<compile_context>
chip_gen: v6e
topology: v6e:2x2x1
jax: 0.10.0
libtpu: 0.0.40
codegen_flags: <defaults>
</compile_context>

<pallas_src>
import jax
import jax.numpy as jnp
from jax.experimental import pallas as pl
from jax.experimental.pallas import tpu as pltpu

VMEM = pl.BlockSpec(memory_space=pltpu.MemorySpace.VMEM)

NB = 3   # number of branches
K = 3    # conv kernel size / pool window


def _pool_geom(L):
    """Lengths after (conv k=3 -> pool 3) applied twice."""
    l1 = L - 2            # conv1 output length
    p1 = l1 // 3          # pool1 output length
    l2 = p1 - 2           # conv2 output length
    p2 = l2 // 3          # pool2 output length (= LSTM sequence length T)
    return p1, p2


# ------------------------------ Pallas kernel ------------------------------

def quasi_kernel(x1_ref, x2_ref, x3_ref,
                 w1_ref, s1_ref, t1_ref,
                 w2_ref, s2_ref, t2_ref,
                 wih_ref, whh_ref, bl_ref,
                 h0_ref, c0_ref,
                 fw1_ref, fb1_ref, fw2_ref, fb2_ref, fw3_ref, fb3_ref,
                 out_ref):
    """Whole forward pass: 3x (conv+BN+ReLU -> pool3 -> conv+BN+ReLU -> pool3
    -> LSTM) with interleaved recurrences, then the fused fc head.

    Per-branch parameters are stacked along a leading size-3 axis and indexed
    with static Python ints inside the (static) branch loop.
    """
    x_refs = (x1_ref, x2_ref, x3_ref)
    B, L, Cin = x1_ref.shape
    Lp1, T = _pool_geom(L)
    C1 = w1_ref.shape[2]
    C2 = w2_ref.shape[2]
    G = wih_ref.shape[2]          # 4*H, fused gate width (lane-dense = 128)
    H = G // 4
    n1 = Lp1 * K                  # conv1 rows actually consumed by pool1
    n2 = T * K                    # conv2 rows actually consumed by pool2

    # ---- feed-forward part of every branch (B folded into matmul M) ----
    xg = []                       # per-branch (B, T, 4H) x-gate pre-activations
    for n in range(NB):
        x = x_refs[n][...]                                        # (B, L, Cin)

        # conv1 as ONE im2col matmul: lane-concat the K shifted slices so the
        # contraction depth is K*Cin, then fold B into the row dimension.
        pat1 = jnp.concatenate([x[:, k:k + n1, :] for k in range(K)], axis=-1)
        y1 = jnp.dot(pat1.reshape(B * n1, K * Cin), w1_ref[n],
                     preferred_element_type=jnp.float32)          # (B*n1, C1)
        y1 = jnp.maximum(y1 * s1_ref[n] + t1_ref[n], 0.0)         # BN + ReLU

        # MaxPool1d(3): window max over the second-minor axis, no scratch.
        p1 = jnp.max(y1.reshape(B * Lp1, K, C1), axis=1)          # (B*Lp1, C1)
        p1 = p1.reshape(B, Lp1, C1)

        # conv2, same fused im2col + folded BN + ReLU.
        pat2 = jnp.concatenate([p1[:, k:k + n2, :] for k in range(K)], axis=-1)
        y2 = jnp.dot(pat2.reshape(B * n2, K * C1), w2_ref[n],
                     preferred_element_type=jnp.float32)          # (B*n2, C2)
        y2 = jnp.maximum(y2 * s2_ref[n] + t2_ref[n], 0.0)

        seq = jnp.max(y2.reshape(B * T, K, C2), axis=1)           # (B*T, C2)

        # Hoist the LSTM input-side gate projection (+ b_ih + b_hh) out of
        # the recurrence: one (B*T, C2) @ (C2, 4H) matmul per branch.
        g = jnp.dot(seq, wih_ref[n],
                    preferred_element_type=jnp.float32) + bl_ref[n]
        xg.append(g.reshape(B, T, G))

    # ---- LSTM recurrences, interleaved across the 3 independent branches ---
    # Gate column order matches torch.nn.LSTM: [i | f | g | o].
    whh = [whh_ref[n] for n in range(NB)]
    h = [h0_ref[n] for n in range(NB)]    # (B, H) each
    c = [c0_ref[n] for n in range(NB)]
    for t in range(T):                    # small static T -> unrolled
        # Three independent MXU pushes back-to-back: they pipeline instead of
        # forming three fully serialized latency chains.
        mm = [jnp.dot(h[n], whh[n], preferred_element_type=jnp.float32)
              for n in range(NB)]
        for n in range(NB):
            gates = xg[n][:, t, :] + mm[n]                        # (B, 4H)
            # One full-width sigmoid (single 128-lane vreg push); the
            # g-quarter lanes are discarded, tanh uses the raw g-quarter.
            sig = jax.nn.sigmoid(gates)
            i = sig[:, 0:H]
            f = sig[:, H:2 * H]
            o = sig[:, 3 * H:4 * H]
            gg = jnp.tanh(gates[:, 2 * H:3 * H])
            c[n] = f * c[n] + i * gg
            h[n] = o * jnp.tanh(c[n])
    # h[n] is now lstm_out[:, -1, :] for branch n.

    # ---- fc head, fused: lane-concat features and one (B,3H)@(3H,16) push --
    feat = jnp.concatenate(h, axis=-1)                            # (B, 3H)
    z = jnp.maximum(jnp.dot(feat, fw1_ref[...],
                            preferred_element_type=jnp.float32) + fb1_ref[...],
                    0.0)                                          # Dropout=id
    z = jnp.maximum(jnp.dot(z, fw2_ref[...],
                            preferred_element_type=jnp.float32) + fb2_ref[...],
                    0.0)
    out_ref[...] = (jnp.dot(z, fw3_ref[...],
                            preferred_element_type=jnp.float32) + fb3_ref[...])


# --------------------------------- wrapper ----------------------------------

def quasi_siamese_forward(params, x1, x2, x3):
    # x1: (B, 1, L, C) -> squeeze(1); x2/x3: (B, L, C). Channels-last layout
    # makes the reference's permutes no-ops. Single fused launch, no grid.
    x1 = jnp.squeeze(x1, axis=1)
    B = x1.shape[0]
    num_classes = params["fc_w3"].shape[1]

    args = (x1, x2, x3,
            params["w1"], params["s1"], params["t1"],
            params["w2"], params["s2"], params["t2"],
            params["wih"], params["whh"], params["bl"],
            params["h0"], params["c0"],
            params["fc_w1"], params["fc_b1"],
            params["fc_w2"], params["fc_b2"],
            params["fc_w3"], params["fc_b3"])

    return pl.pallas_call(
        quasi_kernel,
        out_shape=jax.ShapeDtypeStruct((B, num_classes), jnp.float32),
        in_specs=[VMEM] * len(args),
        out_specs=VMEM,
    )(*args)


# ------------------------------ parameter init -------------------------------

def init_params(key, in_size, hidden, num_classes, batch, D=1, n_branch=NB):
    """Per-branch parameters stacked along a leading branch axis.

    Conv weights are stored pre-reshaped to (branch, K*Cin, Cout) with row
    order (k, cin), matching the kernel's lane-concatenated im2col patches.
    Branches must share Cin (true for the example: 4/4/4)."""
    keys = iter(jax.random.split(key, 64))

    def nrm(shape, s=0.1):
        return jax.random.normal(next(keys), shape, dtype=jnp.float32) * s

    def conv_bn(cin, cout):
        # torch Conv1d weight is (Cout, Cin, K); flattened here as (K*Cin, Cout)
        # in (k, cin) row order. Eval-mode BN (+ conv bias) folded to scale/shift.
        w = nrm((n_branch, K, cin, cout)).reshape(n_branch, K * cin, cout)
        b = nrm((n_branch, 1, cout))
        gamma = 1.0 + nrm((n_branch, 1, cout))
        beta = nrm((n_branch, 1, cout))
        mean = nrm((n_branch, 1, cout))
        var = 1.0 + jnp.abs(nrm((n_branch, 1, cout)))
        scale = gamma / jnp.sqrt(var + 1e-5)
        shift = (b - mean) * scale + beta
        return w, scale, shift

    w1, s1, t1 = conv_bn(in_size, 16)
    w2, s2, t2 = conv_bn(16, 32)
    return dict(
        w1=w1, s1=s1, t1=t1, w2=w2, s2=s2, t2=t2,
        # fused LSTM gate weights, column order [i | f | g | o]; bl = b_ih + b_hh
        wih=nrm((n_branch, 32, 4 * hidden)),
        whh=nrm((n_branch, hidden, 4 * hidden)),
        bl=nrm((n_branch, 1, 4 * hidden)),
        # TODO(synk): reference draws fresh torch.randn h0/c0 (cast to double)
        # every forward; fixed float32 draws stand in.
        h0=nrm((n_branch, batch, hidden), 1.0),
        c0=nrm((n_branch, batch, hidden), 1.0),
        # fc head; W1 row order must follow torch.cat([f1, f2, f3], -1).
        fc_w1=nrm((n_branch * D * hidden, 16)),
        fc_b1=nrm((1, 16)),
        fc_w2=nrm((16, 8)), fc_b2=nrm((1, 8)),
        fc_w3=nrm((8, num_classes)), fc_b3=nrm((1, num_classes)),
    )


# ----------------------------------- main ------------------------------------

if __name__ == "__main__":
    B, L = 2, 64
    in_size = 4                   # input1_size = input2_size = input3_size
    hidden_size1, num_layer, num_classes, D = 32, 1, 3, 1

    key = jax.random.PRNGKey(0)
    kp, k1, k2, k3 = jax.random.split(key, 4)
    params = init_params(kp, in_size, hidden_size1, num_classes, B, D)

    x1 = jax.random.normal(k1, (B, 1, L, in_size), dtype=jnp.float32)
    x2 = jax.random.normal(k2, (B, L, in_size), dtype=jnp.float32)
    x3 = jax.random.normal(k3, (B, L, in_size), dtype=jnp.float32)

    out = jax.jit(quasi_siamese_forward)(params, x1, x2, x3)
    out = jax.block_until_ready(out)
    assert out.shape == (B, num_classes)
    assert bool(jnp.all(jnp.isfinite(out)))
    print("KERNEL_OK")
</pallas_src>

<mosaic_0001>
module attributes {stable_mosaic.version = 11 : i64} {
  func.func @quasi_kernel(%arg0: memref<2x64x4xf32, #tpu.memory_space<vmem>>, %arg1: memref<2x64x4xf32, #tpu.memory_space<vmem>>, %arg2: memref<2x64x4xf32, #tpu.memory_space<vmem>>, %arg3: memref<3x12x16xf32, #tpu.memory_space<vmem>>, %arg4: memref<3x1x16xf32, #tpu.memory_space<vmem>>, %arg5: memref<3x1x16xf32, #tpu.memory_space<vmem>>, %arg6: memref<3x48x32xf32, #tpu.memory_space<vmem>>, %arg7: memref<3x1x32xf32, #tpu.memory_space<vmem>>, %arg8: memref<3x1x32xf32, #tpu.memory_space<vmem>>, %arg9: memref<3x32x128xf32, #tpu.memory_space<vmem>>, %arg10: memref<3x32x128xf32, #tpu.memory_space<vmem>>, %arg11: memref<3x1x128xf32, #tpu.memory_space<vmem>>, %arg12: memref<3x2x32xf32, #tpu.memory_space<vmem>>, %arg13: memref<3x2x32xf32, #tpu.memory_space<vmem>>, %arg14: memref<96x16xf32, #tpu.memory_space<vmem>>, %arg15: memref<1x16xf32, #tpu.memory_space<vmem>>, %arg16: memref<16x8xf32, #tpu.memory_space<vmem>>, %arg17: memref<1x8xf32, #tpu.memory_space<vmem>>, %arg18: memref<8x3xf32, #tpu.memory_space<vmem>>, %arg19: memref<1x3xf32, #tpu.memory_space<vmem>>, %arg20: memref<2x3xf32, #tpu.memory_space<vmem>>) attributes {dimension_semantics = [], scalar_prefetch = 0 : i64, scratch_operands = 0 : i64, tpu.core_type = #tpu.core_type<tc>} {
    %c0 = arith.constant 0 : index
    %c0_0 = arith.constant 0 : index
    %c0_1 = arith.constant 0 : index
    %0 = vector.load %arg0[%c0, %c0_0, %c0_1] : memref<2x64x4xf32, #tpu.memory_space<vmem>>, vector<2x64x4xf32>
    %1 = vector.extract_strided_slice %0 {offsets = [0, 0, 0], sizes = [2, 60, 4], strides = [1, 1, 1]} : vector<2x64x4xf32> to vector<2x60x4xf32>
    %2 = vector.extract_strided_slice %0 {offsets = [0, 1, 0], sizes = [2, 60, 4], strides = [1, 1, 1]} : vector<2x64x4xf32> to vector<2x60x4xf32>
    %3 = vector.extract_strided_slice %0 {offsets = [0, 2, 0], sizes = [2, 60, 4], strides = [1, 1, 1]} : vector<2x64x4xf32> to vector<2x60x4xf32>
    %4 = tpu.concatenate %1, %2, %3 in 2 : vector<2x60x4xf32>, vector<2x60x4xf32>, vector<2x60x4xf32> -> vector<2x60x12xf32>
    %5 = vector.shape_cast %4 : vector<2x60x12xf32> to vector<120x12xf32>
    %c0_2 = arith.constant 0 : index
    %c0_3 = arith.constant 0 : index
    %c0_4 = arith.constant 0 : index
    %6 = vector.load %arg3[%c0_2, %c0_3, %c0_4] : memref<3x12x16xf32, #tpu.memory_space<vmem>>, vector<1x12x16xf32>
    %7 = vector.shape_cast %6 : vector<1x12x16xf32> to vector<12x16xf32>
    %cst = arith.constant dense<0.000000e+00> : vector<120x16xf32>
    %8 = tpu.matmul %5, %7, %cst {dimension_numbers = #tpu.dot_dimension_numbers<[1], [0], [0], [1], [0, 0, 1, 1], [], []>} : vector<120x12xf32>, vector<12x16xf32>, vector<120x16xf32> -> vector<120x16xf32>
    %c0_5 = arith.constant 0 : index
    %c0_6 = arith.constant 0 : index
    %c0_7 = arith.constant 0 : index
    %9 = vector.load %arg4[%c0_5, %c0_6, %c0_7] : memref<3x1x16xf32, #tpu.memory_space<vmem>>, vector<1x1x16xf32>
    %10 = vector.shape_cast %9 : vector<1x1x16xf32> to vector<1x16xf32>
    %11 = vector.broadcast %10 : vector<1x16xf32> to vector<120x16xf32>
    %12 = arith.mulf %8, %11 : vector<120x16xf32>
    %c0_8 = arith.constant 0 : index
    %c0_9 = arith.constant 0 : index
    %c0_10 = arith.constant 0 : index
    %13 = vector.load %arg5[%c0_8, %c0_9, %c0_10] : memref<3x1x16xf32, #tpu.memory_space<vmem>>, vector<1x1x16xf32>
    %14 = vector.shape_cast %13 : vector<1x1x16xf32> to vector<1x16xf32>
    %15 = vector.broadcast %14 : vector<1x16xf32> to vector<120x16xf32>
    %16 = arith.addf %12, %15 : vector<120x16xf32>
    %cst_11 = arith.constant 0.000000e+00 : f32
    %17 = vector.broadcast %cst_11 : f32 to vector<120x16xf32>
    %18 = arith.maximumf %16, %17 : vector<120x16xf32>
    %19 = vector.shape_cast %18 : vector<120x16xf32> to vector<40x3x16xf32>
    %cst_12 = arith.constant dense<0xFF800000> : vector<40x16xf32>
    %20 = vector.multi_reduction <maximumf>, %19, %cst_12 [1] : vector<40x3x16xf32> to vector<40x16xf32>
    %21 = vector.shape_cast %20 : vector<40x16xf32> to vector<2x20x16xf32>
    %22 = vector.extract_strided_slice %21 {offsets = [0, 0, 0], sizes = [2, 18, 16], strides = [1, 1, 1]} : vector<2x20x16xf32> to vector<2x18x16xf32>
    %23 = vector.extract_strided_slice %21 {offsets = [0, 1, 0], sizes = [2, 18, 16], strides = [1, 1, 1]} : vector<2x20x16xf32> to vector<2x18x16xf32>
    %24 = vector.extract_strided_slice %21 {offsets = [0, 2, 0], sizes = [2, 18, 16], strides = [1, 1, 1]} : vector<2x20x16xf32> to vector<2x18x16xf32>
    %25 = tpu.concatenate %22, %23, %24 in 2 : vector<2x18x16xf32>, vector<2x18x16xf32>, vector<2x18x16xf32> -> vector<2x18x48xf32>
    %26 = vector.shape_cast %25 : vector<2x18x48xf32> to vector<36x48xf32>
    %c0_13 = arith.constant 0 : index
    %c0_14 = arith.constant 0 : index
    %c0_15 = arith.constant 0 : index
    %27 = vector.load %arg6[%c0_13, %c0_14, %c0_15] : memref<3x48x32xf32, #tpu.memory_space<vmem>>, vector<1x48x32xf32>
    %28 = vector.shape_cast %27 : vector<1x48x32xf32> to vector<48x32xf32>
    %cst_16 = arith.constant dense<0.000000e+00> : vector<36x32xf32>
    %29 = tpu.matmul %26, %28, %cst_16 {dimension_numbers = #tpu.dot_dimension_numbers<[1], [0], [0], [1], [0, 0, 1, 1], [], []>} : vector<36x48xf32>, vector<48x32xf32>, vector<36x32xf32> -> vector<36x32xf32>
    %c0_17 = arith.constant 0 : index
    %c0_18 = arith.constant 0 : index
    %c0_19 = arith.constant 0 : index
    %30 = vector.load %arg7[%c0_17, %c0_18, %c0_19] : memref<3x1x32xf32, #tpu.memory_space<vmem>>, vector<1x1x32xf32>
    %31 = vector.shape_cast %30 : vector<1x1x32xf32> to vector<1x32xf32>
    %32 = vector.broadcast %31 : vector<1x32xf32> to vector<36x32xf32>
    %33 = arith.mulf %29, %32 : vector<36x32xf32>
    %c0_20 = arith.constant 0 : index
    %c0_21 = arith.constant 0 : index
    %c0_22 = arith.constant 0 : index
    %34 = vector.load %arg8[%c0_20, %c0_21, %c0_22] : memref<3x1x32xf32, #tpu.memory_space<vmem>>, vector<1x1x32xf32>
    %35 = vector.shape_cast %34 : vector<1x1x32xf32> to vector<1x32xf32>
    %36 = vector.broadcast %35 : vector<1x32xf32> to vector<36x32xf32>
    %37 = arith.addf %33, %36 : vector<36x32xf32>
    %cst_23 = arith.constant 0.000000e+00 : f32
    %38 = vector.broadcast %cst_23 : f32 to vector<36x32xf32>
    %39 = arith.maximumf %37, %38 : vector<36x32xf32>
    %40 = vector.shape_cast %39 : vector<36x32xf32> to vector<12x3x32xf32>
    %cst_24 = arith.constant dense<0xFF800000> : vector<12x32xf32>
    %41 = vector.multi_reduction <maximumf>, %40, %cst_24 [1] : vector<12x3x32xf32> to vector<12x32xf32>
    %c0_25 = arith.constant 0 : index
    %c0_26 = arith.constant 0 : index
    %c0_27 = arith.constant 0 : index
    %42 = vector.load %arg9[%c0_25, %c0_26, %c0_27] : memref<3x32x128xf32, #tpu.memory_space<vmem>>, vector<1x32x128xf32>
    %43 = vector.shape_cast %42 : vector<1x32x128xf32> to vector<32x128xf32>
    %cst_28 = arith.constant dense<0.000000e+00> : vector<12x128xf32>
    %44 = tpu.matmul %41, %43, %cst_28 {dimension_numbers = #tpu.dot_dimension_numbers<[1], [0], [0], [1], [0, 0, 1, 1], [], []>} : vector<12x32xf32>, vector<32x128xf32>, vector<12x128xf32> -> vector<12x128xf32>
    %c0_29 = arith.constant 0 : index
    %c0_30 = arith.constant 0 : index
    %c0_31 = arith.constant 0 : index
    %45 = vector.load %arg11[%c0_29, %c0_30, %c0_31] : memref<3x1x128xf32, #tpu.memory_space<vmem>>, vector<1x1x128xf32>
    %46 = vector.shape_cast %45 : vector<1x1x128xf32> to vector<1x128xf32>
    %47 = vector.broadcast %46 : vector<1x128xf32> to vector<12x128xf32>
    %48 = arith.addf %44, %47 : vector<12x128xf32>
    %49 = vector.shape_cast %48 : vector<12x128xf32> to vector<2x6x128xf32>
    %c0_32 = arith.constant 0 : index
    %c0_33 = arith.constant 0 : index
    %c0_34 = arith.constant 0 : index
    %50 = vector.load %arg1[%c0_32, %c0_33, %c0_34] : memref<2x64x4xf32, #tpu.memory_space<vmem>>, vector<2x64x4xf32>
    %51 = vector.extract_strided_slice %50 {offsets = [0, 0, 0], sizes = [2, 60, 4], strides = [1, 1, 1]} : vector<2x64x4xf32> to vector<2x60x4xf32>
    %52 = vector.extract_strided_slice %50 {offsets = [0, 1, 0], sizes = [2, 60, 4], strides = [1, 1, 1]} : vector<2x64x4xf32> to vector<2x60x4xf32>
    %53 = vector.extract_strided_slice %50 {offsets = [0, 2, 0], sizes = [2, 60, 4], strides = [1, 1, 1]} : vector<2x64x4xf32> to vector<2x60x4xf32>
    %54 = tpu.concatenate %51, %52, %53 in 2 : vector<2x60x4xf32>, vector<2x60x4xf32>, vector<2x60x4xf32> -> vector<2x60x12xf32>
    %55 = vector.shape_cast %54 : vector<2x60x12xf32> to vector<120x12xf32>
    %c1 = arith.constant 1 : index
    %c0_35 = arith.constant 0 : index
    %c0_36 = arith.constant 0 : index
    %56 = vector.load %arg3[%c1, %c0_35, %c0_36] : memref<3x12x16xf32, #tpu.memory_space<vmem>>, vector<1x12x16xf32>
    %57 = vector.shape_cast %56 : vector<1x12x16xf32> to vector<12x16xf32>
    %cst_37 = arith.constant dense<0.000000e+00> : vector<120x16xf32>
    %58 = tpu.matmul %55, %57, %cst_37 {dimension_numbers = #tpu.dot_dimension_numbers<[1], [0], [0], [1], [0, 0, 1, 1], [], []>} : vector<120x12xf32>, vector<12x16xf32>, vector<120x16xf32> -> vector<120x16xf32>
    %c1_38 = arith.constant 1 : index
    %c0_39 = arith.constant 0 : index
    %c0_40 = arith.constant 0 : index
    %59 = vector.load %arg4[%c1_38, %c0_39, %c0_40] : memref<3x1x16xf32, #tpu.memory_space<vmem>>, vector<1x1x16xf32>
    %60 = vector.shape_cast %59 : vector<1x1x16xf32> to vector<1x16xf32>
    %61 = vector.broadcast %60 : vector<1x16xf32> to vector<120x16xf32>
    %62 = arith.mulf %58, %61 : vector<120x16xf32>
    %c1_41 = arith.constant 1 : index
    %c0_42 = arith.constant 0 : index
    %c0_43 = arith.constant 0 : index
    %63 = vector.load %arg5[%c1_41, %c0_42, %c0_43] : memref<3x1x16xf32, #tpu.memory_space<vmem>>, vector<1x1x16xf32>
    %64 = vector.shape_cast %63 : vector<1x1x16xf32> to vector<1x16xf32>
    %65 = vector.broadcast %64 : vector<1x16xf32> to vector<120x16xf32>
    %66 = arith.addf %62, %65 : vector<120x16xf32>
    %cst_44 = arith.constant 0.000000e+00 : f32
    %67 = vector.broadcast %cst_44 : f32 to vector<120x16xf32>
    %68 = arith.maximumf %66, %67 : vector<120x16xf32>
    %69 = vector.shape_cast %68 : vector<120x16xf32> to vector<40x3x16xf32>
    %cst_45 = arith.constant dense<0xFF800000> : vector<40x16xf32>
    %70 = vector.multi_reduction <maximumf>, %69, %cst_45 [1] : vector<40x3x16xf32> to vector<40x16xf32>
    %71 = vector.shape_cast %70 : vector<40x16xf32> to vector<2x20x16xf32>
    %72 = vector.extract_strided_slice %71 {offsets = [0, 0, 0], sizes = [2, 18, 16], strides = [1, 1, 1]} : vector<2x20x16xf32> to vector<2x18x16xf32>
    %73 = vector.extract_strided_slice %71 {offsets = [0, 1, 0], sizes = [2, 18, 16], strides = [1, 1, 1]} : vector<2x20x16xf32> to vector<2x18x16xf32>
    %74 = vector.extract_strided_slice %71 {offsets = [0, 2, 0], sizes = [2, 18, 16], strides = [1, 1, 1]} : vector<2x20x16xf32> to vector<2x18x16xf32>
    %75 = tpu.concatenate %72, %73, %74 in 2 : vector<2x18x16xf32>, vector<2x18x16xf32>, vector<2x18x16xf32> -> vector<2x18x48xf32>
    %76 = vector.shape_cast %75 : vector<2x18x48xf32> to vector<36x48xf32>
    %c1_46 = arith.constant 1 : index
    %c0_47 = arith.constant 0 : index
    %c0_48 = arith.constant 0 : index
    %77 = vector.load %arg6[%c1_46, %c0_47, %c0_48] : memref<3x48x32xf32, #tpu.memory_space<vmem>>, vector<1x48x32xf32>
    %78 = vector.shape_cast %77 : vector<1x48x32xf32> to vector<48x32xf32>
    %cst_49 = arith.constant dense<0.000000e+00> : vector<36x32xf32>
    %79 = tpu.matmul %76, %78, %cst_49 {dimension_numbers = #tpu.dot_dimension_numbers<[1], [0], [0], [1], [0, 0, 1, 1], [], []>} : vector<36x48xf32>, vector<48x32xf32>, vector<36x32xf32> -> vector<36x32xf32>
    %c1_50 = arith.constant 1 : index
    %c0_51 = arith.constant 0 : index
    %c0_52 = arith.constant 0 : index
    %80 = vector.load %arg7[%c1_50, %c0_51, %c0_52] : memref<3x1x32xf32, #tpu.memory_space<vmem>>, vector<1x1x32xf32>
    %81 = vector.shape_cast %80 : vector<1x1x32xf32> to vector<1x32xf32>
    %82 = vector.broadcast %81 : vector<1x32xf32> to vector<36x32xf32>
    %83 = arith.mulf %79, %82 : vector<36x32xf32>
    %c1_53 = arith.constant 1 : index
    %c0_54 = arith.constant 0 : index
    %c0_55 = arith.constant 0 : index
    %84 = vector.load %arg8[%c1_53, %c0_54, %c0_55] : memref<3x1x32xf32, #tpu.memory_space<vmem>>, vector<1x1x32xf32>
    %85 = vector.shape_cast %84 : vector<1x1x32xf32> to vector<1x32xf32>
    %86 = vector.broadcast %85 : vector<1x32xf32> to vector<36x32xf32>
    %87 = arith.addf %83, %86 : vector<36x32xf32>
    %cst_56 = arith.constant 0.000000e+00 : f32
    %88 = vector.broadcast %cst_56 : f32 to vector<36x32xf32>
    %89 = arith.maximumf %87, %88 : vector<36x32xf32>
    %90 = vector.shape_cast %89 : vector<36x32xf32> to vector<12x3x32xf32>
    %cst_57 = arith.constant dense<0xFF800000> : vector<12x32xf32>
    %91 = vector.multi_reduction <maximumf>, %90, %cst_57 [1] : vector<12x3x32xf32> to vector<12x32xf32>
    %c1_58 = arith.constant 1 : index
    %c0_59 = arith.constant 0 : index
    %c0_60 = arith.constant 0 : index
    %92 = vector.load %arg9[%c1_58, %c0_59, %c0_60] : memref<3x32x128xf32, #tpu.memory_space<vmem>>, vector<1x32x128xf32>
    %93 = vector.shape_cast %92 : vector<1x32x128xf32> to vector<32x128xf32>
    %cst_61 = arith.constant dense<0.000000e+00> : vector<12x128xf32>
    %94 = tpu.matmul %91, %93, %cst_61 {dimension_numbers = #tpu.dot_dimension_numbers<[1], [0], [0], [1], [0, 0, 1, 1], [], []>} : vector<12x32xf32>, vector<32x128xf32>, vector<12x128xf32> -> vector<12x128xf32>
    %c1_62 = arith.constant 1 : index
    %c0_63 = arith.constant 0 : index
    %c0_64 = arith.constant 0 : index
    %95 = vector.load %arg11[%c1_62, %c0_63, %c0_64] : memref<3x1x128xf32, #tpu.memory_space<vmem>>, vector<1x1x128xf32>
    %96 = vector.shape_cast %95 : vector<1x1x128xf32> to vector<1x128xf32>
    %97 = vector.broadcast %96 : vector<1x128xf32> to vector<12x128xf32>
    %98 = arith.addf %94, %97 : vector<12x128xf32>
    %99 = vector.shape_cast %98 : vector<12x128xf32> to vector<2x6x128xf32>
    %c0_65 = arith.constant 0 : index
    %c0_66 = arith.constant 0 : index
    %c0_67 = arith.constant 0 : index
    %100 = vector.load %arg2[%c0_65, %c0_66, %c0_67] : memref<2x64x4xf32, #tpu.memory_space<vmem>>, vector<2x64x4xf32>
    %101 = vector.extract_strided_slice %100 {offsets = [0, 0, 0], sizes = [2, 60, 4], strides = [1, 1, 1]} : vector<2x64x4xf32> to vector<2x60x4xf32>
    %102 = vector.extract_strided_slice %100 {offsets = [0, 1, 0], sizes = [2, 60, 4], strides = [1, 1, 1]} : vector<2x64x4xf32> to vector<2x60x4xf32>
    %103 = vector.extract_strided_slice %100 {offsets = [0, 2, 0], sizes = [2, 60, 4], strides = [1, 1, 1]} : vector<2x64x4xf32> to vector<2x60x4xf32>
    %104 = tpu.concatenate %101, %102, %103 in 2 : vector<2x60x4xf32>, vector<2x60x4xf32>, vector<2x60x4xf32> -> vector<2x60x12xf32>
    %105 = vector.shape_cast %104 : vector<2x60x12xf32> to vector<120x12xf32>
    %c2 = arith.constant 2 : index
    %c0_68 = arith.constant 0 : index
    %c0_69 = arith.constant 0 : index
    %106 = vector.load %arg3[%c2, %c0_68, %c0_69] : memref<3x12x16xf32, #tpu.memory_space<vmem>>, vector<1x12x16xf32>
    %107 = vector.shape_cast %106 : vector<1x12x16xf32> to vector<12x16xf32>
    %cst_70 = arith.constant dense<0.000000e+00> : vector<120x16xf32>
    %108 = tpu.matmul %105, %107, %cst_70 {dimension_numbers = #tpu.dot_dimension_numbers<[1], [0], [0], [1], [0, 0, 1, 1], [], []>} : vector<120x12xf32>, vector<12x16xf32>, vector<120x16xf32> -> vector<120x16xf32>
    %c2_71 = arith.constant 2 : index
    %c0_72 = arith.constant 0 : index
    %c0_73 = arith.constant 0 : index
    %109 = vector.load %arg4[%c2_71, %c0_72, %c0_73] : memref<3x1x16xf32, #tpu.memory_space<vmem>>, vector<1x1x16xf32>
    %110 = vector.shape_cast %109 : vector<1x1x16xf32> to vector<1x16xf32>
    %111 = vector.broadcast %110 : vector<1x16xf32> to vector<120x16xf32>
    %112 = arith.mulf %108, %111 : vector<120x16xf32>
    %c2_74 = arith.constant 2 : index
    %c0_75 = arith.constant 0 : index
    %c0_76 = arith.constant 0 : index
    %113 = vector.load %arg5[%c2_74, %c0_75, %c0_76] : memref<3x1x16xf32, #tpu.memory_space<vmem>>, vector<1x1x16xf32>
    %114 = vector.shape_cast %113 : vector<1x1x16xf32> to vector<1x16xf32>
    %115 = vector.broadcast %114 : vector<1x16xf32> to vector<120x16xf32>
    %116 = arith.addf %112, %115 : vector<120x16xf32>
    %cst_77 = arith.constant 0.000000e+00 : f32
    %117 = vector.broadcast %cst_77 : f32 to vector<120x16xf32>
    %118 = arith.maximumf %116, %117 : vector<120x16xf32>
    %119 = vector.shape_cast %118 : vector<120x16xf32> to vector<40x3x16xf32>
    %cst_78 = arith.constant dense<0xFF800000> : vector<40x16xf32>
    %120 = vector.multi_reduction <maximumf>, %119, %cst_78 [1] : vector<40x3x16xf32> to vector<40x16xf32>
    %121 = vector.shape_cast %120 : vector<40x16xf32> to vector<2x20x16xf32>
    %122 = vector.extract_strided_slice %121 {offsets = [0, 0, 0], sizes = [2, 18, 16], strides = [1, 1, 1]} : vector<2x20x16xf32> to vector<2x18x16xf32>
    %123 = vector.extract_strided_slice %121 {offsets = [0, 1, 0], sizes = [2, 18, 16], strides = [1, 1, 1]} : vector<2x20x16xf32> to vector<2x18x16xf32>
    %124 = vector.extract_strided_slice %121 {offsets = [0, 2, 0], sizes = [2, 18, 16], strides = [1, 1, 1]} : vector<2x20x16xf32> to vector<2x18x16xf32>
    %125 = tpu.concatenate %122, %123, %124 in 2 : vector<2x18x16xf32>, vector<2x18x16xf32>, vector<2x18x16xf32> -> vector<2x18x48xf32>
    %126 = vector.shape_cast %125 : vector<2x18x48xf32> to vector<36x48xf32>
    %c2_79 = arith.constant 2 : index
    %c0_80 = arith.constant 0 : index
    %c0_81 = arith.constant 0 : index
    %127 = vector.load %arg6[%c2_79, %c0_80, %c0_81] : memref<3x48x32xf32, #tpu.memory_space<vmem>>, vector<1x48x32xf32>
    %128 = vector.shape_cast %127 : vector<1x48x32xf32> to vector<48x32xf32>
    %cst_82 = arith.constant dense<0.000000e+00> : vector<36x32xf32>
    %129 = tpu.matmul %126, %128, %cst_82 {dimension_numbers = #tpu.dot_dimension_numbers<[1], [0], [0], [1], [0, 0, 1, 1], [], []>} : vector<36x48xf32>, vector<48x32xf32>, vector<36x32xf32> -> vector<36x32xf32>
    %c2_83 = arith.constant 2 : index
    %c0_84 = arith.constant 0 : index
    %c0_85 = arith.constant 0 : index
    %130 = vector.load %arg7[%c2_83, %c0_84, %c0_85] : memref<3x1x32xf32, #tpu.memory_space<vmem>>, vector<1x1x32xf32>
    %131 = vector.shape_cast %130 : vector<1x1x32xf32> to vector<1x32xf32>
    %132 = vector.broadcast %131 : vector<1x32xf32> to vector<36x32xf32>
    %133 = arith.mulf %129, %132 : vector<36x32xf32>
    %c2_86 = arith.constant 2 : index
    %c0_87 = arith.constant 0 : index
    %c0_88 = arith.constant 0 : index
    %134 = vector.load %arg8[%c2_86, %c0_87, %c0_88] : memref<3x1x32xf32, #tpu.memory_space<vmem>>, vector<1x1x32xf32>
    %135 = vector.shape_cast %134 : vector<1x1x32xf32> to vector<1x32xf32>
    %136 = vector.broadcast %135 : vector<1x32xf32> to vector<36x32xf32>
    %137 = arith.addf %133, %136 : vector<36x32xf32>
    %cst_89 = arith.constant 0.000000e+00 : f32
    %138 = vector.broadcast %cst_89 : f32 to vector<36x32xf32>
    %139 = arith.maximumf %137, %138 : vector<36x32xf32>
    %140 = vector.shape_cast %139 : vector<36x32xf32> to vector<12x3x32xf32>
    %cst_90 = arith.constant dense<0xFF800000> : vector<12x32xf32>
    %141 = vector.multi_reduction <maximumf>, %140, %cst_90 [1] : vector<12x3x32xf32> to vector<12x32xf32>
    %c2_91 = arith.constant 2 : index
    %c0_92 = arith.constant 0 : index
    %c0_93 = arith.constant 0 : index
    %142 = vector.load %arg9[%c2_91, %c0_92, %c0_93] : memref<3x32x128xf32, #tpu.memory_space<vmem>>, vector<1x32x128xf32>
    %143 = vector.shape_cast %142 : vector<1x32x128xf32> to vector<32x128xf32>
    %cst_94 = arith.constant dense<0.000000e+00> : vector<12x128xf32>
    %144 = tpu.matmul %141, %143, %cst_94 {dimension_numbers = #tpu.dot_dimension_numbers<[1], [0], [0], [1], [0, 0, 1, 1], [], []>} : vector<12x32xf32>, vector<32x128xf32>, vector<12x128xf32> -> vector<12x128xf32>
    %c2_95 = arith.constant 2 : index
    %c0_96 = arith.constant 0 : index
    %c0_97 = arith.constant 0 : index
    %145 = vector.load %arg11[%c2_95, %c0_96, %c0_97] : memref<3x1x128xf32, #tpu.memory_space<vmem>>, vector<1x1x128xf32>
    %146 = vector.shape_cast %145 : vector<1x1x128xf32> to vector<1x128xf32>
    %147 = vector.broadcast %146 : vector<1x128xf32> to vector<12x128xf32>
    %148 = arith.addf %144, %147 : vector<12x128xf32>
    %149 = vector.shape_cast %148 : vector<12x128xf32> to vector<2x6x128xf32>
    %c0_98 = arith.constant 0 : index
    %c0_99 = arith.constant 0 : index
    %c0_100 = arith.constant 0 : index
    %150 = vector.load %arg10[%c0_98, %c0_99, %c0_100] : memref<3x32x128xf32, #tpu.memory_space<vmem>>, vector<1x32x128xf32>
    %151 = vector.shape_cast %150 : vector<1x32x128xf32> to vector<32x128xf32>
    %c1_101 = arith.constant 1 : index
    %c0_102 = arith.constant 0 : index
    %c0_103 = arith.constant 0 : index
    %152 = vector.load %arg10[%c1_101, %c0_102, %c0_103] : memref<3x32x128xf32, #tpu.memory_space<vmem>>, vector<1x32x128xf32>
    %153 = vector.shape_cast %152 : vector<1x32x128xf32> to vector<32x128xf32>
    %c2_104 = arith.constant 2 : index
    %c0_105 = arith.constant 0 : index
    %c0_106 = arith.constant 0 : index
    %154 = vector.load %arg10[%c2_104, %c0_105, %c0_106] : memref<3x32x128xf32, #tpu.memory_space<vmem>>, vector<1x32x128xf32>
    %155 = vector.shape_cast %154 : vector<1x32x128xf32> to vector<32x128xf32>
    %c0_107 = arith.constant 0 : index
    %c0_108 = arith.constant 0 : index
    %c0_109 = arith.constant 0 : index
    %156 = vector.load %arg12[%c0_107, %c0_108, %c0_109] : memref<3x2x32xf32, #tpu.memory_space<vmem>>, vector<1x2x32xf32>
    %157 = vector.shape_cast %156 : vector<1x2x32xf32> to vector<2x32xf32>
    %c1_110 = arith.constant 1 : index
    %c0_111 = arith.constant 0 : index
    %c0_112 = arith.constant 0 : index
    %158 = vector.load %arg12[%c1_110, %c0_111, %c0_112] : memref<3x2x32xf32, #tpu.memory_space<vmem>>, vector<1x2x32xf32>
    %159 = vector.shape_cast %158 : vector<1x2x32xf32> to vector<2x32xf32>
    %c2_113 = arith.constant 2 : index
    %c0_114 = arith.constant 0 : index
    %c0_115 = arith.constant 0 : index
    %160 = vector.load %arg12[%c2_113, %c0_114, %c0_115] : memref<3x2x32xf32, #tpu.memory_space<vmem>>, vector<1x2x32xf32>
    %161 = vector.shape_cast %160 : vector<1x2x32xf32> to vector<2x32xf32>
    %c0_116 = arith.constant 0 : index
    %c0_117 = arith.constant 0 : index
    %c0_118 = arith.constant 0 : index
    %162 = vector.load %arg13[%c0_116, %c0_117, %c0_118] : memref<3x2x32xf32, #tpu.memory_space<vmem>>, vector<1x2x32xf32>
    %163 = vector.shape_cast %162 : vector<1x2x32xf32> to vector<2x32xf32>
    %c1_119 = arith.constant 1 : index
    %c0_120 = arith.constant 0 : index
    %c0_121 = arith.constant 0 : index
    %164 = vector.load %arg13[%c1_119, %c0_120, %c0_121] : memref<3x2x32xf32, #tpu.memory_space<vmem>>, vector<1x2x32xf32>
    %165 = vector.shape_cast %164 : vector<1x2x32xf32> to vector<2x32xf32>
    %c2_122 = arith.constant 2 : index
    %c0_123 = arith.constant 0 : index
    %c0_124 = arith.constant 0 : index
    %166 = vector.load %arg13[%c2_122, %c0_123, %c0_124] : memref<3x2x32xf32, #tpu.memory_space<vmem>>, vector<1x2x32xf32>
    %167 = vector.shape_cast %166 : vector<1x2x32xf32> to vector<2x32xf32>
    %cst_125 = arith.constant dense<0.000000e+00> : vector<2x128xf32>
    %168 = tpu.matmul %157, %151, %cst_125 {dimension_numbers = #tpu.dot_dimension_numbers<[1], [0], [0], [1], [0, 0, 1, 1], [], []>} : vector<2x32xf32>, vector<32x128xf32>, vector<2x128xf32> -> vector<2x128xf32>
    %cst_126 = arith.constant dense<0.000000e+00> : vector<2x128xf32>
    %169 = tpu.matmul %159, %153, %cst_126 {dimension_numbers = #tpu.dot_dimension_numbers<[1], [0], [0], [1], [0, 0, 1, 1], [], []>} : vector<2x32xf32>, vector<32x128xf32>, vector<2x128xf32> -> vector<2x128xf32>
    %cst_127 = arith.constant dense<0.000000e+00> : vector<2x128xf32>
    %170 = tpu.matmul %161, %155, %cst_127 {dimension_numbers = #tpu.dot_dimension_numbers<[1], [0], [0], [1], [0, 0, 1, 1], [], []>} : vector<2x32xf32>, vector<32x128xf32>, vector<2x128xf32> -> vector<2x128xf32>
    %171 = vector.extract_strided_slice %49 {offsets = [0, 0, 0], sizes = [2, 1, 128], strides = [1, 1, 1]} : vector<2x6x128xf32> to vector<2x1x128xf32>
    %172 = vector.shape_cast %171 : vector<2x1x128xf32> to vector<2x128xf32>
    %173 = arith.addf %172, %168 : vector<2x128xf32>
    %174 = arith.negf %173 : vector<2x128xf32>
    %175 = math.exp %174 : vector<2x128xf32>
    %cst_128 = arith.constant 1.000000e+00 : f32
    %176 = vector.broadcast %cst_128 : f32 to vector<2x128xf32>
    %177 = arith.addf %176, %175 : vector<2x128xf32>
    %178 = arith.divf %176, %177 : vector<2x128xf32>
    %179 = vector.extract_strided_slice %178 {offsets = [0, 0], sizes = [2, 32], strides = [1, 1]} : vector<2x128xf32> to vector<2x32xf32>
    %180 = vector.extract_strided_slice %178 {offsets = [0, 32], sizes = [2, 32], strides = [1, 1]} : vector<2x128xf32> to vector<2x32xf32>
    %181 = vector.extract_strided_slice %178 {offsets = [0, 96], sizes = [2, 32], strides = [1, 1]} : vector<2x128xf32> to vector<2x32xf32>
    %182 = vector.extract_strided_slice %173 {offsets = [0, 64], sizes = [2, 32], strides = [1, 1]} : vector<2x128xf32> to vector<2x32xf32>
    %183 = math.tanh %182 : vector<2x32xf32>
    %184 = arith.mulf %180, %163 : vector<2x32xf32>
    %185 = arith.mulf %179, %183 : vector<2x32xf32>
    %186 = arith.addf %184, %185 : vector<2x32xf32>
    %187 = math.tanh %186 : vector<2x32xf32>
    %188 = arith.mulf %181, %187 : vector<2x32xf32>
    %189 = vector.extract_strided_slice %99 {offsets = [0, 0, 0], sizes = [2, 1, 128], strides = [1, 1, 1]} : vector<2x6x128xf32> to vector<2x1x128xf32>
    %190 = vector.shape_cast %189 : vector<2x1x128xf32> to vector<2x128xf32>
    %191 = arith.addf %190, %169 : vector<2x128xf32>
    %192 = arith.negf %191 : vector<2x128xf32>
    %193 = math.exp %192 : vector<2x128xf32>
    %cst_129 = arith.constant 1.000000e+00 : f32
    %194 = vector.broadcast %cst_129 : f32 to vector<2x128xf32>
    %195 = arith.addf %194, %193 : vector<2x128xf32>
    %196 = arith.divf %194, %195 : vector<2x128xf32>
    %197 = vector.extract_strided_slice %196 {offsets = [0, 0], sizes = [2, 32], strides = [1, 1]} : vector<2x128xf32> to vector<2x32xf32>
    %198 = vector.extract_strided_slice %196 {offsets = [0, 32], sizes = [2, 32], strides = [1, 1]} : vector<2x128xf32> to vector<2x32xf32>
    %199 = vector.extract_strided_slice %196 {offsets = [0, 96], sizes = [2, 32], strides = [1, 1]} : vector<2x128xf32> to vector<2x32xf32>
    %200 = vector.extract_strided_slice %191 {offsets = [0, 64], sizes = [2, 32], strides = [1, 1]} : vector<2x128xf32> to vector<2x32xf32>
    %201 = math.tanh %200 : vector<2x32xf32>
    %202 = arith.mulf %198, %165 : vector<2x32xf32>
    %203 = arith.mulf %197, %201 : vector<2x32xf32>
    %204 = arith.addf %202, %203 : vector<2x32xf32>
    %205 = math.tanh %204 : vector<2x32xf32>
    %206 = arith.mulf %199, %205 : vector<2x32xf32>
    %207 = vector.extract_strided_slice %149 {offsets = [0, 0, 0], sizes = [2, 1, 128], strides = [1, 1, 1]} : vector<2x6x128xf32> to vector<2x1x128xf32>
    %208 = vector.shape_cast %207 : vector<2x1x128xf32> to vector<2x128xf32>
    %209 = arith.addf %208, %170 : vector<2x128xf32>
    %210 = arith.negf %209 : vector<2x128xf32>
    %211 = math.exp %210 : vector<2x128xf32>
    %cst_130 = arith.constant 1.000000e+00 : f32
    %212 = vector.broadcast %cst_130 : f32 to vector<2x128xf32>
    %213 = arith.addf %212, %211 : vector<2x128xf32>
    %214 = arith.divf %212, %213 : vector<2x128xf32>
    %215 = vector.extract_strided_slice %214 {offsets = [0, 0], sizes = [2, 32], strides = [1, 1]} : vector<2x128xf32> to vector<2x32xf32>
    %216 = vector.extract_strided_slice %214 {offsets = [0, 32], sizes = [2, 32], strides = [1, 1]} : vector<2x128xf32> to vector<2x32xf32>
    %217 = vector.extract_strided_slice %214 {offsets = [0, 96], sizes = [2, 32], strides = [1, 1]} : vector<2x128xf32> to vector<2x32xf32>
    %218 = vector.extract_strided_slice %209 {offsets = [0, 64], sizes = [2, 32], strides = [1, 1]} : vector<2x128xf32> to vector<2x32xf32>
    %219 = math.tanh %218 : vector<2x32xf32>
    %220 = arith.mulf %216, %167 : vector<2x32xf32>
    %221 = arith.mulf %215, %219 : vector<2x32xf32>
    %222 = arith.addf %220, %221 : vector<2x32xf32>
    %223 = math.tanh %222 : vector<2x32xf32>
    %224 = arith.mulf %217, %223 : vector<2x32xf32>
    %cst_131 = arith.constant dense<0.000000e+00> : vector<2x128xf32>
    %225 = tpu.matmul %188, %151, %cst_131 {dimension_numbers = #tpu.dot_dimension_numbers<[1], [0], [0], [1], [0, 0, 1, 1], [], []>} : vector<2x32xf32>, vector<32x128xf32>, vector<2x128xf32> -> vector<2x128xf32>
    %cst_132 = arith.constant dense<0.000000e+00> : vector<2x128xf32>
    %226 = tpu.matmul %206, %153, %cst_132 {dimension_numbers = #tpu.dot_dimension_numbers<[1], [0], [0], [1], [0, 0, 1, 1], [], []>} : vector<2x32xf32>, vector<32x128xf32>, vector<2x128xf32> -> vector<2x128xf32>
    %cst_133 = arith.constant dense<0.000000e+00> : vector<2x128xf32>
    %227 = tpu.matmul %224, %155, %cst_133 {dimension_numbers = #tpu.dot_dimension_numbers<[1], [0], [0], [1], [0, 0, 1, 1], [], []>} : vector<2x32xf32>, vector<32x128xf32>, vector<2x128xf32> -> vector<2x128xf32>
    %228 = vector.extract_strided_slice %49 {offsets = [0, 1, 0], sizes = [2, 1, 128], strides = [1, 1, 1]} : vector<2x6x128xf32> to vector<2x1x128xf32>
    %229 = vector.shape_cast %228 : vector<2x1x128xf32> to vector<2x128xf32>
    %230 = arith.addf %229, %225 : vector<2x128xf32>
    %231 = arith.negf %230 : vector<2x128xf32>
    %232 = math.exp %231 : vector<2x128xf32>
    %cst_134 = arith.constant 1.000000e+00 : f32
    %233 = vector.broadcast %cst_134 : f32 to vector<2x128xf32>
    %234 = arith.addf %233, %232 : vector<2x128xf32>
    %235 = arith.divf %233, %234 : vector<2x128xf32>
    %236 = vector.extract_strided_slice %235 {offsets = [0, 0], sizes = [2, 32], strides = [1, 1]} : vector<2x128xf32> to vector<2x32xf32>
    %237 = vector.extract_strided_slice %235 {offsets = [0, 32], sizes = [2, 32], strides = [1, 1]} : vector<2x128xf32> to vector<2x32xf32>
    %238 = vector.extract_strided_slice %235 {offsets = [0, 96], sizes = [2, 32], strides = [1, 1]} : vector<2x128xf32> to vector<2x32xf32>
    %239 = vector.extract_strided_slice %230 {offsets = [0, 64], sizes = [2, 32], strides = [1, 1]} : vector<2x128xf32> to vector<2x32xf32>
    %240 = math.tanh %239 : vector<2x32xf32>
    %241 = arith.mulf %237, %186 : vector<2x32xf32>
    %242 = arith.mulf %236, %240 : vector<2x32xf32>
    %243 = arith.addf %241, %242 : vector<2x32xf32>
    %244 = math.tanh %243 : vector<2x32xf32>
    %245 = arith.mulf %238, %244 : vector<2x32xf32>
    %246 = vector.extract_strided_slice %99 {offsets = [0, 1, 0], sizes = [2, 1, 128], strides = [1, 1, 1]} : vector<2x6x128xf32> to vector<2x1x128xf32>
    %247 = vector.shape_cast %246 : vector<2x1x128xf32> to vector<2x128xf32>
    %248 = arith.addf %247, %226 : vector<2x128xf32>
    %249 = arith.negf %248 : vector<2x128xf32>
    %250 = math.exp %249 : vector<2x128xf32>
    %cst_135 = arith.constant 1.000000e+00 : f32
    %251 = vector.broadcast %cst_135 : f32 to vector<2x128xf32>
    %252 = arith.addf %251, %250 : vector<2x128xf32>
    %253 = arith.divf %251, %252 : vector<2x128xf32>
    %254 = vector.extract_strided_slice %253 {offsets = [0, 0], sizes = [2, 32], strides = [1, 1]} : vector<2x128xf32> to vector<2x32xf32>
    %255 = vector.extract_strided_slice %253 {offsets = [0, 32], sizes = [2, 32], strides = [1, 1]} : vector<2x128xf32> to vector<2x32xf32>
    %256 = vector.extract_strided_slice %253 {offsets = [0, 96], sizes = [2, 32], strides = [1, 1]} : vector<2x128xf32> to vector<2x32xf32>
    %257 = vector.extract_strided_slice %248 {offsets = [0, 64], sizes = [2, 32], strides = [1, 1]} : vector<2x128xf32> to vector<2x32xf32>
    %258 = math.tanh %257 : vector<2x32xf32>
    %259 = arith.mulf %255, %204 : vector<2x32xf32>
    %260 = arith.mulf %254, %258 : vector<2x32xf32>
    %261 = arith.addf %259, %260 : vector<2x32xf32>
    %262 = math.tanh %261 : vector<2x32xf32>
    %263 = arith.mulf %256, %262 : vector<2x32xf32>
    %264 = vector.extract_strided_slice %149 {offsets = [0, 1, 0], sizes = [2, 1, 128], strides = [1, 1, 1]} : vector<2x6x128xf32> to vector<2x1x128xf32>
    %265 = vector.shape_cast %264 : vector<2x1x128xf32> to vector<2x128xf32>
    %266 = arith.addf %265, %227 : vector<2x128xf32>
    %267 = arith.negf %266 : vector<2x128xf32>
    %268 = math.exp %267 : vector<2x128xf32>
    %cst_136 = arith.constant 1.000000e+00 : f32
    %269 = vector.broadcast %cst_136 : f32 to vector<2x128xf32>
    %270 = arith.addf %269, %268 : vector<2x128xf32>
    %271 = arith.divf %269, %270 : vector<2x128xf32>
    %272 = vector.extract_strided_slice %271 {offsets = [0, 0], sizes = [2, 32], strides = [1, 1]} : vector<2x128xf32> to vector<2x32xf32>
    %273 = vector.extract_strided_slice %271 {offsets = [0, 32], sizes = [2, 32], strides = [1, 1]} : vector<2x128xf32> to vector<2x32xf32>
    %274 = vector.extract_strided_slice %271 {offsets = [0, 96], sizes = [2, 32], strides = [1, 1]} : vector<2x128xf32> to vector<2x32xf32>
    %275 = vector.extract_strided_slice %266 {offsets = [0, 64], sizes = [2, 32], strides = [1, 1]} : vector<2x128xf32> to vector<2x32xf32>
    %276 = math.tanh %275 : vector<2x32xf32>
    %277 = arith.mulf %273, %222 : vector<2x32xf32>
    %278 = arith.mulf %272, %276 : vector<2x32xf32>
    %279 = arith.addf %277, %278 : vector<2x32xf32>
    %280 = math.tanh %279 : vector<2x32xf32>
    %281 = arith.mulf %274, %280 : vector<2x32xf32>
    %cst_137 = arith.constant dense<0.000000e+00> : vector<2x128xf32>
    %282 = tpu.matmul %245, %151, %cst_137 {dimension_numbers = #tpu.dot_dimension_numbers<[1], [0], [0], [1], [0, 0, 1, 1], [], []>} : vector<2x32xf32>, vector<32x128xf32>, vector<2x128xf32> -> vector<2x128xf32>
    %cst_138 = arith.constant dense<0.000000e+00> : vector<2x128xf32>
    %283 = tpu.matmul %263, %153, %cst_138 {dimension_numbers = #tpu.dot_dimension_numbers<[1], [0], [0], [1], [0, 0, 1, 1], [], []>} : vector<2x32xf32>, vector<32x128xf32>, vector<2x128xf32> -> vector<2x128xf32>
    %cst_139 = arith.constant dense<0.000000e+00> : vector<2x128xf32>
    %284 = tpu.matmul %281, %155, %cst_139 {dimension_numbers = #tpu.dot_dimension_numbers<[1], [0], [0], [1], [0, 0, 1, 1], [], []>} : vector<2x32xf32>, vector<32x128xf32>, vector<2x128xf32> -> vector<2x128xf32>
    %285 = vector.extract_strided_slice %49 {offsets = [0, 2, 0], sizes = [2, 1, 128], strides = [1, 1, 1]} : vector<2x6x128xf32> to vector<2x1x128xf32>
    %286 = vector.shape_cast %285 : vector<2x1x128xf32> to vector<2x128xf32>
    %287 = arith.addf %286, %282 : vector<2x128xf32>
    %288 = arith.negf %287 : vector<2x128xf32>
    %289 = math.exp %288 : vector<2x128xf32>
    %cst_140 = arith.constant 1.000000e+00 : f32
    %290 = vector.broadcast %cst_140 : f32 to vector<2x128xf32>
    %291 = arith.addf %290, %289 : vector<2x128xf32>
    %292 = arith.divf %290, %291 : vector<2x128xf32>
    %293 = vector.extract_strided_slice %292 {offsets = [0, 0], sizes = [2, 32], strides = [1, 1]} : vector<2x128xf32> to vector<2x32xf32>
    %294 = vector.extract_strided_slice %292 {offsets = [0, 32], sizes = [2, 32], strides = [1, 1]} : vector<2x128xf32> to vector<2x32xf32>
    %295 = vector.extract_strided_slice %292 {offsets = [0, 96], sizes = [2, 32], strides = [1, 1]} : vector<2x128xf32> to vector<2x32xf32>
    %296 = vector.extract_strided_slice %287 {offsets = [0, 64], sizes = [2, 32], strides = [1, 1]} : vector<2x128xf32> to vector<2x32xf32>
    %297 = math.tanh %296 : vector<2x32xf32>
    %298 = arith.mulf %294, %243 : vector<2x32xf32>
    %299 = arith.mulf %293, %297 : vector<2x32xf32>
    %300 = arith.addf %298, %299 : vector<2x32xf32>
    %301 = math.tanh %300 : vector<2x32xf32>
    %302 = arith.mulf %295, %301 : vector<2x32xf32>
    %303 = vector.extract_strided_slice %99 {offsets = [0, 2, 0], sizes = [2, 1, 128], strides = [1, 1, 1]} : vector<2x6x128xf32> to vector<2x1x128xf32>
    %304 = vector.shape_cast %303 : vector<2x1x128xf32> to vector<2x128xf32>
    %305 = arith.addf %304, %283 : vector<2x128xf32>
    %306 = arith.negf %305 : vector<2x128xf32>
    %307 = math.exp %306 : vector<2x128xf32>
    %cst_141 = arith.constant 1.000000e+00 : f32
    %308 = vector.broadcast %cst_141 : f32 to vector<2x128xf32>
    %309 = arith.addf %308, %307 : vector<2x128xf32>
    %310 = arith.divf %308, %309 : vector<2x128xf32>
    %311 = vector.extract_strided_slice %310 {offsets = [0, 0], sizes = [2, 32], strides = [1, 1]} : vector<2x128xf32> to vector<2x32xf32>
    %312 = vector.extract_strided_slice %310 {offsets = [0, 32], sizes = [2, 32], strides = [1, 1]} : vector<2x128xf32> to vector<2x32xf32>
    %313 = vector.extract_strided_slice %310 {offsets = [0, 96], sizes = [2, 32], strides = [1, 1]} : vector<2x128xf32> to vector<2x32xf32>
    %314 = vector.extract_strided_slice %305 {offsets = [0, 64], sizes = [2, 32], strides = [1, 1]} : vector<2x128xf32> to vector<2x32xf32>
    %315 = math.tanh %314 : vector<2x32xf32>
    %316 = arith.mulf %312, %261 : vector<2x32xf32>
    %317 = arith.mulf %311, %315 : vector<2x32xf32>
    %318 = arith.addf %316, %317 : vector<2x32xf32>
    %319 = math.tanh %318 : vector<2x32xf32>
    %320 = arith.mulf %313, %319 : vector<2x32xf32>
    %321 = vector.extract_strided_slice %149 {offsets = [0, 2, 0], sizes = [2, 1, 128], strides = [1, 1, 1]} : vector<2x6x128xf32> to vector<2x1x128xf32>
    %322 = vector.shape_cast %321 : vector<2x1x128xf32> to vector<2x128xf32>
    %323 = arith.addf %322, %284 : vector<2x128xf32>
    %324 = arith.negf %323 : vector<2x128xf32>
    %325 = math.exp %324 : vector<2x128xf32>
    %cst_142 = arith.constant 1.000000e+00 : f32
    %326 = vector.broadcast %cst_142 : f32 to vector<2x128xf32>
    %327 = arith.addf %326, %325 : vector<2x128xf32>
    %328 = arith.divf %326, %327 : vector<2x128xf32>
    %329 = vector.extract_strided_slice %328 {offsets = [0, 0], sizes = [2, 32], strides = [1, 1]} : vector<2x128xf32> to vector<2x32xf32>
    %330 = vector.extract_strided_slice %328 {offsets = [0, 32], sizes = [2, 32], strides = [1, 1]} : vector<2x128xf32> to vector<2x32xf32>
    %331 = vector.extract_strided_slice %328 {offsets = [0, 96], sizes = [2, 32], strides = [1, 1]} : vector<2x128xf32> to vector<2x32xf32>
    %332 = vector.extract_strided_slice %323 {offsets = [0, 64], sizes = [2, 32], strides = [1, 1]} : vector<2x128xf32> to vector<2x32xf32>
    %333 = math.tanh %332 : vector<2x32xf32>
    %334 = arith.mulf %330, %279 : vector<2x32xf32>
    %335 = arith.mulf %329, %333 : vector<2x32xf32>
    %336 = arith.addf %334, %335 : vector<2x32xf32>
    %337 = math.tanh %336 : vector<2x32xf32>
    %338 = arith.mulf %331, %337 : vector<2x32xf32>
    %cst_143 = arith.constant dense<0.000000e+00> : vector<2x128xf32>
    %339 = tpu.matmul %302, %151, %cst_143 {dimension_numbers = #tpu.dot_dimension_numbers<[1], [0], [0], [1], [0, 0, 1, 1], [], []>} : vector<2x32xf32>, vector<32x128xf32>, vector<2x128xf32> -> vector<2x128xf32>
    %cst_144 = arith.constant dense<0.000000e+00> : vector<2x128xf32>
    %340 = tpu.matmul %320, %153, %cst_144 {dimension_numbers = #tpu.dot_dimension_numbers<[1], [0], [0], [1], [0, 0, 1, 1], [], []>} : vector<2x32xf32>, vector<32x128xf32>, vector<2x128xf32> -> vector<2x128xf32>
    %cst_145 = arith.constant dense<0.000000e+00> : vector<2x128xf32>
    %341 = tpu.matmul %338, %155, %cst_145 {dimension_numbers = #tpu.dot_dimension_numbers<[1], [0], [0], [1], [0, 0, 1, 1], [], []>} : vector<2x32xf32>, vector<32x128xf32>, vector<2x128xf32> -> vector<2x128xf32>
    %342 = vector.extract_strided_slice %49 {offsets = [0, 3, 0], sizes = [2, 1, 128], strides = [1, 1, 1]} : vector<2x6x128xf32> to vector<2x1x128xf32>
    %343 = vector.shape_cast %342 : vector<2x1x128xf32> to vector<2x128xf32>
    %344 = arith.addf %343, %339 : vector<2x128xf32>
    %345 = arith.negf %344 : vector<2x128xf32>
    %346 = math.exp %345 : vector<2x128xf32>
    %cst_146 = arith.constant 1.000000e+00 : f32
    %347 = vector.broadcast %cst_146 : f32 to vector<2x128xf32>
    %348 = arith.addf %347, %346 : vector<2x128xf32>
    %349 = arith.divf %347, %348 : vector<2x128xf32>
    %350 = vector.extract_strided_slice %349 {offsets = [0, 0], sizes = [2, 32], strides = [1, 1]} : vector<2x128xf32> to vector<2x32xf32>
    %351 = vector.extract_strided_slice %349 {offsets = [0, 32], sizes = [2, 32], strides = [1, 1]} : vector<2x128xf32> to vector<2x32xf32>
    %352 = vector.extract_strided_slice %349 {offsets = [0, 96], sizes = [2, 32], strides = [1, 1]} : vector<2x128xf32> to vector<2x32xf32>
    %353 = vector.extract_strided_slice %344 {offsets = [0, 64], sizes = [2, 32], strides = [1, 1]} : vector<2x128xf32> to vector<2x32xf32>
    %354 = math.tanh %353 : vector<2x32xf32>
    %355 = arith.mulf %351, %300 : vector<2x32xf32>
    %356 = arith.mulf %350, %354 : vector<2x32xf32>
    %357 = arith.addf %355, %356 : vector<2x32xf32>
    %358 = math.tanh %357 : vector<2x32xf32>
    %359 = arith.mulf %352, %358 : vector<2x32xf32>
    %360 = vector.extract_strided_slice %99 {offsets = [0, 3, 0], sizes = [2, 1, 128], strides = [1, 1, 1]} : vector<2x6x128xf32> to vector<2x1x128xf32>
    %361 = vector.shape_cast %360 : vector<2x1x128xf32> to vector<2x128xf32>
    %362 = arith.addf %361, %340 : vector<2x128xf32>
    %363 = arith.negf %362 : vector<2x128xf32>
    %364 = math.exp %363 : vector<2x128xf32>
    %cst_147 = arith.constant 1.000000e+00 : f32
    %365 = vector.broadcast %cst_147 : f32 to vector<2x128xf32>
    %366 = arith.addf %365, %364 : vector<2x128xf32>
    %367 = arith.divf %365, %366 : vector<2x128xf32>
    %368 = vector.extract_strided_slice %367 {offsets = [0, 0], sizes = [2, 32], strides = [1, 1]} : vector<2x128xf32> to vector<2x32xf32>
    %369 = vector.extract_strided_slice %367 {offsets = [0, 32], sizes = [2, 32], strides = [1, 1]} : vector<2x128xf32> to vector<2x32xf32>
    %370 = vector.extract_strided_slice %367 {offsets = [0, 96], sizes = [2, 32], strides = [1, 1]} : vector<2x128xf32> to vector<2x32xf32>
    %371 = vector.extract_strided_slice %362 {offsets = [0, 64], sizes = [2, 32], strides = [1, 1]} : vector<2x128xf32> to vector<2x32xf32>
    %372 = math.tanh %371 : vector<2x32xf32>
    %373 = arith.mulf %369, %318 : vector<2x32xf32>
    %374 = arith.mulf %368, %372 : vector<2x32xf32>
    %375 = arith.addf %373, %374 : vector<2x32xf32>
    %376 = math.tanh %375 : vector<2x32xf32>
    %377 = arith.mulf %370, %376 : vector<2x32xf32>
    %378 = vector.extract_strided_slice %149 {offsets = [0, 3, 0], sizes = [2, 1, 128], strides = [1, 1, 1]} : vector<2x6x128xf32> to vector<2x1x128xf32>
    %379 = vector.shape_cast %378 : vector<2x1x128xf32> to vector<2x128xf32>
    %380 = arith.addf %379, %341 : vector<2x128xf32>
    %381 = arith.negf %380 : vector<2x128xf32>
    %382 = math.exp %381 : vector<2x128xf32>
    %cst_148 = arith.constant 1.000000e+00 : f32
    %383 = vector.broadcast %cst_148 : f32 to vector<2x128xf32>
    %384 = arith.addf %383, %382 : vector<2x128xf32>
    %385 = arith.divf %383, %384 : vector<2x128xf32>
    %386 = vector.extract_strided_slice %385 {offsets = [0, 0], sizes = [2, 32], strides = [1, 1]} : vector<2x128xf32> to vector<2x32xf32>
    %387 = vector.extract_strided_slice %385 {offsets = [0, 32], sizes = [2, 32], strides = [1, 1]} : vector<2x128xf32> to vector<2x32xf32>
    %388 = vector.extract_strided_slice %385 {offsets = [0, 96], sizes = [2, 32], strides = [1, 1]} : vector<2x128xf32> to vector<2x32xf32>
    %389 = vector.extract_strided_slice %380 {offsets = [0, 64], sizes = [2, 32], strides = [1, 1]} : vector<2x128xf32> to vector<2x32xf32>
    %390 = math.tanh %389 : vector<2x32xf32>
    %391 = arith.mulf %387, %336 : vector<2x32xf32>
    %392 = arith.mulf %386, %390 : vector<2x32xf32>
    %393 = arith.addf %391, %392 : vector<2x32xf32>
    %394 = math.tanh %393 : vector<2x32xf32>
    %395 = arith.mulf %388, %394 : vector<2x32xf32>
    %cst_149 = arith.constant dense<0.000000e+00> : vector<2x128xf32>
    %396 = tpu.matmul %359, %151, %cst_149 {dimension_numbers = #tpu.dot_dimension_numbers<[1], [0], [0], [1], [0, 0, 1, 1], [], []>} : vector<2x32xf32>, vector<32x128xf32>, vector<2x128xf32> -> vector<2x128xf32>
    %cst_150 = arith.constant dense<0.000000e+00> : vector<2x128xf32>
    %397 = tpu.matmul %377, %153, %cst_150 {dimension_numbers = #tpu.dot_dimension_numbers<[1], [0], [0], [1], [0, 0, 1, 1], [], []>} : vector<2x32xf32>, vector<32x128xf32>, vector<2x128xf32> -> vector<2x128xf32>
    %cst_151 = arith.constant dense<0.000000e+00> : vector<2x128xf32>
    %398 = tpu.matmul %395, %155, %cst_151 {dimension_numbers = #tpu.dot_dimension_numbers<[1], [0], [0], [1], [0, 0, 1, 1], [], []>} : vector<2x32xf32>, vector<32x128xf32>, vector<2x128xf32> -> vector<2x128xf32>
    %399 = vector.extract_strided_slice %49 {offsets = [0, 4, 0], sizes = [2, 1, 128], strides = [1, 1, 1]} : vector<2x6x128xf32> to vector<2x1x128xf32>
    %400 = vector.shape_cast %399 : vector<2x1x128xf32> to vector<2x128xf32>
    %401 = arith.addf %400, %396 : vector<2x128xf32>
    %402 = arith.negf %401 : vector<2x128xf32>
    %403 = math.exp %402 : vector<2x128xf32>
    %cst_152 = arith.constant 1.000000e+00 : f32
    %404 = vector.broadcast %cst_152 : f32 to vector<2x128xf32>
    %405 = arith.addf %404, %403 : vector<2x128xf32>
    %406 = arith.divf %404, %405 : vector<2x128xf32>
    %407 = vector.extract_strided_slice %406 {offsets = [0, 0], sizes = [2, 32], strides = [1, 1]} : vector<2x128xf32> to vector<2x32xf32>
    %408 = vector.extract_strided_slice %406 {offsets = [0, 32], sizes = [2, 32], strides = [1, 1]} : vector<2x128xf32> to vector<2x32xf32>
    %409 = vector.extract_strided_slice %406 {offsets = [0, 96], sizes = [2, 32], strides = [1, 1]} : vector<2x128xf32> to vector<2x32xf32>
    %410 = vector.extract_strided_slice %401 {offsets = [0, 64], sizes = [2, 32], strides = [1, 1]} : vector<2x128xf32> to vector<2x32xf32>
    %411 = math.tanh %410 : vector<2x32xf32>
    %412 = arith.mulf %408, %357 : vector<2x32xf32>
    %413 = arith.mulf %407, %411 : vector<2x32xf32>
    %414 = arith.addf %412, %413 : vector<2x32xf32>
    %415 = math.tanh %414 : vector<2x32xf32>
    %416 = arith.mulf %409, %415 : vector<2x32xf32>
    %417 = vector.extract_strided_slice %99 {offsets = [0, 4, 0], sizes = [2, 1, 128], strides = [1, 1, 1]} : vector<2x6x128xf32> to vector<2x1x128xf32>
    %418 = vector.shape_cast %417 : vector<2x1x128xf32> to vector<2x128xf32>
    %419 = arith.addf %418, %397 : vector<2x128xf32>
    %420 = arith.negf %419 : vector<2x128xf32>
    %421 = math.exp %420 : vector<2x128xf32>
    %cst_153 = arith.constant 1.000000e+00 : f32
    %422 = vector.broadcast %cst_153 : f32 to vector<2x128xf32>
    %423 = arith.addf %422, %421 : vector<2x128xf32>
    %424 = arith.divf %422, %423 : vector<2x128xf32>
    %425 = vector.extract_strided_slice %424 {offsets = [0, 0], sizes = [2, 32], strides = [1, 1]} : vector<2x128xf32> to vector<2x32xf32>
    %426 = vector.extract_strided_slice %424 {offsets = [0, 32], sizes = [2, 32], strides = [1, 1]} : vector<2x128xf32> to vector<2x32xf32>
    %427 = vector.extract_strided_slice %424 {offsets = [0, 96], sizes = [2, 32], strides = [1, 1]} : vector<2x128xf32> to vector<2x32xf32>
    %428 = vector.extract_strided_slice %419 {offsets = [0, 64], sizes = [2, 32], strides = [1, 1]} : vector<2x128xf32> to vector<2x32xf32>
    %429 = math.tanh %428 : vector<2x32xf32>
    %430 = arith.mulf %426, %375 : vector<2x32xf32>
    %431 = arith.mulf %425, %429 : vector<2x32xf32>
    %432 = arith.addf %430, %431 : vector<2x32xf32>
    %433 = math.tanh %432 : vector<2x32xf32>
    %434 = arith.mulf %427, %433 : vector<2x32xf32>
    %435 = vector.extract_strided_slice %149 {offsets = [0, 4, 0], sizes = [2, 1, 128], strides = [1, 1, 1]} : vector<2x6x128xf32> to vector<2x1x128xf32>
    %436 = vector.shape_cast %435 : vector<2x1x128xf32> to vector<2x128xf32>
    %437 = arith.addf %436, %398 : vector<2x128xf32>
    %438 = arith.negf %437 : vector<2x128xf32>
    %439 = math.exp %438 : vector<2x128xf32>
    %cst_154 = arith.constant 1.000000e+00 : f32
    %440 = vector.broadcast %cst_154 : f32 to vector<2x128xf32>
    %441 = arith.addf %440, %439 : vector<2x128xf32>
    %442 = arith.divf %440, %441 : vector<2x128xf32>
    %443 = vector.extract_strided_slice %442 {offsets = [0, 0], sizes = [2, 32], strides = [1, 1]} : vector<2x128xf32> to vector<2x32xf32>
    %444 = vector.extract_strided_slice %442 {offsets = [0, 32], sizes = [2, 32], strides = [1, 1]} : vector<2x128xf32> to vector<2x32xf32>
    %445 = vector.extract_strided_slice %442 {offsets = [0, 96], sizes = [2, 32], strides = [1, 1]} : vector<2x128xf32> to vector<2x32xf32>
    %446 = vector.extract_strided_slice %437 {offsets = [0, 64], sizes = [2, 32], strides = [1, 1]} : vector<2x128xf32> to vector<2x32xf32>
    %447 = math.tanh %446 : vector<2x32xf32>
    %448 = arith.mulf %444, %393 : vector<2x32xf32>
    %449 = arith.mulf %443, %447 : vector<2x32xf32>
    %450 = arith.addf %448, %449 : vector<2x32xf32>
    %451 = math.tanh %450 : vector<2x32xf32>
    %452 = arith.mulf %445, %451 : vector<2x32xf32>
    %cst_155 = arith.constant dense<0.000000e+00> : vector<2x128xf32>
    %453 = tpu.matmul %416, %151, %cst_155 {dimension_numbers = #tpu.dot_dimension_numbers<[1], [0], [0], [1], [0, 0, 1, 1], [], []>} : vector<2x32xf32>, vector<32x128xf32>, vector<2x128xf32> -> vector<2x128xf32>
    %cst_156 = arith.constant dense<0.000000e+00> : vector<2x128xf32>
    %454 = tpu.matmul %434, %153, %cst_156 {dimension_numbers = #tpu.dot_dimension_numbers<[1], [0], [0], [1], [0, 0, 1, 1], [], []>} : vector<2x32xf32>, vector<32x128xf32>, vector<2x128xf32> -> vector<2x128xf32>
    %cst_157 = arith.constant dense<0.000000e+00> : vector<2x128xf32>
    %455 = tpu.matmul %452, %155, %cst_157 {dimension_numbers = #tpu.dot_dimension_numbers<[1], [0], [0], [1], [0, 0, 1, 1], [], []>} : vector<2x32xf32>, vector<32x128xf32>, vector<2x128xf32> -> vector<2x128xf32>
    %456 = vector.extract_strided_slice %49 {offsets = [0, 5, 0], sizes = [2, 1, 128], strides = [1, 1, 1]} : vector<2x6x128xf32> to vector<2x1x128xf32>
    %457 = vector.shape_cast %456 : vector<2x1x128xf32> to vector<2x128xf32>
    %458 = arith.addf %457, %453 : vector<2x128xf32>
    %459 = arith.negf %458 : vector<2x128xf32>
    %460 = math.exp %459 : vector<2x128xf32>
    %cst_158 = arith.constant 1.000000e+00 : f32
    %461 = vector.broadcast %cst_158 : f32 to vector<2x128xf32>
    %462 = arith.addf %461, %460 : vector<2x128xf32>
    %463 = arith.divf %461, %462 : vector<2x128xf32>
    %464 = vector.extract_strided_slice %463 {offsets = [0, 0], sizes = [2, 32], strides = [1, 1]} : vector<2x128xf32> to vector<2x32xf32>
    %465 = vector.extract_strided_slice %463 {offsets = [0, 32], sizes = [2, 32], strides = [1, 1]} : vector<2x128xf32> to vector<2x32xf32>
    %466 = vector.extract_strided_slice %463 {offsets = [0, 96], sizes = [2, 32], strides = [1, 1]} : vector<2x128xf32> to vector<2x32xf32>
    %467 = vector.extract_strided_slice %458 {offsets = [0, 64], sizes = [2, 32], strides = [1, 1]} : vector<2x128xf32> to vector<2x32xf32>
    %468 = math.tanh %467 : vector<2x32xf32>
    %469 = arith.mulf %465, %414 : vector<2x32xf32>
    %470 = arith.mulf %464, %468 : vector<2x32xf32>
    %471 = arith.addf %469, %470 : vector<2x32xf32>
    %472 = math.tanh %471 : vector<2x32xf32>
    %473 = arith.mulf %466, %472 : vector<2x32xf32>
    %474 = vector.extract_strided_slice %99 {offsets = [0, 5, 0], sizes = [2, 1, 128], strides = [1, 1, 1]} : vector<2x6x128xf32> to vector<2x1x128xf32>
    %475 = vector.shape_cast %474 : vector<2x1x128xf32> to vector<2x128xf32>
    %476 = arith.addf %475, %454 : vector<2x128xf32>
    %477 = arith.negf %476 : vector<2x128xf32>
    %478 = math.exp %477 : vector<2x128xf32>
    %cst_159 = arith.constant 1.000000e+00 : f32
    %479 = vector.broadcast %cst_159 : f32 to vector<2x128xf32>
    %480 = arith.addf %479, %478 : vector<2x128xf32>
    %481 = arith.divf %479, %480 : vector<2x128xf32>
    %482 = vector.extract_strided_slice %481 {offsets = [0, 0], sizes = [2, 32], strides = [1, 1]} : vector<2x128xf32> to vector<2x32xf32>
    %483 = vector.extract_strided_slice %481 {offsets = [0, 32], sizes = [2, 32], strides = [1, 1]} : vector<2x128xf32> to vector<2x32xf32>
    %484 = vector.extract_strided_slice %481 {offsets = [0, 96], sizes = [2, 32], strides = [1, 1]} : vector<2x128xf32> to vector<2x32xf32>
    %485 = vector.extract_strided_slice %476 {offsets = [0, 64], sizes = [2, 32], strides = [1, 1]} : vector<2x128xf32> to vector<2x32xf32>
    %486 = math.tanh %485 : vector<2x32xf32>
    %487 = arith.mulf %483, %432 : vector<2x32xf32>
    %488 = arith.mulf %482, %486 : vector<2x32xf32>
    %489 = arith.addf %487, %488 : vector<2x32xf32>
    %490 = math.tanh %489 : vector<2x32xf32>
    %491 = arith.mulf %484, %490 : vector<2x32xf32>
    %492 = vector.extract_strided_slice %149 {offsets = [0, 5, 0], sizes = [2, 1, 128], strides = [1, 1, 1]} : vector<2x6x128xf32> to vector<2x1x128xf32>
    %493 = vector.shape_cast %492 : vector<2x1x128xf32> to vector<2x128xf32>
    %494 = arith.addf %493, %455 : vector<2x128xf32>
    %495 = arith.negf %494 : vector<2x128xf32>
    %496 = math.exp %495 : vector<2x128xf32>
    %cst_160 = arith.constant 1.000000e+00 : f32
    %497 = vector.broadcast %cst_160 : f32 to vector<2x128xf32>
    %498 = arith.addf %497, %496 : vector<2x128xf32>
    %499 = arith.divf %497, %498 : vector<2x128xf32>
    %500 = vector.extract_strided_slice %499 {offsets = [0, 0], sizes = [2, 32], strides = [1, 1]} : vector<2x128xf32> to vector<2x32xf32>
    %501 = vector.extract_strided_slice %499 {offsets = [0, 32], sizes = [2, 32], strides = [1, 1]} : vector<2x128xf32> to vector<2x32xf32>
    %502 = vector.extract_strided_slice %499 {offsets = [0, 96], sizes = [2, 32], strides = [1, 1]} : vector<2x128xf32> to vector<2x32xf32>
    %503 = vector.extract_strided_slice %494 {offsets = [0, 64], sizes = [2, 32], strides = [1, 1]} : vector<2x128xf32> to vector<2x32xf32>
    %504 = math.tanh %503 : vector<2x32xf32>
    %505 = arith.mulf %501, %450 : vector<2x32xf32>
    %506 = arith.mulf %500, %504 : vector<2x32xf32>
    %507 = arith.addf %505, %506 : vector<2x32xf32>
    %508 = math.tanh %507 : vector<2x32xf32>
    %509 = arith.mulf %502, %508 : vector<2x32xf32>
    %510 = tpu.concatenate %473, %491, %509 in 1 : vector<2x32xf32>, vector<2x32xf32>, vector<2x32xf32> -> vector<2x96xf32>
    %c0_161 = arith.constant 0 : index
    %c0_162 = arith.constant 0 : index
    %511 = vector.load %arg14[%c0_161, %c0_162] : memref<96x16xf32, #tpu.memory_space<vmem>>, vector<96x16xf32>
    %cst_163 = arith.constant dense<0.000000e+00> : vector<2x16xf32>
    %512 = tpu.matmul %510, %511, %cst_163 {dimension_numbers = #tpu.dot_dimension_numbers<[1], [0], [0], [1], [0, 0, 1, 1], [], []>} : vector<2x96xf32>, vector<96x16xf32>, vector<2x16xf32> -> vector<2x16xf32>
    %c0_164 = arith.constant 0 : index
    %c0_165 = arith.constant 0 : index
    %513 = vector.load %arg15[%c0_164, %c0_165] : memref<1x16xf32, #tpu.memory_space<vmem>>, vector<1x16xf32>
    %514 = vector.broadcast %513 : vector<1x16xf32> to vector<2x16xf32>
    %515 = arith.addf %512, %514 : vector<2x16xf32>
    %cst_166 = arith.constant 0.000000e+00 : f32
    %516 = vector.broadcast %cst_166 : f32 to vector<2x16xf32>
    %517 = arith.maximumf %515, %516 : vector<2x16xf32>
    %c0_167 = arith.constant 0 : index
    %c0_168 = arith.constant 0 : index
    %518 = vector.load %arg16[%c0_167, %c0_168] : memref<16x8xf32, #tpu.memory_space<vmem>>, vector<16x8xf32>
    %cst_169 = arith.constant dense<0.000000e+00> : vector<2x8xf32>
    %519 = tpu.matmul %517, %518, %cst_169 {dimension_numbers = #tpu.dot_dimension_numbers<[1], [0], [0], [1], [0, 0, 1, 1], [], []>} : vector<2x16xf32>, vector<16x8xf32>, vector<2x8xf32> -> vector<2x8xf32>
    %c0_170 = arith.constant 0 : index
    %c0_171 = arith.constant 0 : index
    %520 = vector.load %arg17[%c0_170, %c0_171] : memref<1x8xf32, #tpu.memory_space<vmem>>, vector<1x8xf32>
    %521 = vector.broadcast %520 : vector<1x8xf32> to vector<2x8xf32>
    %522 = arith.addf %519, %521 : vector<2x8xf32>
    %cst_172 = arith.constant 0.000000e+00 : f32
    %523 = vector.broadcast %cst_172 : f32 to vector<2x8xf32>
    %524 = arith.maximumf %522, %523 : vector<2x8xf32>
    %c0_173 = arith.constant 0 : index
    %c0_174 = arith.constant 0 : index
    %525 = vector.load %arg18[%c0_173, %c0_174] : memref<8x3xf32, #tpu.memory_space<vmem>>, vector<8x3xf32>
    %cst_175 = arith.constant dense<0.000000e+00> : vector<2x3xf32>
    %526 = tpu.matmul %524, %525, %cst_175 {dimension_numbers = #tpu.dot_dimension_numbers<[1], [0], [0], [1], [0, 0, 1, 1], [], []>} : vector<2x8xf32>, vector<8x3xf32>, vector<2x3xf32> -> vector<2x3xf32>
    %c0_176 = arith.constant 0 : index
    %c0_177 = arith.constant 0 : index
    %527 = vector.load %arg19[%c0_176, %c0_177] : memref<1x3xf32, #tpu.memory_space<vmem>>, vector<1x3xf32>
    %528 = vector.broadcast %527 : vector<1x3xf32> to vector<2x3xf32>
    %529 = arith.addf %526, %528 : vector<2x3xf32>
    %c0_178 = arith.constant 0 : index
    %c0_179 = arith.constant 0 : index
    %530 = vector.load %arg20[%c0_178, %c0_179] : memref<2x3xf32, #tpu.memory_space<vmem>>, vector<2x3xf32>
    tpu.vector_store %arg20[%c0_178, %c0_179], %529 {strides = array<i32>} : memref<2x3xf32, #tpu.memory_space<vmem>>, vector<2x3xf32>,
    return
  }
}

</mosaic_0001>

<bundles_post_ra>
// kernel: quasi_siamese_forward.1
= control target key start
LH: loop header
LB: loop body
LE: loop exit
PB: predicated region body
PF: predicated region fallthrough
CT: control target
= control target key end

     0   :  { %s20590_s0 = inlined_call_operand.vmem [shape: f32[2,64,4], index: 0, kind: input, shape index: {}]   ;;  %s20591_s1 = inlined_call_operand.vmem [shape: f32[2,64,4], index: 1, kind: input, shape index: {}]   ;;  %s20592_s2 = inlined_call_operand.vmem [shape: f32[2,64,4], index: 2, kind: input, shape index: {}]   ;;  %s20593_s3 = inlined_call_operand.vmem [shape: f32[3,12,16], index: 3, kind: input, shape index: {}]   ;;  %s20594_s4 = inlined_call_operand.vmem [shape: f32[3,1,16], index: 4, kind: input, shape index: {}]   ;;  %s20595_s5 = inlined_call_operand.vmem [shape: f32[3,1,16], index: 5, kind: input, shape index: {}]   ;;  %s20596_s6 = inlined_call_operand.vmem [shape: f32[3,48,32], index: 6, kind: input, shape index: {}]   ;;  %s20597_s7 = inlined_call_operand.vmem [shape: f32[3,1,32], index: 7, kind: input, shape index: {}]   ;;  %s20598_s8 = inlined_call_operand.vmem [shape: f32[3,1,32], index: 8, kind: input, shape index: {}]   ;;  %s20599_s9 = inlined_call_operand.vmem [shape: f32[3,32,128], index: 9, kind: input, shape index: {}]   ;;  %s20600_s10 = inlined_call_operand.vmem [shape: f32[3,32,128], index: 10, kind: input, shape index: {}]   ;;  %s20601_s11 = inlined_call_operand.vmem [shape: f32[3,1,128], index: 11, kind: input, shape index: {}]   ;;  %s20602_s12 = inlined_call_operand.vmem [shape: f32[3,2,32], index: 12, kind: input, shape index: {}]   ;;  %s20603_s13 = inlined_call_operand.vmem [shape: f32[3,2,32], index: 13, kind: input, shape index: {}]   ;;  %s20604_s14 = inlined_call_operand.vmem [shape: f32[96,16], index: 14, kind: input, shape index: {}]   ;;  %s20605_s15 = inlined_call_operand.vmem [shape: f32[1,16], index: 15, kind: input, shape index: {}]   ;;  %s20606_s16 = inlined_call_operand.vmem [shape: f32[16,8], index: 16, kind: input, shape index: {}]   ;;  %s20607_s17 = inlined_call_operand.vmem [shape: f32[1,8], index: 17, kind: input, shape index: {}]   ;;  %s20608_s18 = inlined_call_operand.vmem [shape: f32[8,3], index: 18, kind: input, shape index: {}]   ;;  %s20609_s19 = inlined_call_operand.vmem [shape: f32[1,3], index: 19, kind: input, shape index: {}]   ;;  %s20610_s20 = inlined_call_operand.hbm [shape: f32[2,3], index: 20, kind: output, shape index: {}]  }
   0x1   :  { %20626 = sst [smem:[#allocation9_spill]] %s20590_s0 }
   0x2   :  { %20627 = sst [smem:[#allocation10_spill]] %s20591_s1 }
   0x3   :  { %20628 = sst [smem:[#allocation11_spill]] %s20592_s2 }
   0x4   :  { %20629 = sst [smem:[#allocation12_spill]] %s20593_s3 }
   0x5   :  { %20630 = sst [smem:[#allocation13_spill]] %s20594_s4 }
   0x6   :  { %s20631_s23 = sld [smem:[#allocation9_spill]]  ;;  %vm98_vm0 = vcmask 1046528   ;;  %vm177_vm1 = vcmask 1045504   ;;  %s15615_s28 = smov 4  }
   0x7   :  { %s15616_s30 = smov 8  }
   0xc   :  { %v15734_v0 = vld [vmem:[%s20631_s23 + $0x8] sm:$0xff]  ;;  %v15739_v1 = vld [vmem:[%s20631_s23 + $0x10] sm:$0xff]  ;;  %v15744_v2 = vld [vmem:[%s20631_s23] sm:$0xff] }
   0xd   :  { %v100_v3 = vrot.slane %v15734_v0, 1  ;;  %v102_v4 = vrot.slane %v15739_v1, 1  ;;  %v99_v5 = vrot.slane %v15744_v2, 1  ;;  %v179_v6 = vrot.slane %v15734_v0, 2  ;;  %v15755_v9 = vld [vmem:[%s20631_s23 + $0x18] sm:$0xff]  ;;  %v15768_v16 = vld [vmem:[%s20631_s23 + $0x20] sm:$0xff] }
   0xe   :  { %v181_v7 = vrot.slane %v15739_v1, 2  ;;  %v178_v8 = vrot.slane %v15744_v2, 2  ;;  %v183_v14 = vrot.slane %v15755_v9, 2  ;;  %v104_v15 = vrot.slane %v15755_v9, 1 }
   0xf   :  { %v103_v10 = vsel %vm98_vm0, %v100_v3, %v102_v4  ;;  %v101_v11 = vsel %vm98_vm0, %v99_v5, %v100_v3 }
  0x10   :  { %131 = vrot.lane.b32.xlu1 %v103_v10, %s15615_s28  ;;  %129 = vrot.lane.b32.xlu0 %v101_v11, %s15615_s28  ;;  %v182_v12 = vsel %vm177_vm1, %v179_v6, %v181_v7  ;;  %v180_v13 = vsel %vm177_vm1, %v178_v8, %v179_v6 }
  0x14   :  { %210 = vrot.lane.b32.xlu1 %v182_v12, %s15616_s30  ;;  %208 = vrot.lane.b32.xlu0 %v180_v13, %s15616_s30 }
  0x15   :  { %25 = vsyncpa [#allocation3], 0  ;;  %v184_v17 = vsel %vm177_vm1, %v181_v7, %v183_v14  ;;  %v105_v18 = vsel %vm98_vm0, %v102_v4, %v104_v15  ;;  %v185_v19 = vrot.slane %v15768_v16, 2  ;;  %v106_v20 = vrot.slane %v15768_v16, 1  ;;  %v15779_v21 = vld [vmem:[%s20631_s23 + $0x28] sm:$0xff]  ;;  %v15790_v26 = vld [vmem:[%s20631_s23 + $0x30] sm:$0xff] }
  0x16   :  { %v187_v22 = vrot.slane %v15779_v21, 2  ;;  %v108_v25 = vrot.slane %v15779_v21, 1  ;;  %s20632_s25 = sld [smem:[#allocation12_spill]]  ;;  %vm20622_vm2 = vcmask 1043456   ;;  %v189_v30 = vrot.slane %v15790_v26, 2  ;;  %v15806_v33 = vld [vmem:[%s20631_s23 + $0x38] sm:$0xff] }
  0x17   :  { %v186_v23 = vsel %vm177_vm1, %v183_v14, %v185_v19  ;;  %v107_v24 = vsel %vm98_vm0, %v104_v15, %v106_v20  ;;  %v110_v31 = vrot.slane %v15790_v26, 1  ;;  %v20616_v32 = vmov 0.0   ;;  %v15826_v39 = vld [vmem:[%s20631_s23 + $0x40] sm:$0xff]  ;;  %v15831_v40 = vld [vmem:[%s20631_s23 + $0x48] sm:$0xff]  ;;  %v15848_v48 = vld [vmem:[%s20631_s23 + $0x50] sm:$0xff]  ;;  %s20633_s2 = sld [smem:[#allocation13_spill]] }
  0x18   :  { %212 = vrot.lane.b32.xlu1 %v184_v17, %s15616_s30  ;;  %133 = vrot.lane.b32.xlu0 %v105_v18, %s15615_s28  ;;  %v188_v28 = vsel %vm177_vm1, %v185_v19, %v187_v22  ;;  %v109_v29 = vsel %vm98_vm0, %v106_v20, %v108_v25  ;;  %vm15618_vm3 = vmmov 0   ;;  %v190_v35 = vsel %vm177_vm1, %v187_v22, %v189_v30  ;;  %v15858_v52 = vld [vmem:[%s20631_s23 + $0x58] sm:$0xff]  ;;  %v15869_v57 = vld [vmem:[%s20631_s23 + $0x60] sm:$0xff]  ;;  %s15620_s27 = smov 16   ;;  %s15621_s3 = smov 32  }
  0x19   :  { %14779 = vmatprep.subr.mxu0 %v20616_v32  ;;  %14828 = vmatprep.subr.mxu1 %v20616_v32  ;;  %v111_v36 = vsel %vm98_vm0, %v108_v25, %v110_v31  ;;  %v191_v37 = vrot.slane %v15806_v33, 2  ;;  %v112_v38 = vrot.slane %v15806_v33, 1  ;;  %v114_v43 = vrot.slane %v15826_v39, 1  ;;  %v15880_v62 = vld [vmem:[%s20631_s23 + $0x68] sm:$0xff]  ;;  %v15891_v6 = vld [vmem:[%s20631_s23 + $0x70] sm:$0xff]  ;;  %v15902_v12 = vld [vmem:[%s20631_s23 + $0x78] sm:$0xff] }
  0x1a   :  { %14783 = vmatprep.mubr.msk.f32.mxu0 %vm15618_vm3, %v20616_v32  ;;  %14840 = vmatprep.mubr.msk.f32.mxu1 %vm15618_vm3, %v20616_v32  ;;  %v115_v44 = vrot.slane %v15831_v40, 1  ;;  %v193_v46 = vrot.slane %v15826_v39, 2  ;;  %v194_v47 = vrot.slane %v15831_v40, 2  ;;  %v117_v50 = vrot.slane %v15848_v48, 1  ;;  %s20655_s24 = sld [smem:[#allocation10_spill]] }
  0x1b   :  { %v192_v41 = vsel %vm177_vm1, %v189_v30, %v191_v37  ;;  %v113_v42 = vsel %vm98_vm0, %v110_v31, %v112_v38  ;;  %v196_v51 = vrot.slane %v15848_v48, 2  ;;  %v119_v55 = vrot.slane %v15858_v52, 1  ;;  %s20718_s22 = sld [smem:[#allocation11_spill]] }
  0x1c   :  { %v321_v27 = vld [vmem:[%s20632_s25 + $0x8] sm:$0xf]  ;;  %214 = vrot.lane.b32.xlu1 %v186_v23, %s15616_s30  ;;  %135 = vrot.lane.b32.xlu0 %v107_v24, %s15615_s28  ;;  %v320_v34 = vld [vmem:[%s20632_s25] sm:$0xff]  ;;  %v116_v45 = vsel %vm98_vm0, %v114_v43, %v115_v44  ;;  %v195_v49 = vsel %vm177_vm1, %v193_v46, %v194_v47  ;;  %v118_v53 = vsel %vm98_vm0, %v115_v44, %v117_v50  ;;  %v198_v56 = vrot.slane %v15858_v52, 2 }
  0x1d   :  { %14780 = vmatpush3.msk.msra.mxu0 %vm20622_vm2, %v321_v27  ;;  %v197_v54 = vsel %vm177_vm1, %v194_v47, %v196_v51  ;;  %v120_v58 = vsel %vm98_vm0, %v117_v50, %v119_v55  ;;  %v121_v60 = vrot.slane %v15869_v57, 1  ;;  %v200_v61 = vrot.slane %v15869_v57, 2 }
  0x1e   :  { %14781 = vmatprep.subr.mxu0 %v20616_v32  ;;  %v199_v59 = vsel %vm177_vm1, %v196_v51, %v198_v56  ;;  %v123_v4 = vrot.slane %v15880_v62, 1  ;;  %v202_v5 = vrot.slane %v15880_v62, 2  ;;  %v125_v10 = vrot.slane %v15891_v6, 1 }
  0x1f   :  { %14782 = vmatpush3.msra.mxu0 %v320_v34  ;;  %v122_v63 = vsel %vm98_vm0, %v119_v55, %v121_v60  ;;  %v201_v3 = vsel %vm177_vm1, %v198_v56, %v200_v61  ;;  %v204_v11 = vrot.slane %v15891_v6, 2  ;;  %v127_v15 = vrot.slane %v15902_v12, 1 }
  0x20   :  { %216 = vrot.lane.b32.xlu1 %v188_v28, %s15616_s30  ;;  %137 = vrot.lane.b32.xlu0 %v109_v29, %s15615_s28  ;;  %v124_v7 = vsel %vm98_vm0, %v121_v60, %v123_v4  ;;  %v203_v8 = vsel %vm177_vm1, %v200_v61, %v202_v5  ;;  %v126_v13 = vsel %vm98_vm0, %v123_v4, %v125_v10  ;;  %v206_v17 = vrot.slane %v15902_v12, 2 }
  0x21   :  { %14915 = vmatprep.subr.mxu0 %v20616_v32  ;;  %v205_v14 = vsel %vm177_vm1, %v202_v5, %v204_v11  ;;  %v128_v18 = vsel %vm98_vm0, %v125_v10, %v127_v15  ;;  %vm256_vm4 = vcmask 31744   ;;  %vm273_vm5 = vcmask 64512  }
  0x22   :  { %v207_v19 = vsel %vm177_vm1, %v204_v11, %v206_v17  ;;  %vm20619_vm6 = vcmask 97280   ;;  %vm20618_vm7 = vcmask 124928   ;;  %vm2598_vm8 = vcmask 1041409  }
  0x23   :  { %vm2600_vm9 = vcmask 1042434   ;;  %vm2602_vm10 = vcmask 1043459   ;;  %vm2604_vm11 = vcmask 1044484   ;;  %vm2606_vm12 = vcmask 1045509  }
  0x24   :  { %218 = vrot.lane.b32.xlu1 %v190_v35, %s15616_s30  ;;  %139 = vrot.lane.b32.xlu0 %v111_v36, %s15615_s28  ;;  %vm2608_vm13 = vcmask 1046534   ;;  %vm2610_vm14 = vcmask 1047559   ;;  %vm2741_vm15 = vcmask 130048  }
  0x28   :  { %220 = vrot.lane.b32.xlu1 %v192_v41, %s15616_s30  ;;  %141 = vrot.lane.b32.xlu0 %v113_v42, %s15615_s28 }
  0x2c   :  { %145 = vrot.lane.b32.xlu1 %v116_v45, %s15615_s28  ;;  %143 = vrot.lane.b32.xlu0 %v112_v38, %s15615_s28 }
  0x30   :  { %224 = vrot.lane.b32.xlu1 %v195_v49, %s15616_s30  ;;  %222 = vrot.lane.b32.xlu0 %v191_v37, %s15616_s30 }
  0x34   :  { %147 = vrot.lane.b32.xlu0 %v118_v53, %s15615_s28  ;;  %226 = vrot.lane.b32.xlu1 %v197_v54, %s15616_s30 }
  0x38   :  { %149 = vrot.lane.b32.xlu0 %v120_v58, %s15615_s28  ;;  %228 = vrot.lane.b32.xlu1 %v199_v59, %s15616_s30 }
  0x3c   :  { %151 = vrot.lane.b32.xlu0 %v122_v63, %s15615_s28  ;;  %230 = vrot.lane.b32.xlu1 %v201_v3, %s15616_s30 }
  0x40   :  { %153 = vrot.lane.b32.xlu0 %v124_v7, %s15615_s28  ;;  %232 = vrot.lane.b32.xlu1 %v203_v8, %s15616_s30 }
  0x44   :  { %155 = vrot.lane.b32.xlu0 %v126_v13, %s15615_s28  ;;  %234 = vrot.lane.b32.xlu1 %v205_v14, %s15616_s30 }
  0x48   :  { %157 = vrot.lane.b32.xlu0 %v128_v18, %s15615_s28  ;;  %236 = vrot.lane.b32.xlu1 %v207_v19, %s15616_s30 }
  0x4c   :  { %159 = vrot.lane.b32.xlu0 %v127_v15, %s15615_s28  ;;  %238 = vrot.lane.b32.xlu1 %v206_v17, %s15616_s30 }
  0x82   :  { %v132_v20 = vpop.permute.xlu1 %131  ;;  %v130_v22 = vpop.permute.xlu0 %129 }
  0x83   :  { %v258_v23 = vsel %vm256_vm4, %v15734_v0, %v132_v20  ;;  %v257_v24 = vsel %vm256_vm4, %v15744_v2, %v130_v22 }
  0x86   :  { %v211_v25 = vpop.permute.xlu1 %210  ;;  %v209_v27 = vpop.permute.xlu0 %208 }
  0x87   :  { %v275_v28 = vsel %vm273_vm5, %v258_v23, %v211_v25  ;;  %v274_v29 = vsel %vm273_vm5, %v257_v24, %v209_v27 }
  0x88   :  { %v306_v30 = vcombine.high %v274_v29, %v274_v29  ;;  %v307_v31 = vcombine.high %v275_v28, %v275_v28 }
  0x8a   :  { %v322_v34 = vcombine.low %v274_v29, %v306_v30  ;;  %v213_v35 = vpop.permute.xlu1 %212  ;;  %v134_v36 = vpop.permute.xlu0 %133  ;;  %v323_v2 = vcombine.low %v275_v28, %v307_v31 }
  0x8b   :  { %v259_v37 = vsel %vm256_vm4, %v15739_v1, %v134_v36 }
  0x8c   :  { %v276_v0 = vsel %vm273_vm5, %v259_v37, %v213_v35  ;;  %14784 = vmatmul.mubr.msk.f32.vlgmr.msra.gmra.mxu0 %vm20619_vm6, %v322_v34 }
  0x8d   :  { %14786 = vmatprep.mubr.msk.f32.mxu0 %vm15618_vm3, %v20616_v32  ;;  %v308_v38 = vcombine.high %v276_v0, %v276_v0 }
  0x8e   :  { %v215_v41 = vpop.permute.xlu1 %214  ;;  %v136_v42 = vpop.permute.xlu0 %135 }
  0x8f   :  { %v260_v43 = vsel %vm256_vm4, %v15755_v9, %v136_v42  ;;  %v324_v1 = vcombine.low %v276_v0, %v308_v38 }
  0x90   :  { %v277_v44 = vsel %vm273_vm5, %v260_v43, %v215_v41  ;;  %14787 = vmatmul.mubr.msk.f32.gmra.mxu0 %vm20619_vm6, %v323_v2 }
  0x91   :  { %14789 = vmatprep.mubr.msk.f32.mxu0 %vm15618_vm3, %v20616_v32  ;;  %v309_v45 = vcombine.high %v277_v44, %v277_v44 }
  0x92   :  { %v217_v46 = vpop.permute.xlu1 %216  ;;  %v138_v47 = vpop.permute.xlu0 %137 }
  0x93   :  { %v261_v49 = vsel %vm256_vm4, %v15768_v16, %v138_v47  ;;  %v325_v9 = vcombine.low %v277_v44, %v309_v45 }
  0x94   :  { %v278_v50 = vsel %vm273_vm5, %v261_v49, %v217_v46  ;;  %14790 = vmatmul.mubr.msk.f32.gmra.mxu0 %vm20619_vm6, %v324_v1 }
  0x95   :  { %14792 = vmatprep.mubr.msk.f32.mxu0 %vm15618_vm3, %v20616_v32  ;;  %v310_v51 = vcombine.high %v278_v50, %v278_v50 }
  0x96   :  { %v219_v53 = vpop.permute.xlu1 %218  ;;  %v140_v54 = vpop.permute.xlu0 %139 }
  0x97   :  { %v262_v55 = vsel %vm256_vm4, %v15779_v21, %v140_v54  ;;  %v326_v16 = vcombine.low %v278_v50, %v310_v51 }
  0x98   :  { %v279_v56 = vsel %vm273_vm5, %v262_v55, %v219_v53  ;;  %14793 = vmatmul.mubr.msk.f32.gmra.mxu0 %vm20619_vm6, %v325_v9 }
  0x99   :  { %14795 = vmatprep.mubr.msk.f32.mxu0 %vm15618_vm3, %v20616_v32  ;;  %v311_v58 = vcombine.high %v279_v56, %v279_v56 }
  0x9a   :  { %v221_v59 = vpop.permute.xlu1 %220  ;;  %v142_v60 = vpop.permute.xlu0 %141 }
  0x9b   :  { %v263_v61 = vsel %vm256_vm4, %v15790_v26, %v142_v60  ;;  %v327_v21 = vcombine.low %v279_v56, %v311_v58 }
  0x9c   :  { %v280_v63 = vsel %vm273_vm5, %v263_v61, %v221_v59  ;;  %14796 = vmatmul.mubr.msk.f32.gmra.mxu0 %vm20619_vm6, %v326_v16  ;;  %v590_v16 = vlaneseq  ;;  %v16021_v61 = vld [vmem:[%s20595_s5] ss:$0 sm:$0xff] }
  0x9d   :  { %14798 = vmatprep.mubr.msk.f32.mxu0 %vm15618_vm3, %v20616_v32  ;;  %v312_v3 = vcombine.high %v280_v63, %v280_v63 }
  0x9e   :  { %v146_v4 = vpop.permute.xlu1 %145  ;;  %v144_v5 = vpop.permute.xlu0 %143  ;;  %v16016_v59 = vshrl.u32 %v590_v16, 7 }
  0x9f   :  { %v265_v7 = vsel %vm256_vm4, %v15826_v39, %v146_v4  ;;  %v328_v26 = vcombine.low %v280_v63, %v312_v3  ;;  %v264_v8 = vsel %vm256_vm4, %v15806_v33, %v144_v5 }
  0xa0   :  { %14799 = vmatmul.mubr.msk.f32.gmra.mxu0 %vm20619_vm6, %v327_v21  ;;  %20634 = vst [vmem:[#allocation5_spill] sm:$0xff] %v16016_v59 }
  0xa1   :  { %14801 = vmatprep.mubr.msk.f32.mxu0 %vm15618_vm3, %v20616_v32 }
  0xa2   :  { %v225_v10 = vpop.permute.xlu1 %224  ;;  %v223_v11 = vpop.permute.xlu0 %222 }
  0xa3   :  { %v282_v13 = vsel %vm273_vm5, %v265_v7, %v225_v10  ;;  %v281_v14 = vsel %vm273_vm5, %v264_v8, %v223_v11 }
  0xa4   :  { %14802 = vmatmul.mubr.msk.f32.gmra.mxu0 %vm20619_vm6, %v328_v26  ;;  %v329_v39 = vcombine.low %v281_v14, %v282_v13  ;;  %v313_v18 = vcombine.high %v282_v13, %v282_v13 }
  0xa5   :  { %14804 = vmatprep.mubr.msk.f32.mxu0 %vm15618_vm3, %v20616_v32 }
  0xa6   :  { %v148_v15 = vpop.permute.xlu0 %147  ;;  %v227_v17 = vpop.permute.xlu1 %226 }
  0xa7   :  { %v266_v19 = vsel %vm256_vm4, %v15831_v40, %v148_v15 }
  0xa8   :  { %v283_v33 = vsel %vm273_vm5, %v266_v19, %v227_v17  ;;  %14805 = vmatmul.mubr.msk.f32.gmra.mxu0 %vm20619_vm6, %v329_v39 }
  0xa9   :  { %v314_v20 = vcombine.high %v283_v33, %v283_v33  ;;  %v330_v22 = vcombine.low %v313_v18, %v283_v33  ;;  %14807 = vmatprep.mubr.msk.f32.mxu0 %vm15618_vm3, %v20616_v32 }
  0xaa   :  { %v150_v23 = vpop.permute.xlu0 %149  ;;  %v229_v24 = vpop.permute.xlu1 %228 }
  0xab   :  { %v267_v25 = vsel %vm256_vm4, %v15848_v48, %v150_v23 }
  0xac   :  { %v284_v27 = vsel %vm273_vm5, %v267_v25, %v229_v24  ;;  %14808 = vmatmul.mubr.msk.f32.gmra.mxu0 %vm20619_vm6, %v330_v22 }
  0xad   :  { %v315_v28 = vcombine.high %v284_v27, %v284_v27  ;;  %v331_v40 = vcombine.low %v314_v20, %v284_v27  ;;  %14810 = vmatprep.mubr.msk.f32.mxu0 %vm15618_vm3, %v20616_v32 }
  0xae   :  { %v152_v29 = vpop.permute.xlu0 %151  ;;  %v231_v30 = vpop.permute.xlu1 %230 }
  0xaf   :  { %v268_v31 = vsel %vm256_vm4, %v15858_v52, %v152_v29 }
  0xb0   :  { %v285_v34 = vsel %vm273_vm5, %v268_v31, %v231_v30  ;;  %14811 = vmatmul.mubr.msk.f32.gmra.mxu0 %vm20619_vm6, %v331_v40 }
  0xb1   :  { %v316_v35 = vcombine.high %v285_v34, %v285_v34  ;;  %v332_v48 = vcombine.low %v315_v28, %v285_v34  ;;  %14813 = vmatprep.mubr.msk.f32.mxu0 %vm15618_vm3, %v20616_v32 }
  0xb2   :  { %v154_v36 = vpop.permute.xlu0 %153  ;;  %v233_v37 = vpop.permute.xlu1 %232 }
  0xb3   :  { %v269_v0 = vsel %vm256_vm4, %v15869_v57, %v154_v36 }
  0xb4   :  { %v286_v2 = vsel %vm273_vm5, %v269_v0, %v233_v37  ;;  %14814 = vmatmul.mubr.msk.f32.gmra.mxu0 %vm20619_vm6, %v332_v48 }
  0xb5   :  { %v317_v38 = vcombine.high %v286_v2, %v286_v2  ;;  %v333_v52 = vcombine.low %v316_v35, %v286_v2  ;;  %14816 = vmatprep.mubr.msk.f32.mxu0 %vm15618_vm3, %v20616_v32 }
  0xb6   :  { %v156_v41 = vpop.permute.xlu0 %155  ;;  %v235_v42 = vpop.permute.xlu1 %234 }
  0xb7   :  { %v270_v43 = vsel %vm256_vm4, %v15880_v62, %v156_v41 }
  0xb8   :  { %v287_v44 = vsel %vm273_vm5, %v270_v43, %v235_v42  ;;  %14817 = vmatmul.mubr.msk.f32.gmra.mxu0 %vm20619_vm6, %v333_v52 }
  0xb9   :  { %v318_v1 = vcombine.high %v287_v44, %v287_v44  ;;  %v334_v57 = vcombine.low %v317_v38, %v287_v44  ;;  %14819 = vmatprep.mubr.msk.f32.mxu0 %vm15618_vm3, %v20616_v32 }
  0xba   :  { %v158_v45 = vpop.permute.xlu0 %157  ;;  %v237_v46 = vpop.permute.xlu1 %236 }
  0xbb   :  { %v271_v47 = vsel %vm256_vm4, %v15891_v6, %v158_v45  ;;  %v15619_v6 = vmov 1966171168  }
  0xbc   :  { %v288_v49 = vsel %vm273_vm5, %v271_v47, %v237_v46  ;;  %14820 = vmatmul.mubr.msk.f32.gmra.mxu0 %vm20619_vm6, %v334_v57  ;;  %v588_v56 = vunpack.c.l.s4 %v15619_v6 }
  0xbd   :  { %v319_v50 = vcombine.high %v288_v49, %v288_v49  ;;  %v335_v62 = vcombine.low %v318_v1, %v288_v49  ;;  %14822 = vmatprep.mubr.msk.f32.mxu0 %vm15618_vm3, %v20616_v32 }
  0xbe   :  { %v160_v9 = vpop.permute.xlu0 %159  ;;  %v239_v51 = vpop.permute.xlu1 %238  ;;  %v589_v58 = vunpack.c.0.s8 %v588_v56 }
  0xbf   :  { %v272_v53 = vsel %vm256_vm4, %v15902_v12, %v160_v9  ;;  %v16014_v12 = vld [vmem:[%s20633_s2] ss:$0 sm:$0xff] }
  0xc0   :  { %v289_v54 = vsel %vm273_vm5, %v272_v53, %v239_v51  ;;  %14823 = vmatmul.mubr.msk.f32.gmra.mxu0 %vm20619_vm6, %v335_v62  ;;  %v16026_v4 = vsub.s32 %v589_v58, %v16016_v59 }
  0xc1   :  { %v336_v55 = vcombine.low %v319_v50, %v289_v54  ;;  %14825 = vmatprep.mubr.msk.f32.mxu0 %vm15618_vm3, %v20616_v32 }
  0xc4   :  { %14826 = vmatmul.mubr.msk.f32.gmra.mxu0 %vm20619_vm6, %v336_v55  ;;  %vm20620_vm6 = vcmask 392192  }
  0xc5   :  { %14927 = vmatprep.mubr.msk.f32.mxu0 %vm15618_vm3, %v20616_v32 }
 0x14c   :  { %v438_v60 = vpop.f32.mrf.mxu0 }
 0x14d   :  { %v519_v63 = vmul.f32 %v16014_v12, %v438_v60 }
 0x14e   :  { %v14785_v21 = vpop.f32.mrf.mxu0 }
 0x14f   :  { %v541_v3 = vadd.f32 %v16021_v61, %v519_v63 }
 0x150   :  { %v443_v5 = vpop.f32.mrf.mxu0 }
 0x151   :  { %v556_v7 = vmax.f32 %v541_v3, 0.0  ;;  %v520_v26 = vmul.f32 %v16014_v12, %v443_v5 }
 0x152   :  { %v14788_v8 = vpop.f32.mrf.mxu0 }
 0x153   :  { %v586_v10 = vcombine.high %v556_v7, %v556_v7  ;;  %v593_v11 = vrot.slane %v556_v7, %v16026_v4  ;;  %v542_v13 = vadd.f32 %v16021_v61, %v520_v26 }
 0x154   :  { %v448_v14 = vpop.f32.mrf.mxu0 }
 0x155   :  { %v600_v39 = vrot.slane %v586_v10, %v16026_v4  ;;  %v601_v15 = vcombine.high %v593_v11, %v593_v11  ;;  %v609_v17 = vrot.slane %v593_v11, %v16026_v4  ;;  %v557_v18 = vmax.f32 %v542_v13, 0.0 }
 0x156   :  { %v521_v19 = vmul.f32 %v16014_v12, %v448_v14  ;;  %v14791_v33 = vpop.f32.mrf.mxu0 }
 0x157   :  { %v602_v20 = vcombine.high %v600_v39, %v600_v39  ;;  %v623_v22 = vrot.slane %v601_v15, %v16026_v4  ;;  %v631_v23 = vcombine.high %v609_v17, %v609_v17  ;;  %v616_v24 = vrot.slane %v600_v39, %v16026_v4 }
 0x158   :  { %v635_v25 = vcombine.high %v557_v18, %v557_v18  ;;  %v642_v27 = vrot.slane %v557_v18, %v16026_v4  ;;  %v543_v28 = vadd.f32 %v16021_v61, %v521_v19  ;;  %v16038_v40 = vpop.f32.mrf.mxu0 }
 0x159   :  { %v630_v29 = vrot.slane %v602_v20, %v16026_v4  ;;  %v633_v30 = vcombine.high %v623_v22, %v623_v22  ;;  %v1321_v31 = vcombine.low %v609_v17, %v623_v22  ;;  %v16042_v34 = vrot.slane %v631_v23, %v16026_v4 }
 0x15a   :  { %v649_v35 = vrot.slane %v635_v25, %v16026_v4  ;;  %v650_v48 = vcombine.high %v642_v27, %v642_v27  ;;  %v658_v36 = vrot.slane %v642_v27, %v16026_v4  ;;  %v558_v37 = vmax.f32 %v543_v28, 0.0  ;;  %v14794_v0 = vpop.f32.mrf.mxu0 }
 0x15b   :  { %v16047_v2 = vrot.slane %v1321_v31, %v16026_v4  ;;  %v1344_v38 = vcombine.low %v633_v30, %v616_v24  ;;  %v1358_v52 = vrot.slane %v630_v29, %v16026_v4  ;;  %v14343_v41 = vcombine.high %v616_v24, %v630_v29 }
 0x15c   :  { %v651_v42 = vcombine.high %v649_v35, %v649_v35  ;;  %v665_v43 = vrot.slane %v649_v35, %v16026_v4  ;;  %v672_v44 = vrot.slane %v650_v48, %v16026_v4  ;;  %v680_v1 = vcombine.high %v658_v36, %v658_v36  ;;  %v16052_v57 = vpop.f32.mrf.mxu0 }
 0x15d   :  { %v1351_v46 = vrot.slane %v1344_v38, %v16026_v4  ;;  %v1374_v47 = vrot.slane %v14343_v41, %v16026_v4  ;;  %v1381_v49 = vrot.slane %v658_v36, %v16026_v4  ;;  %v684_v6 = vcombine.high %v558_v37, %v558_v37 }
 0x15e   :  { %v679_v50 = vrot.slane %v651_v42, %v16026_v4  ;;  %v681_v62 = vcombine.high %v665_v43, %v665_v43  ;;  %v682_v9 = vcombine.high %v672_v44, %v672_v44  ;;  %v1390_v51 = vcombine.low %v672_v44, %v680_v1  ;;  %v14797_v53 = vpop.f32.mrf.mxu0 }
 0x15f   :  { %v1359_v54 = vcombine.low %v1351_v46, %v1358_v52  ;;  %v1382_v55 = vcombine.low %v1374_v47, %v1381_v49  ;;  %v691_v26 = vrot.slane %v558_v37, %v16026_v4  ;;  %v698_v13 = vrot.slane %v684_v6, %v16026_v4 }
 0x160   :  { %v1397_v56 = vrot.slane %v1390_v51, %v16026_v4  ;;  %v1404_v16 = vrot.slane %v682_v9, %v16026_v4  ;;  %v1413_v58 = vcombine.low %v665_v43, %v679_v50  ;;  %v463_v60 = vpop.f32.mrf.mxu0  ;;  %v1427_v7 = vrot.slane %v681_v62, %v16026_v4 }
 0x161   :  { %v1366_v63 = vrot.slane %v1359_v54, %v16026_v4  ;;  %v1389_v21 = vrot.slane %v1382_v55, %v16026_v4  ;;  %v699_v19 = vcombine.high %v691_v26, %v691_v26  ;;  %v700_v33 = vcombine.high %v698_v13, %v698_v13 }
 0x162   :  { %v1405_v3 = vcombine.low %v1397_v56, %v1404_v16  ;;  %v1420_v5 = vrot.slane %v1413_v58, %v16026_v4  ;;  %v14800_v8 = vpop.f32.mrf.mxu0  ;;  %v683_v24 = vcombine.high %v679_v50, %v679_v50  ;;  %v714_v29 = vrot.slane %v698_v13, %v16026_v4 }
 0x163   :  { %v2289_v10 = vsel %vm20618_vm7, %v1366_v63, -inf  ;;  %v2296_v11 = vsel %vm20618_vm7, %v1389_v21, -inf  ;;  %v721_v30 = vrot.slane %v699_v19, %v16026_v4  ;;  %v707_v31 = vrot.slane %v691_v26, %v16026_v4 }
 0x164   :  { %v2290_v14 = vrot.slane %v2289_v10, 4  ;;  %v1412_v39 = vrot.slane %v1405_v3, %v16026_v4  ;;  %v1428_v15 = vcombine.low %v1420_v5, %v1427_v7  ;;  %v468_v17 = vpop.f32.mrf.mxu0  ;;  %v2297_v18 = vrot.slane %v2296_v11, 4 }
 0x165   :  { %v728_v35 = vrot.slane %v700_v33, %v16026_v4  ;;  %v522_v48 = vmul.f32 %v16014_v12, %v16038_v40  ;;  %v730_v38 = vcombine.high %v714_v29, %v714_v29  ;;  %v1436_v43 = vcombine.low %v683_v24, %v707_v31 }
 0x166   :  { %v16071_v20 = vmax.f32 %v2289_v10, %v2290_v14  ;;  %v1435_v22 = vrot.slane %v1428_v15, %v16026_v4  ;;  %v2303_v23 = vsel %vm20618_vm7, %v1412_v39, -inf  ;;  %v14803_v25 = vpop.f32.mrf.mxu0  ;;  %v2298_v27 = vmax.f32 %v2296_v11, %v2297_v18 }
 0x167   :  { %v2304_v28 = vrot.slane %v2303_v23, 4  ;;  %v732_v42 = vcombine.high %v728_v35, %v728_v35  ;;  %v1450_v46 = vrot.slane %v721_v30, %v16026_v4  ;;  %v14344_v47 = vcombine.high %v707_v31, %v721_v30 }
 0x168   :  { %v473_v36 = vpop.f32.mrf.mxu0  ;;  %v2292_v37 = vrot.slane %v16071_v20, 2  ;;  %v2299_v0 = vrot.slane %v2298_v27, 2  ;;  %v16085_v41 = vsel %vm20618_vm7, %v1435_v22, -inf  ;;  %v1482_v49 = vcombine.low %v728_v35, %v730_v38 }
 0x169   :  { %v16082_v52 = vmax.f32 %v2303_v23, %v2304_v28  ;;  %v1443_v40 = vrot.slane %v1436_v43, %v16026_v4  ;;  %v1473_v50 = vrot.slane %v714_v29, %v16026_v4  ;;  %v544_v62 = vadd.f32 %v16021_v61, %v522_v48 }
 0x16a   :  { %v14806_v44 = vpop.f32.mrf.mxu0  ;;  %v16087_v1 = vmax.f32 %v2298_v27, %v2299_v0  ;;  %v523_v9 = vmul.f32 %v16014_v12, %v16052_v57  ;;  %v1466_v53 = vrot.slane %v14344_v47, %v16026_v4  ;;  %v1489_v54 = vrot.slane %v1482_v49, %v16026_v4 }
 0x16b   :  { %v1496_v55 = vrot.slane %v732_v42, %v16026_v4  ;;  %v524_v6 = vmul.f32 %v16014_v12, %v463_v60  ;;  %v2311_v56 = vrot.slane %v16085_v41, 4  ;;  %v1451_v16 = vcombine.low %v1443_v40, %v1450_v46 }
 0x16c   :  { %v16095_v51 = vpop.f32.mrf.mxu0  ;;  %v559_v58 = vmax.f32 %v544_v62, 0.0  ;;  %v545_v63 = vadd.f32 %v16021_v61, %v523_v9  ;;  %v16103_v3 = vcombine.low %v1466_v53, %v1473_v50  ;;  %v525_v5 = vmul.f32 %v16014_v12, %v468_v17 }
 0x16d   :  { %v546_v57 = vadd.f32 %v16021_v61, %v524_v6  ;;  %v526_v7 = vmul.f32 %v16014_v12, %v473_v36  ;;  %v1458_v26 = vrot.slane %v1451_v16, %v16026_v4  ;;  %v2301_v13 = vrot.slane %v16087_v1, 1 }
 0x16e   :  { %v14809_v21 = vpop.f32.mrf.mxu0  ;;  %v733_v8 = vcombine.high %v559_v58, %v559_v58  ;;  %v740_v60 = vrot.slane %v559_v58, %v16026_v4  ;;  %v560_v10 = vmax.f32 %v545_v63, 0.0  ;;  %v16115_v39 = vcombine.low %v1489_v54, %v1496_v55 }
 0x16f   :  { %v561_v15 = vmax.f32 %v546_v57, 0.0  ;;  %v16118_v17 = vsel %vm20618_vm7, %v1458_v26, -inf  ;;  %v547_v25 = vadd.f32 %v16021_v61, %v525_v5  ;;  %v16125_v27 = vadd.f32 %v16021_v61, %v526_v7 }
 0x170   :  { %v16110_v11 = vpop.f32.mrf.mxu0  ;;  %v747_v18 = vrot.slane %v733_v8, %v16026_v4  ;;  %v748_v19 = vcombine.high %v740_v60, %v740_v60  ;;  %v756_v33 = vrot.slane %v740_v60, %v16026_v4  ;;  %v782_v23 = vcombine.high %v560_v10, %v560_v10 }
 0x171   :  { %v789_v24 = vrot.slane %v560_v10, %v16026_v4  ;;  %v831_v38 = vcombine.high %v561_v15, %v561_v15  ;;  %v838_v55 = vrot.slane %v561_v15, %v16026_v4 }
 0x172   :  { %v14812_v22 = vpop.f32.mrf.mxu0  ;;  %v749_v29 = vcombine.high %v747_v18, %v747_v18  ;;  %v770_v30 = vrot.slane %v748_v19, %v16026_v4  ;;  %v778_v31 = vcombine.high %v756_v33, %v756_v33  ;;  %v796_v48 = vrot.slane %v782_v23, %v16026_v4 }
 0x173   :  { %v797_v36 = vcombine.high %v789_v24, %v789_v24  ;;  %v805_v0 = vrot.slane %v789_v24, %v16026_v4  ;;  %v763_v42 = vrot.slane %v747_v18, %v16026_v4  ;;  %v845_v23 = vrot.slane %v831_v38, %v16026_v4 }
 0x174   :  { %v16129_v35 = vpop.f32.mrf.mxu0  ;;  %v777_v43 = vrot.slane %v749_v29, %v16026_v4  ;;  %v780_v44 = vcombine.high %v770_v30, %v770_v30  ;;  %v1505_v46 = vcombine.low %v756_v33, %v770_v30  ;;  %v798_v49 = vcombine.high %v796_v48, %v796_v48 }
 0x175   :  { %v812_v40 = vrot.slane %v796_v48, %v16026_v4  ;;  %v819_v50 = vrot.slane %v797_v36, %v16026_v4  ;;  %v827_v62 = vcombine.high %v805_v0, %v805_v0  ;;  %v16141_v53 = vrot.slane %v778_v31, %v16026_v4 }
 0x176   :  { %v14815_v47 = vpop.f32.mrf.mxu0  ;;  %v16138_v9 = vrot.slane %v1505_v46, %v16026_v4  ;;  %v14345_v54 = vcombine.high %v763_v42, %v777_v43  ;;  %v1528_v16 = vcombine.low %v780_v44, %v763_v42  ;;  %v826_v58 = vrot.slane %v798_v49, %v16026_v4 }
 0x177   :  { %v828_v63 = vcombine.high %v812_v40, %v812_v40  ;;  %v829_v21 = vcombine.high %v819_v50, %v819_v50  ;;  %v1542_v57 = vrot.slane %v777_v43, %v16026_v4  ;;  %v1565_v7 = vrot.slane %v805_v0, %v16026_v4 }
 0x178   :  { %v16144_v6 = vpop.f32.mrf.mxu0  ;;  %v1558_v5 = vrot.slane %v14345_v54, %v16026_v4  ;;  %v1574_v26 = vcombine.low %v819_v50, %v827_v62  ;;  %v1520_v60 = vcombine.low %v16138_v9, %v16141_v53  ;;  %v1597_v15 = vcombine.low %v812_v40, %v826_v58 }
 0x179   :  { %v1588_v10 = vrot.slane %v829_v21, %v16026_v4  ;;  %v830_v18 = vcombine.high %v826_v58, %v826_v58  ;;  %v1611_v22 = vrot.slane %v828_v63, %v16026_v4  ;;  %v846_v30 = vcombine.high %v838_v55, %v838_v55 }
 0x17a   :  { %v14818_v8 = vpop.f32.mrf.mxu0  ;;  %v1566_v19 = vcombine.low %v1558_v5, %v1565_v7  ;;  %v1581_v33 = vrot.slane %v1574_v26, %v16026_v4  ;;  %v1604_v29 = vrot.slane %v1597_v15, %v16026_v4  ;;  %v854_v31 = vrot.slane %v838_v55, %v16026_v4 }
 0x17b   :  { %v562_v48 = vmax.f32 %v547_v25, 0.0  ;;  %v847_v42 = vcombine.high %v845_v23, %v845_v23  ;;  %v861_v43 = vrot.slane %v845_v23, %v16026_v4  ;;  %v1535_v46 = vrot.slane %v1528_v16, %v16026_v4 }
 0x17c   :  { %v16156_v24 = vpop.f32.mrf.mxu0  ;;  %v1573_v36 = vrot.slane %v1566_v19, %v16026_v4  ;;  %v1589_v0 = vcombine.low %v1581_v33, %v1588_v10  ;;  %v1612_v47 = vcombine.low %v1604_v29, %v1611_v22  ;;  %v868_v38 = vrot.slane %v846_v30, %v16026_v4 }
 0x17d   :  { %v1620_v49 = vcombine.low %v830_v18, %v854_v31  ;;  %v875_v62 = vrot.slane %v847_v42, %v16026_v4  ;;  %v877_v25 = vcombine.high %v861_v43, %v861_v43  ;;  %v880_v26 = vcombine.high %v562_v48, %v562_v48 }
 0x17e   :  { %v14821_v44 = vpop.f32.mrf.mxu0  ;;  %v1596_v40 = vrot.slane %v1589_v0, %v16026_v4  ;;  %v2352_v50 = vsel %vm20618_vm7, %v1573_v36, -inf  ;;  %v1619_v55 = vrot.slane %v1612_v47, %v16026_v4  ;;  %v1634_v16 = vrot.slane %v868_v38, %v16026_v4 }
 0x17f   :  { %v2353_v58 = vrot.slane %v2352_v50, 4  ;;  %v1627_v63 = vrot.slane %v1620_v49, %v16026_v4  ;;  %v879_v5 = vcombine.high %v875_v62, %v875_v62  ;;  %v14346_v7 = vcombine.high %v854_v31, %v868_v38 }
 0x180   :  { %v16167_v54 = vpop.f32.mrf.mxu0  ;;  %v2359_v21 = vsel %vm20618_vm7, %v1596_v40, -inf  ;;  %v16173_v10 = vcombine.low %v1535_v46, %v1542_v57  ;;  %v16178_v18 = vsel %vm20618_vm7, %v1619_v55, -inf  ;;  %v1657_v23 = vrot.slane %v861_v43, %v16026_v4 }
 0x181   :  { %v16175_v15 = vmax.f32 %v2352_v50, %v2353_v58  ;;  %v1635_v19 = vcombine.low %v1627_v63, %v1634_v16  ;;  %v2360_v33 = vrot.slane %v2359_v21, 4  ;;  %v1650_v22 = vrot.slane %v14346_v7, %v16026_v4 }
 0x182   :  { %v14824_v8 = vpop.f32.mrf.mxu0  ;;  %v1666_v29 = vcombine.low %v875_v62, %v877_v25  ;;  %v1680_v57 = vrot.slane %v879_v5, %v16026_v4  ;;  %v887_v0 = vrot.slane %v562_v48, %v16026_v4  ;;  %v894_v46 = vrot.slane %v880_v26, %v16026_v4 }
 0x183   :  { %v1642_v36 = vrot.slane %v1635_v19, %v16026_v4  ;;  %v16188_v42 = vcombine.low %v1650_v22, %v1657_v23  ;;  %v563_v47 = vmax.f32 %v16125_v27, 0.0  ;;  %v527_v50 = vmul.f32 %v16014_v12, %v16095_v51 }
 0x184   :  { %v16182_v30 = vpop.f32.mrf.mxu0  ;;  %v1673_v44 = vrot.slane %v1666_v29, %v16026_v4  ;;  %v895_v49 = vcombine.high %v887_v0, %v887_v0  ;;  %v903_v40 = vrot.slane %v887_v0, %v16026_v4  ;;  %v16197_v62 = vmax.f32 %v2359_v21, %v2360_v33 }
 0x185   :  { %v16202_v25 = vsel %vm20618_vm7, %v1642_v36, -inf  ;;  %v896_v55 = vcombine.high %v894_v46, %v894_v46  ;;  %v929_v16 = vcombine.high %v563_v47, %v563_v47  ;;  %v910_v5 = vrot.slane %v894_v46, %v16026_v4 }
 0x186   :  { %v14827_v43 = vpop.f32.mrf.mxu0  ;;  %v16204_v58 = vcombine.low %v1673_v44, %v1680_v57  ;;  %v917_v27 = vrot.slane %v895_v49, %v16026_v4  ;;  %v925_v63 = vcombine.high %v903_v40, %v903_v40  ;;  %v936_v51 = vrot.slane %v563_v47, %v16026_v4 }
 0x187   :  { %v924_v7 = vrot.slane %v896_v55, %v16026_v4  ;;  %v549_v21 = vadd.f32 %v16021_v61, %v527_v50  ;;  %v943_v19 = vrot.slane %v929_v16, %v16026_v4  ;;  %v528_v33 = vmul.f32 %v16014_v12, %v16110_v11 }
 0x188   :  { %v927_v26 = vcombine.high %v917_v27, %v917_v27  ;;  %v1689_v8 = vcombine.low %v903_v40, %v917_v27  ;;  %v16215_v22 = vrot.slane %v925_v63, %v16026_v4  ;;  %v944_v29 = vcombine.high %v936_v51, %v936_v51 }
 0x189   :  { %v14347_v23 = vcombine.high %v910_v5, %v924_v7  ;;  %v952_v36 = vrot.slane %v936_v51, %v16026_v4  ;;  %v945_v44 = vcombine.high %v943_v19, %v943_v19  ;;  %v959_v46 = vrot.slane %v943_v19, %v16026_v4 }
 0x18a   :  { %v16219_v57 = vrot.slane %v1689_v8, %v16026_v4  ;;  %v1712_v0 = vcombine.low %v927_v26, %v910_v5  ;;  %v966_v47 = vrot.slane %v944_v29, %v16026_v4  ;;  %v1726_v50 = vrot.slane %v924_v7, %v16026_v4 }
 0x18b   :  { %v974_v43 = vcombine.high %v952_v36, %v952_v36  ;;  %v1742_v49 = vrot.slane %v14347_v23, %v16026_v4  ;;  %v1749_v11 = vrot.slane %v952_v36, %v16026_v4  ;;  %v973_v55 = vrot.slane %v945_v44, %v16026_v4 }
 0x18c   :  { %v1719_v40 = vrot.slane %v1712_v0, %v16026_v4  ;;  %v975_v27 = vcombine.high %v959_v46, %v959_v46  ;;  %v976_v63 = vcombine.high %v966_v47, %v966_v47  ;;  %v564_v51 = vmax.f32 %v549_v21, 0.0 }
 0x18d   :  { %v16228_v16 = vcombine.low %v1742_v49, %v1749_v11  ;;  %v1758_v5 = vcombine.low %v966_v47, %v974_v43  ;;  %v1781_v23 = vcombine.low %v959_v46, %v973_v55  ;;  %v977_v49 = vcombine.high %v973_v55, %v973_v55 }
 0x18e   :  { %v16233_v19 = vcombine.low %v1719_v40, %v1726_v50  ;;  %v1772_v7 = vrot.slane %v976_v63, %v16026_v4  ;;  %v1795_v36 = vrot.slane %v975_v27, %v16026_v4  ;;  %v978_v0 = vcombine.high %v564_v51, %v564_v51 }
 0x18f   :  { %v1765_v29 = vrot.slane %v1758_v5, %v16026_v4  ;;  %v1788_v44 = vrot.slane %v1781_v23, %v16026_v4  ;;  %v985_v21 = vrot.slane %v564_v51, %v16026_v4  ;;  %v550_v47 = vadd.f32 %v16021_v61, %v528_v33 }
 0x190   :  { %v992_v46 = vrot.slane %v978_v0, %v16026_v4  ;;  %v529_v40 = vmul.f32 %v16014_v12, %v16129_v35  ;;  %v530_v33 = vmul.f32 %v16014_v12, %v16144_v6  ;;  %v2312_v9 = vmax.f32 %v16085_v41, %v2311_v56 }
 0x191   :  { %v16243_v11 = vcombine.low %v1765_v29, %v1772_v7  ;;  %v1796_v50 = vcombine.low %v1788_v44, %v1795_v36  ;;  %v993_v27 = vcombine.high %v985_v21, %v985_v21  ;;  %v1001_v63 = vrot.slane %v985_v21, %v16026_v4 }
 0x192   :  { %v565_v5 = vmax.f32 %v550_v47, 0.0  ;;  %v994_v55 = vcombine.high %v992_v46, %v992_v46  ;;  %v1008_v51 = vrot.slane %v992_v46, %v16026_v4  ;;  %v551_v47 = vadd.f32 %v16021_v61, %v529_v40 }
 0x193   :  { %v1803_v29 = vrot.slane %v1796_v50, %v16026_v4  ;;  %v1015_v7 = vrot.slane %v993_v27, %v16026_v4  ;;  %v1804_v0 = vcombine.low %v977_v49, %v1001_v63 }
 0x194   :  { %v1027_v35 = vcombine.high %v565_v5, %v565_v5  ;;  %v1022_v36 = vrot.slane %v994_v55, %v16026_v4  ;;  %v1024_v44 = vcombine.high %v1008_v51, %v1008_v51  ;;  %v1034_v21 = vrot.slane %v565_v5, %v16026_v4 }
 0x195   :  { %v2422_v46 = vsel %vm20618_vm7, %v1803_v29, -inf  ;;  %v1811_v6 = vrot.slane %v1804_v0, %v16026_v4  ;;  %v1818_v45 = vrot.slane %v1015_v7, %v16026_v4  ;;  %v14348_v43 = vcombine.high %v1001_v63, %v1015_v7 }
 0x196   :  { %v1026_v48 = vcombine.high %v1022_v36, %v1022_v36  ;;  %v1841_v50 = vrot.slane %v1008_v51, %v16026_v4  ;;  %v1850_v27 = vcombine.low %v1022_v36, %v1024_v44  ;;  %v1041_v49 = vrot.slane %v1027_v35, %v16026_v4 }
 0x197   :  { %v1819_v26 = vcombine.low %v1811_v6, %v1818_v45  ;;  %v1834_v55 = vrot.slane %v14348_v43, %v16026_v4  ;;  %v1042_v31 = vcombine.high %v1034_v21, %v1034_v21  ;;  %v1050_v5 = vrot.slane %v1034_v21, %v16026_v4 }
 0x198   :  { %v2423_v40 = vrot.slane %v2422_v46, 4  ;;  %v1857_v29 = vrot.slane %v1850_v27, %v16026_v4  ;;  %v1864_v0 = vrot.slane %v1026_v48, %v16026_v4  ;;  %v1043_v32 = vcombine.high %v1041_v49, %v1041_v49 }
 0x199   :  { %v1826_v63 = vrot.slane %v1819_v26, %v16026_v4  ;;  %v1842_v7 = vcombine.low %v1834_v55, %v1841_v50  ;;  %v1064_v51 = vrot.slane %v1042_v31, %v16026_v4  ;;  %v552_v36 = vadd.f32 %v16021_v61, %v530_v33 }
 0x19a   :  { %v1865_v35 = vcombine.low %v1857_v29, %v1864_v0  ;;  %v1057_v45 = vrot.slane %v1041_v49, %v16026_v4  ;;  %v1071_v43 = vrot.slane %v1043_v32, %v16026_v4  ;;  %v1072_v44 = vcombine.high %v1050_v5, %v1050_v5 }
 0x19b   :  { %v1849_v21 = vrot.slane %v1842_v7, %v16026_v4  ;;  %v2429_v6 = vsel %vm20618_vm7, %v1826_v63, -inf  ;;  %v1074_v27 = vcombine.high %v1064_v51, %v1064_v51  ;;  %v1873_v48 = vcombine.low %v1050_v5, %v1064_v51 }
 0x19c   :  { %v16275_v8 = vmax.f32 %v2422_v46, %v2423_v40  ;;  %v1872_v26 = vrot.slane %v1865_v35, %v16026_v4  ;;  %v2430_v50 = vrot.slane %v2429_v6, 4  ;;  %v1887_v31 = vrot.slane %v1072_v44, %v16026_v4 }
 0x19d   :  { %v2436_v33 = vsel %vm20618_vm7, %v1849_v21, -inf  ;;  %v1880_v49 = vrot.slane %v1873_v48, %v16026_v4  ;;  %v1896_v55 = vcombine.low %v1074_v27, %v1057_v45  ;;  %v1910_v32 = vrot.slane %v1071_v43, %v16026_v4 }
 0x19e   :  { %v2431_v29 = vmax.f32 %v2429_v6, %v2430_v50  ;;  %v2437_v0 = vrot.slane %v2436_v33, 4  ;;  %v16283_v63 = vsel %vm20618_vm7, %v1872_v26, -inf  ;;  %v14349_v5 = vcombine.high %v1057_v45, %v1071_v43 }
 0x19f   :  { %v1888_v40 = vcombine.low %v1880_v49, %v1887_v31  ;;  %v1903_v7 = vrot.slane %v1896_v55, %v16026_v4  ;;  %v566_v51 = vmax.f32 %v551_v47, 0.0  ;;  %v567_v48 = vmax.f32 %v552_v36, 0.0 }
 0x1a0   :  { %v2432_v35 = vrot.slane %v2431_v29, 2  ;;  %v2438_v44 = vmax.f32 %v2436_v33, %v2437_v0  ;;  %v1926_v21 = vrot.slane %v14349_v5, %v16026_v4 }
 0x1a1   :  { %v1895_v27 = vrot.slane %v1888_v40, %v16026_v4  ;;  %v16289_v38 = vcombine.low %v1903_v7, %v1910_v32  ;;  %v1076_v6 = vcombine.high %v566_v51, %v566_v51  ;;  %v1083_v26 = vrot.slane %v566_v51, %v16026_v4 }
 0x1a2   :  { %v16292_v50 = vmax.f32 %v2431_v29, %v2432_v35  ;;  %v2439_v45 = vrot.slane %v2438_v44, 2  ;;  %v1125_v43 = vcombine.high %v567_v48, %v567_v48  ;;  %v1132_v31 = vrot.slane %v567_v48, %v16026_v4 }
 0x1a3   :  { %v2450_v33 = vsel %vm20618_vm7, %v1895_v27, -inf  ;;  %v1090_v36 = vrot.slane %v1076_v6, %v16026_v4  ;;  %v1091_v49 = vcombine.high %v1083_v26, %v1083_v26  ;;  %v1099_v0 = vrot.slane %v1083_v26, %v16026_v4 }
 0x1a4   :  { %v16299_v55 = vmax.f32 %v2438_v44, %v2439_v45  ;;  %v2451_v32 = vrot.slane %v2450_v33, 4  ;;  %v1139_v29 = vrot.slane %v1125_v43, %v16026_v4  ;;  %v1140_v51 = vcombine.high %v1132_v31, %v1132_v31 }
 0x1a5   :  { %v1092_v5 = vcombine.high %v1090_v36, %v1090_v36  ;;  %v1106_v40 = vrot.slane %v1090_v36, %v16026_v4  ;;  %v1113_v7 = vrot.slane %v1091_v49, %v16026_v4  ;;  %v1121_v48 = vcombine.high %v1099_v0, %v1099_v0 }
 0x1a6   :  { %v16305_v35 = vmax.f32 %v2450_v33, %v2451_v32  ;;  %v1933_v27 = vrot.slane %v1099_v0, %v16026_v4  ;;  %v1141_v6 = vcombine.high %v1139_v29, %v1139_v29  ;;  %v1148_v26 = vrot.slane %v1132_v31, %v16026_v4 }
 0x1a7   :  { %v1120_v44 = vrot.slane %v1092_v5, %v16026_v4  ;;  %v1122_v45 = vcombine.high %v1106_v40, %v1106_v40  ;;  %v1123_v47 = vcombine.high %v1113_v7, %v1113_v7  ;;  %v1942_v43 = vcombine.low %v1113_v7, %v1121_v48 }
 0x1a8   :  { %v1934_v46 = vcombine.low %v1926_v21, %v1933_v27  ;;  %v1155_v23 = vrot.slane %v1139_v29, %v16026_v4  ;;  %v1162_v36 = vrot.slane %v1140_v51, %v16026_v4  ;;  %v1169_v28 = vrot.slane %v1141_v6, %v16026_v4 }
 0x1a9   :  { %v1956_v49 = vrot.slane %v1123_v47, %v16026_v4  ;;  %v1965_v33 = vcombine.low %v1106_v40, %v1120_v44  ;;  %v16314_v32 = vrot.slane %v1122_v45, %v16026_v4  ;;  %v1124_v0 = vcombine.high %v1120_v44, %v1120_v44 }
 0x1aa   :  { %v1941_v14 = vrot.slane %v1934_v46, %v16026_v4  ;;  %v1949_v5 = vrot.slane %v1942_v43, %v16026_v4  ;;  %v1171_v31 = vcombine.high %v1155_v23, %v1155_v23  ;;  %v2002_v7 = vrot.slane %v1162_v36, %v16026_v4 }
 0x1ab   :  { %v16320_v21 = vrot.slane %v1965_v33, %v16026_v4  ;;  %v1988_v29 = vcombine.low %v1124_v0, %v1148_v26  ;;  %v14350_v51 = vcombine.high %v1148_v26, %v1162_v36  ;;  %v1173_v48 = vcombine.high %v1169_v28, %v1169_v28 }
 0x1ac   :  { %v16323_v47 = vcombine.low %v1949_v5, %v1956_v49  ;;  %v16326_v40 = vsel %vm20618_vm7, %v1941_v14, -inf  ;;  %v2025_v46 = vrot.slane %v1155_v23, %v16026_v4  ;;  %v2034_v43 = vcombine.low %v1169_v28, %v1171_v31 }
 0x1ad   :  { %v1995_v44 = vrot.slane %v1988_v29, %v16026_v4  ;;  %v2018_v45 = vrot.slane %v14350_v51, %v16026_v4  ;;  %v2048_v26 = vrot.slane %v1173_v48, %v16026_v4  ;;  %v1527_v14 = vrot.slane %v1520_v60, %v16026_v4 }
 0x1ae   :  { %v2293_v23 = vmax.f32 %v16071_v20, %v2292_v37  ;;  %v16347_v33 = vmax.f32 %v16087_v1, %v2301_v13  ;;  %v2306_v28 = vrot.slane %v16082_v52, 2  ;;  %v2041_v0 = vrot.slane %v2034_v43, %v16026_v4 }
 0x1af   :  { %v16342_v36 = vcombine.low %v1995_v44, %v2002_v7  ;;  %v2026_v49 = vcombine.low %v2018_v45, %v2025_v46  ;;  %v20635_v20 = vrot.slane %v16118_v17, 4  ;;  %v20636_v1 = vrot.slane %v16103_v3, %v16026_v4 }
 0x1b0   :  { %v2294_v5 = vrot.slane %v2293_v23, 1  ;;  %v2307_v60 = vmax.f32 %v16082_v52, %v2306_v28  ;;  %v20637_v31 = vrot.slane %v16115_v39, %v16026_v4  ;;  %v2049_v41 = vcombine.low %v2041_v0, %v2048_v26 }
 0x1b1   :  { %v2319_v37 = vmax.f32 %v16118_v17, %v20635_v20  ;;  %v2033_v53 = vrot.slane %v2026_v49, %v16026_v4  ;;  %v2324_v13 = vsel %vm20618_vm7, %v20636_v1, -inf  ;;  %v2313_v7 = vrot.slane %v2312_v9, 2 }
 0x1b2   :  { %v2331_v29 = vsel %vm20618_vm7, %v20637_v31, -inf  ;;  %v16367_v56 = vmax.f32 %v2293_v23, %v2294_v5  ;;  %v2308_v52 = vrot.slane %v2307_v60, 1  ;;  %v2325_v48 = vrot.slane %v2324_v13, 4 }
 0x1b3   :  { %v2320_v17 = vrot.slane %v2319_v37, 2  ;;  %v2492_v51 = vsel %vm20618_vm7, %v2033_v53, -inf  ;;  %v2332_v46 = vrot.slane %v2331_v29, 4  ;;  %v2056_v3 = vrot.slane %v2049_v41, %v16026_v4 }
 0x1b4   :  { %v2493_v44 = vrot.slane %v2492_v51, 4  ;;  %v2314_v45 = vmax.f32 %v2312_v9, %v2313_v7  ;;  %v16371_v39 = vmax.f32 %v2307_v60, %v2308_v52  ;;  %v2326_v49 = vmax.f32 %v2324_v13, %v2325_v48 }
 0x1b5   :  { %v2321_v43 = vmax.f32 %v2319_v37, %v2320_v17  ;;  %v2333_v26 = vmax.f32 %v2331_v29, %v2332_v46  ;;  %v2338_v23 = vsel %vm20618_vm7, %v1527_v14, -inf  ;;  %v16377_v0 = vsel %vm20618_vm7, %v2056_v3, -inf }
 0x1b6   :  { %v16374_v28 = vmax.f32 %v2492_v51, %v2493_v44  ;;  %v2315_v5 = vrot.slane %v2314_v45, 1  ;;  %v2327_v1 = vrot.slane %v2326_v49, 2  ;;  %v2339_v37 = vrot.slane %v2338_v23, 4 }
 0x1b7   :  { %v2322_v20 = vrot.slane %v2321_v43, 1  ;;  %v2334_v9 = vrot.slane %v2333_v26, 2  ;;  %v2643_v14 = vsel %vm2598_vm8, %v16347_v33, %v16367_v56  ;;  %v531_v13 = vmul.f32 %v16014_v12, %v16156_v24 }
 0x1b8   :  { %v16380_v31 = vmax.f32 %v2314_v45, %v2315_v5  ;;  %v2328_v29 = vmax.f32 %v2326_v49, %v2327_v1  ;;  %v2340_v7 = vmax.f32 %v2338_v23, %v2339_v37  ;;  %v2644_v17 = vsel %vm2600_vm9, %v16371_v39, %v2643_v14 }
 0x1b9   :  { %v16382_v60 = vmax.f32 %v2321_v43, %v2322_v20  ;;  %v2335_v41 = vmax.f32 %v2333_v26, %v2334_v9  ;;  %v553_v52 = vadd.f32 %v16021_v61, %v531_v13  ;;  %v1550_v48 = vrot.slane %v16173_v10, %v16026_v4 }
 0x1ba   :  { %v2645_v51 = vsel %vm2602_vm10, %v16380_v31, %v2644_v17  ;;  %v2693_v46 = vsel %vm2598_vm8, %v16371_v39, %v16347_v33  ;;  %v2329_v24 = vrot.slane %v2328_v29, 1  ;;  %v2341_v44 = vrot.slane %v2340_v7, 2 }
 0x1bb   :  { %v2336_v3 = vrot.slane %v2335_v41, 1  ;;  %v2646_v45 = vsel %vm2604_vm11, %v16382_v60, %v2645_v51  ;;  %v568_v43 = vmax.f32 %v553_v52, 0.0  ;;  %v2345_v49 = vsel %vm20618_vm7, %v1550_v48, -inf }
 0x1bc   :  { %v2694_v26 = vsel %vm2600_vm9, %v16380_v31, %v2693_v46  ;;  %v20638_v23 = vrot.slane %v16175_v15, 2  ;;  %v16407_v5 = vmax.f32 %v2328_v29, %v2329_v24  ;;  %v2342_v1 = vmax.f32 %v2340_v7, %v2341_v44 }
 0x1bd   :  { %v16409_v20 = vmax.f32 %v2335_v41, %v2336_v3  ;;  %v2346_v9 = vrot.slane %v2345_v49, 4  ;;  %v1174_v37 = vcombine.high %v568_v43, %v568_v43  ;;  %v1181_v14 = vrot.slane %v568_v43, %v16026_v4 }
 0x1be   :  { %v2356_v10 = vmax.f32 %v16175_v15, %v20638_v23  ;;  %v2695_v13 = vsel %vm2602_vm10, %v16382_v60, %v2694_v26  ;;  %v2343_v51 = vrot.slane %v2342_v1, 1  ;;  %v2647_v52 = vsel %vm2606_vm12, %v16407_v5, %v2646_v45 }
 0x1bf   :  { %v2347_v48 = vmax.f32 %v2345_v49, %v2346_v9  ;;  %v2696_v15 = vsel %vm2604_vm11, %v16407_v5, %v2695_v13  ;;  %v2648_v29 = vsel %vm2608_vm13, %v16409_v20, %v2647_v52  ;;  %v1188_v41 = vrot.slane %v1174_v37, %v16026_v4 }
 0x1c0   :  { %v2357_v17 = vrot.slane %v2356_v10, 1  ;;  %v1189_v7 = vcombine.high %v1181_v14, %v1181_v14  ;;  %v1197_v46 = vrot.slane %v1181_v14, %v16026_v4  ;;  %v2344_v24 = vmax.f32 %v2342_v1, %v2343_v51 }
 0x1c1   :  { %v2348_v3 = vrot.slane %v2347_v48, 2  ;;  %v2697_v44 = vsel %vm2606_vm12, %v16409_v20, %v2696_v15  ;;  %v1190_v45 = vcombine.high %v1188_v41, %v1188_v41  ;;  %v1204_v49 = vrot.slane %v1188_v41, %v16026_v4 }
 0x1c2   :  { %v16424_v43 = vmax.f32 %v2356_v10, %v2357_v17  ;;  %v1211_v26 = vrot.slane %v1189_v7, %v16026_v4  ;;  %v1219_v23 = vcombine.high %v1197_v46, %v1197_v46  ;;  %v2649_v9 = vsel %vm2610_vm14, %v2344_v24, %v2648_v29 }
 0x1c3   :  { %v2349_v13 = vmax.f32 %v2347_v48, %v2348_v3  ;;  %v2698_v37 = vsel %vm2608_vm13, %v2344_v24, %v2697_v44  ;;  %v532_v1 = vmul.f32 %v16014_v12, %v16167_v54  ;;  %2673 = vrot.lane.b32.xlu0 %v2649_v9, %s15620_s27  ;;  %v1218_v10 = vrot.slane %v1190_v45, %v16026_v4 }
 0x1c4   :  { %v1221_v14 = vcombine.high %v1211_v26, %v1211_v26  ;;  %v2057_v17 = vcombine.low %v1197_v46, %v1211_v26  ;;  %v2071_v51 = vrot.slane %v1219_v23, %v16026_v4  ;;  %v533_v48 = vmul.f32 %v16014_v12, %v16182_v30  ;;  %v2848_v46 = vld [vmem:[%s20596_s6 + $0x28] sm:$0xff]  ;;  %v15576_v12 = vld [vmem:[%s20595_s5] ss:$0 sm:$0xff] }
 0x1c5   :  { %v2350_v52 = vrot.slane %v2349_v13, 1  ;;  %v554_v15 = vadd.f32 %v16021_v61, %v532_v1  ;;  %v1688_v29 = vrot.slane %v16204_v58, %v16026_v4  ;;  %v2094_v7 = vrot.slane %v1218_v10, %v16026_v4  ;;  %v2847_v61 = vld [vmem:[%s20596_s6 + $0x20] sm:$0xff]  ;;  %14829 = vmatpush3.msra.mxu1 %v2848_v46  ;;  %v2844_v58 = vld [vmem:[%s20596_s6 + $0x8] sm:$0xff] }
 0x1c6   :  { %v2064_v54 = vrot.slane %v2057_v17, %v16026_v4  ;;  %v2080_v41 = vcombine.low %v1221_v14, %v1204_v49  ;;  %v14351_v3 = vcombine.high %v1204_v49, %v1218_v10  ;;  %v555_v30 = vadd.f32 %v15576_v12, %v533_v48 }
 0x1c7   :  { %v2351_v44 = vmax.f32 %v2349_v13, %v2350_v52  ;;  %v569_v45 = vmax.f32 %v554_v15, 0.0  ;;  %v20639_v26 = vcombine.low %v16219_v57, %v16215_v22  ;;  %v2362_v13 = vrot.slane %v16197_v62, 2  ;;  %v2846_v57 = vld [vmem:[%s20596_s6 + $0x18] sm:$0xff] }
 0x1c8   :  { %v2072_v23 = vcombine.low %v2064_v54, %v2071_v51  ;;  %v2087_v9 = vrot.slane %v2080_v41, %v16026_v4  ;;  %v2110_v1 = vrot.slane %v14351_v3, %v16026_v4  ;;  %v20640_v10 = vmov 0.0  }
 0x1c9   :  { %v16455_v49 = vrot.slane %v20639_v26, %v16026_v4  ;;  %14830 = vmatprep.subr.mxu1 %v20640_v10  ;;  %v2699_v14 = vsel %vm2610_vm14, %v2351_v44, %v2698_v37  ;;  %v2612_v17 = vsel %vm2598_vm8, %v2351_v44, %v2344_v24  ;;  %v16465_v52 = vsel %vm2598_vm8, %v16424_v43, %v2351_v44 }
 0x1ca   :  { %v1223_v22 = vcombine.high %v569_v45, %v569_v45  ;;  %14831 = vmatpush3.msra.mxu1 %v2847_v61  ;;  %v2079_v51 = vrot.slane %v2072_v23, %v16026_v4  ;;  %v16471_v15 = vcombine.low %v2087_v9, %v2094_v7  ;;  %2723 = vrot.lane.b32.xlu1 %v2699_v14, %s15621_s3  ;;  %v570_v54 = vmax.f32 %v555_v30, 0.0  ;;  %v2845_v7 = vld [vmem:[%s20596_s6 + $0x10] sm:$0xff] }
 0x1cb   :  { %v16476_v24 = vsel %vm2600_vm9, %v16424_v43, %v2612_v17  ;;  %v1230_v37 = vrot.slane %v569_v45, %v16026_v4  ;;  %v2363_v41 = vmax.f32 %v16197_v62, %v2362_v13  ;;  %v20641_v3 = vrot.slane %v16178_v18, 4  ;;  %14832 = vmatprep.subr.mxu1 %v20640_v10 }
 0x1cc   :  { %v1237_v48 = vrot.slane %v1223_v22, %v16026_v4  ;;  %v2506_v44 = vsel %vm20618_vm7, %v2079_v51, -inf  ;;  %14833 = vmatpush3.msra.mxu1 %v2846_v57  ;;  %v1279_v14 = vrot.slane %v570_v54, %v16026_v4  ;;  %v20642_v6 = vrot.slane %v16202_v25, 4 }
 0x1cd   :  { %v2368_v46 = vmax.f32 %v16178_v18, %v20641_v3  ;;  %v1238_v45 = vcombine.high %v1230_v37, %v1230_v37  ;;  %v1246_v12 = vrot.slane %v1230_v37, %v16026_v4  ;;  %v2507_v62 = vrot.slane %v2506_v44, 4  ;;  %14834 = vmatprep.subr.mxu1 %v20640_v10 }
 0x1ce   :  { %v1239_v30 = vcombine.high %v1237_v48, %v1237_v48  ;;  %v1253_v26 = vrot.slane %v1237_v48, %v16026_v4  ;;  %v1272_v18 = vcombine.high %v570_v54, %v570_v54  ;;  %14835 = vmatpush3.msra.mxu1 %v2845_v7  ;;  %v1287_v61 = vcombine.high %v1279_v14, %v1279_v14 }
 0x1cf   :  { %v1260_v23 = vrot.slane %v1238_v45, %v16026_v4  ;;  %v1268_v9 = vcombine.high %v1246_v12, %v1246_v12  ;;  %v2117_v13 = vrot.slane %v1246_v12, %v16026_v4  ;;  %v16497_v17 = vmax.f32 %v2506_v44, %v2507_v62  ;;  %14836 = vmatprep.subr.mxu1 %v20640_v10 }
 0x1d0   :  { %v1267_v22 = vrot.slane %v1239_v30, %v16026_v4  ;;  %v1269_v57 = vcombine.high %v1253_v26, %v1253_v26  ;;  %v1286_v51 = vrot.slane %v1272_v18, %v16026_v4  ;;  %v1295_v30 = vrot.slane %v1279_v14, %v16026_v4  ;;  %14837 = vmatpush3.msra.mxu1 %v2844_v58 }
 0x1d1   :  { %v1270_v37 = vcombine.high %v1260_v23, %v1260_v23  ;;  %v2118_v48 = vcombine.low %v2110_v1, %v2117_v13  ;;  %v2126_v3 = vcombine.low %v1260_v23, %v1268_v9  ;;  %14838 = vmatprep.subr.mxu1 %v20640_v10 }
 0x1d2   :  { %v2149_v45 = vcombine.low %v1253_v26, %v1267_v22  ;;  %v16503_v53 = vrot.slane %v1269_v57, %v16026_v4  ;;  %v1271_v12 = vcombine.high %v1267_v22, %v1267_v22  ;;  %v1288_v54 = vcombine.high %v1286_v51, %v1286_v51 }
 0x1d3   :  { %v2125_v7 = vrot.slane %v2118_v48, %v16026_v4  ;;  %v2133_v44 = vrot.slane %v2126_v3, %v16026_v4  ;;  %v2140_v62 = vrot.slane %v1270_v37, %v16026_v4  ;;  %v1302_v1 = vrot.slane %v1286_v51, %v16026_v4 }
 0x1d4   :  { %v16510_v18 = vrot.slane %v2149_v45, %v16026_v4  ;;  %v1309_v26 = vrot.slane %v1287_v61, %v16026_v4  ;;  %v1316_v23 = vrot.slane %v1288_v54, %v16026_v4  ;;  %v2172_v22 = vcombine.low %v1271_v12, %v1295_v30 }
 0x1d5   :  { %v16515_v9 = vcombine.low %v2133_v44, %v2140_v62  ;;  %v16518_v13 = vsel %vm20618_vm7, %v2125_v7, -inf  ;;  %v2364_v57 = vrot.slane %v2363_v41, 1  ;;  %v1318_v48 = vcombine.high %v1302_v1, %v1302_v1 }
 0x1d6   :  { %v1320_v3 = vcombine.high %v1316_v23, %v1316_v23  ;;  %v2179_v51 = vrot.slane %v2172_v22, %v16026_v4  ;;  %v2186_v61 = vrot.slane %v1309_v26, %v16026_v4  ;;  %v14352_v45 = vcombine.high %v1295_v30, %v1309_v26 }
 0x1d7   :  { %v2209_v54 = vrot.slane %v1302_v1, %v16026_v4  ;;  %v16526_v44 = vcombine.low %v1316_v23, %v1318_v48  ;;  %v16531_v12 = vmax.f32 %v2363_v41, %v2364_v57  ;;  %v2369_v62 = vrot.slane %v2368_v46, 2 }
 0x1d8   :  { %v16529_v7 = vrot.slane %v1320_v3, %v16026_v4  ;;  %v16533_v37 = vcombine.low %v2179_v51, %v2186_v61  ;;  %v2202_v14 = vrot.slane %v14352_v45, %v16026_v4  ;;  %v2375_v22 = vmax.f32 %v16202_v25, %v20642_v6 }
 0x1d9   :  { %v20643_v30 = vrot.slane %v16188_v42, %v16026_v4  ;;  %v2370_v23 = vmax.f32 %v2368_v46, %v2369_v62  ;;  %v2387_v57 = vsel %vm20618_vm7, %v1688_v29, -inf  ;;  %v2394_v25 = vsel %vm20618_vm7, %v16455_v49, -inf }
 0x1da   :  { %v16549_v48 = vcombine.low %v2202_v14, %v2209_v54  ;;  %v2376_v3 = vrot.slane %v2375_v22, 2  ;;  %v2388_v51 = vrot.slane %v2387_v57, 4  ;;  %v2395_v61 = vrot.slane %v2394_v25, 4 }
 0x1db   :  { %v2380_v1 = vsel %vm20618_vm7, %v20643_v30, -inf  ;;  %v2371_v42 = vrot.slane %v2370_v23, 1  ;;  %v2651_v46 = vsel %vm2600_vm9, %v16531_v12, %v16465_v52  ;;  %v1734_v14 = vrot.slane %v16233_v19, %v16026_v4 }
 0x1dc   :  { %v2381_v41 = vrot.slane %v2380_v1, 4  ;;  %v2377_v45 = vmax.f32 %v2375_v22, %v2376_v3  ;;  %v2389_v29 = vmax.f32 %v2387_v57, %v2388_v51  ;;  %v2700_v49 = vsel %vm2598_vm8, %v16531_v12, %v16424_v43 }
 0x1dd   :  { %v16564_v54 = vmax.f32 %v2370_v23, %v2371_v42  ;;  %v2396_v30 = vmax.f32 %v2394_v25, %v2395_v61  ;;  %v20644_v52 = vrot.slane %v16228_v16, %v16026_v4  ;;  %v2401_v19 = vsel %vm20618_vm7, %v1734_v14, -inf }
 0x1de   :  { %v2382_v6 = vmax.f32 %v2380_v1, %v2381_v41  ;;  %v2378_v22 = vrot.slane %v2377_v45, 1  ;;  %v2390_v41 = vrot.slane %v2389_v29, 2  ;;  %v2402_v23 = vrot.slane %v2401_v19, 4 }
 0x1df   :  { %v2408_v1 = vsel %vm20618_vm7, %v20644_v52, -inf  ;;  %v2397_v51 = vrot.slane %v2396_v30, 2  ;;  %v2652_v43 = vsel %vm2602_vm10, %v16564_v54, %v2651_v46  ;;  %v2701_v16 = vsel %vm2600_vm9, %v16564_v54, %v2700_v49 }
 0x1e0   :  { %v2383_v62 = vrot.slane %v2382_v6, 2  ;;  %v2409_v57 = vrot.slane %v2408_v1, 4  ;;  %v16574_v42 = vmax.f32 %v2377_v45, %v2378_v22  ;;  %v2391_v25 = vmax.f32 %v2389_v29, %v2390_v41 }
 0x1e1   :  { %v2398_v52 = vmax.f32 %v2396_v30, %v2397_v51  ;;  %v2403_v26 = vmax.f32 %v2401_v19, %v2402_v23  ;;  %v1780_v14 = vrot.slane %v16243_v11, %v16026_v4  ;;  %v1964_v11 = vrot.slane %v16323_v47, %v16026_v4 }
 0x1e2   :  { %v2384_v3 = vmax.f32 %v2382_v6, %v2383_v62  ;;  %v2410_v61 = vmax.f32 %v2408_v1, %v2409_v57  ;;  %v2392_v27 = vrot.slane %v2391_v25, 1  ;;  %v2653_v6 = vsel %vm2604_vm11, %v16574_v42, %v2652_v43 }
 0x1e3   :  { %v2702_v46 = vsel %vm2602_vm10, %v16574_v42, %v2701_v16  ;;  %v2399_v29 = vrot.slane %v2398_v52, 1  ;;  %v2404_v22 = vrot.slane %v2403_v26, 2  ;;  %v2415_v49 = vsel %vm20618_vm7, %v1780_v14, -inf }
 0x1e4   :  { %v2385_v58 = vrot.slane %v2384_v3, 1  ;;  %v2411_v45 = vrot.slane %v2410_v61, 2  ;;  %v16587_v1 = vmax.f32 %v2391_v25, %v2392_v27  ;;  %v2416_v41 = vrot.slane %v2415_v49, 4 }
 0x1e5   :  { %v16591_v19 = vmax.f32 %v2398_v52, %v2399_v29  ;;  %v2405_v51 = vmax.f32 %v2403_v26, %v2404_v22  ;;  %v20645_v26 = vcombine.low %v16320_v21, %v16314_v32  ;;  %v20646_v22 = vrot.slane %v16283_v63, 4 }
 0x1e6   :  { %v16584_v62 = vmax.f32 %v2384_v3, %v2385_v58  ;;  %v2412_v30 = vmax.f32 %v2410_v61, %v2411_v45  ;;  %v2417_v25 = vmax.f32 %v2415_v49, %v2416_v41  ;;  %v2843_v45 = vld [vmem:[%s20596_s6] sm:$0xff]  ;;  %v2453_v32 = vrot.slane %v16305_v35, 2 }
 0x1e7   :  { %v2406_v16 = vrot.slane %v2405_v51, 1  ;;  %v1987_v58 = vrot.slane %v20645_v26, %v16026_v4  ;;  %v2445_v49 = vmax.f32 %v16283_v63, %v20646_v22  ;;  %v20647_v21 = vrot.slane %v16289_v38, %v16026_v4  ;;  %14839 = vmatpush3.msra.mxu1 %v2843_v45 }
 0x1e8   :  { %v2654_v57 = vsel %vm2606_vm12, %v16584_v62, %v2653_v6  ;;  %v2703_v3 = vsel %vm2604_vm11, %v16584_v62, %v2702_v46  ;;  %v2413_v23 = vrot.slane %v2412_v30, 1  ;;  %v2418_v14 = vrot.slane %v2417_v25, 2 }
 0x1e9   :  { %v2655_v43 = vsel %vm2608_vm13, %v16587_v1, %v2654_v57  ;;  %v2704_v27 = vsel %vm2606_vm12, %v16587_v1, %v2703_v3  ;;  %v2434_v6 = vrot.slane %v16292_v50, 1  ;;  %v2441_v46 = vrot.slane %v16299_v55, 1 }
 0x1ea   :  { %v2656_v47 = vsel %vm2610_vm14, %v16591_v19, %v2655_v43  ;;  %v2705_v61 = vsel %vm2608_vm13, %v16591_v19, %v2704_v27  ;;  %v2414_v52 = vmax.f32 %v2412_v30, %v2413_v23  ;;  %v16615_v29 = vmax.f32 %v2405_v51, %v2406_v16 }
 0x1eb   :  { %2675 = vrot.lane.b32.xlu0 %v2656_v47, %s15620_s27  ;;  %v2457_v30 = vsel %vm20618_vm7, %v20647_v21, -inf  ;;  %v2419_v41 = vmax.f32 %v2417_v25, %v2418_v14  ;;  %v16626_v57 = vmax.f32 %v16292_v50, %v2434_v6  ;;  %v16629_v3 = vmax.f32 %v16299_v55, %v2441_v46 }
 0x1ec   :  { %v2458_v51 = vrot.slane %v2457_v30, 4  ;;  %v2706_v43 = vsel %vm2610_vm14, %v16615_v29, %v2705_v61  ;;  %v2657_v63 = vsel %vm2598_vm8, %v2414_v52, %v16615_v29  ;;  %v2446_v27 = vrot.slane %v2445_v49, 2 }
 0x1ed   :  { %v2454_v38 = vmax.f32 %v16305_v35, %v2453_v32  ;;  %2725 = vrot.lane.b32.xlu1 %v2706_v43, %s15621_s3  ;;  %v2420_v23 = vrot.slane %v2419_v41, 1  ;;  %v20648_v25 = vrot.slane %v16326_v40, 4  ;;  %v2471_v47 = vsel %vm20618_vm7, %v1964_v11, -inf }
 0x1ee   :  { %v2459_v50 = vmax.f32 %v2457_v30, %v2458_v51  ;;  %v2447_v16 = vmax.f32 %v2445_v49, %v2446_v27  ;;  %v2472_v26 = vrot.slane %v2471_v47, 4  ;;  %v2478_v14 = vsel %vm20618_vm7, %v1987_v58, -inf }
 0x1ef   :  { %2677 = vrot.lane.b32.xlu0 %v2657_v63, %s15620_s27  ;;  %v2466_v55 = vmax.f32 %v16326_v40, %v20648_v25  ;;  %v2455_v61 = vrot.slane %v2454_v38, 1  ;;  %v2421_v6 = vmax.f32 %v2419_v41, %v2420_v23  ;;  %v2479_v45 = vrot.slane %v2478_v14, 4 }
 0x1f0   :  { %v2460_v46 = vrot.slane %v2459_v50, 2  ;;  %v2448_v22 = vrot.slane %v2447_v16, 1  ;;  %v2473_v21 = vmax.f32 %v2471_v47, %v2472_v26  ;;  %v2658_v30 = vsel %vm2598_vm8, %v16629_v3, %v16626_v57 }
 0x1f1   :  { %v2467_v35 = vrot.slane %v2466_v55, 2  ;;  %v16643_v32 = vmax.f32 %v2454_v38, %v2455_v61  ;;  %v2707_v40 = vsel %vm2598_vm8, %v2421_v6, %v2414_v52  ;;  %v2480_v51 = vmax.f32 %v2478_v14, %v2479_v45 }
 0x1f2   :  { %v2461_v11 = vmax.f32 %v2459_v50, %v2460_v46  ;;  %2727 = vrot.lane.b32.xlu1 %v2707_v40, %s15621_s3  ;;  %v16650_v58 = vmax.f32 %v2447_v16, %v2448_v22  ;;  %v2474_v41 = vrot.slane %v2473_v21, 2  ;;  %v2010_v43 = vrot.slane %v16342_v36, %v16026_v4 }
 0x1f3   :  { %v2468_v49 = vmax.f32 %v2466_v55, %v2467_v35  ;;  %v2495_v63 = vrot.slane %v16374_v28, 2  ;;  %v2481_v23 = vrot.slane %v2480_v51, 2  ;;  %v2148_v25 = vrot.slane %v16515_v9, %v16026_v4 }
 0x1f4   :  { %v2462_v27 = vrot.slane %v2461_v11, 1  ;;  %v2475_v52 = vmax.f32 %v2473_v21, %v2474_v41  ;;  %v2659_v50 = vsel %vm2600_vm9, %v16650_v58, %v2658_v30  ;;  %v2485_v55 = vsel %vm20618_vm7, %v2010_v43, -inf }
 0x1f5   :  { %v2469_v38 = vrot.slane %v2468_v49, 1  ;;  %v2708_v47 = vsel %vm2598_vm8, %v16650_v58, %v16629_v3  ;;  %v2482_v61 = vmax.f32 %v2480_v51, %v2481_v23  ;;  %v2660_v26 = vsel %vm2602_vm10, %v16643_v32, %v2659_v50 }
 0x1f6   :  { %v16663_v16 = vmax.f32 %v2461_v11, %v2462_v27  ;;  %v2476_v14 = vrot.slane %v2475_v52, 1  ;;  %v2486_v9 = vrot.slane %v2485_v55, 4  ;;  %v2709_v6 = vsel %vm2600_vm9, %v16643_v32, %v2708_v47 }
 0x1f7   :  { %v16665_v36 = vmax.f32 %v2468_v49, %v2469_v38  ;;  %v2496_v46 = vmax.f32 %v16374_v28, %v2495_v63  ;;  %v2483_v35 = vrot.slane %v2482_v61, 1  ;;  %v20649_v21 = vcombine.low %v16510_v18, %v16503_v53 }
 0x1f8   :  { %v2661_v45 = vsel %vm2604_vm11, %v16663_v16, %v2660_v26  ;;  %v2710_v22 = vsel %vm2602_vm10, %v16663_v16, %v2709_v6  ;;  %v16680_v40 = vmax.f32 %v2475_v52, %v2476_v14  ;;  %v2487_v49 = vmax.f32 %v2485_v55, %v2486_v9 }
 0x1f9   :  { %v2171_v30 = vrot.slane %v20649_v21, %v16026_v4  ;;  %v2662_v11 = vsel %vm2606_vm12, %v16665_v36, %v2661_v45  ;;  %v2711_v28 = vsel %vm2604_vm11, %v16665_v36, %v2710_v22  ;;  %v2484_v51 = vmax.f32 %v2482_v61, %v2483_v35 }
 0x1fa   :  { %v2497_v41 = vrot.slane %v2496_v46, 1  ;;  %v20650_v43 = vrot.slane %v16377_v0, 4  ;;  %v2509_v27 = vrot.slane %v16497_v17, 2  ;;  %v2663_v53 = vsel %vm2608_vm13, %v16680_v40, %v2662_v11 }
 0x1fb   :  { %v2488_v18 = vrot.slane %v2487_v49, 2  ;;  %v2712_v38 = vsel %vm2606_vm12, %v16680_v40, %v2711_v28  ;;  %v20651_v23 = vrot.slane %v16471_v15, %v16026_v4  ;;  %v2664_v50 = vsel %vm2610_vm14, %v2484_v51, %v2663_v53 }
 0x1fc   :  { %v2501_v63 = vmax.f32 %v16377_v0, %v20650_v43  ;;  %v2713_v55 = vsel %vm2608_vm13, %v2484_v51, %v2712_v38  ;;  %v2498_v47 = vmax.f32 %v2496_v46, %v2497_v41  ;;  %2679 = vrot.lane.b32.xlu0 %v2664_v50, %s15620_s27  ;;  %v2510_v26 = vmax.f32 %v16497_v17, %v2509_v27 }
 0x1fd   :  { %v2513_v52 = vsel %vm20618_vm7, %v20651_v23, -inf  ;;  %v2489_v61 = vmax.f32 %v2487_v49, %v2488_v18  ;;  %v20652_v9 = vrot.slane %v16518_v13, 4  ;;  %v2527_v15 = vsel %vm20618_vm7, %v2148_v25, -inf }
 0x1fe   :  { %v2502_v0 = vrot.slane %v2501_v63, 2  ;;  %v2514_v14 = vrot.slane %v2513_v52, 4  ;;  %v2534_v45 = vsel %vm20618_vm7, %v2171_v30, -inf  ;;  %v2194_v22 = vrot.slane %v16533_v37, %v16026_v4 }
 0x1ff   :  { %v2522_v6 = vmax.f32 %v16518_v13, %v20652_v9  ;;  %v2490_v46 = vrot.slane %v2489_v61, 1  ;;  %v2511_v21 = vrot.slane %v2510_v26, 1  ;;  %v2528_v41 = vrot.slane %v2527_v15, 4 }
 0x200   :  { %v2503_v35 = vmax.f32 %v2501_v63, %v2502_v0  ;;  %v2515_v11 = vmax.f32 %v2513_v52, %v2514_v14  ;;  %v2535_v17 = vrot.slane %v2534_v45, 4  ;;  %v2541_v43 = vsel %vm20618_vm7, %v2194_v22, -inf }
 0x201   :  { %v2523_v28 = vrot.slane %v2522_v6, 2  ;;  %v2491_v27 = vmax.f32 %v2489_v61, %v2490_v46  ;;  %v16710_v53 = vmax.f32 %v2510_v26, %v2511_v21  ;;  %v2529_v30 = vmax.f32 %v2527_v15, %v2528_v41 }
 0x202   :  { %v2504_v49 = vrot.slane %v2503_v35, 1  ;;  %v2516_v13 = vrot.slane %v2515_v11, 2  ;;  %v2536_v18 = vmax.f32 %v2534_v45, %v2535_v17  ;;  %v2542_v38 = vrot.slane %v2541_v43, 4 }
 0x203   :  { %v2524_v63 = vmax.f32 %v2522_v6, %v2523_v28  ;;  %v2714_v37 = vsel %vm2610_vm14, %v2491_v27, %v2713_v55  ;;  %v2627_v23 = vsel %vm2598_vm8, %v2491_v27, %v2484_v51  ;;  %v2665_v52 = vsel %vm2598_vm8, %v2498_v47, %v2491_v27 }
 0x204   :  { %v16712_v25 = vmax.f32 %v2503_v35, %v2504_v49  ;;  %v2517_v50 = vmax.f32 %v2515_v11, %v2516_v13  ;;  %2729 = vrot.lane.b32.xlu1 %v2714_v37, %s15621_s3  ;;  %v2628_v0 = vsel %vm2600_vm9, %v2498_v47, %v2627_v23  ;;  %v2530_v26 = vrot.slane %v2529_v30, 2 }
 0x205   :  { %v2525_v61 = vrot.slane %v2524_v63, 1  ;;  %v2537_v14 = vrot.slane %v2536_v18, 2  ;;  %v2543_v35 = vmax.f32 %v2541_v43, %v2542_v38  ;;  %v2217_v28 = vrot.slane %v16549_v48, %v16026_v4 }
 0x206   :  { %v2518_v9 = vrot.slane %v2517_v50, 1  ;;  %v2666_v6 = vsel %vm2600_vm9, %v16712_v25, %v2665_v52  ;;  %v2715_v55 = vsel %vm2598_vm8, %v16712_v25, %v2498_v47  ;;  %v2531_v51 = vmax.f32 %v2529_v30, %v2530_v26 }
 0x207   :  { %v16723_v15 = vmax.f32 %v2524_v63, %v2525_v61  ;;  %v2538_v45 = vmax.f32 %v2536_v18, %v2537_v14  ;;  %v2667_v22 = vsel %vm2602_vm10, %v16710_v53, %v2666_v6  ;;  %v2544_v21 = vrot.slane %v2543_v35, 2 }
 0x208   :  { %v2519_v46 = vmax.f32 %v2517_v50, %v2518_v9  ;;  %v2716_v11 = vsel %vm2600_vm9, %v16710_v53, %v2715_v55  ;;  %v20653_v49 = vcombine.low %v16047_v2, %v16042_v34  ;;  %v2532_v41 = vrot.slane %v2531_v51, 1 }
 0x209   :  { %v2539_v17 = vrot.slane %v2538_v45, 1  ;;  %v20654_v43 = vrot.slane %v16526_v44, %v16026_v4  ;;  %v2545_v63 = vmax.f32 %v2543_v35, %v2544_v21  ;;  %v2548_v18 = vsel %vm20618_vm7, %v2217_v28, -inf }
 0x20a   :  { %v1343_v47 = vrot.slane %v20653_v49, %v16026_v4  ;;  %v2668_v13 = vsel %vm2604_vm11, %v2519_v46, %v2667_v22  ;;  %v2717_v30 = vsel %vm2602_vm10, %v2519_v46, %v2716_v11  ;;  %v2533_v48 = vmax.f32 %v2531_v51, %v2532_v41 }
 0x20b   :  { %v2233_v27 = vcombine.low %v20654_v43, %v16529_v7  ;;  %v2540_v38 = vmax.f32 %v2538_v45, %v2539_v17  ;;  %v2669_v34 = vsel %vm2606_vm12, %v16723_v15, %v2668_v13  ;;  %v2718_v2 = vsel %vm2604_vm11, %v16723_v15, %v2717_v30 }
 0x20c   :  { %v2425_v37 = vrot.slane %v16275_v8, 2  ;;  %v2546_v23 = vrot.slane %v2545_v63, 1  ;;  %v2549_v44 = vrot.slane %v2548_v18, 4  ;;  %v2670_v52 = vsel %vm2608_vm13, %v2533_v48, %v2669_v34 }
 0x20d   :  { %v2240_v7 = vrot.slane %v2233_v27, %v16026_v4  ;;  %v2719_v50 = vsel %vm2606_vm12, %v2533_v48, %v2718_v2  ;;  %v2671_v61 = vsel %vm2610_vm14, %v2540_v38, %v2670_v52  ;;  %v2282_v6 = vsel %vm20618_vm7, %v1343_v47, -inf }
 0x20e   :  { %v2547_v26 = vmax.f32 %v2545_v63, %v2546_v23  ;;  %v2720_v14 = vsel %vm2608_vm13, %v2540_v38, %v2719_v50  ;;  %v2550_v9 = vmax.f32 %v2548_v18, %v2549_v44  ;;  %2681 = vrot.lane.b32.xlu0 %v2671_v61, %s15620_s27  ;;  %v2426_v55 = vmax.f32 %v16275_v8, %v2425_v37  ;;  %v16823_v61 = vld [vmem:[%s20655_s24 + $0x18] sm:$0xff] }
 0x20f   :  { %v2555_v35 = vsel %vm20618_vm7, %v2240_v7, -inf  ;;  %v2614_v21 = vsel %vm2602_vm10, %v16531_v12, %v16476_v24  ;;  %v2283_v47 = vrot.slane %v2282_v6, 4  ;;  %v16768_v8 = vsel %vm2598_vm8, %v16615_v29, %v16591_v19 }
 0x210   :  { %v2721_v51 = vsel %vm2610_vm14, %v2547_v26, %v2720_v14  ;;  %v2551_v45 = vrot.slane %v2550_v9, 2  ;;  %v2556_v22 = vrot.slane %v2555_v35, 4  ;;  %v2615_v49 = vsel %vm2604_vm11, %v16564_v54, %v2614_v21 }
 0x211   :  { %2731 = vrot.lane.b32.xlu1 %v2721_v51, %s15621_s3  ;;  %v2616_v41 = vsel %vm2606_vm12, %v16574_v42, %v2615_v49  ;;  %v2427_v24 = vrot.slane %v2426_v55, 1  ;;  %v2629_v54 = vsel %vm2602_vm10, %v16712_v25, %v2628_v0  ;;  %v16779_v42 = vsel %vm2598_vm8, %v2547_v26, %v2540_v38  ;;  %v16792_v25 = vld [vmem:[%s20655_s24 + $0x8] sm:$0xff]  ;;  %v16843_v51 = vld [vmem:[%s20655_s24 + $0x20] sm:$0xff] }
 0x212   :  { %v2552_v11 = vmax.f32 %v2550_v9, %v2551_v45  ;;  %v2557_v28 = vmax.f32 %v2555_v35, %v2556_v22  ;;  %v2617_v27 = vsel %vm2608_vm13, %v16584_v62, %v2616_v41  ;;  %v2630_v29 = vsel %vm2604_vm11, %v16710_v53, %v2629_v54 }
 0x213   :  { %v16774_v12 = vsel %vm2610_vm14, %v16587_v1, %v2617_v27  ;;  %v2428_v19 = vmax.f32 %v2426_v55, %v2427_v24  ;;  %v2284_v30 = vmax.f32 %v2282_v6, %v2283_v47  ;;  %v2631_v62 = vsel %vm2606_vm12, %v2519_v46, %v2630_v29  ;;  %v16787_v1 = vld [vmem:[%s20655_s24] sm:$0xff]  ;;  %v16802_v46 = vld [vmem:[%s20655_s24 + $0x10] sm:$0xff] }
 0x214   :  { %v2553_v17 = vrot.slane %v2552_v11, 1  ;;  %v2558_v43 = vrot.slane %v2557_v28, 2  ;;  %v2632_v53 = vsel %vm2608_vm13, %v16723_v15, %v2631_v62  ;;  %v3830_v37 = vrot.slane %v16787_v1, 1 }
 0x215   :  { %v2620_v38 = vsel %vm2598_vm8, %v16626_v57, %v2428_v19  ;;  %v16808_v2 = vsel %vm2610_vm14, %v2533_v48, %v2632_v53  ;;  %v3831_v57 = vrot.slane %v16792_v25, 1  ;;  %v3908_v44 = vrot.slane %v16787_v1, 2  ;;  %v16878_v19 = vld [vmem:[%s20655_s24 + $0x38] sm:$0xff] }
 0x216   :  { %v2554_v13 = vmax.f32 %v2552_v11, %v2553_v17  ;;  %v2559_v63 = vmax.f32 %v2557_v28, %v2558_v43  ;;  %v2621_v34 = vsel %vm2600_vm9, %v16629_v3, %v2620_v38  ;;  %v3909_v7 = vrot.slane %v16792_v25, 2  ;;  %v16854_v11 = vld [vmem:[%s20655_s24 + $0x28] sm:$0xff]  ;;  %v16865_v43 = vld [vmem:[%s20655_s24 + $0x30] sm:$0xff] }
 0x217   :  { %v2622_v15 = vsel %vm2602_vm10, %v16650_v58, %v2621_v34  ;;  %v2285_v52 = vrot.slane %v2284_v30, 2  ;;  %v3832_v3 = vsel %vm98_vm0, %v3830_v37, %v3831_v57  ;;  %v3833_v48 = vrot.slane %v16802_v46, 1  ;;  %v16900_v37 = vld [vmem:[%s20655_s24 + $0x40] sm:$0xff] }
 0x218   :  { %v2672_v0 = vsel %vm2598_vm8, %v2554_v13, %v2547_v26  ;;  %v2560_v18 = vrot.slane %v2559_v63, 1  ;;  %v2623_v50 = vsel %vm2604_vm11, %v16643_v32, %v2622_v15  ;;  %v3911_v32 = vrot.slane %v16802_v46, 2 }
 0x219   :  { %2683 = vrot.lane.b32.xlu0 %v2672_v0, %s15620_s27  ;;  %v2624_v58 = vsel %vm2606_vm12, %v16663_v16, %v2623_v50  ;;  %v3910_v6 = vsel %vm177_vm1, %v3908_v44, %v3909_v7  ;;  %v3834_v35 = vsel %vm98_vm0, %v3831_v57, %v3833_v48  ;;  %v3835_v55 = vrot.slane %v16823_v61, 1 }
 0x21a   :  { %v2561_v23 = vmax.f32 %v2559_v63, %v2560_v18  ;;  %v2625_v14 = vsel %vm2608_vm13, %v16665_v36, %v2624_v58  ;;  %v2286_v16 = vmax.f32 %v2284_v30, %v2285_v52  ;;  %v3912_v36 = vsel %vm177_vm1, %v3909_v7, %v3911_v32  ;;  %v16917_v52 = vld [vmem:[%s20655_s24 + $0x50] sm:$0xff] }
 0x21b   :  { %v16835_v9 = vsel %vm2610_vm14, %v16680_v40, %v2625_v14  ;;  %v3836_v40 = vsel %vm98_vm0, %v3833_v48, %v3835_v55  ;;  %v3913_v45 = vrot.slane %v16823_v61, 2  ;;  %v3837_v22 = vrot.slane %v16843_v51, 1 }
 0x21c   :  { %v2722_v26 = vsel %vm2598_vm8, %v2561_v23, %v2554_v13  ;;  %v2287_v21 = vrot.slane %v2286_v16, 1  ;;  %v3915_v47 = vrot.slane %v16843_v51, 2  ;;  %v3839_v41 = vrot.slane %v16854_v11, 1 }
 0x21d   :  { %2733 = vrot.lane.b32.xlu1 %v2722_v26, %s15621_s3  ;;  %3860 = vrot.lane.b32.xlu0 %v3832_v3, %s15615_s28  ;;  %v3914_v28 = vsel %vm177_vm1, %v3911_v32, %v3913_v45  ;;  %v3838_v49 = vsel %vm98_vm0, %v3835_v55, %v3837_v22  ;;  %v3917_v13 = vrot.slane %v16854_v11, 2  ;;  %v3841_v63 = vrot.slane %v16865_v43, 1  ;;  %v16930_v32 = vld [vmem:[%s20655_s24 + $0x58] sm:$0xff] }
 0x21e   :  { %v2288_v17 = vmax.f32 %v2286_v16, %v2287_v21  ;;  %v3916_v24 = vsel %vm177_vm1, %v3913_v45, %v3915_v47  ;;  %v3840_v54 = vsel %vm98_vm0, %v3837_v22, %v3839_v41  ;;  %v3919_v62 = vrot.slane %v16865_v43, 2 }
 0x21f   :  { %v3918_v29 = vsel %vm177_vm1, %v3915_v47, %v3917_v13  ;;  %v3842_v30 = vsel %vm98_vm0, %v3839_v41, %v3841_v63  ;;  %v3843_v0 = vrot.slane %v16878_v19, 1  ;;  %v3921_v53 = vrot.slane %v16878_v19, 2 }
 0x220   :  { %v2599_v27 = vsel %vm2598_vm8, %v16367_v56, %v2288_v17  ;;  %v15622_v57 = vmov 1983009808   ;;  %v3845_v44 = vrot.slane %v16900_v37, 1  ;;  %v3923_v26 = vrot.slane %v16900_v37, 2 }
 0x221   :  { %3938 = vrot.lane.b32.xlu1 %v3910_v6, %s15616_s30  ;;  %3862 = vrot.lane.b32.xlu0 %v3834_v35, %s15615_s28  ;;  %v2601_v56 = vsel %vm2600_vm9, %v16347_v33, %v2599_v27  ;;  %v3920_v33 = vsel %vm177_vm1, %v3917_v13, %v3919_v62  ;;  %v3844_v38 = vsel %vm98_vm0, %v3841_v63, %v3843_v0  ;;  %v2763_v23 = vunpack.c.l.s4 %v15622_v57 }
 0x222   :  { %v2603_v18 = vsel %vm2602_vm10, %v16371_v39, %v2601_v56  ;;  %v16905_v39 = vld [vmem:[%s20655_s24 + $0x48] sm:$0xff]  ;;  %v3848_v14 = vrot.slane %v16917_v52, 1  ;;  %vm20623_vm7 = vcmask 261120   ;;  %v3928_v47 = vrot.slane %v16930_v32, 2 }
 0x223   :  { %v2605_v34 = vsel %vm2604_vm11, %v16380_v31, %v2603_v18  ;;  %v3922_v31 = vsel %vm177_vm1, %v3919_v62, %v3921_v53  ;;  %v3846_v7 = vrot.slane %v16905_v39, 1  ;;  %v2764_v3 = vunpack.c.0.s8 %v2763_v23 }
 0x224   :  { %v2607_v15 = vsel %vm2606_vm12, %v16382_v60, %v2605_v34  ;;  %v3924_v58 = vrot.slane %v16905_v39, 2 }
 0x225   :  { %3940 = vrot.lane.b32.xlu1 %v3912_v36, %s15616_s30  ;;  %3864 = vrot.lane.b32.xlu0 %v3836_v40, %s15615_s28  ;;  %v2609_v50 = vsel %vm2608_vm13, %v16407_v5, %v2607_v15  ;;  %v3847_v48 = vsel %vm98_vm0, %v3845_v44, %v3846_v7  ;;  %v16936_v35 = vsub.s32 %v2764_v3, %v16016_v59  ;;  %v3926_v36 = vrot.slane %v16917_v52, 2 }
 0x226   :  { %v2611_v5 = vsel %vm2610_vm14, %v16409_v20, %v2609_v50  ;;  %v3925_v55 = vsel %vm177_vm1, %v3923_v26, %v3924_v58  ;;  %v3849_v16 = vsel %vm98_vm0, %v3846_v7, %v3848_v14  ;;  %v3850_v40 = vrot.slane %v16930_v32, 1 }
 0x229   :  { %3942 = vrot.lane.b32.xlu1 %v3914_v28, %s15616_s30  ;;  %3866 = vrot.lane.b32.xlu0 %v3838_v49, %s15615_s28  ;;  %v3927_v28 = vsel %vm177_vm1, %v3924_v58, %v3926_v36  ;;  %v3851_v49 = vsel %vm98_vm0, %v3848_v14, %v3850_v40 }
 0x22d   :  { %3944 = vrot.lane.b32.xlu1 %v3916_v24, %s15616_s30  ;;  %3868 = vrot.lane.b32.xlu0 %v3840_v54, %s15615_s28  ;;  %v3929_v54 = vsel %vm177_vm1, %v3926_v36, %v3928_v47 }
 0x231   :  { %3946 = vrot.lane.b32.xlu1 %v3918_v29, %s15616_s30  ;;  %3870 = vrot.lane.b32.xlu0 %v3842_v30, %s15615_s28 }
 0x235   :  { %3948 = vrot.lane.b32.xlu1 %v3920_v33, %s15616_s30  ;;  %3872 = vrot.lane.b32.xlu0 %v3844_v38, %s15615_s28  ;;  %v2674_v60 = vpop.permute.xlu0 %2673 }
 0x236   :  { %v2742_v6 = vsel %vm2741_vm15, %v2611_v5, %v2674_v60 }
 0x239   :  { %3950 = vrot.lane.b32.xlu1 %v3922_v31, %s15616_s30  ;;  %3874 = vrot.lane.b32.xlu0 %v3843_v0, %s15615_s28 }
 0x23c   :  { %v2724_v45 = vpop.permute.xlu1 %2723 }
 0x23d   :  { %3876 = vrot.lane.b32.xlu1 %v3847_v48, %s15615_s28  ;;  %3952 = vrot.lane.b32.xlu0 %v3921_v53, %s15616_s30  ;;  %v2749_v20 = vsel %vm20623_vm7, %v2742_v6, %v2724_v45 }
 0x23e   :  { %v2761_v22 = vcombine.high %v2749_v20, %v2749_v20  ;;  %v2768_v21 = vrot.slane %v2749_v20, %v16936_v35 }
 0x240   :  { %v2775_v41 = vrot.slane %v2761_v22, %v16936_v35  ;;  %v2776_v17 = vcombine.high %v2768_v21, %v2768_v21 }
 0x241   :  { %3954 = vrot.lane.b32.xlu1 %v3925_v55, %s15616_s30  ;;  %3878 = vrot.lane.b32.xlu0 %v3849_v16, %s15615_s28 }
 0x242   :  { %v2777_v27 = vcombine.high %v2775_v41, %v2775_v41  ;;  %v2849_v24 = vcombine.low %v2768_v21, %v2776_v17 }
 0x244   :  { %v2850_v13 = vcombine.low %v2775_v41, %v2777_v27  ;;  %v2857_v63 = vrot.slane %v2849_v24, %v16936_v35 }
 0x245   :  { %3956 = vrot.lane.b32.xlu1 %v3927_v28, %s15616_s30  ;;  %3880 = vrot.lane.b32.xlu0 %v3851_v49, %s15615_s28 }
 0x246   :  { %v2864_v56 = vrot.slane %v2850_v13, %v16936_v35 }
 0x248   :  { %v2865_v29 = vcombine.low %v2857_v63, %v2864_v56 }
 0x249   :  { %3958 = vrot.lane.b32.xlu1 %v3929_v54, %s15616_s30 }
 0x24a   :  { %14841 = vmatmul.mubr.msk.f32.vlgmr.msra.gmra.mxu1 %vm20620_vm6, %v2865_v29 }
 0x24b   :  { %14843 = vmatprep.mubr.msk.f32.mxu1 %vm15618_vm3, %v20640_v10 }
 0x25d   :  { %v2676_v30 = vpop.permute.xlu0 %2675 }
 0x25e   :  { %v2743_v62 = vsel %vm2741_vm15, %v16774_v12, %v2676_v30 }
 0x25f   :  { %v2726_v0 = vpop.permute.xlu1 %2725 }
 0x260   :  { %v2750_v18 = vsel %vm20623_vm7, %v2743_v62, %v2726_v0 }
 0x261   :  { %v2778_v33 = vcombine.high %v2750_v18, %v2750_v18  ;;  %v2785_v38 = vrot.slane %v2750_v18, %v16936_v35  ;;  %v2678_v50 = vpop.permute.xlu0 %2677 }
 0x262   :  { %v2744_v3 = vsel %vm2741_vm15, %v16768_v8, %v2678_v50  ;;  %v17022_v50 = vld [vmem:[%s20655_s24 + $0x70] sm:$0xff] }
 0x263   :  { %v2792_v53 = vrot.slane %v2778_v33, %v16936_v35  ;;  %v2793_v34 = vcombine.high %v2785_v38, %v2785_v38 }
 0x264   :  { %v2728_v60 = vpop.permute.xlu1 %2727 }
 0x265   :  { %v2794_v57 = vcombine.high %v2792_v53, %v2792_v53  ;;  %v2866_v23 = vcombine.low %v2785_v38, %v2793_v34  ;;  %v2751_v26 = vsel %vm20623_vm7, %v2744_v3, %v2728_v60 }
 0x266   :  { %v2801_v5 = vrot.slane %v2751_v26, %v16936_v35  ;;  %v3856_v26 = vrot.slane %v17022_v50, 1 }
 0x267   :  { %v2867_v15 = vcombine.low %v2792_v53, %v2794_v57  ;;  %v2874_v31 = vrot.slane %v2866_v23, %v16936_v35  ;;  %v17013_v23 = vld [vmem:[%s20655_s24 + $0x68] sm:$0xff] }
 0x269   :  { %v2881_v44 = vrot.slane %v2867_v15, %v16936_v35 }
 0x26b   :  { %v2882_v7 = vcombine.low %v2874_v31, %v2881_v44  ;;  %v3854_v44 = vrot.slane %v17013_v23, 1 }
 0x26d   :  { %14844 = vmatmul.mubr.msk.f32.gmra.mxu1 %vm20620_vm6, %v2882_v7  ;;  %v3932_v7 = vrot.slane %v17013_v23, 2 }
 0x26e   :  { %14846 = vmatprep.mubr.msk.f32.mxu1 %vm15618_vm3, %v20640_v10  ;;  %v2680_v12 = vpop.permute.xlu0 %2679 }
 0x26f   :  { %v2745_v48 = vsel %vm2741_vm15, %v16835_v9, %v2680_v12 }
 0x276   :  { %v2730_v58 = vpop.permute.xlu1 %2729 }
 0x277   :  { %v2752_v14 = vsel %vm20623_vm7, %v2745_v48, %v2730_v58  ;;  %v3934_v58 = vrot.slane %v17022_v50, 2 }
 0x278   :  { %v2802_v6 = vcombine.high %v2752_v14, %v2752_v14  ;;  %v2809_v55 = vrot.slane %v2752_v14, %v16936_v35  ;;  %v17045_v14 = vld [vmem:[%s20655_s24 + $0x78] sm:$0xff] }
 0x27a   :  { %v2816_v16 = vrot.slane %v2802_v6, %v16936_v35  ;;  %v2817_v36 = vcombine.high %v2809_v55, %v2809_v55  ;;  %v2883_v45 = vcombine.low %v2801_v5, %v2809_v55  ;;  %v3858_v5 = vrot.slane %v17045_v14, 1 }
 0x27b   :  { %v3936_v6 = vrot.slane %v17045_v14, 2 }
 0x27c   :  { %v2884_v20 = vcombine.low %v2817_v36, %v2816_v16  ;;  %v2891_v8 = vrot.slane %v2883_v45, %v16936_v35  ;;  %v2818_v17 = vcombine.high %v2816_v16, %v2816_v16  ;;  %v3859_v55 = vsel %vm98_vm0, %v3856_v26, %v3858_v5  ;;  %v3656_v36 = vld [vmem:[%s20599_s9 + $0x18] sm:$0xff]  ;;  %v3655_v45 = vld [vmem:[%s20599_s9 + $0x10] sm:$0xff] }
 0x27d   :  { %v3937_v16 = vsel %vm177_vm1, %v3934_v58, %v3936_v6  ;;  %14855 = vmatprep.subr.mxu1 %v3656_v36 }
 0x27e   :  { %v2898_v22 = vrot.slane %v2884_v20, %v16936_v35  ;;  %14856 = vmatpush3.msra.mxu1 %v3656_v36  ;;  %v3654_v20 = vld [vmem:[%s20599_s9 + $0x8] sm:$0xff] }
 0x27f   :  { %14857 = vmatprep.subr.mxu1 %v3655_v45 }
 0x280   :  { %v2682_v9 = vpop.permute.xlu0 %2681  ;;  %v2899_v21 = vcombine.low %v2891_v8, %v2898_v22  ;;  %14858 = vmatpush3.msra.mxu1 %v3655_v45  ;;  %v3653_v8 = vld [vmem:[%s20599_s9] sm:$0xff] }
 0x281   :  { %v2746_v28 = vsel %vm2741_vm15, %v16808_v2, %v2682_v9  ;;  %14859 = vmatprep.subr.mxu1 %v3654_v20  ;;  %v17071_v22 = vld [vmem:[%s20597_s7] ss:$0 sm:$0xff] }
 0x282   :  { %14847 = vmatmul.mubr.msk.f32.gmra.mxu1 %vm20620_vm6, %v2899_v21  ;;  %v17076_v21 = vld [vmem:[%s20598_s8] ss:$0 sm:$0xff] }
 0x283   :  { %v2732_v49 = vpop.permute.xlu1 %2731  ;;  %14849 = vmatprep.mubr.msk.f32.mxu1 %vm15618_vm3, %v20640_v10  ;;  %14860 = vmatpush3.msra.mxu1 %v3654_v20 }
 0x284   :  { %v2753_v41 = vsel %vm20623_vm7, %v2746_v28, %v2732_v49  ;;  %14861 = vmatprep.subr.mxu1 %v3653_v8 }
 0x285   :  { %v2819_v27 = vcombine.high %v2753_v41, %v2753_v41  ;;  %v2826_v24 = vrot.slane %v2753_v41, %v16936_v35  ;;  %14862 = vmatpush3.msra.mxu1 %v3653_v8 }
 0x286   :  { %14866 = vmatprep.subr.mxu1 %v20640_v10 }
 0x287   :  { %v2833_v54 = vrot.slane %v2819_v27, %v16936_v35  ;;  %v2834_v13 = vcombine.high %v2826_v24, %v2826_v24  ;;  %v2900_v63 = vcombine.low %v2818_v17, %v2826_v24 }
 0x289   :  { %v2901_v56 = vcombine.low %v2834_v13, %v2833_v54  ;;  %v2908_v29 = vrot.slane %v2900_v63, %v16936_v35  ;;  %v2835_v33 = vcombine.high %v2833_v54, %v2833_v54 }
 0x28b   :  { %v2915_v2 = vrot.slane %v2901_v56, %v16936_v35  ;;  %v2684_v30 = vpop.permute.xlu0 %2683 }
 0x28c   :  { %v2747_v62 = vsel %vm2741_vm15, %v16779_v42, %v2684_v30  ;;  %v17008_v42 = vld [vmem:[%s20655_s24 + $0x60] sm:$0xff] }
 0x28d   :  { %v2916_v0 = vcombine.low %v2908_v29, %v2915_v2  ;;  %v3852_v15 = vrot.slane %v17008_v42, 1  ;;  %v3930_v31 = vrot.slane %v17008_v42, 2 }
 0x28f   :  { %v2734_v18 = vpop.permute.xlu1 %2733  ;;  %14850 = vmatmul.mubr.msk.f32.gmra.mxu1 %vm20620_vm6, %v2916_v0  ;;  %v3853_v12 = vsel %vm98_vm0, %v3850_v40, %v3852_v15  ;;  %v3931_v3 = vsel %vm177_vm1, %v3928_v47, %v3930_v31  ;;  %v3855_v60 = vsel %vm98_vm0, %v3852_v15, %v3854_v44  ;;  %v3933_v48 = vsel %vm177_vm1, %v3930_v31, %v3932_v7 }
 0x290   :  { %v2754_v38 = vsel %vm20623_vm7, %v2747_v62, %v2734_v18  ;;  %14852 = vmatprep.mubr.msk.f32.mxu1 %vm15618_vm3, %v20640_v10  ;;  %3882 = vrot.lane.b32.xlu0 %v3853_v12, %s15615_s28  ;;  %v3857_v40 = vsel %vm98_vm0, %v3854_v44, %v3856_v26  ;;  %v3935_v47 = vsel %vm177_vm1, %v3932_v7, %v3934_v58 }
 0x291   :  { %v2842_v53 = vrot.slane %v2754_v38, %v16936_v35  ;;  %3960 = vrot.lane.b32.xlu1 %v3931_v3, %s15616_s30 }
 0x293   :  { %v2917_v34 = vcombine.low %v2835_v33, %v2842_v53 }
 0x294   :  { %3884 = vrot.lane.b32.xlu0 %v3855_v60, %s15615_s28 }
 0x295   :  { %v2924_v57 = vrot.slane %v2917_v34, %v16936_v35  ;;  %3962 = vrot.lane.b32.xlu1 %v3933_v48, %s15616_s30 }
 0x297   :  { %14853 = vmatmul.mubr.msk.f32.gmra.mxu1 %vm20620_vm6, %v2924_v57  ;;  %vm20621_vm6 = vcmask 256000  }
 0x298   :  { %3886 = vrot.lane.b32.xlu0 %v3857_v40, %s15615_s28 }
 0x299   :  { %3964 = vrot.lane.b32.xlu1 %v3935_v47, %s15616_s30 }
 0x29c   :  { %3888 = vrot.lane.b32.xlu0 %v3859_v55, %s15615_s28 }
 0x29d   :  { %3966 = vrot.lane.b32.xlu1 %v3937_v16, %s15616_s30 }
 0x2a0   :  { %3890 = vrot.lane.b32.xlu0 %v3858_v5, %s15615_s28 }
 0x2a1   :  { %3968 = vrot.lane.b32.xlu1 %v3936_v6, %s15616_s30 }
 0x30a   :  { %v3002_v9 = vpop.f32.mrf.mxu1 }
 0x30b   :  { %v3033_v28 = vmul.f32 %v17071_v22, %v3002_v9 }
 0x30c   :  { %v14842_v49 = vpop.f32.mrf.mxu1 }
 0x30d   :  { %v3045_v41 = vadd.f32 %v17076_v21, %v3033_v28 }
 0x30f   :  { %v3050_v17 = vmax.f32 %v3045_v41, 0.0 }
 0x311   :  { %v3067_v27 = vrot.slane %v3050_v17, %v16026_v4  ;;  %v3060_v54 = vcombine.high %v3050_v17, %v3050_v17 }
 0x313   :  { %v3075_v24 = vcombine.high %v3067_v27, %v3067_v27  ;;  %v3074_v63 = vrot.slane %v3060_v54, %v16026_v4  ;;  %v3083_v29 = vrot.slane %v3067_v27, %v16026_v4 }
 0x315   :  { %v3097_v13 = vrot.slane %v3075_v24, %v16026_v4  ;;  %v3076_v2 = vcombine.high %v3074_v63, %v3074_v63  ;;  %v3090_v30 = vrot.slane %v3074_v63, %v16026_v4  ;;  %v3105_v18 = vcombine.high %v3083_v29, %v3083_v29 }
 0x317   :  { %v3107_v56 = vcombine.high %v3097_v13, %v3097_v13  ;;  %v3280_v62 = vcombine.low %v3083_v29, %v3097_v13  ;;  %v3104_v33 = vrot.slane %v3076_v2, %v16026_v4  ;;  %v3294_v34 = vrot.slane %v3105_v18, %v16026_v4 }
 0x319   :  { %v3303_v0 = vcombine.low %v3107_v56, %v3090_v30  ;;  %v3287_v38 = vrot.slane %v3280_v62, %v16026_v4  ;;  %v3317_v57 = vrot.slane %v3104_v33, %v16026_v4  ;;  %v14360_v47 = vcombine.high %v3090_v30, %v3104_v33 }
 0x31b   :  { %v3310_v53 = vrot.slane %v3303_v0, %v16026_v4  ;;  %v3295_v15 = vcombine.low %v3287_v38, %v3294_v34  ;;  %v3333_v41 = vrot.slane %v14360_v47, %v16026_v4 }
 0x31d   :  { %v3318_v44 = vcombine.low %v3310_v53, %v3317_v57  ;;  %v3302_v60 = vrot.slane %v3295_v15, %v16026_v4 }
 0x31f   :  { %v3325_v48 = vrot.slane %v3318_v44, %v16026_v4  ;;  %v3569_v5 = vsel %vm20621_vm6, %v3302_v60, -inf }
 0x320   :  { %v3570_v28 = vrot.slane %v3569_v5, 4 }
 0x321   :  { %v3576_v6 = vsel %vm20621_vm6, %v3325_v48, -inf }
 0x322   :  { %v3577_v49 = vrot.slane %v3576_v6, 4  ;;  %v3571_v30 = vmax.f32 %v3569_v5, %v3570_v28 }
 0x324   :  { %v3578_v62 = vmax.f32 %v3576_v6, %v3577_v49 }
 0x326   :  { %v3579_v44 = vrot.slane %v3578_v62, 2 }
 0x32d   :  { %v3007_v31 = vpop.f32.mrf.mxu1 }
 0x32e   :  { %v3034_v7 = vmul.f32 %v17071_v22, %v3007_v31  ;;  %v3572_v31 = vrot.slane %v3571_v30, 2 }
 0x32f   :  { %v14845_v12 = vpop.f32.mrf.mxu1 }
 0x330   :  { %v3046_v3 = vadd.f32 %v17076_v21, %v3034_v7  ;;  %v3573_v6 = vmax.f32 %v3571_v30, %v3572_v31 }
 0x332   :  { %v3051_v26 = vmax.f32 %v3046_v3, 0.0 }
 0x334   :  { %v3109_v58 = vcombine.high %v3051_v26, %v3051_v26  ;;  %v3116_v40 = vrot.slane %v3051_v26, %v16026_v4 }
 0x336   :  { %v3123_v55 = vrot.slane %v3109_v58, %v16026_v4  ;;  %v3124_v16 = vcombine.high %v3116_v40, %v3116_v40  ;;  %v3132_v36 = vrot.slane %v3116_v40, %v16026_v4 }
 0x338   :  { %v3125_v45 = vcombine.high %v3123_v55, %v3123_v55  ;;  %v3139_v20 = vrot.slane %v3123_v55, %v16026_v4  ;;  %v3146_v8 = vrot.slane %v3124_v16, %v16026_v4  ;;  %v3154_v9 = vcombine.high %v3132_v36, %v3132_v36 }
 0x339   :  { %v3340_v17 = vrot.slane %v3132_v36, %v16026_v4  ;;  %v3580_v55 = vmax.f32 %v3578_v62, %v3579_v44 }
 0x33a   :  { %v3153_v27 = vrot.slane %v3125_v45, %v16026_v4  ;;  %v3155_v24 = vcombine.high %v3139_v20, %v3139_v20  ;;  %v3156_v54 = vcombine.high %v3146_v8, %v3146_v8  ;;  %v3349_v13 = vcombine.low %v3146_v8, %v3154_v9 }
 0x33b   :  { %v3341_v63 = vcombine.low %v3333_v41, %v3340_v17  ;;  %v3574_v41 = vrot.slane %v3573_v6, 1  ;;  %v3581_v17 = vrot.slane %v3580_v55, 1 }
 0x33c   :  { %v3356_v56 = vrot.slane %v3349_v13, %v16026_v4  ;;  %v3363_v29 = vrot.slane %v3156_v54, %v16026_v4  ;;  %v3372_v2 = vcombine.low %v3139_v20, %v3153_v27  ;;  %v3386_v38 = vrot.slane %v3155_v24, %v16026_v4 }
 0x33d   :  { %v3348_v0 = vrot.slane %v3341_v63, %v16026_v4  ;;  %v3157_v13 = vcombine.high %v3153_v27, %v3153_v27 }
 0x33e   :  { %v3364_v18 = vcombine.low %v3356_v56, %v3363_v29  ;;  %v3379_v33 = vrot.slane %v3372_v2, %v16026_v4 }
 0x33f   :  { %v3583_v53 = vsel %vm20621_vm6, %v3348_v0, -inf }
 0x340   :  { %v3371_v34 = vrot.slane %v3364_v18, %v16026_v4  ;;  %v3387_v57 = vcombine.low %v3379_v33, %v3386_v38  ;;  %v3584_v15 = vrot.slane %v3583_v53, 4 }
 0x342   :  { %v3012_v7 = vpop.f32.mrf.mxu1  ;;  %v3394_v12 = vrot.slane %v3387_v57, %v16026_v4  ;;  %v3585_v3 = vmax.f32 %v3583_v53, %v3584_v15  ;;  %v3590_v60 = vsel %vm20621_vm6, %v3371_v34, -inf  ;;  %v3575_v34 = vmax.f32 %v3573_v6, %v3574_v41 }
 0x343   :  { %v3035_v48 = vmul.f32 %v17071_v22, %v3012_v7  ;;  %v3591_v26 = vrot.slane %v3590_v60, 4  ;;  %v3582_v57 = vmax.f32 %v3580_v55, %v3581_v17 }
 0x344   :  { %v14848_v58 = vpop.f32.mrf.mxu1  ;;  %v3586_v40 = vrot.slane %v3585_v3, 2  ;;  %v3597_v47 = vsel %vm20621_vm6, %v3394_v12, -inf }
 0x345   :  { %v3047_v5 = vadd.f32 %v17076_v21, %v3035_v48  ;;  %v3592_v16 = vmax.f32 %v3590_v60, %v3591_v26  ;;  %v3598_v36 = vrot.slane %v3597_v47, 4 }
 0x346   :  { %v3587_v20 = vmax.f32 %v3585_v3, %v3586_v40 }
 0x347   :  { %v3052_v45 = vmax.f32 %v3047_v5, 0.0  ;;  %v3593_v8 = vrot.slane %v3592_v16, 2  ;;  %v3599_v9 = vmax.f32 %v3597_v47, %v3598_v36 }
 0x348   :  { %v3588_v2 = vrot.slane %v3587_v20, 1 }
 0x349   :  { %v3158_v28 = vcombine.high %v3052_v45, %v3052_v45  ;;  %v3165_v49 = vrot.slane %v3052_v45, %v16026_v4  ;;  %v3594_v24 = vmax.f32 %v3592_v16, %v3593_v8  ;;  %v3600_v54 = vrot.slane %v3599_v9, 2  ;;  %v17128_v16 = vpop.permute.xlu0 %3860 }
 0x34a   :  { %v3589_v60 = vmax.f32 %v3587_v20, %v3588_v2  ;;  %v3676_v20 = vsel %vm2598_vm8, %v3582_v57, %v3575_v34 }
 0x34b   :  { %v3172_v63 = vrot.slane %v3158_v28, %v16026_v4  ;;  %v3173_v56 = vcombine.high %v3165_v49, %v3165_v49  ;;  %v3181_v29 = vrot.slane %v3165_v49, %v16026_v4  ;;  %v3595_v30 = vrot.slane %v3594_v24, 1 }
 0x34c   :  { %v3601_v62 = vmax.f32 %v3599_v9, %v3600_v54  ;;  %v3677_v49 = vsel %vm2600_vm9, %v3589_v60, %v3676_v20 }
 0x34d   :  { %v3174_v0 = vcombine.high %v3172_v63, %v3172_v63  ;;  %v3188_v18 = vrot.slane %v3172_v63, %v16026_v4  ;;  %v3195_v33 = vrot.slane %v3173_v56, %v16026_v4  ;;  %v3395_v38 = vcombine.low %v3157_v13, %v3181_v29  ;;  %v17137_v13 = vpop.permute.xlu1 %3938  ;;  %v17145_v57 = vpop.permute.xlu0 %3862 }
 0x34e   :  { %v3596_v48 = vmax.f32 %v3594_v24, %v3595_v30  ;;  %v3602_v47 = vrot.slane %v3601_v62, 1 }
 0x34f   :  { %v3017_v53 = vpop.f32.mrf.mxu1  ;;  %v3202_v15 = vrot.slane %v3174_v0, %v16026_v4  ;;  %v3204_v27 = vcombine.high %v3188_v18, %v3188_v18  ;;  %v3402_v31 = vrot.slane %v3395_v38, %v16026_v4  ;;  %v3409_v44 = vrot.slane %v3195_v33, %v16026_v4 }
 0x350   :  { %v14361_v7 = vcombine.high %v3181_v29, %v3195_v33  ;;  %v3036_v12 = vmul.f32 %v17071_v22, %v3017_v53  ;;  %v3432_v6 = vrot.slane %v3188_v18, %v16026_v4  ;;  %v3603_v24 = vmax.f32 %v3601_v62, %v3602_v47 }
 0x351   :  { %v14851_v3 = vpop.f32.mrf.mxu1  ;;  %v3206_v26 = vcombine.high %v3202_v15, %v3202_v15  ;;  %v3410_v58 = vcombine.low %v3402_v31, %v3409_v44  ;;  %v3441_v40 = vcombine.low %v3202_v15, %v3204_v27  ;;  %v3678_v54 = vsel %vm2602_vm10, %v3596_v48, %v3677_v49 }
 0x352   :  { %v3425_v5 = vrot.slane %v14361_v7, %v16026_v4  ;;  %v3048_v55 = vadd.f32 %v17076_v21, %v3036_v12  ;;  %v3679_v44 = vsel %vm2604_vm11, %v3603_v24, %v3678_v54 }
 0x353   :  { %v3417_v36 = vrot.slane %v3410_v58, %v16026_v4  ;;  %v3448_v45 = vrot.slane %v3441_v40, %v16026_v4  ;;  %v3455_v8 = vrot.slane %v3206_v26, %v16026_v4  ;;  %v17153_v40 = vpop.permute.xlu1 %3940 }
 0x354   :  { %v3433_v9 = vcombine.low %v3425_v5, %v3432_v6  ;;  %v3053_v28 = vmax.f32 %v3048_v55, 0.0 }
 0x355   :  { %v3604_v41 = vsel %vm20621_vm6, %v3417_v36, -inf  ;;  %v3456_v17 = vcombine.low %v3448_v45, %v3455_v8 }
 0x356   :  { %v3440_v63 = vrot.slane %v3433_v9, %v16026_v4  ;;  %v3605_v56 = vrot.slane %v3604_v41, 4  ;;  %v3207_v29 = vcombine.high %v3053_v28, %v3053_v28  ;;  %v3214_v2 = vrot.slane %v3053_v28, %v16026_v4 }
 0x357   :  { %v3022_v30 = vpop.f32.mrf.mxu1  ;;  %v3463_v18 = vrot.slane %v3456_v17, %v16026_v4 }
 0x358   :  { %v3037_v0 = vmul.f32 %v17071_v22, %v3022_v30  ;;  %v3221_v33 = vrot.slane %v3207_v29, %v16026_v4  ;;  %v3222_v38 = vcombine.high %v3214_v2, %v3214_v2  ;;  %v3230_v62 = vrot.slane %v3214_v2, %v16026_v4 }
 0x359   :  { %v14854_v53 = vpop.f32.mrf.mxu1  ;;  %v3606_v34 = vmax.f32 %v3604_v41, %v3605_v56  ;;  %v3611_v27 = vsel %vm20621_vm6, %v3440_v63, -inf  ;;  %v3618_v31 = vsel %vm20621_vm6, %v3463_v18, -inf  ;;  %v17160_v41 = vpop.permute.xlu0 %3864 }
 0x35a   :  { %v3049_v15 = vadd.f32 %v17076_v21, %v3037_v0  ;;  %v3223_v22 = vcombine.high %v3221_v33, %v3221_v33  ;;  %v3237_v7 = vrot.slane %v3221_v33, %v16026_v4  ;;  %v3244_v12 = vrot.slane %v3222_v38, %v16026_v4 }
 0x35b   :  { %v3252_v3 = vcombine.high %v3230_v62, %v3230_v62  ;;  %v3607_v48 = vrot.slane %v3606_v34, 2  ;;  %v3612_v26 = vrot.slane %v3611_v27, 4  ;;  %v3619_v58 = vrot.slane %v3618_v31, 4 }
 0x35c   :  { %v3054_v60 = vmax.f32 %v3049_v15, 0.0  ;;  %v3251_v21 = vrot.slane %v3223_v22, %v16026_v4  ;;  %v3254_v47 = vcombine.high %v3244_v12, %v3244_v12  ;;  %v3464_v5 = vcombine.low %v3230_v62, %v3244_v12  ;;  %v17167_v62 = vpop.permute.xlu1 %3942 }
 0x35d   :  { %v3478_v6 = vrot.slane %v3252_v3, %v16026_v4  ;;  %v3608_v36 = vmax.f32 %v3606_v34, %v3607_v48  ;;  %v3613_v45 = vmax.f32 %v3611_v27, %v3612_v26  ;;  %v3620_v8 = vmax.f32 %v3618_v31, %v3619_v58  ;;  %v17173_v58 = vpop.permute.xlu0 %3866 }
 0x35e   :  { %v3262_v55 = vrot.slane %v3054_v60, %v16026_v4  ;;  %v3471_v20 = vrot.slane %v3464_v5, %v16026_v4  ;;  %v3487_v9 = vcombine.low %v3254_v47, %v3237_v7  ;;  %v3501_v28 = vrot.slane %v3251_v21, %v16026_v4 }
 0x35f   :  { %v14362_v49 = vcombine.high %v3237_v7, %v3251_v21  ;;  %v3609_v54 = vrot.slane %v3608_v36, 1  ;;  %v3614_v63 = vrot.slane %v3613_v45, 2  ;;  %v3621_v30 = vrot.slane %v3620_v8, 2 }
 0x360   :  { %v3263_v17 = vcombine.high %v3262_v55, %v3262_v55  ;;  %v3270_v24 = vrot.slane %v3262_v55, %v16026_v4  ;;  %v3479_v56 = vcombine.low %v3471_v20, %v3478_v6  ;;  %v3494_v29 = vrot.slane %v3487_v9, %v16026_v4 }
 0x361   :  { %v3517_v2 = vrot.slane %v14362_v49, %v16026_v4  ;;  %v3610_v38 = vmax.f32 %v3608_v36, %v3609_v54  ;;  %v3615_v15 = vmax.f32 %v3613_v45, %v3614_v63  ;;  %v3622_v27 = vmax.f32 %v3620_v8, %v3621_v30 }
 0x362   :  { %v3277_v0 = vrot.slane %v3263_v17, %v16026_v4  ;;  %v3278_v18 = vcombine.high %v3270_v24, %v3270_v24  ;;  %v3524_v33 = vrot.slane %v3270_v24, %v16026_v4  ;;  %v3486_v53 = vrot.slane %v3479_v56, %v16026_v4 }
 0x363   :  { %v3502_v34 = vcombine.low %v3494_v29, %v3501_v28  ;;  %v3680_v12 = vsel %vm2606_vm12, %v3610_v38, %v3679_v44  ;;  %v3616_v48 = vrot.slane %v3615_v15, 1  ;;  %v3623_v26 = vrot.slane %v3622_v27, 1  ;;  %v3945_v28 = vpop.permute.xlu1 %3944 }
 0x364   :  { %v3279_v31 = vcombine.high %v3277_v0, %v3277_v0  ;;  %v3525_v22 = vcombine.low %v3517_v2, %v3524_v33  ;;  %v3533_v7 = vcombine.low %v3277_v0, %v3278_v18  ;;  %v3625_v60 = vsel %vm20621_vm6, %v3486_v53, -inf  ;;  %v3869_v2 = vpop.permute.xlu0 %3868 }
 0x365   :  { %v3509_v3 = vrot.slane %v3502_v34, %v16026_v4  ;;  %v3626_v21 = vrot.slane %v3625_v60, 4  ;;  %v3617_v36 = vmax.f32 %v3615_v15, %v3616_v48  ;;  %v3624_v45 = vmax.f32 %v3622_v27, %v3623_v26 }
 0x366   :  { %v3532_v47 = vrot.slane %v3525_v22, %v16026_v4  ;;  %v3540_v5 = vrot.slane %v3533_v7, %v16026_v4  ;;  %v3547_v6 = vrot.slane %v3279_v31, %v16026_v4 }
 0x367   :  { %v3632_v55 = vsel %vm20621_vm6, %v3509_v3, -inf  ;;  %v3627_v44 = vmax.f32 %v3625_v60, %v3626_v21  ;;  %v3681_v17 = vsel %vm2608_vm13, %v3617_v36, %v3680_v12  ;;  %v3947_v15 = vpop.permute.xlu1 %3946  ;;  %v3986_v60 = vsel %vm256_vm4, %v16787_v1, %v17128_v16  ;;  %v14367_v16 = vld [vmem:[%s20632_s25 + $0x18] sm:$0xf] }
 0x368   :  { %v3633_v8 = vrot.slane %v3632_v55, 4  ;;  %v3548_v20 = vcombine.low %v3540_v5, %v3547_v6  ;;  %v3639_v9 = vsel %vm20621_vm6, %v3532_v47, -inf  ;;  %v3682_v56 = vsel %vm2610_vm14, %v3624_v45, %v3681_v17  ;;  %v3871_v3 = vpop.permute.xlu0 %3870 }
 0x369   :  { %v3640_v49 = vrot.slane %v3639_v9, 4  ;;  %v3628_v24 = vrot.slane %v3627_v44, 2  ;;  %14863 = vmatprep.mubr.msk.f32.mxu1 %vm20623_vm7, %v3682_v56  ;;  %v3987_v45 = vsel %vm256_vm4, %v16792_v25, %v17145_v57  ;;  %v14366_v25 = vld [vmem:[%s20632_s25 + $0x10] sm:$0xff] }
 0x36a   :  { %v3634_v54 = vmax.f32 %v3632_v55, %v3633_v8  ;;  %v3555_v63 = vrot.slane %v3548_v20, %v16026_v4  ;;  %v4002_v55 = vsel %vm273_vm5, %v3986_v60, %v17137_v13  ;;  %v3988_v13 = vsel %vm256_vm4, %v16802_v46, %v17160_v41 }
 0x36b   :  { %v3641_v29 = vmax.f32 %v3639_v9, %v3640_v49  ;;  %v3629_v30 = vmax.f32 %v3627_v44, %v3628_v24  ;;  %v3949_v6 = vpop.permute.xlu1 %3948  ;;  %v4034_v1 = vcombine.high %v4002_v55, %v4002_v55  ;;  %v4003_v9 = vsel %vm273_vm5, %v3987_v45, %v17153_v40 }
 0x36c   :  { %v3635_v0 = vrot.slane %v3634_v54, 2  ;;  %v3646_v18 = vsel %vm20621_vm6, %v3555_v63, -inf  ;;  %v3873_v20 = vpop.permute.xlu0 %3872  ;;  %v4035_v40 = vcombine.high %v4003_v9, %v4003_v9  ;;  %v4004_v24 = vsel %vm273_vm5, %v3988_v13, %v17167_v62 }
 0x36d   :  { %v3642_v33 = vrot.slane %v3641_v29, 2  ;;  %v3647_v38 = vrot.slane %v3646_v18, 4  ;;  %v3630_v53 = vrot.slane %v3629_v30, 1  ;;  %v4051_v17 = vcombine.low %v4002_v55, %v4034_v1 }
 0x36e   :  { %v3636_v34 = vmax.f32 %v3634_v54, %v3635_v0  ;;  %v3989_v41 = vsel %vm256_vm4, %v16823_v61, %v17173_v58  ;;  %vm20656_vm6 = vcmask 97280   ;;  %v4052_v54 = vcombine.low %v4003_v9, %v4035_v40 }
 0x36f   :  { %v3643_v27 = vmax.f32 %v3641_v29, %v3642_v33  ;;  %v3648_v31 = vmax.f32 %v3646_v18, %v3647_v38  ;;  %v3631_v48 = vmax.f32 %v3629_v30, %v3630_v53  ;;  %v3951_v57 = vpop.permute.xlu1 %3950  ;;  %v4036_v63 = vcombine.high %v4004_v24, %v4004_v24 }
 0x370   :  { %v3637_v22 = vrot.slane %v3636_v34, 1  ;;  %v3875_v46 = vpop.permute.xlu0 %3874  ;;  %v4005_v29 = vsel %vm273_vm5, %v3989_v41, %v3945_v28  ;;  %v3990_v62 = vsel %vm256_vm4, %v16843_v51, %v3869_v2  ;;  %v3991_v18 = vsel %vm256_vm4, %v16854_v11, %v3871_v3 }
 0x371   :  { %v3644_v7 = vrot.slane %v3643_v27, 1  ;;  %v3649_v12 = vrot.slane %v3648_v31, 2  ;;  %v4053_v58 = vcombine.low %v4004_v24, %v4036_v63  ;;  %v4037_v30 = vcombine.high %v4005_v29, %v4005_v29 }
 0x372   :  { %v3638_v26 = vmax.f32 %v3636_v34, %v3637_v22  ;;  %v4006_v0 = vsel %vm273_vm5, %v3990_v62, %v3947_v15  ;;  %v4007_v2 = vsel %vm273_vm5, %v3991_v18, %v3949_v6  ;;  %v3992_v53 = vsel %vm256_vm4, %v16865_v43, %v3873_v20 }
 0x373   :  { %v3645_v21 = vmax.f32 %v3643_v27, %v3644_v7  ;;  %v3650_v47 = vmax.f32 %v3648_v31, %v3649_v12  ;;  %v3877_v56 = vpop.permute.xlu1 %3876  ;;  %v4054_v51 = vcombine.low %v4005_v29, %v4037_v30  ;;  %v4038_v28 = vcombine.high %v4006_v0, %v4006_v0 }
 0x374   :  { %v3683_v5 = vsel %vm2598_vm8, %v3638_v26, %v3631_v48  ;;  %v3953_v61 = vpop.permute.xlu0 %3952  ;;  %v4039_v34 = vcombine.high %v4007_v2, %v4007_v2  ;;  %v4008_v27 = vsel %vm273_vm5, %v3992_v53, %v3951_v57  ;;  %v3993_v43 = vsel %vm256_vm4, %v16878_v19, %v3875_v46 }
 0x375   :  { %v3651_v36 = vrot.slane %v3650_v47, 1  ;;  %v3684_v44 = vsel %vm2600_vm9, %v3645_v21, %v3683_v5  ;;  %v4055_v11 = vcombine.low %v4006_v0, %v4038_v28  ;;  %v4040_v7 = vcombine.high %v4008_v27, %v4008_v27  ;;  %v17310_v28 = vld [vmem:[%s20633_s2 + $0x1] ss:$0 sm:$0xff] }
 0x376   :  { %v4056_v22 = vcombine.low %v4007_v2, %v4039_v34  ;;  %v3994_v3 = vsel %vm256_vm4, %v16900_v37, %v3877_v56  ;;  %v4009_v26 = vsel %vm273_vm5, %v3993_v43, %v3953_v61 }
 0x377   :  { %v3652_v8 = vmax.f32 %v3650_v47, %v3651_v36  ;;  %v3955_v33 = vpop.permute.xlu1 %3954  ;;  %v4057_v48 = vcombine.low %v4008_v27, %v4040_v7 }
 0x378   :  { %v3879_v38 = vpop.permute.xlu0 %3878  ;;  %v4010_v21 = vsel %vm273_vm5, %v3994_v3, %v3955_v33 }
 0x379   :  { %v3685_v49 = vsel %vm2602_vm10, %v3652_v8, %v3684_v44  ;;  %v3995_v47 = vsel %vm256_vm4, %v16905_v39, %v3879_v38  ;;  %v4041_v37 = vcombine.high %v4010_v21, %v4010_v21  ;;  %v4058_v5 = vcombine.low %v4009_v26, %v4010_v21  ;;  %v17315_v38 = vld [vmem:[%s20595_s5 + $0x1] ss:$0 sm:$0xff] }
 0x37a   :  { %14864 = vmatmul.mubr.msk.f32.vlgmr.msra.gmra.mxu1 %vm20623_vm7, %v3685_v49 }
 0x37b   :  { %14867 = vmatpush3.msk.msra.mxu1 %vm20622_vm2, %v14367_v16  ;;  %14870 = vmatprep.mubr.msk.f32.mxu1 %vm15618_vm3, %v20640_v10  ;;  %vm20657_vm2 = vmmov %vm20656_vm6  ;;  %v3957_v15 = vpop.permute.xlu1 %3956 }
 0x37c   :  { %14868 = vmatprep.subr.mxu1 %v20640_v10  ;;  %v3881_v31 = vpop.permute.xlu0 %3880  ;;  %v4011_v6 = vsel %vm273_vm5, %v3995_v47, %v3957_v15  ;;  %vm20664_vm7 = vmmov %vm20657_vm2 }
 0x37d   :  { %14869 = vmatpush3.msra.mxu1 %v14366_v25  ;;  %v3996_v36 = vsel %vm256_vm4, %v16917_v52, %v3881_v31  ;;  %v4042_v39 = vcombine.high %v4011_v6, %v4011_v6  ;;  %v4059_v45 = vcombine.low %v4041_v37, %v4011_v6 }
 0x37e   :  { %14871 = vmatmul.mubr.msk.f32.vlgmr.msra.gmra.mxu1 %vm20656_vm6, %v4051_v17  ;;  %15002 = vmatprep.subr.mxu1 %v20640_v10  ;;  %vm20658_vm6 = vmmov %vm20657_vm2 }
 0x37f   :  { %14873 = vmatprep.mubr.msk.f32.mxu1 %vm15618_vm3, %v20640_v10  ;;  %v3959_v12 = vpop.permute.xlu1 %3958 }
 0x380   :  { %v3883_v60 = vpop.permute.xlu0 %3882  ;;  %v4012_v8 = vsel %vm273_vm5, %v3996_v36, %v3959_v12 }
 0x381   :  { %v3997_v20 = vsel %vm256_vm4, %v16930_v32, %v3883_v60  ;;  %v4043_v16 = vcombine.high %v4012_v8, %v4012_v8  ;;  %v4060_v9 = vcombine.low %v4042_v39, %v4012_v8 }
 0x382   :  { %14874 = vmatmul.mubr.msk.f32.gmra.mxu1 %vm20657_vm2, %v4052_v54 }
 0x383   :  { %14876 = vmatprep.mubr.msk.f32.mxu1 %vm15618_vm3, %v20640_v10  ;;  %v3961_v19 = vpop.permute.xlu1 %3960 }
 0x384   :  { %v3885_v55 = vpop.permute.xlu0 %3884  ;;  %v4013_v52 = vsel %vm273_vm5, %v3997_v20, %v3961_v19 }
 0x385   :  { %v3998_v49 = vsel %vm256_vm4, %v17008_v42, %v3885_v55  ;;  %v4044_v25 = vcombine.high %v4013_v52, %v4013_v52  ;;  %v4061_v57 = vcombine.low %v4043_v16, %v4013_v52 }
 0x386   :  { %14877 = vmatmul.mubr.msk.f32.gmra.mxu1 %vm20658_vm6, %v4053_v58  ;;  %vm20659_vm6 = vmmov %vm20657_vm2 }
 0x387   :  { %14879 = vmatprep.mubr.msk.f32.mxu1 %vm15618_vm3, %v20640_v10  ;;  %v3963_v44 = vpop.permute.xlu1 %3962 }
 0x388   :  { %v3887_v1 = vpop.permute.xlu0 %3886  ;;  %v4014_v32 = vsel %vm273_vm5, %v3998_v49, %v3963_v44 }
 0x389   :  { %v3999_v40 = vsel %vm256_vm4, %v17013_v23, %v3887_v1  ;;  %v4045_v24 = vcombine.high %v4014_v32, %v4014_v32  ;;  %v4062_v46 = vcombine.low %v4044_v25, %v4014_v32 }
 0x38a   :  { %14880 = vmatmul.mubr.msk.f32.gmra.mxu1 %vm20657_vm2, %v4054_v51 }
 0x38b   :  { %14882 = vmatprep.mubr.msk.f32.mxu1 %vm15618_vm3, %v20640_v10  ;;  %v3965_v13 = vpop.permute.xlu1 %3964 }
 0x38c   :  { %v3889_v17 = vpop.permute.xlu0 %3888  ;;  %v4015_v41 = vsel %vm273_vm5, %v3999_v40, %v3965_v13 }
 0x38d   :  { %v4000_v54 = vsel %vm256_vm4, %v17022_v50, %v3889_v17  ;;  %v4046_v56 = vcombine.high %v4015_v41, %v4015_v41  ;;  %v4063_v29 = vcombine.low %v4045_v24, %v4015_v41 }
 0x38e   :  { %14883 = vmatmul.mubr.msk.f32.gmra.mxu1 %vm20659_vm6, %v4055_v11  ;;  %vm20660_vm6 = vmmov %vm20657_vm2 }
 0x38f   :  { %14885 = vmatprep.mubr.msk.f32.mxu1 %vm15618_vm3, %v20640_v10  ;;  %v3967_v42 = vpop.permute.xlu1 %3966 }
 0x390   :  { %v3891_v63 = vpop.permute.xlu0 %3890  ;;  %v4016_v23 = vsel %vm273_vm5, %v4000_v54, %v3967_v42 }
 0x391   :  { %v4001_v62 = vsel %vm256_vm4, %v17045_v14, %v3891_v63  ;;  %v4047_v58 = vcombine.high %v4016_v23, %v4016_v23  ;;  %v4064_v30 = vcombine.low %v4046_v56, %v4016_v23  ;;  %v14363_v14 = vld [vmem:[%s20601_s11] ss:$0 sm:$0xff] }
 0x392   :  { %14886 = vmatmul.mubr.msk.f32.gmra.mxu1 %vm20657_vm2, %v4056_v22 }
 0x393   :  { %14888 = vmatprep.mubr.msk.f32.mxu1 %vm15618_vm3, %v20640_v10  ;;  %v3969_v61 = vpop.permute.xlu1 %3968 }
 0x394   :  { %v4017_v50 = vsel %vm273_vm5, %v4001_v62, %v3969_v61 }
 0x395   :  { %v4065_v0 = vcombine.low %v4047_v58, %v4017_v50 }
 0x396   :  { %14889 = vmatmul.mubr.msk.f32.gmra.mxu1 %vm20660_vm6, %v4057_v48  ;;  %vm20661_vm6 = vmmov %vm20657_vm2 }
 0x397   :  { %14891 = vmatprep.mubr.msk.f32.mxu1 %vm15618_vm3, %v20640_v10 }
 0x39a   :  { %14892 = vmatmul.mubr.msk.f32.gmra.mxu1 %vm20657_vm2, %v4058_v5 }
 0x39b   :  { %14894 = vmatprep.mubr.msk.f32.mxu1 %vm15618_vm3, %v20640_v10 }
 0x39e   :  { %14895 = vmatmul.mubr.msk.f32.gmra.mxu1 %vm20661_vm6, %v4059_v45  ;;  %vm20662_vm6 = vmmov %vm20657_vm2 }
 0x39f   :  { %14897 = vmatprep.mubr.msk.f32.mxu1 %vm15618_vm3, %v20640_v10 }
 0x3a2   :  { %14898 = vmatmul.mubr.msk.f32.gmra.mxu1 %vm20657_vm2, %v4060_v9 }
 0x3a3   :  { %14900 = vmatprep.mubr.msk.f32.mxu1 %vm15618_vm3, %v20640_v10 }
 0x3a6   :  { %14901 = vmatmul.mubr.msk.f32.gmra.mxu1 %vm20662_vm6, %v4061_v57  ;;  %vm20663_vm6 = vmmov %vm20657_vm2 }
 0x3a7   :  { %14903 = vmatprep.mubr.msk.f32.mxu1 %vm15618_vm3, %v20640_v10 }
 0x3aa   :  { %14904 = vmatmul.mubr.msk.f32.gmra.mxu1 %vm20657_vm2, %v4062_v46 }
 0x3ab   :  { %14906 = vmatprep.mubr.msk.f32.mxu1 %vm15618_vm3, %v20640_v10 }
 0x3ae   :  { %14907 = vmatmul.mubr.msk.f32.gmra.mxu1 %vm20663_vm6, %v4063_v29 }
 0x3af   :  { %14909 = vmatprep.mubr.msk.f32.mxu1 %vm15618_vm3, %v20640_v10 }
 0x3b2   :  { %14910 = vmatmul.mubr.msk.f32.gmra.mxu1 %vm20657_vm2, %v4064_v30 }
 0x3b3   :  { %14912 = vmatprep.mubr.msk.f32.mxu1 %vm15618_vm3, %v20640_v10 }
 0x3b6   :  { %14913 = vmatmul.mubr.msk.f32.gmra.mxu1 %vm20664_vm7, %v4065_v0  ;;  %vm20667_vm7 = vcmask 124928  }
 0x3b7   :  { %15014 = vmatprep.mubr.msk.f32.mxu1 %vm15618_vm3, %v20640_v10  ;;  %vm20668_vm6 = vmmov %vm20667_vm7 }
 0x3b8   :  { %vm20669_vm2 = vmmov %vm20668_vm6 }
 0x43a   :  { %v14865_v18 = vpop.f32.mrf.mxu1 }
 0x43b   :  { %v17303_v33 = vadd.f32 %v14865_v18, %v14363_v14 }
 0x43c   :  { %v17305_v51 = vpop.f32.mrf.mxu1 }
 0x43d   :  { %20665 = vst [vmem:[#allocation6_spill] sm:$0xff] %v17303_v33  ;;  %20666 = vst [vmem:[#allocation7_spill] sm:$0xff] %v17305_v51 }
 0x43e   :  { %v4165_v2 = vpop.f32.mrf.mxu1 }
 0x43f   :  { %v4247_v53 = vmul.f32 %v17310_v28, %v4165_v2 }
 0x440   :  { %v14872_v11 = vpop.f32.mrf.mxu1 }
 0x441   :  { %v4270_v34 = vadd.f32 %v17315_v38, %v4247_v53 }
 0x442   :  { %v4170_v15 = vpop.f32.mrf.mxu1 }
 0x443   :  { %v4285_v27 = vmax.f32 %v4270_v34, 0.0  ;;  %v4248_v31 = vmul.f32 %v17310_v28, %v4170_v15 }
 0x444   :  { %v14875_v22 = vpop.f32.mrf.mxu1 }
 0x445   :  { %v4315_v7 = vcombine.high %v4285_v27, %v4285_v27  ;;  %v4322_v12 = vrot.slane %v4285_v27, %v16026_v4  ;;  %v4271_v43 = vadd.f32 %v17315_v38, %v4248_v31 }
 0x446   :  { %v4175_v3 = vpop.f32.mrf.mxu1 }
 0x447   :  { %v4329_v60 = vrot.slane %v4315_v7, %v16026_v4  ;;  %v4330_v48 = vcombine.high %v4322_v12, %v4322_v12  ;;  %v4338_v26 = vrot.slane %v4322_v12, %v16026_v4  ;;  %v4286_v21 = vmax.f32 %v4271_v43, 0.0 }
 0x448   :  { %v4249_v47 = vmul.f32 %v17310_v28, %v4175_v3  ;;  %v14878_v19 = vpop.f32.mrf.mxu1 }
 0x449   :  { %v4331_v37 = vcombine.high %v4329_v60, %v4329_v60  ;;  %v4352_v5 = vrot.slane %v4330_v48, %v16026_v4  ;;  %v4360_v6 = vcombine.high %v4338_v26, %v4338_v26  ;;  %v4345_v55 = vrot.slane %v4329_v60, %v16026_v4 }
 0x44a   :  { %v4364_v36 = vcombine.high %v4286_v21, %v4286_v21  ;;  %v4371_v39 = vrot.slane %v4286_v21, %v16026_v4  ;;  %v4272_v45 = vadd.f32 %v17315_v38, %v4249_v47  ;;  %v17329_v44 = vpop.f32.mrf.mxu1 }
 0x44b   :  { %v4359_v8 = vrot.slane %v4331_v37, %v16026_v4  ;;  %v4362_v20 = vcombine.high %v4352_v5, %v4352_v5  ;;  %v5050_v1 = vcombine.low %v4338_v26, %v4352_v5  ;;  %v17333_v16 = vrot.slane %v4360_v6, %v16026_v4 }
 0x44c   :  { %v4378_v9 = vrot.slane %v4364_v36, %v16026_v4  ;;  %v4379_v52 = vcombine.high %v4371_v39, %v4371_v39  ;;  %v4387_v49 = vrot.slane %v4371_v39, %v16026_v4  ;;  %v4287_v13 = vmax.f32 %v4272_v45, 0.0  ;;  %v14881_v25 = vpop.f32.mrf.mxu1 }
 0x44d   :  { %v17338_v57 = vrot.slane %v5050_v1, %v16026_v4  ;;  %v5073_v32 = vcombine.low %v4362_v20, %v4345_v55  ;;  %v5087_v17 = vrot.slane %v4359_v8, %v16026_v4  ;;  %v14388_v40 = vcombine.high %v4345_v55, %v4359_v8 }
 0x44e   :  { %v4380_v24 = vcombine.high %v4378_v9, %v4378_v9  ;;  %v4394_v46 = vrot.slane %v4378_v9, %v16026_v4  ;;  %v4401_v42 = vrot.slane %v4379_v52, %v16026_v4  ;;  %v4409_v41 = vcombine.high %v4387_v49, %v4387_v49  ;;  %v4185_v54 = vpop.f32.mrf.mxu1 }
 0x44f   :  { %v5080_v56 = vrot.slane %v5073_v32, %v16026_v4  ;;  %v5103_v29 = vrot.slane %v14388_v40, %v16026_v4  ;;  %v5110_v23 = vrot.slane %v4387_v49, %v16026_v4  ;;  %v4413_v18 = vcombine.high %v4287_v13, %v4287_v13 }
 0x450   :  { %v4408_v62 = vrot.slane %v4380_v24, %v16026_v4  ;;  %v4410_v61 = vcombine.high %v4394_v46, %v4394_v46  ;;  %v4411_v58 = vcombine.high %v4401_v42, %v4401_v42  ;;  %v5119_v30 = vcombine.low %v4401_v42, %v4409_v41  ;;  %v14884_v50 = vpop.f32.mrf.mxu1 }
 0x451   :  { %v5088_v0 = vcombine.low %v5080_v56, %v5087_v17  ;;  %v5111_v14 = vcombine.low %v5103_v29, %v5110_v23  ;;  %v4420_v12 = vrot.slane %v4287_v13, %v16026_v4  ;;  %v4427_v48 = vrot.slane %v4413_v18, %v16026_v4 }
 0x452   :  { %v5126_v2 = vrot.slane %v5119_v30, %v16026_v4  ;;  %v5133_v53 = vrot.slane %v4411_v58, %v16026_v4  ;;  %v5142_v11 = vcombine.low %v4394_v46, %v4408_v62  ;;  %v4190_v34 = vpop.f32.mrf.mxu1  ;;  %v5156_v7 = vrot.slane %v4410_v61, %v16026_v4 }
 0x453   :  { %v5095_v15 = vrot.slane %v5088_v0, %v16026_v4  ;;  %v5118_v27 = vrot.slane %v5111_v14, %v16026_v4  ;;  %v4428_v5 = vcombine.high %v4420_v12, %v4420_v12  ;;  %v4429_v6 = vcombine.high %v4427_v48, %v4427_v48 }
 0x454   :  { %v5134_v31 = vcombine.low %v5126_v2, %v5133_v53  ;;  %v5149_v22 = vrot.slane %v5142_v11, %v16026_v4  ;;  %v14887_v43 = vpop.f32.mrf.mxu1  ;;  %v4412_v45 = vcombine.high %v4408_v62, %v4408_v62  ;;  %v4443_v9 = vrot.slane %v4427_v48, %v16026_v4 }
 0x455   :  { %v6017_v3 = vsel %vm20667_vm7, %v5095_v15, -inf  ;;  %v6024_v60 = vsel %vm20668_vm6, %v5118_v27, -inf  ;;  %v4450_v52 = vrot.slane %v4428_v5, %v16026_v4  ;;  %v4436_v49 = vrot.slane %v4420_v12, %v16026_v4  ;;  %vm20670_vm7 = vmmov %vm20669_vm2 }
 0x456   :  { %v6018_v26 = vrot.slane %v6017_v3, 4  ;;  %v5141_v21 = vrot.slane %v5134_v31, %v16026_v4  ;;  %v5157_v47 = vcombine.low %v5149_v22, %v5156_v7  ;;  %v4195_v19 = vpop.f32.mrf.mxu1  ;;  %v6025_v37 = vrot.slane %v6024_v60, 4  ;;  %vm20671_vm6 = vmmov %vm20669_vm2 }
 0x457   :  { %v4457_v13 = vrot.slane %v4429_v6, %v16026_v4  ;;  %v4250_v25 = vmul.f32 %v17310_v28, %v17329_v44  ;;  %v4459_v24 = vcombine.high %v4443_v9, %v4443_v9  ;;  %v5165_v56 = vcombine.low %v4412_v45, %v4436_v49 }
 0x458   :  { %v17360_v55 = vmax.f32 %v6017_v3, %v6018_v26  ;;  %v5164_v36 = vrot.slane %v5157_v47, %v16026_v4  ;;  %v6031_v39 = vsel %vm20669_vm2, %v5141_v21, -inf  ;;  %v14890_v8 = vpop.f32.mrf.mxu1  ;;  %v6026_v20 = vmax.f32 %v6024_v60, %v6025_v37 }
 0x459   :  { %v6032_v1 = vrot.slane %v6031_v39, 4  ;;  %v4461_v41 = vcombine.high %v4457_v13, %v4457_v13  ;;  %v5179_v62 = vrot.slane %v4450_v52, %v16026_v4  ;;  %v14389_v61 = vcombine.high %v4436_v49, %v4450_v52 }
 0x45a   :  { %v4200_v32 = vpop.f32.mrf.mxu1  ;;  %v6027_v40 = vrot.slane %v6026_v20, 2  ;;  %v17374_v42 = vsel %vm20670_vm7, %v5164_v36, -inf  ;;  %v5211_v58 = vcombine.low %v4457_v13, %v4459_v24  ;;  %v5172_v44 = vrot.slane %v5165_v56, %v16026_v4  ;;  %vm20672_vm7 = vmmov %vm20669_vm2 }
 0x45b   :  { %v17371_v46 = vmax.f32 %v6031_v39, %v6032_v1  ;;  %v5202_v30 = vrot.slane %v4443_v9, %v16026_v4  ;;  %v4273_v50 = vadd.f32 %v17315_v38, %v4250_v25  ;;  %v4251_v0 = vmul.f32 %v17310_v28, %v4185_v54 }
 0x45c   :  { %v14893_v29 = vpop.f32.mrf.mxu1  ;;  %v17376_v23 = vmax.f32 %v6026_v20, %v6027_v40  ;;  %v5195_v18 = vrot.slane %v14389_v61, %v16026_v4  ;;  %v5218_v2 = vrot.slane %v5211_v58, %v16026_v4  ;;  %v5225_v53 = vrot.slane %v4461_v41, %v16026_v4 }
 0x45d   :  { %v4252_v11 = vmul.f32 %v17310_v28, %v4190_v34  ;;  %v5180_v27 = vcombine.low %v5172_v44, %v5179_v62  ;;  %v4288_v31 = vmax.f32 %v4273_v50, 0.0  ;;  %v4274_v22 = vadd.f32 %v17315_v38, %v4251_v0 }
 0x45e   :  { %v17383_v14 = vpop.f32.mrf.mxu1  ;;  %v17391_v12 = vcombine.low %v5195_v18, %v5202_v30  ;;  %v4253_v43 = vmul.f32 %v17310_v28, %v4195_v19  ;;  %v4254_v3 = vmul.f32 %v17310_v28, %v4200_v32  ;;  %v17403_v5 = vcombine.low %v5218_v2, %v5225_v53 }
 0x45f   :  { %v4275_v54 = vadd.f32 %v17315_v38, %v4252_v11  ;;  %v5187_v60 = vrot.slane %v5180_v27, %v16026_v4  ;;  %v4462_v48 = vcombine.high %v4288_v31, %v4288_v31  ;;  %v4469_v34 = vrot.slane %v4288_v31, %v16026_v4 }
 0x460   :  { %v14896_v7 = vpop.f32.mrf.mxu1  ;;  %v4289_v26 = vmax.f32 %v4274_v22, 0.0  ;;  %v4276_v9 = vadd.f32 %v17315_v38, %v4253_v43  ;;  %v17413_v52 = vadd.f32 %v17315_v38, %v4254_v3 }
 0x461   :  { %v4290_v6 = vmax.f32 %v4275_v54, 0.0  ;;  %v17406_v19 = vsel %vm20671_vm6, %v5187_v60, -inf  ;;  %v4476_v36 = vrot.slane %v4462_v48, %v16026_v4  ;;  %v4477_v39 = vcombine.high %v4469_v34, %v4469_v34  ;;  %vm20673_vm6 = vmmov %vm20669_vm2 }
 0x462   :  { %v17398_v21 = vpop.f32.mrf.mxu1  ;;  %v4485_v45 = vrot.slane %v4469_v34, %v16026_v4  ;;  %v4511_v20 = vcombine.high %v4289_v26, %v4289_v26  ;;  %v4518_v1 = vrot.slane %v4289_v26, %v16026_v4 }
 0x463   :  { %v4478_v13 = vcombine.high %v4476_v36, %v4476_v36  ;;  %v4499_v25 = vrot.slane %v4477_v39, %v16026_v4  ;;  %v4560_v29 = vcombine.high %v4290_v6, %v4290_v6  ;;  %v4492_v62 = vrot.slane %v4476_v36, %v16026_v4 }
 0x464   :  { %v14899_v8 = vpop.f32.mrf.mxu1  ;;  %v4507_v32 = vcombine.high %v4485_v45, %v4485_v45  ;;  %v4525_v24 = vrot.slane %v4511_v20, %v16026_v4  ;;  %v4526_v41 = vcombine.high %v4518_v1, %v4518_v1  ;;  %v4534_v56 = vrot.slane %v4518_v1, %v16026_v4 }
 0x465   :  { %v4506_v61 = vrot.slane %v4478_v13, %v16026_v4  ;;  %v4509_v58 = vcombine.high %v4499_v25, %v4499_v25  ;;  %v5234_v44 = vcombine.low %v4485_v45, %v4499_v25  ;;  %v4567_v31 = vrot.slane %v4290_v6, %v16026_v4 }
 0x466   :  { %v17417_v40 = vpop.f32.mrf.mxu1  ;;  %v4527_v50 = vcombine.high %v4525_v24, %v4525_v24  ;;  %v4541_v0 = vrot.slane %v4525_v24, %v16026_v4  ;;  %v4548_v18 = vrot.slane %v4526_v41, %v16026_v4  ;;  %v4556_v2 = vcombine.high %v4534_v56, %v4534_v56 }
 0x467   :  { %v17426_v53 = vrot.slane %v5234_v44, %v16026_v4  ;;  %v17429_v11 = vrot.slane %v4507_v32, %v16026_v4  ;;  %v14390_v27 = vcombine.high %v4492_v62, %v4506_v61  ;;  %v5257_v7 = vcombine.low %v4509_v58, %v4492_v62 }
 0x468   :  { %v14902_v30 = vpop.f32.mrf.mxu1  ;;  %v4555_v54 = vrot.slane %v4527_v50, %v16026_v4  ;;  %v4557_v43 = vcombine.high %v4541_v0, %v4541_v0  ;;  %v4558_v3 = vcombine.high %v4548_v18, %v4548_v18  ;;  %v5271_v60 = vrot.slane %v4506_v61, %v16026_v4 }
 0x469   :  { %v5287_v48 = vrot.slane %v14390_v27, %v16026_v4  ;;  %v5294_v34 = vrot.slane %v4534_v56, %v16026_v4  ;;  %v5303_v26 = vcombine.low %v4548_v18, %v4556_v2  ;;  %v4574_v25 = vrot.slane %v4560_v29, %v16026_v4 }
 0x46a   :  { %v17432_v22 = vpop.f32.mrf.mxu1  ;;  %v5317_v6 = vrot.slane %v4558_v3, %v16026_v4  ;;  %v5326_v45 = vcombine.low %v4541_v0, %v4555_v54  ;;  %v4559_v8 = vcombine.high %v4555_v54, %v4555_v54  ;;  %v5340_v13 = vrot.slane %v4557_v43, %v16026_v4 }
 0x46b   :  { %v5295_v20 = vcombine.low %v5287_v48, %v5294_v34  ;;  %v5310_v1 = vrot.slane %v5303_v26, %v16026_v4  ;;  %v4575_v41 = vcombine.high %v4567_v31, %v4567_v31  ;;  %v4583_v56 = vrot.slane %v4567_v31, %v16026_v4 }
 0x46c   :  { %v14905_v36 = vpop.f32.mrf.mxu1  ;;  %v5333_v24 = vrot.slane %v5326_v45, %v16026_v4  ;;  %v4291_v62 = vmax.f32 %v4276_v9, 0.0  ;;  %v4576_v44 = vcombine.high %v4574_v25, %v4574_v25  ;;  %v4590_v30 = vrot.slane %v4574_v25, %v16026_v4 }
 0x46d   :  { %v5302_v61 = vrot.slane %v5295_v20, %v16026_v4  ;;  %v5318_v58 = vcombine.low %v5310_v1, %v5317_v6  ;;  %v5264_v0 = vrot.slane %v5257_v7, %v16026_v4  ;;  %v4597_v29 = vrot.slane %v4575_v41, %v16026_v4 }
 0x46e   :  { %v17444_v32 = vpop.f32.mrf.mxu1  ;;  %v5341_v18 = vcombine.low %v5333_v24, %v5340_v13  ;;  %v5349_v2 = vcombine.low %v4559_v8, %v4583_v56  ;;  %v4604_v31 = vrot.slane %v4576_v44, %v16026_v4  ;;  %v4606_v9 = vcombine.high %v4590_v30, %v4590_v30 }
 0x46f   :  { %v5325_v27 = vrot.slane %v5318_v58, %v16026_v4  ;;  %v6080_v54 = vsel %vm20669_vm2, %v5302_v61, -inf  ;;  %v5363_v7 = vrot.slane %v4597_v29, %v16026_v4  ;;  %v14391_v6 = vcombine.high %v4583_v56, %v4597_v29 }
 0x470   :  { %v14908_v50 = vpop.f32.mrf.mxu1  ;;  %v5348_v3 = vrot.slane %v5341_v18, %v16026_v4  ;;  %v6081_v48 = vrot.slane %v6080_v54, 4  ;;  %v5356_v34 = vrot.slane %v5349_v2, %v16026_v4  ;;  %v4608_v36 = vcombine.high %v4604_v31, %v4604_v31 }
 0x471   :  { %v6087_v26 = vsel %vm20672_vm7, %v5325_v27, -inf  ;;  %v4609_v45 = vcombine.high %v4291_v62, %v4291_v62  ;;  %v17461_v20 = vcombine.low %v5264_v0, %v5271_v60  ;;  %v5379_v41 = vrot.slane %v14391_v6, %v16026_v4  ;;  %vm20674_vm7 = vmmov %vm20669_vm2 }
 0x472   :  { %v17455_v43 = vpop.f32.mrf.mxu1  ;;  %v17463_v1 = vmax.f32 %v6080_v54, %v6081_v48  ;;  %v17466_v13 = vsel %vm20673_vm6, %v5348_v3, -inf  ;;  %v5364_v25 = vcombine.low %v5356_v34, %v5363_v7  ;;  %v6088_v24 = vrot.slane %v6087_v26, 4  ;;  %vm20675_vm6 = vmmov %vm20669_vm2 }
 0x473   :  { %v5386_v61 = vrot.slane %v4590_v30, %v16026_v4  ;;  %v5395_v58 = vcombine.low %v4604_v31, %v4606_v9  ;;  %v5409_v60 = vrot.slane %v4608_v36, %v16026_v4  ;;  %v4616_v0 = vrot.slane %v4291_v62, %v16026_v4 }
 0x474   :  { %v14911_v8 = vpop.f32.mrf.mxu1  ;;  %v5371_v50 = vrot.slane %v5364_v25, %v16026_v4  ;;  %v4623_v2 = vrot.slane %v4609_v45, %v16026_v4  ;;  %v4292_v27 = vmax.f32 %v17413_v52, 0.0  ;;  %v4255_v3 = vmul.f32 %v17310_v28, %v17383_v14 }
 0x475   :  { %v17476_v18 = vcombine.low %v5379_v41, %v5386_v61  ;;  %v5402_v29 = vrot.slane %v5395_v58, %v16026_v4  ;;  %v4624_v31 = vcombine.high %v4616_v0, %v4616_v0  ;;  %v4632_v9 = vrot.slane %v4616_v0, %v16026_v4 }
 0x476   :  { %v17470_v44 = vpop.f32.mrf.mxu1  ;;  %v17485_v48 = vmax.f32 %v6087_v26, %v6088_v24  ;;  %v17490_v34 = vsel %vm20669_vm2, %v5371_v50, -inf  ;;  %v4625_v7 = vcombine.high %v4623_v2, %v4623_v2  ;;  %v4658_v45 = vcombine.high %v4292_v27, %v4292_v27 }
 0x477   :  { %v17492_v36 = vcombine.low %v5402_v29, %v5409_v60  ;;  %v4646_v52 = vrot.slane %v4624_v31, %v16026_v4  ;;  %v4654_v6 = vcombine.high %v4632_v9, %v4632_v9  ;;  %v4639_v8 = vrot.slane %v4623_v2, %v16026_v4 }
 0x478   :  { %v14914_v30 = vpop.f32.mrf.mxu1  ;;  %v4653_v25 = vrot.slane %v4625_v7, %v16026_v4  ;;  %v4665_v14 = vrot.slane %v4292_v27, %v16026_v4  ;;  %v4278_v26 = vadd.f32 %v17315_v38, %v4255_v3  ;;  %v4672_v61 = vrot.slane %v4658_v45, %v16026_v4 }
 0x479   :  { %v4656_v24 = vcombine.high %v4646_v52, %v4646_v52  ;;  %v5418_v41 = vcombine.low %v4632_v9, %v4646_v52  ;;  %v4256_v58 = vmul.f32 %v17310_v28, %v17398_v21  ;;  %v17503_v50 = vrot.slane %v4654_v6, %v16026_v4 }
 0x47a   :  { %v14392_v60 = vcombine.high %v4639_v8, %v4653_v25  ;;  %v4673_v0 = vcombine.high %v4665_v14, %v4665_v14  ;;  %v4681_v29 = vrot.slane %v4665_v14, %v16026_v4  ;;  %v4674_v30 = vcombine.high %v4672_v61, %v4672_v61 }
 0x47b   :  { %v17507_v2 = vrot.slane %v5418_v41, %v16026_v4  ;;  %v5441_v27 = vcombine.low %v4656_v24, %v4639_v8  ;;  %v4688_v31 = vrot.slane %v4672_v61, %v16026_v4  ;;  %v5455_v6 = vrot.slane %v4653_v25, %v16026_v4 }
 0x47c   :  { %v4695_v9 = vrot.slane %v4673_v0, %v16026_v4  ;;  %v4703_v3 = vcombine.high %v4681_v29, %v4681_v29  ;;  %v5471_v7 = vrot.slane %v14392_v60, %v16026_v4  ;;  %v5478_v21 = vrot.slane %v4681_v29, %v16026_v4 }
 0x47d   :  { %v5448_v52 = vrot.slane %v5441_v27, %v16026_v4  ;;  %v4702_v45 = vrot.slane %v4674_v30, %v16026_v4  ;;  %v4704_v14 = vcombine.high %v4688_v31, %v4688_v31  ;;  %v4293_v24 = vmax.f32 %v4278_v26, 0.0 }
 0x47e   :  { %v4705_v41 = vcombine.high %v4695_v9, %v4695_v9  ;;  %v17516_v63 = vcombine.low %v5471_v7, %v5478_v21  ;;  %v5487_v8 = vcombine.low %v4695_v9, %v4703_v3  ;;  %v4279_v9 = vadd.f32 %v17315_v38, %v4256_v58 }
 0x47f   :  { %v17521_v60 = vcombine.low %v5448_v52, %v5455_v6  ;;  %v5510_v29 = vcombine.low %v4688_v31, %v4702_v45  ;;  %v5524_v30 = vrot.slane %v4704_v14, %v16026_v4  ;;  %v4707_v62 = vcombine.high %v4293_v24, %v4293_v24 }
 0x480   :  { %v5494_v27 = vrot.slane %v5487_v8, %v16026_v4  ;;  %v5501_v25 = vrot.slane %v4705_v41, %v16026_v4  ;;  %v4706_v21 = vcombine.high %v4702_v45, %v4702_v45  ;;  %v4714_v26 = vrot.slane %v4293_v24, %v16026_v4 }
 0x481   :  { %v5517_v7 = vrot.slane %v5510_v29, %v16026_v4  ;;  %v4721_v31 = vrot.slane %v4707_v62, %v16026_v4  ;;  %v4257_v6 = vmul.f32 %v17310_v28, %v17417_v40  ;;  %v4294_v29 = vmax.f32 %v4279_v9, 0.0 }
 0x482   :  { %v17531_v52 = vcombine.low %v5494_v27, %v5501_v25  ;;  %v4722_v14 = vcombine.high %v4714_v26, %v4714_v26  ;;  %v4730_v8 = vrot.slane %v4714_v26, %v16026_v4  ;;  %v4258_v58 = vmul.f32 %v17310_v28, %v17432_v22 }
 0x483   :  { %v5525_v41 = vcombine.low %v5517_v7, %v5524_v30  ;;  %v4723_v45 = vcombine.high %v4721_v31, %v4721_v31  ;;  %v4737_v24 = vrot.slane %v4721_v31, %v16026_v4  ;;  %v4756_v40 = vcombine.high %v4294_v29, %v4294_v29 }
 0x484   :  { %v4744_v62 = vrot.slane %v4722_v14, %v16026_v4  ;;  %v5533_v3 = vcombine.low %v4706_v21, %v4730_v8  ;;  %v4763_v26 = vrot.slane %v4294_v29, %v16026_v4  ;;  %v4280_v9 = vadd.f32 %v17315_v38, %v4257_v6 }
 0x485   :  { %v5532_v25 = vrot.slane %v5525_v41, %v16026_v4  ;;  %v4751_v30 = vrot.slane %v4723_v45, %v16026_v4  ;;  %v4753_v7 = vcombine.high %v4737_v24, %v4737_v24  ;;  %v5570_v41 = vrot.slane %v4737_v24, %v16026_v4 }
 0x486   :  { %v5540_v22 = vrot.slane %v5533_v3, %v16026_v4  ;;  %v5547_v61 = vrot.slane %v4744_v62, %v16026_v4  ;;  %v14393_v56 = vcombine.high %v4730_v8, %v4744_v62  ;;  %v4770_v21 = vrot.slane %v4756_v40, %v16026_v4 }
 0x487   :  { %v6150_v31 = vsel %vm20674_vm7, %v5532_v25, -inf  ;;  %v4755_v0 = vcombine.high %v4751_v30, %v4751_v30  ;;  %v5579_v14 = vcombine.low %v4751_v30, %v4753_v7  ;;  %v4771_v27 = vcombine.high %v4763_v26, %v4763_v26  ;;  %vm20676_vm7 = vmmov %vm20669_vm2 }
 0x488   :  { %v5548_v54 = vcombine.low %v5540_v22, %v5547_v61  ;;  %v5563_v45 = vrot.slane %v14393_v56, %v16026_v4  ;;  %v4779_v29 = vrot.slane %v4763_v26, %v16026_v4  ;;  %v6151_v6 = vrot.slane %v6150_v31, 4  ;;  %v14403_v26 = vld [vmem:[%s20596_s6 + $0x58] sm:$0xff] }
 0x489   :  { %v5586_v25 = vrot.slane %v5579_v14, %v16026_v4  ;;  %v5593_v3 = vrot.slane %v4755_v0, %v16026_v4  ;;  %v4772_v37 = vcombine.high %v4770_v21, %v4770_v21  ;;  %v4793_v24 = vrot.slane %v4771_v27, %v16026_v4  ;;  %v14402_v0 = vld [vmem:[%s20596_s6 + $0x50] sm:$0xff]  ;;  %14916 = vmatpush3.msra.mxu0 %v14403_v26 }
 0x48a   :  { %v5555_v8 = vrot.slane %v5548_v54, %v16026_v4  ;;  %v5571_v62 = vcombine.low %v5563_v45, %v5570_v41  ;;  %v4281_v30 = vadd.f32 %v17315_v38, %v4258_v58  ;;  %v4786_v61 = vrot.slane %v4770_v21, %v16026_v4  ;;  %14917 = vmatprep.subr.mxu0 %v20640_v10 }
 0x48b   :  { %v5594_v40 = vcombine.low %v5586_v25, %v5593_v3  ;;  %v4800_v56 = vrot.slane %v4772_v37, %v16026_v4  ;;  %v4801_v7 = vcombine.high %v4779_v29, %v4779_v29  ;;  %v4803_v22 = vcombine.high %v4793_v24, %v4793_v24  ;;  %14918 = vmatpush3.msra.mxu0 %v14402_v0 }
 0x48c   :  { %v5578_v54 = vrot.slane %v5571_v62, %v16026_v4  ;;  %v6157_v27 = vsel %vm20675_vm6, %v5555_v8, -inf  ;;  %v5602_v58 = vcombine.low %v4779_v29, %v4793_v24  ;;  %v17569_v41 = vmax.f32 %v6150_v31, %v6151_v6  ;;  %14919 = vmatprep.subr.mxu0 %v20640_v10  ;;  %vm20677_vm6 = vmmov %vm20669_vm2 }
 0x48d   :  { %v5601_v37 = vrot.slane %v5594_v40, %v16026_v4  ;;  %v6158_v14 = vrot.slane %v6157_v27, 4  ;;  %v5616_v21 = vrot.slane %v4801_v7, %v16026_v4  ;;  %v5625_v3 = vcombine.low %v4803_v22, %v4786_v61 }
 0x48e   :  { %v6164_v45 = vsel %vm20669_vm2, %v5578_v54, -inf  ;;  %v5609_v25 = vrot.slane %v5602_v58, %v16026_v4  ;;  %v5639_v62 = vrot.slane %v4800_v56, %v16026_v4  ;;  %v14394_v6 = vcombine.high %v4786_v61, %v4800_v56 }
 0x48f   :  { %v6159_v8 = vmax.f32 %v6157_v27, %v6158_v14  ;;  %v6165_v29 = vrot.slane %v6164_v45, 4  ;;  %v17578_v31 = vsel %vm20676_vm7, %v5601_v37, -inf  ;;  %v5632_v7 = vrot.slane %v5625_v3, %v16026_v4  ;;  %vm20684_vm7 = vmmov %vm20669_vm2 }
 0x490   :  { %v5617_v40 = vcombine.low %v5609_v25, %v5616_v21  ;;  %v4295_v26 = vmax.f32 %v4280_v9, 0.0  ;;  %v5655_v22 = vrot.slane %v14394_v6, %v16026_v4  ;;  %v4296_v49 = vmax.f32 %v4281_v30, 0.0 }
 0x491   :  { %v6160_v54 = vrot.slane %v6159_v8, 2  ;;  %v6166_v58 = vmax.f32 %v6164_v45, %v6165_v29  ;;  %v17585_v27 = vcombine.low %v5632_v7, %v5639_v62 }
 0x492   :  { %v5624_v0 = vrot.slane %v5617_v40, %v16026_v4  ;;  %v4805_v37 = vcombine.high %v4295_v26, %v4295_v26  ;;  %v4812_v61 = vrot.slane %v4295_v26, %v16026_v4  ;;  %v4854_v24 = vcombine.high %v4296_v49, %v4296_v49 }
 0x493   :  { %v17588_v56 = vmax.f32 %v6159_v8, %v6160_v54  ;;  %v6167_v14 = vrot.slane %v6166_v58, 2  ;;  %v4861_v21 = vrot.slane %v4296_v49, %v16026_v4 }
 0x494   :  { %v6178_v45 = vsel %vm20677_vm6, %v5624_v0, -inf  ;;  %v4819_v30 = vrot.slane %v4805_v37, %v16026_v4  ;;  %v4820_v25 = vcombine.high %v4812_v61, %v4812_v61  ;;  %v4828_v29 = vrot.slane %v4812_v61, %v16026_v4  ;;  %vm20686_vm6 = vmmov %vm20669_vm2 }
 0x495   :  { %v17595_v3 = vmax.f32 %v6166_v58, %v6167_v14  ;;  %v6179_v62 = vrot.slane %v6178_v45, 4  ;;  %v4868_v8 = vrot.slane %v4854_v24, %v16026_v4  ;;  %v4869_v7 = vcombine.high %v4861_v21, %v4861_v21 }
 0x496   :  { %v4821_v6 = vcombine.high %v4819_v30, %v4819_v30  ;;  %v4835_v40 = vrot.slane %v4819_v30, %v16026_v4  ;;  %v4842_v49 = vrot.slane %v4820_v25, %v16026_v4  ;;  %v4850_v54 = vcombine.high %v4828_v29, %v4828_v29 }
 0x497   :  { %v17601_v26 = vmax.f32 %v6178_v45, %v6179_v62  ;;  %v5662_v0 = vrot.slane %v4828_v29, %v16026_v4  ;;  %v4870_v37 = vcombine.high %v4868_v8, %v4868_v8  ;;  %v4877_v61 = vrot.slane %v4861_v21, %v16026_v4 }
 0x498   :  { %v4849_v58 = vrot.slane %v4821_v6, %v16026_v4  ;;  %v4851_v14 = vcombine.high %v4835_v40, %v4835_v40  ;;  %v4852_v9 = vcombine.high %v4842_v49, %v4842_v49  ;;  %v5671_v24 = vcombine.low %v4842_v49, %v4850_v54 }
 0x499   :  { %v5663_v15 = vcombine.low %v5655_v22, %v5662_v0  ;;  %v4884_v47 = vrot.slane %v4868_v8, %v16026_v4  ;;  %v4891_v30 = vrot.slane %v4869_v7, %v16026_v4  ;;  %v4898_v39 = vrot.slane %v4870_v37, %v16026_v4 }
 0x49a   :  { %v5685_v25 = vrot.slane %v4852_v9, %v16026_v4  ;;  %v5694_v45 = vcombine.low %v4835_v40, %v4849_v58  ;;  %v17610_v62 = vrot.slane %v4851_v14, %v16026_v4  ;;  %v4853_v29 = vcombine.high %v4849_v58, %v4849_v58 }
 0x49b   :  { %v5670_v17 = vrot.slane %v5663_v15, %v16026_v4  ;;  %v5678_v6 = vrot.slane %v5671_v24, %v16026_v4  ;;  %v4900_v21 = vcombine.high %v4884_v47, %v4884_v47  ;;  %v5731_v49 = vrot.slane %v4891_v30, %v16026_v4 }
 0x49c   :  { %v17616_v22 = vrot.slane %v5694_v45, %v16026_v4  ;;  %v5717_v8 = vcombine.low %v4853_v29, %v4877_v61  ;;  %v14395_v7 = vcombine.high %v4877_v61, %v4891_v30  ;;  %v4902_v54 = vcombine.high %v4898_v39, %v4898_v39 }
 0x49d   :  { %v17619_v9 = vcombine.low %v5678_v6, %v5685_v25  ;;  %v17622_v40 = vsel %vm20669_vm2, %v5670_v17, -inf  ;;  %v5754_v15 = vrot.slane %v4884_v47, %v16026_v4  ;;  %v5763_v24 = vcombine.low %v4898_v39, %v4900_v21 }
 0x49e   :  { %v5724_v58 = vrot.slane %v5717_v8, %v16026_v4  ;;  %v5747_v14 = vrot.slane %v14395_v7, %v16026_v4  ;;  %v5777_v61 = vrot.slane %v4902_v54, %v16026_v4  ;;  %v20678_v17 = vcombine.low %v17426_v53, %v17429_v11 }
 0x49f   :  { %v20679_v25 = vrot.slane %v17360_v55, 2  ;;  %v20680_v6 = vrot.slane %v17376_v23, 1  ;;  %v6034_v39 = vrot.slane %v17371_v46, 2  ;;  %v5770_v21 = vrot.slane %v5763_v24, %v16026_v4 }
 0x4a0   :  { %v5256_v30 = vrot.slane %v20678_v17, %v16026_v4  ;;  %v17638_v45 = vcombine.low %v5724_v58, %v5731_v49  ;;  %v5755_v29 = vcombine.low %v5747_v14, %v5754_v15  ;;  %v20681_v53 = vrot.slane %v17374_v42, 4 }
 0x4a1   :  { %v6021_v47 = vmax.f32 %v17360_v55, %v20679_v25  ;;  %v17643_v8 = vmax.f32 %v17376_v23, %v20680_v6  ;;  %v20682_v54 = vrot.slane %v17406_v19, 4  ;;  %v6035_v15 = vmax.f32 %v17371_v46, %v6034_v39 }
 0x4a2   :  { %v6040_v11 = vmax.f32 %v17374_v42, %v20681_v53  ;;  %v5762_v49 = vrot.slane %v5755_v29, %v16026_v4  ;;  %v20683_v23 = vrot.slane %v17391_v12, %v16026_v4  ;;  %v20685_v14 = vrot.slane %v17403_v5, %v16026_v4 }
 0x4a3   :  { %v6022_v7 = vrot.slane %v6021_v47, 1  ;;  %v6047_v55 = vmax.f32 %v17406_v19, %v20682_v54  ;;  %v5778_v17 = vcombine.low %v5770_v21, %v5777_v61  ;;  %v6036_v29 = vrot.slane %v6035_v15, 1 }
 0x4a4   :  { %v6052_v58 = vsel %vm20684_vm7, %v20683_v23, -inf  ;;  %v6059_v24 = vsel %vm20686_vm6, %v20685_v14, -inf  ;;  %v6041_v25 = vrot.slane %v6040_v11, 2  ;;  %v6220_v19 = vsel %vm20669_vm2, %v5762_v49, -inf  ;;  %vm20687_vm7 = vmmov %vm20669_vm2 }
 0x4a5   :  { %v17663_v42 = vmax.f32 %v6021_v47, %v6022_v7  ;;  %v6048_v6 = vrot.slane %v6047_v55, 2  ;;  %v6053_v53 = vrot.slane %v6052_v58, 4  ;;  %v6060_v46 = vrot.slane %v6059_v24, 4  ;;  %vm20688_vm6 = vmmov %vm20669_vm2 }
 0x4a6   :  { %v5785_v39 = vrot.slane %v5778_v17, %v16026_v4  ;;  %v6221_v12 = vrot.slane %v6220_v19, 4  ;;  %v6042_v54 = vmax.f32 %v6040_v11, %v6041_v25  ;;  %v17667_v37 = vmax.f32 %v6035_v15, %v6036_v29 }
 0x4a7   :  { %v6049_v23 = vmax.f32 %v6047_v55, %v6048_v6  ;;  %v6054_v5 = vmax.f32 %v6052_v58, %v6053_v53  ;;  %v6061_v0 = vmax.f32 %v6059_v24, %v6060_v46  ;;  %v6066_v61 = vsel %vm20687_vm7, %v5256_v30, -inf  ;;  %vm20692_vm7 = vmmov %vm20669_vm2 }
 0x4a8   :  { %v17670_v47 = vmax.f32 %v6220_v19, %v6221_v12  ;;  %v17673_v21 = vsel %vm20688_vm6, %v5785_v39, -inf  ;;  %v6043_v7 = vrot.slane %v6042_v54, 1  ;;  %v6067_v59 = vrot.slane %v6066_v61, 4  ;;  %vm20693_vm6 = vmmov %vm20669_vm2 }
 0x4a9   :  { %v6050_v49 = vrot.slane %v6049_v23, 1  ;;  %v6055_v33 = vrot.slane %v6054_v5, 2  ;;  %v6062_v17 = vrot.slane %v6061_v0, 2  ;;  %v6364_v30 = vsel %vm2598_vm8, %v17643_v8, %v17663_v42 }
 0x4aa   :  { %v17676_v11 = vmax.f32 %v6042_v54, %v6043_v7  ;;  %v4259_v15 = vmul.f32 %v17310_v28, %v17444_v32  ;;  %v6068_v25 = vmax.f32 %v6066_v61, %v6067_v59  ;;  %v6365_v6 = vsel %vm2600_vm9, %v17667_v37, %v6364_v30 }
 0x4ab   :  { %v17678_v55 = vmax.f32 %v6049_v23, %v6050_v49  ;;  %v6056_v58 = vmax.f32 %v6054_v5, %v6055_v33  ;;  %v6063_v24 = vmax.f32 %v6061_v0, %v6062_v17  ;;  %v5279_v53 = vrot.slane %v17461_v20, %v16026_v4 }
 0x4ac   :  { %v6366_v19 = vsel %vm2602_vm10, %v17676_v11, %v6365_v6  ;;  %v4282_v29 = vadd.f32 %v17315_v38, %v4259_v15  ;;  %v6414_v46 = vsel %vm2598_vm8, %v17667_v37, %v17643_v8  ;;  %v6069_v33 = vrot.slane %v6068_v25, 2 }
 0x4ad   :  { %v6057_v39 = vrot.slane %v6056_v58, 1  ;;  %v6064_v32 = vrot.slane %v6063_v24, 1  ;;  %v6367_v59 = vsel %vm2604_vm11, %v17678_v55, %v6366_v19  ;;  %v6073_v12 = vsel %vm20669_vm2, %v5279_v53, -inf }
 0x4ae   :  { %v4297_v0 = vmax.f32 %v4282_v29, 0.0  ;;  %v6415_v54 = vsel %vm2600_vm9, %v17676_v11, %v6414_v46  ;;  %v20689_v23 = vrot.slane %v17463_v1, 2  ;;  %v6070_v7 = vmax.f32 %v6068_v25, %v6069_v33 }
 0x4af   :  { %v17703_v5 = vmax.f32 %v6056_v58, %v6057_v39  ;;  %v17705_v61 = vmax.f32 %v6063_v24, %v6064_v32  ;;  %v6074_v49 = vrot.slane %v6073_v12, 4  ;;  %v6416_v15 = vsel %vm2602_vm10, %v17678_v55, %v6415_v54 }
 0x4b0   :  { %v6084_v20 = vmax.f32 %v17463_v1, %v20689_v23  ;;  %v4903_v17 = vcombine.high %v4297_v0, %v4297_v0  ;;  %v4910_v30 = vrot.slane %v4297_v0, %v16026_v4  ;;  %v6071_v19 = vrot.slane %v6070_v7, 1 }
 0x4b1   :  { %v6368_v29 = vsel %vm2606_vm12, %v17703_v5, %v6367_v59  ;;  %v6075_v53 = vmax.f32 %v6073_v12, %v6074_v49  ;;  %v6417_v1 = vsel %vm2604_vm11, %v17703_v5, %v6416_v15 }
 0x4b2   :  { %v6085_v6 = vrot.slane %v6084_v20, 1  ;;  %v6369_v58 = vsel %vm2608_vm13, %v17705_v61, %v6368_v29  ;;  %v4917_v24 = vrot.slane %v4903_v17, %v16026_v4  ;;  %v4918_v25 = vcombine.high %v4910_v30, %v4910_v30 }
 0x4b3   :  { %v4926_v46 = vrot.slane %v4910_v30, %v16026_v4  ;;  %v6072_v39 = vmax.f32 %v6070_v7, %v6071_v19  ;;  %v6076_v32 = vrot.slane %v6075_v53, 2  ;;  %v6418_v33 = vsel %vm2606_vm12, %v17705_v61, %v6417_v1 }
 0x4b4   :  { %v17720_v0 = vmax.f32 %v6084_v20, %v6085_v6  ;;  %v4919_v59 = vcombine.high %v4917_v24, %v4917_v24  ;;  %v4933_v12 = vrot.slane %v4917_v24, %v16026_v4  ;;  %v4940_v54 = vrot.slane %v4918_v25, %v16026_v4 }
 0x4b5   :  { %v4948_v23 = vcombine.high %v4926_v46, %v4926_v46  ;;  %v6370_v49 = vsel %vm2610_vm14, %v6072_v39, %v6369_v58  ;;  %v6077_v15 = vmax.f32 %v6075_v53, %v6076_v32  ;;  %v6419_v17 = vsel %vm2608_vm13, %v6072_v39, %v6418_v33 }
 0x4b6   :  { %v4260_v7 = vmul.f32 %v17310_v28, %v17455_v43  ;;  %6394 = vrot.lane.b32.xlu0 %v6370_v49, %s15620_s27  ;;  %v4947_v30 = vrot.slane %v4919_v59, %v16026_v4  ;;  %v4950_v20 = vcombine.high %v4940_v54, %v4940_v54  ;;  %v5786_v6 = vcombine.low %v4926_v46, %v4940_v54 }
 0x4b7   :  { %v5800_v19 = vrot.slane %v4948_v23, %v16026_v4  ;;  %v6078_v29 = vrot.slane %v6077_v15, 1  ;;  %v4261_v58 = vmul.f32 %v17310_v28, %v17470_v44  ;;  %v5417_v53 = vrot.slane %v17492_v36, %v16026_v4  ;;  %v14399_v36 = vld [vmem:[%s20596_s6 + $0x38] sm:$0xff] }
 0x4b8   :  { %v4283_v1 = vadd.f32 %v17315_v38, %v4260_v7  ;;  %v5793_v24 = vrot.slane %v5786_v6, %v16026_v4  ;;  %v5809_v43 = vcombine.low %v4950_v20, %v4933_v12  ;;  %v5823_v25 = vrot.slane %v4947_v30, %v16026_v4 }
 0x4b9   :  { %v14396_v32 = vcombine.high %v4933_v12, %v4947_v30  ;;  %v6079_v33 = vmax.f32 %v6077_v15, %v6078_v29  ;;  %v4284_v46 = vadd.f32 %v17315_v38, %v4261_v58  ;;  %v20690_v54 = vcombine.low %v17507_v2, %v17503_v50  ;;  %v14401_v12 = vld [vmem:[%s20596_s6 + $0x48] sm:$0xff]  ;;  %v14400_v30 = vld [vmem:[%s20596_s6 + $0x40] sm:$0xff] }
 0x4ba   :  { %v4298_v59 = vmax.f32 %v4283_v1, 0.0  ;;  %v5801_v28 = vcombine.low %v5793_v24, %v5800_v19  ;;  %v5816_v44 = vrot.slane %v5809_v43, %v16026_v4  ;;  %v6090_v7 = vrot.slane %v17485_v48, 2  ;;  %14920 = vmatpush3.msra.mxu0 %v14401_v12 }
 0x4bb   :  { %v17743_v23 = vrot.slane %v20690_v54, %v16026_v4  ;;  %v5839_v49 = vrot.slane %v14396_v32, %v16026_v4  ;;  %v6420_v15 = vsel %vm2610_vm14, %v6079_v33, %v6419_v17  ;;  %v6333_v38 = vsel %vm2598_vm8, %v6079_v33, %v6072_v39  ;;  %14921 = vmatprep.subr.mxu0 %v20640_v10 }
 0x4bc   :  { %v17755_v50 = vsel %vm2598_vm8, %v17720_v0, %v6079_v33  ;;  %v4952_v2 = vcombine.high %v4298_v59, %v4298_v59  ;;  %v5808_v20 = vrot.slane %v5801_v28, %v16026_v4  ;;  %v17761_v6 = vcombine.low %v5816_v44, %v5823_v25  ;;  %6444 = vrot.lane.b32.xlu1 %v6420_v15, %s15621_s3 }
 0x4bd   :  { %v17766_v17 = vsel %vm2600_vm9, %v17720_v0, %v6333_v38  ;;  %v4959_v39 = vrot.slane %v4298_v59, %v16026_v4  ;;  %v4299_v29 = vmax.f32 %v4284_v46, 0.0  ;;  %v6091_v1 = vmax.f32 %v17485_v48, %v6090_v7  ;;  %14922 = vmatpush3.msra.mxu0 %v14400_v30 }
 0x4be   :  { %v4966_v19 = vrot.slane %v4952_v2, %v16026_v4  ;;  %v20691_v58 = vrot.slane %v17466_v13, 4  ;;  %v6234_v25 = vsel %vm20692_vm7, %v5808_v20, -inf  ;;  %14923 = vmatprep.subr.mxu0 %v20640_v10  ;;  %vm20696_vm7 = vmmov %vm20669_vm2 }
 0x4bf   :  { %v4967_v32 = vcombine.high %v4959_v39, %v4959_v39  ;;  %v4975_v33 = vrot.slane %v4959_v39, %v16026_v4  ;;  %v6235_v59 = vrot.slane %v6234_v25, 4  ;;  %v5001_v48 = vcombine.high %v4299_v29, %v4299_v29  ;;  %14924 = vmatpush3.msra.mxu0 %v14399_v36 }
 0x4c0   :  { %v6096_v24 = vmax.f32 %v17466_v13, %v20691_v58  ;;  %v4968_v54 = vcombine.high %v4966_v19, %v4966_v19  ;;  %v4982_v46 = vrot.slane %v4966_v19, %v16026_v4  ;;  %v5008_v7 = vrot.slane %v4299_v29, %v16026_v4  ;;  %14925 = vmatprep.subr.mxu0 %v20640_v10 }
 0x4c1   :  { %v4989_v13 = vrot.slane %v4967_v32, %v16026_v4  ;;  %v4997_v28 = vcombine.high %v4975_v33, %v4975_v33  ;;  %v5846_v44 = vrot.slane %v4975_v33, %v16026_v4  ;;  %v17784_v12 = vmax.f32 %v6234_v25, %v6235_v59 }
 0x4c2   :  { %v4996_v15 = vrot.slane %v4968_v54, %v16026_v4  ;;  %v4998_v38 = vcombine.high %v4982_v46, %v4982_v46  ;;  %v5015_v2 = vrot.slane %v5001_v48, %v16026_v4  ;;  %v5016_v19 = vcombine.high %v5008_v7, %v5008_v7 }
 0x4c3   :  { %v4999_v30 = vcombine.high %v4989_v13, %v4989_v13  ;;  %v5847_v20 = vcombine.low %v5839_v49, %v5846_v44  ;;  %v5855_v39 = vcombine.low %v4989_v13, %v4997_v28  ;;  %v5024_v59 = vrot.slane %v5008_v7, %v16026_v4 }
 0x4c4   :  { %v5878_v58 = vcombine.low %v4982_v46, %v4996_v15  ;;  %v17789_v43 = vrot.slane %v4998_v38, %v16026_v4  ;;  %v5000_v32 = vcombine.high %v4996_v15, %v4996_v15  ;;  %v5017_v14 = vcombine.high %v5015_v2, %v5015_v2 }
 0x4c5   :  { %v5854_v33 = vrot.slane %v5847_v20, %v16026_v4  ;;  %v5862_v29 = vrot.slane %v5855_v39, %v16026_v4  ;;  %v5869_v25 = vrot.slane %v4999_v30, %v16026_v4  ;;  %v5031_v49 = vrot.slane %v5015_v2, %v16026_v4 }
 0x4c6   :  { %v17796_v54 = vrot.slane %v5878_v58, %v16026_v4  ;;  %v5038_v46 = vrot.slane %v5016_v19, %v16026_v4  ;;  %v5045_v48 = vrot.slane %v5017_v14, %v16026_v4  ;;  %v5901_v44 = vcombine.low %v5000_v32, %v5024_v59 }
 0x4c7   :  { %v17801_v13 = vcombine.low %v5862_v29, %v5869_v25  ;;  %v17804_v28 = vsel %vm20693_vm6, %v5854_v33, -inf  ;;  %v6092_v15 = vrot.slane %v6091_v1, 1  ;;  %v5047_v30 = vcombine.high %v5031_v49, %v5031_v49  ;;  %vm20697_vm6 = vmmov %vm20669_vm2 }
 0x4c8   :  { %v5049_v20 = vcombine.high %v5045_v48, %v5045_v48  ;;  %v5908_v2 = vrot.slane %v5901_v44, %v16026_v4  ;;  %v5915_v39 = vrot.slane %v5038_v46, %v16026_v4  ;;  %v14397_v19 = vcombine.high %v5024_v59, %v5038_v46 }
 0x4c9   :  { %v5938_v14 = vrot.slane %v5031_v49, %v16026_v4  ;;  %v17812_v58 = vcombine.low %v5045_v48, %v5047_v30  ;;  %v17817_v32 = vmax.f32 %v6091_v1, %v6092_v15  ;;  %v6097_v29 = vrot.slane %v6096_v24, 2 }
 0x4ca   :  { %v17815_v33 = vrot.slane %v5049_v20, %v16026_v4  ;;  %v17819_v25 = vcombine.low %v5908_v2, %v5915_v39  ;;  %v5931_v7 = vrot.slane %v14397_v19, %v16026_v4  ;;  %v20694_v38 = vrot.slane %v17490_v34, 4 }
 0x4cb   :  { %v20695_v59 = vrot.slane %v17476_v18, %v16026_v4  ;;  %v6098_v48 = vmax.f32 %v6096_v24, %v6097_v29  ;;  %v6115_v15 = vsel %vm20696_vm7, %v5417_v53, -inf  ;;  %v6372_v24 = vsel %vm2600_vm9, %v17817_v32, %v17755_v50  ;;  %vm20699_vm7 = vmmov %vm20669_vm2 }
 0x4cc   :  { %v6103_v44 = vmax.f32 %v17490_v34, %v20694_v38  ;;  %v17835_v30 = vcombine.low %v5931_v7, %v5938_v14  ;;  %v6116_v2 = vrot.slane %v6115_v15, 4  ;;  %v6122_v34 = vsel %vm20697_vm6, %v17743_v23, -inf  ;;  %vm20700_vm6 = vmmov %vm20669_vm2 }
 0x4cd   :  { %v6108_v49 = vsel %vm20669_vm2, %v20695_v59, -inf  ;;  %v6099_v18 = vrot.slane %v6098_v48, 1  ;;  %v6123_v39 = vrot.slane %v6122_v34, 4  ;;  %v5463_v7 = vrot.slane %v17521_v60, %v16026_v4 }
 0x4ce   :  { %v6109_v1 = vrot.slane %v6108_v49, 4  ;;  %v6104_v20 = vrot.slane %v6103_v44, 2  ;;  %v6117_v53 = vmax.f32 %v6115_v15, %v6116_v2  ;;  %v6421_v23 = vsel %vm2598_vm8, %v17817_v32, %v17720_v0 }
 0x4cf   :  { %v17850_v14 = vmax.f32 %v6098_v48, %v6099_v18  ;;  %v6124_v59 = vmax.f32 %v6122_v34, %v6123_v39  ;;  %v20698_v50 = vrot.slane %v17516_v63, %v16026_v4  ;;  %v6129_v60 = vsel %vm20699_vm7, %v5463_v7, -inf  ;;  %vm20705_vm7 = vmmov %vm20669_vm2 }
 0x4d0   :  { %v6110_v38 = vmax.f32 %v6108_v49, %v6109_v1  ;;  %v6105_v19 = vmax.f32 %v6103_v44, %v6104_v20  ;;  %v6118_v1 = vrot.slane %v6117_v53, 2  ;;  %v6130_v48 = vrot.slane %v6129_v60, 4 }
 0x4d1   :  { %v6136_v49 = vsel %vm20669_vm2, %v20698_v50, -inf  ;;  %v6125_v2 = vrot.slane %v6124_v59, 2  ;;  %v6373_v0 = vsel %vm2602_vm10, %v17850_v14, %v6372_v24  ;;  %v6422_v63 = vsel %vm2600_vm9, %v17850_v14, %v6421_v23 }
 0x4d2   :  { %v6111_v29 = vrot.slane %v6110_v38, 2  ;;  %v6106_v44 = vrot.slane %v6105_v19, 1  ;;  %v6137_v15 = vrot.slane %v6136_v49, 4  ;;  %v6119_v34 = vmax.f32 %v6117_v53, %v6118_v1 }
 0x4d3   :  { %v6126_v50 = vmax.f32 %v6124_v59, %v6125_v2  ;;  %v6131_v46 = vmax.f32 %v6129_v60, %v6130_v48  ;;  %v5509_v7 = vrot.slane %v17531_v52, %v16026_v4  ;;  %v5693_v52 = vrot.slane %v17619_v9, %v16026_v4 }
 0x4d4   :  { %v6112_v20 = vmax.f32 %v6110_v38, %v6111_v29  ;;  %v17860_v18 = vmax.f32 %v6105_v19, %v6106_v44  ;;  %v6138_v39 = vmax.f32 %v6136_v49, %v6137_v15  ;;  %v6120_v51 = vrot.slane %v6119_v34, 1 }
 0x4d5   :  { %v6127_v53 = vrot.slane %v6126_v50, 1  ;;  %v6132_v44 = vrot.slane %v6131_v46, 2  ;;  %v6143_v23 = vsel %vm20700_vm6, %v5509_v7, -inf  ;;  %vm20706_vm6 = vmmov %vm20669_vm2 }
 0x4d6   :  { %v6113_v36 = vrot.slane %v6112_v20, 1  ;;  %v6374_v38 = vsel %vm2604_vm11, %v17860_v18, %v6373_v0  ;;  %v6423_v24 = vsel %vm2602_vm10, %v17860_v18, %v6422_v63  ;;  %v6139_v19 = vrot.slane %v6138_v39, 2 }
 0x4d7   :  { %v17873_v49 = vmax.f32 %v6119_v34, %v6120_v51  ;;  %v6144_v1 = vrot.slane %v6143_v23, 4  ;;  %v17877_v60 = vmax.f32 %v6126_v50, %v6127_v53  ;;  %v6133_v2 = vmax.f32 %v6131_v46, %v6132_v44 }
 0x4d8   :  { %v17870_v29 = vmax.f32 %v6112_v20, %v6113_v36  ;;  %v6140_v59 = vmax.f32 %v6138_v39, %v6139_v19  ;;  %v20701_v46 = vcombine.low %v17616_v22, %v17610_v62  ;;  %v14398_v19 = vld [vmem:[%s20596_s6 + $0x30] sm:$0xff]  ;;  %v20702_v44 = vrot.slane %v17578_v31, 4 }
 0x4d9   :  { %v6145_v34 = vmax.f32 %v6143_v23, %v6144_v1  ;;  %v6134_v63 = vrot.slane %v6133_v2, 1  ;;  %v6181_v62 = vrot.slane %v17601_v26, 2  ;;  %v20703_v22 = vrot.slane %v17585_v27, %v16026_v4  ;;  %14926 = vmatpush3.msra.mxu0 %v14398_v19 }
 0x4da   :  { %v6375_v15 = vsel %vm2606_vm12, %v17870_v29, %v6374_v38  ;;  %v6424_v20 = vsel %vm2604_vm11, %v17870_v29, %v6423_v24  ;;  %v6141_v48 = vrot.slane %v6140_v59, 1  ;;  %v5716_v36 = vrot.slane %v20701_v46, %v16026_v4 }
 0x4db   :  { %v6376_v0 = vsel %vm2608_vm13, %v17873_v49, %v6375_v15  ;;  %v6425_v51 = vsel %vm2606_vm12, %v17873_v49, %v6424_v20  ;;  %v6146_v7 = vrot.slane %v6145_v34, 2  ;;  %v6162_v38 = vrot.slane %v17588_v56, 1 }
 0x4dc   :  { %v6377_v9 = vsel %vm2610_vm14, %v17877_v60, %v6376_v0  ;;  %v6426_v39 = vsel %vm2608_vm13, %v17877_v60, %v6425_v51  ;;  %v6142_v50 = vmax.f32 %v6140_v59, %v6141_v48  ;;  %v6169_v24 = vrot.slane %v17595_v3, 1 }
 0x4dd   :  { %6396 = vrot.lane.b32.xlu0 %v6377_v9, %s15620_s27  ;;  %v17901_v53 = vmax.f32 %v6133_v2, %v6134_v63  ;;  %v6173_v23 = vmax.f32 %v17578_v31, %v20702_v44  ;;  %v6185_v59 = vsel %vm20669_vm2, %v20703_v22, -inf  ;;  %v6147_v1 = vmax.f32 %v6145_v34, %v6146_v7 }
 0x4de   :  { %v17912_v15 = vmax.f32 %v17588_v56, %v6162_v38  ;;  %v17915_v20 = vmax.f32 %v17595_v3, %v6169_v24  ;;  %v6186_v2 = vrot.slane %v6185_v59, 4  ;;  %v6182_v27 = vmax.f32 %v17601_v26, %v6181_v62 }
 0x4df   :  { %v6427_v0 = vsel %vm2610_vm14, %v17901_v53, %v6426_v39  ;;  %v6378_v31 = vsel %vm2598_vm8, %v6142_v50, %v17901_v53  ;;  %v6174_v51 = vrot.slane %v6173_v23, 2  ;;  %v6148_v48 = vrot.slane %v6147_v1, 1 }
 0x4e0   :  { %6446 = vrot.lane.b32.xlu1 %v6427_v0, %s15621_s3  ;;  %v6187_v56 = vmax.f32 %v6185_v59, %v6186_v2  ;;  %v20704_v34 = vrot.slane %v17622_v40, 4  ;;  %v6199_v9 = vsel %vm20705_vm7, %v5693_v52, -inf  ;;  %v6183_v39 = vrot.slane %v6182_v27, 1  ;;  %vm20710_vm7 = vmmov %vm20669_vm2 }
 0x4e1   :  { %6398 = vrot.lane.b32.xlu0 %v6378_v31, %s15620_s27  ;;  %v6175_v63 = vmax.f32 %v6173_v23, %v6174_v51  ;;  %v6200_v46 = vrot.slane %v6199_v9, 4  ;;  %v6206_v7 = vsel %vm20706_vm6, %v5716_v36, -inf  ;;  %v6149_v38 = vmax.f32 %v6147_v1, %v6148_v48  ;;  %vm20712_vm6 = vmmov %vm20669_vm2 }
 0x4e2   :  { %v6194_v3 = vmax.f32 %v17622_v40, %v20704_v34  ;;  %v6188_v24 = vrot.slane %v6187_v56, 2  ;;  %v6207_v19 = vrot.slane %v6206_v7, 4  ;;  %v17929_v62 = vmax.f32 %v6182_v27, %v6183_v39 }
 0x4e3   :  { %v6176_v44 = vrot.slane %v6175_v63, 1  ;;  %v6201_v22 = vmax.f32 %v6199_v9, %v6200_v46  ;;  %v6379_v59 = vsel %vm2598_vm8, %v17915_v20, %v17912_v15  ;;  %v6428_v40 = vsel %vm2598_vm8, %v6149_v38, %v6142_v50 }
 0x4e4   :  { %v6195_v26 = vrot.slane %v6194_v3, 2  ;;  %v6189_v52 = vmax.f32 %v6187_v56, %v6188_v24  ;;  %v6208_v2 = vmax.f32 %v6206_v7, %v6207_v19  ;;  %6448 = vrot.lane.b32.xlu1 %v6428_v40, %s15621_s3  ;;  %v5739_v0 = vrot.slane %v17638_v45, %v16026_v4 }
 0x4e5   :  { %v17936_v36 = vmax.f32 %v6175_v63, %v6176_v44  ;;  %v6202_v1 = vrot.slane %v6201_v22, 2  ;;  %v6223_v31 = vrot.slane %v17670_v47, 2  ;;  %v5877_v34 = vrot.slane %v17801_v13, %v16026_v4 }
 0x4e6   :  { %v6196_v23 = vmax.f32 %v6194_v3, %v6195_v26  ;;  %v6190_v51 = vrot.slane %v6189_v52, 1  ;;  %v6209_v48 = vrot.slane %v6208_v2, 2  ;;  %v6213_v3 = vsel %vm20669_vm2, %v5739_v0, -inf }
 0x4e7   :  { %v6203_v50 = vmax.f32 %v6201_v22, %v6202_v1  ;;  %v6380_v56 = vsel %vm2600_vm9, %v17936_v36, %v6379_v59  ;;  %v6429_v9 = vsel %vm2598_vm8, %v17936_v36, %v17915_v20  ;;  %v6214_v13 = vrot.slane %v6213_v3, 4 }
 0x4e8   :  { %v6197_v27 = vrot.slane %v6196_v23, 1  ;;  %v17949_v63 = vmax.f32 %v6189_v52, %v6190_v51  ;;  %v6210_v39 = vmax.f32 %v6208_v2, %v6209_v48  ;;  %v6381_v46 = vsel %vm2602_vm10, %v17929_v62, %v6380_v56 }
 0x4e9   :  { %v6204_v7 = vrot.slane %v6203_v50, 1  ;;  %v6430_v38 = vsel %vm2600_vm9, %v17929_v62, %v6429_v9  ;;  %v6224_v24 = vmax.f32 %v17670_v47, %v6223_v31  ;;  %v20707_v22 = vcombine.low %v17796_v54, %v17789_v43 }
 0x4ea   :  { %v17951_v45 = vmax.f32 %v6196_v23, %v6197_v27  ;;  %v6211_v26 = vrot.slane %v6210_v39, 1  ;;  %v6382_v19 = vsel %vm2604_vm11, %v17949_v63, %v6381_v46  ;;  %v6431_v44 = vsel %vm2602_vm10, %v17949_v63, %v6430_v38 }
 0x4eb   :  { %v5900_v59 = vrot.slane %v20707_v22, %v16026_v4  ;;  %v17966_v40 = vmax.f32 %v6203_v50, %v6204_v7  ;;  %v6215_v23 = vmax.f32 %v6213_v3, %v6214_v13  ;;  %v6225_v1 = vrot.slane %v6224_v24, 1 }
 0x4ec   :  { %v6383_v52 = vsel %vm2606_vm12, %v17951_v45, %v6382_v19  ;;  %v6432_v47 = vsel %vm2604_vm11, %v17951_v45, %v6431_v44  ;;  %v6212_v2 = vmax.f32 %v6210_v39, %v6211_v26  ;;  %v20708_v0 = vrot.slane %v17673_v21, 4 }
 0x4ed   :  { %v6237_v51 = vrot.slane %v17784_v12, 2  ;;  %v6384_v43 = vsel %vm2608_vm13, %v17966_v40, %v6383_v52  ;;  %v6216_v54 = vrot.slane %v6215_v23, 2  ;;  %v6433_v27 = vsel %vm2606_vm12, %v17966_v40, %v6432_v47 }
 0x4ee   :  { %v6229_v31 = vmax.f32 %v17673_v21, %v20708_v0  ;;  %v20709_v48 = vrot.slane %v17761_v6, %v16026_v4  ;;  %v6385_v56 = vsel %vm2610_vm14, %v6212_v2, %v6384_v43  ;;  %v6434_v3 = vsel %vm2608_vm13, %v6212_v2, %v6433_v27 }
 0x4ef   :  { %v6226_v9 = vmax.f32 %v6224_v24, %v6225_v1  ;;  %6400 = vrot.lane.b32.xlu0 %v6385_v56, %s15620_s27  ;;  %v6217_v39 = vmax.f32 %v6215_v23, %v6216_v54  ;;  %v6238_v46 = vmax.f32 %v17784_v12, %v6237_v51  ;;  %v20711_v13 = vrot.slane %v17804_v28, 4 }
 0x4f0   :  { %v6241_v50 = vsel %vm20710_vm7, %v20709_v48, -inf  ;;  %v6230_v21 = vrot.slane %v6229_v31, 2  ;;  %v6255_v6 = vsel %vm20712_vm6, %v5877_v34, -inf  ;;  %v6262_v19 = vsel %vm20669_vm2, %v5900_v59, -inf  ;;  %vm20713_vm7 = vmmov %vm20669_vm2 }
 0x4f1   :  { %v6242_v7 = vrot.slane %v6241_v50, 4  ;;  %v6250_v38 = vmax.f32 %v17804_v28, %v20711_v13  ;;  %v5923_v44 = vrot.slane %v17819_v25, %v16026_v4  ;;  %v6218_v24 = vrot.slane %v6217_v39, 1  ;;  %vm20715_vm6 = vmmov %vm20669_vm2 }
 0x4f2   :  { %v6231_v26 = vmax.f32 %v6229_v31, %v6230_v21  ;;  %v6239_v22 = vrot.slane %v6238_v46, 1  ;;  %v6256_v1 = vrot.slane %v6255_v6, 4  ;;  %v6263_v12 = vrot.slane %v6262_v19, 4 }
 0x4f3   :  { %v6243_v52 = vmax.f32 %v6241_v50, %v6242_v7  ;;  %v6251_v47 = vrot.slane %v6250_v38, 2  ;;  %v6269_v0 = vsel %vm20713_vm7, %v5923_v44, -inf  ;;  %v6219_v51 = vmax.f32 %v6217_v39, %v6218_v24  ;;  %vm20717_vm7 = vmmov %vm20669_vm2 }
 0x4f4   :  { %v6232_v23 = vrot.slane %v6231_v26, 1  ;;  %v17996_v43 = vmax.f32 %v6238_v46, %v6239_v22  ;;  %v6257_v54 = vmax.f32 %v6255_v6, %v6256_v1  ;;  %v6264_v59 = vmax.f32 %v6262_v19, %v6263_v12 }
 0x4f5   :  { %v6244_v28 = vrot.slane %v6243_v52, 2  ;;  %v6252_v31 = vmax.f32 %v6250_v38, %v6251_v47  ;;  %v6270_v27 = vrot.slane %v6269_v0, 4  ;;  %v6435_v25 = vsel %vm2610_vm14, %v6219_v51, %v6434_v3 }
 0x4f6   :  { %v6233_v34 = vmax.f32 %v6231_v26, %v6232_v23  ;;  %v6348_v48 = vsel %vm2598_vm8, %v6219_v51, %v6212_v2  ;;  %v6386_v50 = vsel %vm2598_vm8, %v6226_v9, %v6219_v51  ;;  %6450 = vrot.lane.b32.xlu1 %v6435_v25, %s15621_s3  ;;  %v6258_v46 = vrot.slane %v6257_v54, 2 }
 0x4f7   :  { %v6245_v56 = vmax.f32 %v6243_v52, %v6244_v28  ;;  %v6349_v21 = vsel %vm2600_vm9, %v6226_v9, %v6348_v48  ;;  %v6253_v39 = vrot.slane %v6252_v31, 1  ;;  %v6265_v7 = vrot.slane %v6264_v59, 2 }
 0x4f8   :  { %v6387_v38 = vsel %vm2600_vm9, %v6233_v34, %v6386_v50  ;;  %v6271_v26 = vmax.f32 %v6269_v0, %v6270_v27  ;;  %v6436_v6 = vsel %vm2598_vm8, %v6233_v34, %v6226_v9  ;;  %v6259_v3 = vmax.f32 %v6257_v54, %v6258_v46 }
 0x4f9   :  { %v6246_v13 = vrot.slane %v6245_v56, 1  ;;  %v6254_v19 = vmax.f32 %v6252_v31, %v6253_v39  ;;  %v6266_v44 = vmax.f32 %v6264_v59, %v6265_v7  ;;  %v6388_v2 = vsel %vm2602_vm10, %v17996_v43, %v6387_v38 }
 0x4fa   :  { %v6272_v22 = vrot.slane %v6271_v26, 2  ;;  %v6437_v52 = vsel %vm2600_vm9, %v17996_v43, %v6436_v6  ;;  %v5946_v47 = vrot.slane %v17835_v30, %v16026_v4  ;;  %v6153_v23 = vrot.slane %v17569_v41, 2 }
 0x4fb   :  { %v6247_v24 = vmax.f32 %v6245_v56, %v6246_v13  ;;  %v6260_v1 = vrot.slane %v6259_v3, 1  ;;  %v6267_v12 = vrot.slane %v6266_v44, 1  ;;  %v20714_v9 = vrot.slane %v17812_v58, %v16026_v4 }
 0x4fc   :  { %v6273_v28 = vmax.f32 %v6271_v26, %v6272_v22  ;;  %v6276_v54 = vsel %vm20715_vm6, %v5946_v47, -inf  ;;  %v20716_v48 = vcombine.low %v17338_v57, %v17333_v16  ;;  %v6154_v39 = vmax.f32 %v17569_v41, %v6153_v23 }
 0x4fd   :  { %v5962_v0 = vcombine.low %v20714_v9, %v17815_v33  ;;  %v6389_v51 = vsel %vm2604_vm11, %v6247_v24, %v6388_v2  ;;  %v6438_v31 = vsel %vm2602_vm10, %v6247_v24, %v6437_v52  ;;  %v6261_v59 = vmax.f32 %v6259_v3, %v6260_v1 }
 0x4fe   :  { %v6268_v27 = vmax.f32 %v6266_v44, %v6267_v12  ;;  %v6390_v30 = vsel %vm2606_vm12, %v6254_v19, %v6389_v51  ;;  %v6439_v25 = vsel %vm2604_vm11, %v6254_v19, %v6438_v31  ;;  %v5072_v50 = vrot.slane %v20716_v48, %v16026_v4 }
 0x4ff   :  { %v6274_v58 = vrot.slane %v6273_v28, 1  ;;  %v6277_v33 = vrot.slane %v6276_v54, 4  ;;  %v5969_v56 = vrot.slane %v5962_v0, %v16026_v4  ;;  %v6391_v46 = vsel %vm2608_vm13, %v6261_v59, %v6390_v30 }
 0x500   :  { %v6440_v7 = vsel %vm2606_vm12, %v6261_v59, %v6439_v25  ;;  %v6335_v13 = vsel %vm2602_vm10, %v17817_v32, %v17766_v17  ;;  %v6392_v38 = vsel %vm2610_vm14, %v6268_v27, %v6391_v46  ;;  %v18041_v3 = vsel %vm2598_vm8, %v17901_v53, %v17877_v60 }
 0x501   :  { %v6275_v26 = vmax.f32 %v6273_v28, %v6274_v58  ;;  %v6441_v16 = vsel %vm2608_vm13, %v6268_v27, %v6440_v7  ;;  %v6278_v57 = vmax.f32 %v6276_v54, %v6277_v33  ;;  %6402 = vrot.lane.b32.xlu0 %v6392_v38, %s15620_s27  ;;  %v6283_v6 = vsel %vm20669_vm2, %v5969_v56, -inf }
 0x502   :  { %v6336_v41 = vsel %vm2604_vm11, %v17850_v14, %v6335_v13  ;;  %v6010_v17 = vsel %vm20717_vm7, %v5072_v50, -inf  ;;  %v6284_v2 = vrot.slane %v6283_v6, 4  ;;  %v6155_v52 = vrot.slane %v6154_v39, 1 }
 0x503   :  { %v6442_v32 = vsel %vm2610_vm14, %v6275_v26, %v6441_v16  ;;  %v6279_v44 = vrot.slane %v6278_v57, 2  ;;  %v6337_v22 = vsel %vm2606_vm12, %v17860_v18, %v6336_v41  ;;  %v6350_v47 = vsel %vm2602_vm10, %v6233_v34, %v6349_v21 }
 0x504   :  { %6452 = vrot.lane.b32.xlu1 %v6442_v32, %s15621_s3  ;;  %v6285_v23 = vmax.f32 %v6283_v6, %v6284_v2  ;;  %v6338_v60 = vsel %vm2608_vm13, %v17870_v29, %v6337_v22  ;;  %v6011_v53 = vrot.slane %v6010_v17, 4  ;;  %v6156_v12 = vmax.f32 %v6154_v39, %v6155_v52  ;;  %v18130_v2 = vld [vmem:[%s20718_s22 + $0x28] sm:$0xff] }
 0x505   :  { %v6280_v14 = vmax.f32 %v6278_v57, %v6279_v44  ;;  %v18053_v1 = vsel %vm2610_vm14, %v17873_v49, %v6338_v60  ;;  %v6351_v9 = vsel %vm2604_vm11, %v17996_v43, %v6350_v47  ;;  %v18059_v34 = vsel %vm2598_vm8, %v6275_v26, %v6268_v27  ;;  %v18074_v27 = vld [vmem:[%s20718_s22] sm:$0xff]  ;;  %v18141_v60 = vld [vmem:[%s20718_s22 + $0x30] sm:$0xff] }
 0x506   :  { %v6286_v51 = vrot.slane %v6285_v23, 2  ;;  %v6352_v18 = vsel %vm2606_vm12, %v6247_v24, %v6351_v9  ;;  %v6341_v21 = vsel %vm2598_vm8, %v17912_v15, %v6156_v12  ;;  %v6012_v43 = vmax.f32 %v6010_v17, %v6011_v53  ;;  %v18079_v15 = vld [vmem:[%s20718_s22 + $0x8] sm:$0xff]  ;;  %v18119_v57 = vld [vmem:[%s20718_s22 + $0x20] sm:$0xff] }
 0x507   :  { %v6281_v0 = vrot.slane %v6280_v14, 1  ;;  %v6353_v29 = vsel %vm2608_vm13, %v6254_v19, %v6352_v18  ;;  %v6342_v49 = vsel %vm2600_vm9, %v17915_v20, %v6341_v21  ;;  %v18084_v20 = vld [vmem:[%s20718_s22 + $0x10] sm:$0xff]  ;;  %v7552_v30 = vrot.slane %v18074_v27, 1  ;;  %v18154_v18 = vld [vmem:[%s20718_s22 + $0x38] sm:$0xff] }
 0x508   :  { %v6287_v31 = vmax.f32 %v6285_v23, %v6286_v51  ;;  %v18067_v54 = vsel %vm2610_vm14, %v6261_v59, %v6353_v29  ;;  %v6343_v24 = vsel %vm2602_vm10, %v17936_v36, %v6342_v49  ;;  %v7553_v48 = vrot.slane %v18079_v15, 1 }
 0x509   :  { %v6282_v28 = vmax.f32 %v6280_v14, %v6281_v0  ;;  %v6344_v36 = vsel %vm2604_vm11, %v17929_v62, %v6343_v24  ;;  %v7630_v50 = vrot.slane %v18074_v27, 2  ;;  %v7631_v56 = vrot.slane %v18079_v15, 2 }
 0x50a   :  { %v6288_v59 = vrot.slane %v6287_v31, 1  ;;  %v6345_v25 = vsel %vm2606_vm12, %v17949_v63, %v6344_v36  ;;  %v7555_v39 = vrot.slane %v18084_v20, 1  ;;  %v6013_v62 = vrot.slane %v6012_v43, 2  ;;  %v18107_v63 = vld [vmem:[%s20718_s22 + $0x18] sm:$0xff] }
 0x50b   :  { %v6393_v19 = vsel %vm2598_vm8, %v6282_v28, %v6275_v26  ;;  %v6346_v33 = vsel %vm2608_vm13, %v17951_v45, %v6345_v25  ;;  %v7554_v7 = vsel %vm98_vm0, %v7552_v30, %v7553_v48  ;;  %v7632_v45 = vsel %vm177_vm1, %v7630_v50, %v7631_v56 }
 0x50c   :  { %6404 = vrot.lane.b32.xlu0 %v6393_v19, %s15620_s27  ;;  %v6289_v58 = vmax.f32 %v6287_v31, %v6288_v59  ;;  %v18101_v46 = vsel %vm2610_vm14, %v17966_v40, %v6346_v33  ;;  %v7556_v38 = vsel %vm98_vm0, %v7553_v48, %v7555_v39  ;;  %v7633_v40 = vrot.slane %v18084_v20, 2  ;;  %v18176_v59 = vld [vmem:[%s20718_s22 + $0x40] sm:$0xff]  ;;  %v18193_v48 = vld [vmem:[%s20718_s22 + $0x50] sm:$0xff] }
 0x50d   :  { %v7557_v26 = vrot.slane %v18107_v63, 1  ;;  %v6014_v16 = vmax.f32 %v6012_v43, %v6013_v62  ;;  %v7635_v17 = vrot.slane %v18107_v63, 2  ;;  %v7559_v32 = vrot.slane %v18119_v57, 1  ;;  %v18206_v62 = vld [vmem:[%s20718_s22 + $0x58] sm:$0xff] }
 0x50e   :  { %v6443_v13 = vsel %vm2598_vm8, %v6289_v58, %v6282_v28  ;;  %v7634_v6 = vsel %vm177_vm1, %v7631_v56, %v7633_v40  ;;  %v7637_v47 = vrot.slane %v18119_v57, 2  ;;  %v7561_v14 = vrot.slane %v18130_v2, 1 }
 0x50f   :  { %6454 = vrot.lane.b32.xlu1 %v6443_v13, %s15621_s3  ;;  %v7558_v41 = vsel %vm98_vm0, %v7555_v39, %v7557_v26  ;;  %v6015_v44 = vrot.slane %v6014_v16, 1  ;;  %v7636_v22 = vsel %vm177_vm1, %v7633_v40, %v7635_v17  ;;  %v7560_v52 = vsel %vm98_vm0, %v7557_v26, %v7559_v32 }
 0x510   :  { %7582 = vrot.lane.b32.xlu0 %v7554_v7, %s15615_s28  ;;  %v7638_v12 = vsel %vm177_vm1, %v7635_v17, %v7637_v47  ;;  %v7562_v9 = vsel %vm98_vm0, %v7559_v32, %v7561_v14  ;;  %v7639_v0 = vrot.slane %v18130_v2, 2  ;;  %v7563_v51 = vrot.slane %v18141_v60, 1 }
 0x511   :  { %v6016_v23 = vmax.f32 %v6014_v16, %v6015_v44  ;;  %v7641_v28 = vrot.slane %v18141_v60, 2  ;;  %v7565_v31 = vrot.slane %v18154_v18, 1  ;;  %v7643_v24 = vrot.slane %v18154_v18, 2 }
 0x512   :  { %v7640_v21 = vsel %vm177_vm1, %v7637_v47, %v7639_v0  ;;  %v7564_v29 = vsel %vm98_vm0, %v7561_v14, %v7563_v51  ;;  %v7645_v33 = vrot.slane %v18176_v59, 2  ;;  %v7570_v39 = vrot.slane %v18193_v48, 1 }
 0x513   :  { %7660 = vrot.lane.b32.xlu1 %v7632_v45, %s15616_s30  ;;  %v6326_v53 = vsel %vm2598_vm8, %v17663_v42, %v6016_v23  ;;  %v7566_v43 = vsel %vm98_vm0, %v7563_v51, %v7565_v31  ;;  %v7644_v30 = vsel %vm177_vm1, %v7641_v28, %v7643_v24  ;;  %v7572_v40 = vrot.slane %v18206_v62, 1 }
 0x514   :  { %7584 = vrot.lane.b32.xlu0 %v7556_v38, %s15615_s28  ;;  %v6327_v42 = vsel %vm2600_vm9, %v17643_v8, %v6326_v53  ;;  %v7642_v8 = vsel %vm177_vm1, %v7639_v0, %v7641_v28  ;;  %v7648_v38 = vrot.slane %v18193_v48, 2  ;;  %vm20719_vm6 = vcmask 261120  }
 0x515   :  { %v6328_v49 = vsel %vm2602_vm10, %v17667_v37, %v6327_v42  ;;  %v18181_v37 = vld [vmem:[%s20718_s22 + $0x48] sm:$0xff]  ;;  %v7573_v17 = vsel %vm98_vm0, %v7570_v39, %v7572_v40  ;;  %v7650_v32 = vrot.slane %v18206_v62, 2  ;;  %vm20720_vm2 = vcmask 392192   ;;  %vm20721_vm7 = vmmov %vm20719_vm6 }
 0x516   :  { %v6329_v19 = vsel %vm2604_vm11, %v17676_v11, %v6328_v49  ;;  %v7567_v11 = vrot.slane %v18176_v59, 1  ;;  %v7568_v25 = vrot.slane %v18181_v37, 1  ;;  %v7646_v56 = vrot.slane %v18181_v37, 2 }
 0x517   :  { %7662 = vrot.lane.b32.xlu1 %v7634_v6, %s15616_s30  ;;  %v6330_v36 = vsel %vm2606_vm12, %v17678_v55, %v6329_v19  ;;  %v7651_v14 = vsel %vm177_vm1, %v7648_v38, %v7650_v32 }
 0x518   :  { %7586 = vrot.lane.b32.xlu0 %v7558_v41, %s15615_s28  ;;  %v6331_v50 = vsel %vm2608_vm13, %v17703_v5, %v6330_v36  ;;  %v7569_v55 = vsel %vm98_vm0, %v7567_v11, %v7568_v25  ;;  %v7647_v13 = vsel %vm177_vm1, %v7645_v33, %v7646_v56  ;;  %v7571_v45 = vsel %vm98_vm0, %v7568_v25, %v7570_v39 }
 0x519   :  { %v6332_v5 = vsel %vm2610_vm14, %v17705_v61, %v6331_v50  ;;  %v7649_v41 = vsel %vm177_vm1, %v7646_v56, %v7648_v38 }
 0x51b   :  { %7664 = vrot.lane.b32.xlu1 %v7636_v22, %s15616_s30 }
 0x51c   :  { %7588 = vrot.lane.b32.xlu0 %v7560_v52, %s15615_s28 }
 0x51f   :  { %7666 = vrot.lane.b32.xlu1 %v7638_v12, %s15616_s30 }
 0x520   :  { %7590 = vrot.lane.b32.xlu0 %v7562_v9, %s15615_s28 }
 0x523   :  { %7668 = vrot.lane.b32.xlu1 %v7640_v21, %s15616_s30 }
 0x524   :  { %7592 = vrot.lane.b32.xlu0 %v7564_v29, %s15615_s28 }
 0x527   :  { %7670 = vrot.lane.b32.xlu1 %v7642_v8, %s15616_s30 }
 0x528   :  { %7594 = vrot.lane.b32.xlu0 %v7566_v43, %s15615_s28  ;;  %v6395_v58 = vpop.permute.xlu0 %6394 }
 0x529   :  { %v6462_v7 = vsel %vm2741_vm15, %v6332_v5, %v6395_v58 }
 0x52b   :  { %7672 = vrot.lane.b32.xlu1 %v7644_v30, %s15616_s30 }
 0x52c   :  { %7596 = vrot.lane.b32.xlu0 %v7565_v31, %s15615_s28 }
 0x52e   :  { %v6445_v26 = vpop.permute.xlu1 %6444 }
 0x52f   :  { %7598 = vrot.lane.b32.xlu1 %v7569_v55, %s15615_s28  ;;  %v6468_v16 = vsel %vm20719_vm6, %v6462_v7, %v6445_v26  ;;  %vm20722_vm6 = vmmov %vm20720_vm2 }
 0x530   :  { %7674 = vrot.lane.b32.xlu0 %v7643_v24, %s15616_s30  ;;  %v6480_v6 = vcombine.high %v6468_v16, %v6468_v16  ;;  %v6487_v61 = vrot.slane %v6468_v16, %v16936_v35 }
 0x532   :  { %v6494_v44 = vrot.slane %v6480_v6, %v16936_v35  ;;  %v6495_v22 = vcombine.high %v6487_v61, %v6487_v61 }
 0x533   :  { %7676 = vrot.lane.b32.xlu1 %v7647_v13, %s15616_s30 }
 0x534   :  { %7600 = vrot.lane.b32.xlu0 %v7571_v45, %s15615_s28  ;;  %v6496_v52 = vcombine.high %v6494_v44, %v6494_v44  ;;  %v6569_v47 = vcombine.low %v6487_v61, %v6495_v22 }
 0x536   :  { %v6570_v23 = vcombine.low %v6494_v44, %v6496_v52  ;;  %v6577_v53 = vrot.slane %v6569_v47, %v16936_v35 }
 0x537   :  { %7678 = vrot.lane.b32.xlu1 %v7649_v41, %s15616_s30 }
 0x538   :  { %7602 = vrot.lane.b32.xlu0 %v7573_v17, %s15615_s28  ;;  %v6584_v12 = vrot.slane %v6570_v23, %v16936_v35 }
 0x53a   :  { %v6585_v9 = vcombine.low %v6577_v53, %v6584_v12 }
 0x53b   :  { %7680 = vrot.lane.b32.xlu1 %v7651_v14, %s15616_s30 }
 0x53c   :  { %14928 = vmatmul.mubr.msk.f32.vlgmr.msra.gmra.mxu0 %vm20720_vm2, %v6585_v9  ;;  %vm20723_vm2 = vmmov %vm20721_vm7 }
 0x53d   :  { %14930 = vmatprep.mubr.msk.f32.mxu0 %vm15618_vm3, %v20640_v10 }
 0x54f   :  { %v6397_v0 = vpop.permute.xlu0 %6396 }
 0x550   :  { %v6463_v51 = vsel %vm2741_vm15, %v18053_v1, %v6397_v0 }
 0x552   :  { %v6447_v42 = vpop.permute.xlu1 %6446 }
 0x553   :  { %v6469_v21 = vsel %vm20721_vm7, %v6463_v51, %v6447_v42  ;;  %v6399_v11 = vpop.permute.xlu0 %6398  ;;  %vm20724_vm7 = vmmov %vm20723_vm2 }
 0x554   :  { %v6497_v29 = vcombine.high %v6469_v21, %v6469_v21  ;;  %v6504_v28 = vrot.slane %v6469_v21, %v16936_v35  ;;  %v6464_v25 = vsel %vm2741_vm15, %v18041_v3, %v6399_v11 }
 0x556   :  { %v6511_v31 = vrot.slane %v6497_v29, %v16936_v35  ;;  %v6512_v49 = vcombine.high %v6504_v28, %v6504_v28  ;;  %v6449_v50 = vpop.permute.xlu1 %6448 }
 0x557   :  { %v6470_v55 = vsel %vm20723_vm2, %v6464_v25, %v6449_v50 }
 0x558   :  { %v6513_v8 = vcombine.high %v6511_v31, %v6511_v31  ;;  %v6586_v43 = vcombine.low %v6504_v28, %v6512_v49  ;;  %v6520_v39 = vrot.slane %v6470_v55, %v16936_v35 }
 0x55a   :  { %v6587_v24 = vcombine.low %v6511_v31, %v6513_v8  ;;  %v6594_v19 = vrot.slane %v6586_v43, %v16936_v35  ;;  %v18286_v8 = vld [vmem:[%s20718_s22 + $0x68] sm:$0xff] }
 0x55c   :  { %v6601_v36 = vrot.slane %v6587_v24, %v16936_v35 }
 0x55e   :  { %v6602_v30 = vcombine.low %v6594_v19, %v6601_v36  ;;  %v7576_v19 = vrot.slane %v18286_v8, 1  ;;  %v7654_v36 = vrot.slane %v18286_v8, 2 }
 0x560   :  { %14931 = vmatmul.mubr.msk.f32.gmra.mxu0 %vm20722_vm6, %v6602_v30  ;;  %v18295_v30 = vld [vmem:[%s20718_s22 + $0x70] sm:$0xff] }
 0x561   :  { %14933 = vmatprep.mubr.msk.f32.mxu0 %vm15618_vm3, %v20640_v10  ;;  %v6401_v1 = vpop.permute.xlu0 %6400  ;;  %v7656_v55 = vrot.slane %v18295_v30, 2 }
 0x562   :  { %v6465_v58 = vsel %vm2741_vm15, %v18101_v46, %v6401_v1 }
 0x568   :  { %v6451_v33 = vpop.permute.xlu1 %6450 }
 0x569   :  { %v6471_v56 = vsel %vm20724_vm7, %v6465_v58, %v6451_v33  ;;  %vm20725_vm7 = vmmov %vm20722_vm6  ;;  %v7578_v58 = vrot.slane %v18295_v30, 1  ;;  %v18318_v33 = vld [vmem:[%s20718_s22 + $0x78] sm:$0xff] }
 0x56a   :  { %v6521_v5 = vcombine.high %v6471_v56, %v6471_v56  ;;  %v6528_v7 = vrot.slane %v6471_v56, %v16936_v35  ;;  %v7580_v56 = vrot.slane %v18318_v33, 1 }
 0x56c   :  { %v6535_v13 = vrot.slane %v6521_v5, %v16936_v35  ;;  %v6536_v45 = vcombine.high %v6528_v7, %v6528_v7  ;;  %v6603_v38 = vcombine.low %v6520_v39, %v6528_v7  ;;  %v7658_v39 = vrot.slane %v18318_v33, 2 }
 0x56d   :  { %v7581_v5 = vsel %vm98_vm0, %v7578_v58, %v7580_v56 }
 0x56e   :  { %v6604_v26 = vcombine.low %v6536_v45, %v6535_v13  ;;  %v6611_v3 = vrot.slane %v6603_v38, %v16936_v35  ;;  %v6537_v44 = vcombine.high %v6535_v13, %v6535_v13  ;;  %v7659_v7 = vsel %vm177_vm1, %v7656_v55, %v7658_v39  ;;  %v14419_v13 = vld [vmem:[%s20599_s9 + $0x38] sm:$0xff]  ;;  %v14418_v45 = vld [vmem:[%s20599_s9 + $0x30] sm:$0xff]  ;;  %v14417_v38 = vld [vmem:[%s20599_s9 + $0x28] sm:$0xff] }
 0x56f   :  { %14942 = vmatprep.subr.mxu0 %v14419_v13 }
 0x570   :  { %v6618_v16 = vrot.slane %v6604_v26, %v16936_v35  ;;  %14943 = vmatpush3.msra.mxu0 %v14419_v13  ;;  %v14416_v26 = vld [vmem:[%s20599_s9 + $0x20] sm:$0xff] }
 0x571   :  { %14944 = vmatprep.subr.mxu0 %v14418_v45 }
 0x572   :  { %v6619_v6 = vcombine.low %v6611_v3, %v6618_v16  ;;  %14945 = vmatpush3.msra.mxu0 %v14418_v45  ;;  %v18344_v3 = vld [vmem:[%s20597_s7 + $0x1] ss:$0 sm:$0xff] }
 0x573   :  { %v6403_v46 = vpop.permute.xlu0 %6402  ;;  %14946 = vmatprep.subr.mxu0 %v14417_v38 }
 0x574   :  { %v6466_v61 = vsel %vm2741_vm15, %v18067_v54, %v6403_v46  ;;  %14934 = vmatmul.mubr.msk.f32.gmra.mxu0 %vm20722_vm6, %v6619_v6  ;;  %vm20726_vm6 = vmmov %vm20723_vm2  ;;  %v18349_v46 = vld [vmem:[%s20598_s8 + $0x1] ss:$0 sm:$0xff] }
 0x575   :  { %14936 = vmatprep.mubr.msk.f32.mxu0 %vm15618_vm3, %v20640_v10  ;;  %14947 = vmatpush3.msra.mxu0 %v14417_v38 }
 0x576   :  { %v6453_v41 = vpop.permute.xlu1 %6452  ;;  %14948 = vmatprep.subr.mxu0 %v14416_v26 }
 0x577   :  { %v6472_v17 = vsel %vm20723_vm2, %v6466_v61, %v6453_v41  ;;  %vm20727_vm2 = vmmov %vm20725_vm7  ;;  %14949 = vmatpush3.msra.mxu0 %v14416_v26 }
 0x578   :  { %v6538_v22 = vcombine.high %v6472_v17, %v6472_v17  ;;  %v6545_v52 = vrot.slane %v6472_v17, %v16936_v35  ;;  %14953 = vmatprep.subr.mxu0 %v20640_v10 }
 0x57a   :  { %v6552_v47 = vrot.slane %v6538_v22, %v16936_v35  ;;  %v6553_v14 = vcombine.high %v6545_v52, %v6545_v52  ;;  %v6620_v23 = vcombine.low %v6537_v44, %v6545_v52 }
 0x57c   :  { %v6621_v53 = vcombine.low %v6553_v14, %v6552_v47  ;;  %v6628_v12 = vrot.slane %v6620_v23, %v16936_v35  ;;  %v6554_v21 = vcombine.high %v6552_v47, %v6552_v47 }
 0x57e   :  { %v6635_v54 = vrot.slane %v6621_v53, %v16936_v35  ;;  %v6405_v9 = vpop.permute.xlu0 %6404 }
 0x57f   :  { %v6467_v0 = vsel %vm2741_vm15, %v18059_v34, %v6405_v9  ;;  %v18281_v34 = vld [vmem:[%s20718_s22 + $0x60] sm:$0xff] }
 0x580   :  { %v6636_v51 = vcombine.low %v6628_v12, %v6635_v54  ;;  %v7574_v43 = vrot.slane %v18281_v34, 1  ;;  %v7652_v24 = vrot.slane %v18281_v34, 2 }
 0x581   :  { %v6455_v42 = vpop.permute.xlu1 %6454 }
 0x582   :  { %14937 = vmatmul.mubr.msk.f32.gmra.mxu0 %vm20725_vm7, %v6636_v51  ;;  %v6473_v29 = vsel %vm20726_vm6, %v6467_v0, %v6455_v42  ;;  %v7575_v11 = vsel %vm98_vm0, %v7572_v40, %v7574_v43  ;;  %v7653_v1 = vsel %vm177_vm1, %v7650_v32, %v7652_v24  ;;  %v7577_v25 = vsel %vm98_vm0, %v7574_v43, %v7576_v19 }
 0x583   :  { %14939 = vmatprep.mubr.msk.f32.mxu0 %vm15618_vm3, %v20640_v10  ;;  %v6561_v28 = vrot.slane %v6473_v29, %v16936_v35  ;;  %7604 = vrot.lane.b32.xlu0 %v7575_v11, %s15615_s28  ;;  %v7655_v50 = vsel %vm177_vm1, %v7652_v24, %v7654_v36  ;;  %v7579_v40 = vsel %vm98_vm0, %v7576_v19, %v7578_v58  ;;  %vm20728_vm0 = vcmask 256000  }
 0x584   :  { %7682 = vrot.lane.b32.xlu1 %v7653_v1, %s15616_s30  ;;  %v7657_v32 = vsel %vm177_vm1, %v7654_v36, %v7656_v55  ;;  %vm20729_vm1 = vmmov %vm20728_vm0 }
 0x585   :  { %v6637_v31 = vcombine.low %v6554_v21, %v6561_v28  ;;  %vm20730_vm7 = vmmov %vm20728_vm0 }
 0x586   :  { %vm20731_vm6 = vmmov %vm20728_vm0 }
 0x587   :  { %v6644_v49 = vrot.slane %v6637_v31, %v16936_v35  ;;  %7606 = vrot.lane.b32.xlu0 %v7577_v25, %s15615_s28 }
 0x588   :  { %7684 = vrot.lane.b32.xlu1 %v7655_v50, %s15616_s30 }
 0x589   :  { %14940 = vmatmul.mubr.msk.f32.gmra.mxu0 %vm20727_vm2, %v6644_v49  ;;  %vm20732_vm2 = vmmov %vm20728_vm0 }
 0x58b   :  { %7608 = vrot.lane.b32.xlu0 %v7579_v40, %s15615_s28 }
 0x58c   :  { %7686 = vrot.lane.b32.xlu1 %v7657_v32, %s15616_s30 }
 0x58f   :  { %7610 = vrot.lane.b32.xlu0 %v7581_v5, %s15615_s28 }
 0x590   :  { %7688 = vrot.lane.b32.xlu1 %v7659_v7, %s15616_s30 }
 0x593   :  { %7612 = vrot.lane.b32.xlu0 %v7580_v56, %s15615_s28 }
 0x594   :  { %7690 = vrot.lane.b32.xlu1 %v7658_v39, %s15616_s30 }
 0x5fc   :  { %v6721_v16 = vpop.f32.mrf.mxu0 }
 0x5fd   :  { %v6753_v6 = vmul.f32 %v18344_v3, %v6721_v16 }
 0x5fe   :  { %v14929_v61 = vpop.f32.mrf.mxu0 }
 0x5ff   :  { %v6766_v41 = vadd.f32 %v18349_v46, %v6753_v6 }
 0x601   :  { %v6771_v17 = vmax.f32 %v6766_v41, 0.0 }
 0x603   :  { %v6788_v44 = vrot.slane %v6771_v17, %v16026_v4  ;;  %v6781_v52 = vcombine.high %v6771_v17, %v6771_v17 }
 0x605   :  { %v6796_v22 = vcombine.high %v6788_v44, %v6788_v44  ;;  %v6795_v14 = vrot.slane %v6781_v52, %v16026_v4  ;;  %v6804_v53 = vrot.slane %v6788_v44, %v16026_v4 }
 0x607   :  { %v6818_v47 = vrot.slane %v6796_v22, %v16026_v4  ;;  %v6797_v12 = vcombine.high %v6795_v14, %v6795_v14  ;;  %v6811_v54 = vrot.slane %v6795_v14, %v16026_v4  ;;  %v6826_v51 = vcombine.high %v6804_v53, %v6804_v53 }
 0x609   :  { %v6828_v23 = vcombine.high %v6818_v47, %v6818_v47  ;;  %v7001_v9 = vcombine.low %v6804_v53, %v6818_v47  ;;  %v6825_v42 = vrot.slane %v6797_v12, %v16026_v4  ;;  %v7015_v28 = vrot.slane %v6826_v51, %v16026_v4 }
 0x60b   :  { %v7024_v0 = vcombine.low %v6828_v23, %v6811_v54  ;;  %v7008_v21 = vrot.slane %v7001_v9, %v16026_v4  ;;  %v7038_v31 = vrot.slane %v6825_v42, %v16026_v4  ;;  %v14413_v40 = vcombine.high %v6811_v54, %v6825_v42 }
 0x60d   :  { %v7031_v29 = vrot.slane %v7024_v0, %v16026_v4  ;;  %v7016_v49 = vcombine.low %v7008_v21, %v7015_v28  ;;  %v7054_v61 = vrot.slane %v14413_v40, %v16026_v4 }
 0x60f   :  { %v7039_v24 = vcombine.low %v7031_v29, %v7038_v31  ;;  %v7023_v1 = vrot.slane %v7016_v49, %v16026_v4 }
 0x611   :  { %v7046_v25 = vrot.slane %v7039_v24, %v16026_v4  ;;  %v7289_v32 = vsel %vm20728_vm0, %v7023_v1, -inf }
 0x612   :  { %v7290_v16 = vrot.slane %v7289_v32, 4 }
 0x613   :  { %v7296_v56 = vsel %vm20729_vm1, %v7046_v25, -inf  ;;  %vm20733_vm1 = vmmov %vm20728_vm0 }
 0x614   :  { %v7297_v6 = vrot.slane %v7296_v56, 4  ;;  %v7291_v12 = vmax.f32 %v7289_v32, %v7290_v16 }
 0x616   :  { %v7298_v54 = vmax.f32 %v7296_v56, %v7297_v6  ;;  %v7292_v49 = vrot.slane %v7291_v12, 2 }
 0x618   :  { %v7293_v32 = vmax.f32 %v7291_v12, %v7292_v49 }
 0x61a   :  { %v7294_v6 = vrot.slane %v7293_v32, 1 }
 0x620   :  { %v6726_v43 = vpop.f32.mrf.mxu0 }
 0x621   :  { %v6754_v19 = vmul.f32 %v18344_v3, %v6726_v43  ;;  %v7299_v43 = vrot.slane %v7298_v54, 2 }
 0x622   :  { %v14932_v36 = vpop.f32.mrf.mxu0 }
 0x623   :  { %v6767_v11 = vadd.f32 %v18349_v46, %v6754_v19  ;;  %v7300_v56 = vmax.f32 %v7298_v54, %v7299_v43 }
 0x625   :  { %v6772_v50 = vmax.f32 %v6767_v11, 0.0 }
 0x627   :  { %v6830_v58 = vcombine.high %v6772_v50, %v6772_v50  ;;  %v6837_v55 = vrot.slane %v6772_v50, %v16026_v4 }
 0x629   :  { %v6844_v39 = vrot.slane %v6830_v58, %v16026_v4  ;;  %v6845_v5 = vcombine.high %v6837_v55, %v6837_v55  ;;  %v6853_v7 = vrot.slane %v6837_v55, %v16026_v4 }
 0x62b   :  { %v6846_v13 = vcombine.high %v6844_v39, %v6844_v39  ;;  %v6860_v45 = vrot.slane %v6844_v39, %v16026_v4  ;;  %v6867_v38 = vrot.slane %v6845_v5, %v16026_v4  ;;  %v6875_v26 = vcombine.high %v6853_v7, %v6853_v7 }
 0x62c   :  { %v7061_v41 = vrot.slane %v6853_v7, %v16026_v4 }
 0x62d   :  { %v6874_v17 = vrot.slane %v6846_v13, %v16026_v4  ;;  %v6876_v44 = vcombine.high %v6860_v45, %v6860_v45  ;;  %v6877_v22 = vcombine.high %v6867_v38, %v6867_v38  ;;  %v7070_v52 = vcombine.low %v6867_v38, %v6875_v26 }
 0x62e   :  { %v7062_v47 = vcombine.low %v7054_v61, %v7061_v41  ;;  %v7301_v61 = vrot.slane %v7300_v56, 1 }
 0x62f   :  { %v7077_v14 = vrot.slane %v7070_v52, %v16026_v4  ;;  %v7084_v23 = vrot.slane %v6877_v22, %v16026_v4  ;;  %v7093_v53 = vcombine.low %v6860_v45, %v6874_v17  ;;  %v7107_v42 = vrot.slane %v6876_v44, %v16026_v4 }
 0x630   :  { %v7069_v9 = vrot.slane %v7062_v47, %v16026_v4  ;;  %v6878_v22 = vcombine.high %v6874_v17, %v6874_v17 }
 0x631   :  { %v7085_v0 = vcombine.low %v7077_v14, %v7084_v23  ;;  %v7100_v51 = vrot.slane %v7093_v53, %v16026_v4 }
 0x632   :  { %v7303_v21 = vsel %vm20730_vm7, %v7069_v9, -inf  ;;  %vm20734_vm7 = vmmov %vm20728_vm0 }
 0x633   :  { %v7092_v29 = vrot.slane %v7085_v0, %v16026_v4  ;;  %v7108_v28 = vcombine.low %v7100_v51, %v7107_v42  ;;  %v7304_v31 = vrot.slane %v7303_v21, 4 }
 0x634   :  { %v6731_v24 = vpop.f32.mrf.mxu0 }
 0x635   :  { %v7115_v19 = vrot.slane %v7108_v28, %v16026_v4  ;;  %v7305_v36 = vmax.f32 %v7303_v21, %v7304_v31  ;;  %v7310_v11 = vsel %vm20731_vm6, %v7092_v29, -inf  ;;  %v6755_v1 = vmul.f32 %v18344_v3, %v6731_v24  ;;  %vm20735_vm6 = vmmov %vm20728_vm0 }
 0x636   :  { %v7311_v25 = vrot.slane %v7310_v11, 4  ;;  %v14935_v50 = vpop.f32.mrf.mxu0  ;;  %v7295_v21 = vmax.f32 %v7293_v32, %v7294_v6  ;;  %v7302_v29 = vmax.f32 %v7300_v56, %v7301_v61  ;;  %v18401_v56 = vpop.permute.xlu0 %7582 }
 0x637   :  { %v7306_v58 = vrot.slane %v7305_v36, 2  ;;  %v7317_v55 = vsel %vm20732_vm2, %v7115_v19, -inf  ;;  %v6768_v40 = vadd.f32 %v18349_v46, %v6755_v1  ;;  %vm20736_vm2 = vmmov %vm20728_vm0 }
 0x638   :  { %v7312_v39 = vmax.f32 %v7310_v11, %v7311_v25  ;;  %v7318_v5 = vrot.slane %v7317_v55, 4 }
 0x639   :  { %v6773_v7 = vmax.f32 %v6768_v40, 0.0  ;;  %v7307_v13 = vmax.f32 %v7305_v36, %v7306_v58 }
 0x63a   :  { %v7313_v45 = vrot.slane %v7312_v39, 2  ;;  %v7319_v38 = vmax.f32 %v7317_v55, %v7318_v5 }
 0x63b   :  { %v6879_v26 = vcombine.high %v6773_v7, %v6773_v7  ;;  %v6886_v16 = vrot.slane %v6773_v7, %v16026_v4  ;;  %v7308_v23 = vrot.slane %v7307_v13, 1 }
 0x63c   :  { %v7314_v41 = vmax.f32 %v7312_v39, %v7313_v45  ;;  %v7320_v44 = vrot.slane %v7319_v38, 2 }
 0x63d   :  { %v6893_v52 = vrot.slane %v6879_v26, %v16026_v4  ;;  %v6894_v47 = vcombine.high %v6886_v16, %v6886_v16  ;;  %v6902_v14 = vrot.slane %v6886_v16, %v16026_v4  ;;  %v7309_v36 = vmax.f32 %v7307_v13, %v7308_v23 }
 0x63e   :  { %v7315_v53 = vrot.slane %v7314_v41, 1  ;;  %v7321_v12 = vmax.f32 %v7319_v38, %v7320_v44  ;;  %v7398_v13 = vsel %vm2598_vm8, %v7302_v29, %v7295_v21  ;;  %v18410_v44 = vpop.permute.xlu1 %7660  ;;  %v18418_v21 = vpop.permute.xlu0 %7584 }
 0x63f   :  { %v6895_v54 = vcombine.high %v6893_v52, %v6893_v52  ;;  %v6909_v9 = vrot.slane %v6893_v52, %v16026_v4  ;;  %v6916_v0 = vrot.slane %v6894_v47, %v16026_v4  ;;  %v7116_v51 = vcombine.low %v6878_v22, %v6902_v14 }
 0x640   :  { %v7316_v11 = vmax.f32 %v7314_v41, %v7315_v53  ;;  %v7322_v58 = vrot.slane %v7321_v12, 1  ;;  %v7399_v26 = vsel %vm2600_vm9, %v7309_v36, %v7398_v13 }
 0x641   :  { %v6923_v28 = vrot.slane %v6895_v54, %v16026_v4  ;;  %v6925_v17 = vcombine.high %v6909_v9, %v6909_v9  ;;  %v7123_v31 = vrot.slane %v7116_v51, %v16026_v4  ;;  %v7130_v49 = vrot.slane %v6916_v0, %v16026_v4 }
 0x642   :  { %v6736_v42 = vpop.f32.mrf.mxu0  ;;  %v14414_v43 = vcombine.high %v6902_v14, %v6916_v0  ;;  %v7153_v40 = vrot.slane %v6909_v9, %v16026_v4  ;;  %v7323_v61 = vmax.f32 %v7321_v12, %v7322_v58  ;;  %v7400_v41 = vsel %vm2602_vm10, %v7316_v11, %v7399_v26  ;;  %v18433_v26 = vpop.permute.xlu0 %7586 }
 0x643   :  { %v6756_v24 = vmul.f32 %v18344_v3, %v6736_v42  ;;  %v6927_v1 = vcombine.high %v6923_v28, %v6923_v28  ;;  %v7131_v25 = vcombine.low %v7123_v31, %v7130_v49  ;;  %v7162_v50 = vcombine.low %v6923_v28, %v6925_v17 }
 0x644   :  { %v14938_v19 = vpop.f32.mrf.mxu0  ;;  %v7146_v55 = vrot.slane %v14414_v43, %v16026_v4  ;;  %v7401_v31 = vsel %vm2604_vm11, %v7323_v61, %v7400_v41 }
 0x645   :  { %v6769_v32 = vadd.f32 %v18349_v46, %v6756_v24  ;;  %v7138_v39 = vrot.slane %v7131_v25, %v16026_v4  ;;  %v7169_v5 = vrot.slane %v7162_v50, %v16026_v4  ;;  %v7176_v7 = vrot.slane %v6927_v1, %v16026_v4  ;;  %v18426_v25 = vpop.permute.xlu1 %7662 }
 0x646   :  { %v7154_v45 = vcombine.low %v7146_v55, %v7153_v40 }
 0x647   :  { %v6774_v38 = vmax.f32 %v6769_v32, 0.0  ;;  %v7324_v16 = vsel %vm20728_vm0, %v7138_v39, -inf  ;;  %v7177_v6 = vcombine.low %v7169_v5, %v7176_v7 }
 0x648   :  { %v7161_v22 = vrot.slane %v7154_v45, %v16026_v4  ;;  %v7325_v52 = vrot.slane %v7324_v16, 4 }
 0x649   :  { %v6928_v47 = vcombine.high %v6774_v38, %v6774_v38  ;;  %v6935_v14 = vrot.slane %v6774_v38, %v16026_v4  ;;  %v6741_v23 = vpop.f32.mrf.mxu0  ;;  %v7184_v54 = vrot.slane %v7177_v6, %v16026_v4 }
 0x64a   :  { %v6757_v53 = vmul.f32 %v18344_v3, %v6741_v23  ;;  %v7326_v42 = vmax.f32 %v7324_v16, %v7325_v52  ;;  %v7331_v28 = vsel %vm20733_vm1, %v7161_v22, -inf  ;;  %vm20737_vm1 = vcmask 261120  }
 0x64b   :  { %v6942_v9 = vrot.slane %v6928_v47, %v16026_v4  ;;  %v6943_v0 = vcombine.high %v6935_v14, %v6935_v14  ;;  %v6951_v12 = vrot.slane %v6935_v14, %v16026_v4  ;;  %v14941_v51 = vpop.f32.mrf.mxu0  ;;  %v7338_v17 = vsel %vm20734_vm7, %v7184_v54, -inf  ;;  %vm20738_vm7 = vmmov %vm20728_vm0 }
 0x64c   :  { %v6770_v29 = vadd.f32 %v18349_v46, %v6757_v53  ;;  %v7327_v36 = vrot.slane %v7326_v42, 2  ;;  %v7332_v11 = vrot.slane %v7331_v28, 4  ;;  %v7339_v1 = vrot.slane %v7338_v17, 4 }
 0x64d   :  { %v6944_v3 = vcombine.high %v6942_v9, %v6942_v9  ;;  %v6958_v49 = vrot.slane %v6942_v9, %v16026_v4  ;;  %v6965_v43 = vrot.slane %v6943_v0, %v16026_v4  ;;  %v6973_v24 = vcombine.high %v6951_v12, %v6951_v12  ;;  %v18440_v0 = vpop.permute.xlu1 %7664 }
 0x64e   :  { %v6775_v19 = vmax.f32 %v6770_v29, 0.0  ;;  %v7328_v32 = vmax.f32 %v7326_v42, %v7327_v36  ;;  %v7333_v39 = vmax.f32 %v7331_v28, %v7332_v11  ;;  %v7340_v5 = vmax.f32 %v7338_v17, %v7339_v1  ;;  %v18446_v11 = vpop.permute.xlu0 %7588 }
 0x64f   :  { %v6972_v46 = vrot.slane %v6944_v3, %v16026_v4  ;;  %v6975_v50 = vcombine.high %v6965_v43, %v6965_v43  ;;  %v7185_v58 = vcombine.low %v6951_v12, %v6965_v43  ;;  %v7199_v55 = vrot.slane %v6973_v24, %v16026_v4 }
 0x650   :  { %v6983_v40 = vrot.slane %v6775_v19, %v16026_v4  ;;  %v7329_v61 = vrot.slane %v7328_v32, 1  ;;  %v7334_v41 = vrot.slane %v7333_v39, 2  ;;  %v7341_v14 = vrot.slane %v7340_v5, 2 }
 0x651   :  { %v7192_v7 = vrot.slane %v7185_v58, %v16026_v4  ;;  %v7208_v13 = vcombine.low %v6975_v50, %v6958_v49  ;;  %v7222_v45 = vrot.slane %v6972_v46, %v16026_v4  ;;  %v14415_v38 = vcombine.high %v6958_v49, %v6972_v46 }
 0x652   :  { %v6984_v16 = vcombine.high %v6983_v40, %v6983_v40  ;;  %v6991_v6 = vrot.slane %v6983_v40, %v16026_v4  ;;  %v7330_v9 = vmax.f32 %v7328_v32, %v7329_v61  ;;  %v7335_v42 = vmax.f32 %v7333_v39, %v7334_v41 }
 0x653   :  { %v7200_v22 = vcombine.low %v7192_v7, %v7199_v55  ;;  %v7215_v52 = vrot.slane %v7208_v13, %v16026_v4  ;;  %v7238_v47 = vrot.slane %v14415_v38, %v16026_v4  ;;  %v7342_v29 = vmax.f32 %v7340_v5, %v7341_v14  ;;  %v7667_v13 = vpop.permute.xlu1 %7666 }
 0x654   :  { %v6998_v23 = vrot.slane %v6984_v16, %v16026_v4  ;;  %v6999_v53 = vcombine.high %v6991_v6, %v6991_v6  ;;  %v7245_v54 = vrot.slane %v6991_v6, %v16026_v4  ;;  %v7402_v49 = vsel %vm2606_vm12, %v7330_v9, %v7401_v31 }
 0x655   :  { %v7207_v12 = vrot.slane %v7200_v22, %v16026_v4  ;;  %v7223_v51 = vcombine.low %v7215_v52, %v7222_v45  ;;  %v7336_v19 = vrot.slane %v7335_v42, 1  ;;  %v7343_v36 = vrot.slane %v7342_v29, 1  ;;  %v7591_v52 = vpop.permute.xlu0 %7590 }
 0x656   :  { %v7000_v28 = vcombine.high %v6998_v23, %v6998_v23  ;;  %v7246_v17 = vcombine.low %v7238_v47, %v7245_v54  ;;  %v7254_v3 = vcombine.low %v6998_v23, %v6999_v53 }
 0x657   :  { %v7230_v43 = vrot.slane %v7223_v51, %v16026_v4  ;;  %v7345_v24 = vsel %vm20735_vm6, %v7207_v12, -inf  ;;  %v7337_v40 = vmax.f32 %v7335_v42, %v7336_v19  ;;  %v7344_v32 = vmax.f32 %v7342_v29, %v7343_v36  ;;  %v7669_v51 = vpop.permute.xlu1 %7668  ;;  %vm20739_vm6 = vmmov %vm20737_vm1 }
 0x658   :  { %v7346_v1 = vrot.slane %v7345_v24, 4  ;;  %v7253_v46 = vrot.slane %v7246_v17, %v16026_v4  ;;  %v7261_v50 = vrot.slane %v7254_v3, %v16026_v4  ;;  %v7268_v58 = vrot.slane %v7000_v28, %v16026_v4 }
 0x659   :  { %v7352_v55 = vsel %vm20736_vm2, %v7230_v43, -inf  ;;  %v7403_v38 = vsel %vm2608_vm13, %v7337_v40, %v7402_v49  ;;  %v7593_v49 = vpop.permute.xlu0 %7592  ;;  %v7708_v43 = vsel %vm256_vm4, %v18074_v27, %v18401_v56  ;;  %v7709_v40 = vsel %vm256_vm4, %v18079_v15, %v18418_v21  ;;  %v14425_v56 = vld [vmem:[%s20632_s25 + $0x28] sm:$0xf]  ;;  %v14424_v15 = vld [vmem:[%s20632_s25 + $0x20] sm:$0xff]  ;;  %s15625_s25 = smov [#allocation2]  }
 0x65a   :  { %v7347_v31 = vmax.f32 %v7345_v24, %v7346_v1  ;;  %v7353_v39 = vrot.slane %v7352_v55, 4  ;;  %v7269_v5 = vcombine.low %v7261_v50, %v7268_v58  ;;  %v7359_v7 = vsel %vm20728_vm0, %v7253_v46, -inf  ;;  %s14317_s26 = sshll.u32 %s15625_s25, 4  ;;  %s14318_s26 = int_to_ptr.vmem [resolvable:$true] %s14317_s26 }
 0x65b   :  { %v7360_v45 = vrot.slane %v7359_v7, 4  ;;  %v7404_v41 = vsel %vm2610_vm14, %v7344_v32, %v7403_v38  ;;  %v7671_v50 = vpop.permute.xlu1 %7670  ;;  %v7724_v58 = vsel %vm273_vm5, %v7708_v43, %v18410_v44  ;;  %v7710_v44 = vsel %vm256_vm4, %v18084_v20, %v18433_v26  ;;  %p15598_p1 = scmp.lt.s32.totalorder %s14318_s26, %s14318_s26 }
 0x65c   :  { %v7348_v16 = vrot.slane %v7347_v31, 2  ;;  %v7354_v6 = vmax.f32 %v7352_v55, %v7353_v39  ;;  %v7276_v61 = vrot.slane %v7269_v5, %v16026_v4  ;;  %14950 = vmatprep.mubr.msk.f32.mxu0 %vm20737_vm1, %v7404_v41  ;;  %v7756_v27 = vcombine.high %v7724_v58, %v7724_v58 }
 0x65d   :  { %v7361_v22 = vmax.f32 %v7359_v7, %v7360_v45  ;;  %v7595_v39 = vpop.permute.xlu0 %7594  ;;  %v7725_v5 = vsel %vm273_vm5, %v7709_v40, %v18426_v25  ;;  %vm20740_vm2 = vcmask 1043456   ;;  %v7726_v38 = vsel %vm273_vm5, %v7710_v44, %v18440_v0 }
 0x65e   :  { %v7349_v47 = vmax.f32 %v7347_v31, %v7348_v16  ;;  %v7355_v14 = vrot.slane %v7354_v6, 2  ;;  %v7366_v23 = vsel %vm20738_vm7, %v7276_v61, -inf  ;;  %v7773_v45 = vcombine.low %v7724_v58, %v7756_v27 }
 0x65f   :  { %v7362_v53 = vrot.slane %v7361_v22, 2  ;;  %v7367_v54 = vrot.slane %v7366_v23, 4  ;;  %v7673_v21 = vpop.permute.xlu1 %7672  ;;  %v7757_v25 = vcombine.high %v7725_v5, %v7725_v5  ;;  %v7711_v26 = vsel %vm256_vm4, %v18107_v63, %v18446_v11 }
 0x660   :  { %v7350_v9 = vrot.slane %v7349_v47, 1  ;;  %v7356_v12 = vmax.f32 %v7354_v6, %v7355_v14  ;;  %vm20741_vm0 = vcmask 97280   ;;  %v7758_v6 = vcombine.high %v7726_v38, %v7726_v38 }
 0x661   :  { %v7363_v42 = vmax.f32 %v7361_v22, %v7362_v53  ;;  %v7368_v29 = vmax.f32 %v7366_v23, %v7367_v54  ;;  %v7597_v20 = vpop.permute.xlu0 %7596  ;;  %v7774_v16 = vcombine.low %v7725_v5, %v7757_v25  ;;  %v7727_v41 = vsel %vm273_vm5, %v7711_v26, %v7667_v13  ;;  %vm20742_vm1 = vmmov %vm20741_vm0 }
 0x662   :  { %v7357_v28 = vrot.slane %v7356_v12, 1  ;;  %v7351_v24 = vmax.f32 %v7349_v47, %v7350_v9  ;;  %v7712_v0 = vsel %vm256_vm4, %v18119_v57, %v7591_v52  ;;  %v7775_v11 = vcombine.low %v7726_v38, %v7758_v6  ;;  %vm20743_vm7 = vmmov %vm20741_vm0 }
 0x663   :  { %v7364_v17 = vrot.slane %v7363_v42, 1  ;;  %v7369_v3 = vrot.slane %v7368_v29, 2  ;;  %v7599_v61 = vpop.permute.xlu1 %7598  ;;  %v7759_v22 = vcombine.high %v7727_v41, %v7727_v41  ;;  %v7728_v47 = vsel %vm273_vm5, %v7712_v0, %v7669_v51 }
 0x664   :  { %v7358_v19 = vmax.f32 %v7356_v12, %v7357_v28  ;;  %v7713_v14 = vsel %vm256_vm4, %v18130_v2, %v7593_v49  ;;  %v7760_v13 = vcombine.high %v7728_v47, %v7728_v47  ;;  %v7714_v54 = vsel %vm256_vm4, %v18141_v60, %v7595_v39 }
 0x665   :  { %v7365_v36 = vmax.f32 %v7363_v42, %v7364_v17  ;;  %v7370_v1 = vmax.f32 %v7368_v29, %v7369_v3  ;;  %v7675_v63 = vpop.permute.xlu0 %7674  ;;  %v7776_v57 = vcombine.low %v7727_v41, %v7759_v22  ;;  %v7729_v52 = vsel %vm273_vm5, %v7713_v14, %v7671_v50 }
 0x666   :  { %v7405_v46 = vsel %vm2598_vm8, %v7358_v19, %v7351_v24  ;;  %v7777_v2 = vcombine.low %v7728_v47, %v7760_v13  ;;  %v7761_v9 = vcombine.high %v7729_v52, %v7729_v52  ;;  %v7730_v51 = vsel %vm273_vm5, %v7714_v54, %v7673_v21 }
 0x667   :  { %v7371_v55 = vrot.slane %v7370_v1, 1  ;;  %v7406_v32 = vsel %vm2600_vm9, %v7365_v36, %v7405_v46  ;;  %v7677_v23 = vpop.permute.xlu1 %7676  ;;  %v7762_v28 = vcombine.high %v7730_v51, %v7730_v51  ;;  %v7715_v60 = vsel %vm256_vm4, %v18154_v18, %v7597_v20 }
 0x668   :  { %v7778_v29 = vcombine.low %v7729_v52, %v7761_v9  ;;  %v7716_v3 = vsel %vm256_vm4, %v18176_v59, %v7599_v61  ;;  %v7731_v24 = vsel %vm273_vm5, %v7715_v60, %v7675_v63  ;;  %v18588_v52 = vld [vmem:[%s20595_s5 + $0x2] ss:$0 sm:$0xff] }
 0x669   :  { %v7372_v31 = vmax.f32 %v7370_v1, %v7371_v55  ;;  %v7601_v53 = vpop.permute.xlu0 %7600  ;;  %v7779_v43 = vcombine.low %v7730_v51, %v7762_v28  ;;  %v7732_v19 = vsel %vm273_vm5, %v7716_v3, %v7677_v23 }
 0x66a   :  { %v7717_v36 = vsel %vm256_vm4, %v18181_v37, %v7601_v53  ;;  %v7763_v59 = vcombine.high %v7732_v19, %v7732_v19  ;;  %v7780_v1 = vcombine.low %v7731_v24, %v7732_v19 }
 0x66b   :  { %v7407_v7 = vsel %vm2602_vm10, %v7372_v31, %v7406_v32  ;;  %v7679_v12 = vpop.permute.xlu1 %7678 }
 0x66c   :  { %14951 = vmatmul.mubr.msk.f32.vlgmr.msra.gmra.mxu0 %vm20739_vm6, %v7407_v7  ;;  %vm20744_vm6 = vmmov %vm20741_vm0  ;;  %v7733_v46 = vsel %vm273_vm5, %v7717_v36, %v7679_v12 }
 0x66d   :  { %14954 = vmatpush3.msk.msra.mxu0 %vm20740_vm2, %v14425_v56  ;;  %14957 = vmatprep.mubr.msk.f32.mxu0 %vm15618_vm3, %v20640_v10  ;;  %v7603_v42 = vpop.permute.xlu0 %7602  ;;  %vm20745_vm2 = vmmov %vm20741_vm0  ;;  %v7764_v37 = vcombine.high %v7733_v46, %v7733_v46  ;;  %v7781_v55 = vcombine.low %v7763_v59, %v7733_v46 }
 0x66e   :  { %14955 = vmatprep.subr.mxu0 %v20640_v10  ;;  %v7718_v58 = vsel %vm256_vm4, %v18193_v48, %v7603_v42 }
 0x66f   :  { %14956 = vmatpush3.msra.mxu0 %v14424_v15  ;;  %v7681_v17 = vpop.permute.xlu1 %7680 }
 0x670   :  { %14958 = vmatmul.mubr.msk.f32.vlgmr.msra.gmra.mxu0 %vm20741_vm0, %v7773_v45  ;;  %15073 = vmatprep.subr.mxu0 %v20640_v10  ;;  %v7734_v32 = vsel %vm273_vm5, %v7718_v58, %v7681_v17 }
 0x671   :  { %14960 = vmatprep.mubr.msk.f32.mxu0 %vm15618_vm3, %v20640_v10  ;;  %v7605_v49 = vpop.permute.xlu0 %7604  ;;  %v7765_v27 = vcombine.high %v7734_v32, %v7734_v32  ;;  %v7782_v56 = vcombine.low %v7764_v37, %v7734_v32 }
 0x672   :  { %v7719_v31 = vsel %vm256_vm4, %v18206_v62, %v7605_v49 }
 0x673   :  { %v7683_v18 = vpop.permute.xlu1 %7682 }
 0x674   :  { %14961 = vmatmul.mubr.msk.f32.gmra.mxu0 %vm20742_vm1, %v7774_v16  ;;  %vm20746_vm1 = vmmov %vm20741_vm0  ;;  %v7735_v48 = vsel %vm273_vm5, %v7719_v31, %v7683_v18 }
 0x675   :  { %14963 = vmatprep.mubr.msk.f32.mxu0 %vm15618_vm3, %v20640_v10  ;;  %v7607_v50 = vpop.permute.xlu0 %7606  ;;  %v7766_v44 = vcombine.high %v7735_v48, %v7735_v48  ;;  %v7783_v15 = vcombine.low %v7765_v27, %v7735_v48 }
 0x676   :  { %v7720_v5 = vsel %vm256_vm4, %v18281_v34, %v7607_v50 }
 0x677   :  { %v7685_v40 = vpop.permute.xlu1 %7684 }
 0x678   :  { %14964 = vmatmul.mubr.msk.f32.gmra.mxu0 %vm20743_vm7, %v7775_v11  ;;  %vm20747_vm7 = vmmov %vm20741_vm0  ;;  %v7736_v62 = vsel %vm273_vm5, %v7720_v5, %v7685_v40 }
 0x679   :  { %14966 = vmatprep.mubr.msk.f32.mxu0 %vm15618_vm3, %v20640_v10  ;;  %v7609_v39 = vpop.permute.xlu0 %7608  ;;  %v7767_v25 = vcombine.high %v7736_v62, %v7736_v62  ;;  %v7784_v38 = vcombine.low %v7766_v44, %v7736_v62 }
 0x67a   :  { %v7721_v45 = vsel %vm256_vm4, %v18286_v8, %v7609_v39 }
 0x67b   :  { %v7687_v7 = vpop.permute.xlu1 %7686 }
 0x67c   :  { %14967 = vmatmul.mubr.msk.f32.gmra.mxu0 %vm20744_vm6, %v7776_v57  ;;  %vm20748_vm6 = vmmov %vm20741_vm0  ;;  %v7737_v20 = vsel %vm273_vm5, %v7721_v45, %v7687_v7  ;;  %v18583_v57 = vld [vmem:[%s20633_s2 + $0x2] ss:$0 sm:$0xff] }
 0x67d   :  { %14969 = vmatprep.mubr.msk.f32.mxu0 %vm15618_vm3, %v20640_v10  ;;  %v7611_v21 = vpop.permute.xlu0 %7610  ;;  %v7768_v6 = vcombine.high %v7737_v20, %v7737_v20  ;;  %v7785_v61 = vcombine.low %v7767_v25, %v7737_v20 }
 0x67e   :  { %v7722_v26 = vsel %vm256_vm4, %v18295_v30, %v7611_v21 }
 0x67f   :  { %v7689_v34 = vpop.permute.xlu1 %7688 }
 0x680   :  { %14970 = vmatmul.mubr.msk.f32.gmra.mxu0 %vm20745_vm2, %v7777_v2  ;;  %vm20749_vm2 = vmmov %vm20741_vm0  ;;  %v7738_v8 = vsel %vm273_vm5, %v7722_v26, %v7689_v34 }
 0x681   :  { %14972 = vmatprep.mubr.msk.f32.mxu0 %vm15618_vm3, %v20640_v10  ;;  %v7613_v16 = vpop.permute.xlu0 %7612  ;;  %v7769_v63 = vcombine.high %v7738_v8, %v7738_v8  ;;  %v7786_v11 = vcombine.low %v7768_v6, %v7738_v8 }
 0x682   :  { %v7723_v41 = vsel %vm256_vm4, %v18318_v33, %v7613_v16  ;;  %v14421_v33 = vld [vmem:[%s20601_s11 + $0x1] ss:$0 sm:$0xff]  ;;  %vm20755_vm4 = vcmask 124928  }
 0x683   :  { %v7691_v0 = vpop.permute.xlu1 %7690 }
 0x684   :  { %14973 = vmatmul.mubr.msk.f32.gmra.mxu0 %vm20741_vm0, %v7778_v29  ;;  %v7739_v30 = vsel %vm273_vm5, %v7723_v41, %v7691_v0 }
 0x685   :  { %14975 = vmatprep.mubr.msk.f32.mxu0 %vm15618_vm3, %v20640_v10  ;;  %v7787_v22 = vcombine.low %v7769_v63, %v7739_v30 }
 0x688   :  { %14976 = vmatmul.mubr.msk.f32.gmra.mxu0 %vm20746_vm1, %v7779_v43  ;;  %vm20750_vm1 = vmmov %vm20741_vm0 }
 0x689   :  { %14978 = vmatprep.mubr.msk.f32.mxu0 %vm15618_vm3, %v20640_v10 }
 0x68c   :  { %14979 = vmatmul.mubr.msk.f32.gmra.mxu0 %vm20747_vm7, %v7780_v1  ;;  %vm20751_vm7 = vmmov %vm20741_vm0 }
 0x68d   :  { %14981 = vmatprep.mubr.msk.f32.mxu0 %vm15618_vm3, %v20640_v10 }
 0x690   :  { %14982 = vmatmul.mubr.msk.f32.gmra.mxu0 %vm20748_vm6, %v7781_v55  ;;  %vm20752_vm6 = vmmov %vm20741_vm0 }
 0x691   :  { %14984 = vmatprep.mubr.msk.f32.mxu0 %vm15618_vm3, %v20640_v10 }
 0x694   :  { %14985 = vmatmul.mubr.msk.f32.gmra.mxu0 %vm20749_vm2, %v7782_v56  ;;  %vm20753_vm2 = vmmov %vm20741_vm0 }
 0x695   :  { %14987 = vmatprep.mubr.msk.f32.mxu0 %vm15618_vm3, %v20640_v10 }
 0x698   :  { %14988 = vmatmul.mubr.msk.f32.gmra.mxu0 %vm20741_vm0, %v7783_v15  ;;  %vm20756_vm0 = vmmov %vm20755_vm4 }
 0x699   :  { %14990 = vmatprep.mubr.msk.f32.mxu0 %vm15618_vm3, %v20640_v10 }
 0x69c   :  { %14991 = vmatmul.mubr.msk.f32.gmra.mxu0 %vm20750_vm1, %v7784_v38  ;;  %vm20757_vm1 = vmmov %vm20756_vm0 }
 0x69d   :  { %14993 = vmatprep.mubr.msk.f32.mxu0 %vm15618_vm3, %v20640_v10 }
 0x6a0   :  { %14994 = vmatmul.mubr.msk.f32.gmra.mxu0 %vm20751_vm7, %v7785_v61  ;;  %vm20758_vm7 = vmmov %vm20756_vm0 }
 0x6a1   :  { %14996 = vmatprep.mubr.msk.f32.mxu0 %vm15618_vm3, %v20640_v10 }
 0x6a4   :  { %14997 = vmatmul.mubr.msk.f32.gmra.mxu0 %vm20752_vm6, %v7786_v11  ;;  %vm20759_vm6 = vmmov %vm20756_vm0 }
 0x6a5   :  { %14999 = vmatprep.mubr.msk.f32.mxu0 %vm15618_vm3, %v20640_v10 }
 0x6a8   :  { %15000 = vmatmul.mubr.msk.f32.gmra.mxu0 %vm20753_vm2, %v7787_v22  ;;  %vm20760_vm2 = vmmov %vm20756_vm0 }
 0x6a9   :  { %15081 = vmatprep.mubr.msk.f32.mxu0 %vm15618_vm3, %v20640_v10 }
 0x72c   :  { %v14952_v47 = vpop.f32.mrf.mxu0 }
 0x72d   :  { %v18576_v14 = vadd.f32 %v14952_v47, %v14421_v33 }
 0x72e   :  { %v18578_v23 = vpop.f32.mrf.mxu0 }
 0x72f   :  { %20754 = vst [vmem:[#allocation8_spill] sm:$0xff] %v18576_v14 }
 0x730   :  { %v7887_v13 = vpop.f32.mrf.mxu0 }
 0x731   :  { %v7969_v53 = vmul.f32 %v18583_v57, %v7887_v13 }
 0x732   :  { %v14959_v54 = vpop.f32.mrf.mxu0 }
 0x733   :  { %v7992_v2 = vadd.f32 %v18588_v52, %v7969_v53 }
 0x734   :  { %v7892_v9 = vpop.f32.mrf.mxu0 }
 0x735   :  { %v8007_v12 = vmax.f32 %v7992_v2, 0.0  ;;  %v7970_v51 = vmul.f32 %v18583_v57, %v7892_v9 }
 0x736   :  { %v14962_v42 = vpop.f32.mrf.mxu0 }
 0x737   :  { %v8037_v29 = vcombine.high %v8007_v12, %v8007_v12  ;;  %v8044_v28 = vrot.slane %v8007_v12, %v16026_v4  ;;  %v7993_v17 = vadd.f32 %v18588_v52, %v7970_v51 }
 0x738   :  { %v7897_v60 = vpop.f32.mrf.mxu0 }
 0x739   :  { %v8051_v3 = vrot.slane %v8037_v29, %v16026_v4  ;;  %v8052_v49 = vcombine.high %v8044_v28, %v8044_v28  ;;  %v8060_v43 = vrot.slane %v8044_v28, %v16026_v4  ;;  %v8008_v24 = vmax.f32 %v7993_v17, 0.0 }
 0x73a   :  { %v7971_v19 = vmul.f32 %v18583_v57, %v7897_v60  ;;  %v14965_v36 = vpop.f32.mrf.mxu0 }
 0x73b   :  { %v8053_v18 = vcombine.high %v8051_v3, %v8051_v3  ;;  %v8074_v59 = vrot.slane %v8052_v49, %v16026_v4  ;;  %v8082_v1 = vcombine.high %v8060_v43, %v8060_v43  ;;  %v8067_v46 = vrot.slane %v8051_v3, %v16026_v4 }
 0x73c   :  { %v8086_v50 = vcombine.high %v8008_v24, %v8008_v24  ;;  %v8093_v58 = vrot.slane %v8008_v24, %v16026_v4  ;;  %v7994_v37 = vadd.f32 %v18588_v52, %v7971_v19  ;;  %v18602_v55 = vpop.f32.mrf.mxu0 }
 0x73d   :  { %v8081_v40 = vrot.slane %v8053_v18, %v16026_v4  ;;  %v8084_v32 = vcombine.high %v8074_v59, %v8074_v59  ;;  %v8772_v31 = vcombine.low %v8060_v43, %v8074_v59  ;;  %v18606_v39 = vrot.slane %v8082_v1, %v16026_v4 }
 0x73e   :  { %v8100_v27 = vrot.slane %v8086_v50, %v16026_v4  ;;  %v8101_v56 = vcombine.high %v8093_v58, %v8093_v58  ;;  %v8109_v48 = vrot.slane %v8093_v58, %v16026_v4  ;;  %v8009_v5 = vmax.f32 %v7994_v37, 0.0  ;;  %v14968_v7 = vpop.f32.mrf.mxu0 }
 0x73f   :  { %v18611_v44 = vrot.slane %v8772_v31, %v16026_v4  ;;  %v8795_v15 = vcombine.low %v8084_v32, %v8067_v46  ;;  %v8809_v62 = vrot.slane %v8081_v40, %v16026_v4  ;;  %v14446_v21 = vcombine.high %v8067_v46, %v8081_v40 }
 0x740   :  { %v8102_v45 = vcombine.high %v8100_v27, %v8100_v27  ;;  %v8116_v25 = vrot.slane %v8100_v27, %v16026_v4  ;;  %v8123_v38 = vrot.slane %v8101_v56, %v16026_v4  ;;  %v8131_v34 = vcombine.high %v8109_v48, %v8109_v48  ;;  %v18616_v20 = vpop.f32.mrf.mxu0 }
 0x741   :  { %v8802_v16 = vrot.slane %v8795_v15, %v16026_v4  ;;  %v8825_v6 = vrot.slane %v14446_v21, %v16026_v4  ;;  %v8832_v61 = vrot.slane %v8109_v48, %v16026_v4  ;;  %v8135_v33 = vcombine.high %v8009_v5, %v8009_v5 }
 0x742   :  { %v8130_v8 = vrot.slane %v8102_v45, %v16026_v4  ;;  %v8132_v41 = vcombine.high %v8116_v25, %v8116_v25  ;;  %v8133_v0 = vcombine.high %v8123_v38, %v8123_v38  ;;  %v8841_v63 = vcombine.low %v8123_v38, %v8131_v34  ;;  %v14971_v11 = vpop.f32.mrf.mxu0 }
 0x743   :  { %v8810_v30 = vcombine.low %v8802_v16, %v8809_v62  ;;  %v8833_v22 = vcombine.low %v8825_v6, %v8832_v61  ;;  %v8142_v29 = vrot.slane %v8009_v5, %v16026_v4  ;;  %v8149_v3 = vrot.slane %v8135_v33, %v16026_v4 }
 0x744   :  { %v8848_v47 = vrot.slane %v8841_v63, %v16026_v4  ;;  %v8855_v13 = vrot.slane %v8133_v0, %v16026_v4  ;;  %v8864_v53 = vcombine.low %v8116_v25, %v8130_v8  ;;  %v7912_v54 = vpop.f32.mrf.mxu0  ;;  %v8878_v42 = vrot.slane %v8132_v41, %v16026_v4 }
 0x745   :  { %v8817_v2 = vrot.slane %v8810_v30, %v16026_v4  ;;  %v8840_v9 = vrot.slane %v8833_v22, %v16026_v4  ;;  %v8150_v18 = vcombine.high %v8142_v29, %v8142_v29  ;;  %v8151_v59 = vcombine.high %v8149_v3, %v8149_v3 }
 0x746   :  { %v8856_v12 = vcombine.low %v8848_v47, %v8855_v13  ;;  %v8871_v51 = vrot.slane %v8864_v53, %v16026_v4  ;;  %v14974_v28 = vpop.f32.mrf.mxu0  ;;  %v8134_v58 = vcombine.high %v8130_v8, %v8130_v8  ;;  %v8165_v31 = vrot.slane %v8149_v3, %v16026_v4 }
 0x747   :  { %v9739_v17 = vsel %vm20755_vm4, %v8817_v2, -inf  ;;  %v9746_v60 = vsel %vm20756_vm0, %v8840_v9, -inf  ;;  %v8172_v27 = vrot.slane %v8150_v18, %v16026_v4  ;;  %v8158_v5 = vrot.slane %v8142_v29, %v16026_v4  ;;  %vm20761_vm4 = vmmov %vm20756_vm0 }
 0x748   :  { %v9740_v49 = vrot.slane %v9739_v17, 4  ;;  %v8863_v43 = vrot.slane %v8856_v12, %v16026_v4  ;;  %v8879_v24 = vcombine.low %v8871_v51, %v8878_v42  ;;  %v7917_v19 = vpop.f32.mrf.mxu0  ;;  %v9747_v36 = vrot.slane %v9746_v60, 4 }
 0x749   :  { %v8179_v7 = vrot.slane %v8151_v59, %v16026_v4  ;;  %v8181_v21 = vcombine.high %v8165_v31, %v8165_v31  ;;  %v7972_v45 = vmul.f32 %v18583_v57, %v18602_v55  ;;  %v8887_v34 = vcombine.low %v8134_v58, %v8158_v5 }
 0x74a   :  { %v9741_v1 = vmax.f32 %v9739_v17, %v9740_v49  ;;  %v8886_v46 = vrot.slane %v8879_v24, %v16026_v4  ;;  %v9753_v50 = vsel %vm20757_vm1, %v8863_v43, -inf  ;;  %v14977_v37 = vpop.f32.mrf.mxu0  ;;  %v9748_v40 = vmax.f32 %v9746_v60, %v9747_v36  ;;  %vm20762_vm1 = vmmov %vm20756_vm0 }
 0x74b   :  { %v9754_v32 = vrot.slane %v9753_v50, 4  ;;  %v8183_v38 = vcombine.high %v8179_v7, %v8179_v7  ;;  %v8901_v41 = vrot.slane %v8172_v27, %v16026_v4  ;;  %v8894_v0 = vrot.slane %v8887_v34, %v16026_v4 }
 0x74c   :  { %v9742_v56 = vrot.slane %v9741_v1, 2  ;;  %v9760_v48 = vsel %vm20758_vm7, %v8886_v46, -inf  ;;  %v7922_v15 = vpop.f32.mrf.mxu0  ;;  %v9749_v62 = vrot.slane %v9748_v40, 2  ;;  %v14447_v63 = vcombine.high %v8158_v5, %v8172_v27  ;;  %vm20763_vm7 = vmmov %vm20756_vm0 }
 0x74d   :  { %v18644_v25 = vmax.f32 %v9753_v50, %v9754_v32  ;;  %v9761_v8 = vrot.slane %v9760_v48, 4  ;;  %v8924_v11 = vrot.slane %v8165_v31, %v16026_v4  ;;  %v8933_v30 = vcombine.low %v8179_v7, %v8181_v21 }
 0x74e   :  { %v14980_v16 = vpop.f32.mrf.mxu0  ;;  %v18646_v6 = vmax.f32 %v9741_v1, %v9742_v56  ;;  %v9750_v61 = vmax.f32 %v9748_v40, %v9749_v62  ;;  %v8947_v33 = vrot.slane %v8183_v38, %v16026_v4  ;;  %v7995_v47 = vadd.f32 %v18588_v52, %v7972_v45 }
 0x74f   :  { %v7973_v13 = vmul.f32 %v18583_v57, %v18616_v20  ;;  %v8902_v53 = vcombine.low %v8894_v0, %v8901_v41  ;;  %v8917_v2 = vrot.slane %v14447_v63, %v16026_v4  ;;  %v8940_v9 = vrot.slane %v8933_v30, %v16026_v4 }
 0x750   :  { %v18651_v22 = vpop.f32.mrf.mxu0  ;;  %v9751_v55 = vrot.slane %v9750_v61, 1  ;;  %v7974_v12 = vmul.f32 %v18583_v57, %v7912_v54  ;;  %v9756_v42 = vrot.slane %v18644_v25, 2  ;;  %v18661_v29 = vmax.f32 %v9760_v48, %v9761_v8 }
 0x751   :  { %v8010_v28 = vmax.f32 %v7995_v47, 0.0  ;;  %v7996_v17 = vadd.f32 %v18588_v52, %v7973_v13  ;;  %v8909_v60 = vrot.slane %v8902_v53, %v16026_v4  ;;  %v8925_v3 = vcombine.low %v8917_v2, %v8924_v11 }
 0x752   :  { %v14983_v51 = vpop.f32.mrf.mxu0  ;;  %v7997_v20 = vadd.f32 %v18588_v52, %v7974_v12  ;;  %v7975_v49 = vmul.f32 %v18583_v57, %v7917_v19  ;;  %v18669_v24 = vmax.f32 %v9750_v61, %v9751_v55  ;;  %v18673_v1 = vcombine.low %v8940_v9, %v8947_v33 }
 0x753   :  { %v8184_v54 = vcombine.high %v8010_v28, %v8010_v28  ;;  %v8191_v36 = vrot.slane %v8010_v28, %v16026_v4  ;;  %v8011_v18 = vmax.f32 %v7996_v17, 0.0  ;;  %v8932_v59 = vrot.slane %v8925_v3, %v16026_v4 }
 0x754   :  { %v18667_v43 = vpop.f32.mrf.mxu0  ;;  %v9767_v46 = vsel %vm20759_vm6, %v8909_v60, -inf  ;;  %v8012_v50 = vmax.f32 %v7997_v20, 0.0  ;;  %v7998_v48 = vadd.f32 %v18588_v52, %v7975_v49  ;;  %v18688_v45 = vmul.f32 %v18583_v57, %v7922_v15  ;;  %vm20764_vm6 = vmmov %vm20756_vm0 }
 0x755   :  { %v9768_v37 = vrot.slane %v9767_v46, 4  ;;  %v8198_v40 = vrot.slane %v8184_v54, %v16026_v4  ;;  %v8199_v19 = vcombine.high %v8191_v36, %v8191_v36  ;;  %v8207_v32 = vrot.slane %v8191_v36, %v16026_v4 }
 0x756   :  { %v14986_v58 = vpop.f32.mrf.mxu0  ;;  %v18679_v31 = vsel %vm20760_vm2, %v8932_v59, -inf  ;;  %v8233_v27 = vcombine.high %v8011_v18, %v8011_v18  ;;  %v8240_v56 = vrot.slane %v8011_v18, %v16026_v4  ;;  %v8282_v21 = vcombine.high %v8012_v50, %v8012_v50  ;;  %vm20765_vm2 = vmmov %vm20756_vm0 }
 0x757   :  { %v18685_v7 = vmax.f32 %v9767_v46, %v9768_v37  ;;  %v8200_v62 = vcombine.high %v8198_v40, %v8198_v40  ;;  %v8221_v38 = vrot.slane %v8199_v19, %v16026_v4  ;;  %v8229_v34 = vcombine.high %v8207_v32, %v8207_v32 }
 0x758   :  { %v18683_v5 = vpop.f32.mrf.mxu0  ;;  %v8247_v16 = vrot.slane %v8233_v27, %v16026_v4  ;;  %v8248_v61 = vcombine.high %v8240_v56, %v8240_v56  ;;  %v9775_v41 = vrot.slane %v18679_v31, 4  ;;  %v8214_v0 = vrot.slane %v8198_v40, %v16026_v4 }
 0x759   :  { %v18695_v63 = vrot.slane %v8200_v62, %v16026_v4  ;;  %v8256_v11 = vrot.slane %v8240_v56, %v16026_v4  ;;  %v8231_v30 = vcombine.high %v8221_v38, %v8221_v38  ;;  %v8956_v55 = vcombine.low %v8207_v32, %v8221_v38 }
 0x75a   :  { %v14989_v8 = vpop.f32.mrf.mxu0  ;;  %v8249_v15 = vcombine.high %v8247_v16, %v8247_v16  ;;  %v8289_v33 = vrot.slane %v8012_v50, %v16026_v4  ;;  %v8263_v53 = vrot.slane %v8247_v16, %v16026_v4  ;;  %v8270_v2 = vrot.slane %v8248_v61, %v16026_v4 }
 0x75b   :  { %v14448_v13 = vcombine.high %v8214_v0, %v18695_v63  ;;  %v8296_v9 = vrot.slane %v8282_v21, %v16026_v4  ;;  %v18706_v12 = vrot.slane %v8229_v34, %v16026_v4  ;;  %v18708_v51 = vcombine.low %v8231_v30, %v8214_v0 }
 0x75c   :  { %v18699_v47 = vpop.f32.mrf.mxu0  ;;  %v8277_v28 = vrot.slane %v8249_v15, %v16026_v4  ;;  %v8278_v17 = vcombine.high %v8256_v11, %v8256_v11  ;;  %v8279_v3 = vcombine.high %v8263_v53, %v8263_v53  ;;  %v8280_v20 = vcombine.high %v8270_v2, %v8270_v2 }
 0x75d   :  { %v9009_v49 = vrot.slane %v14448_v13, %v16026_v4  ;;  %v9016_v54 = vrot.slane %v8256_v11, %v16026_v4  ;;  %v18714_v36 = vrot.slane %v8956_v55, %v16026_v4  ;;  %v8993_v18 = vrot.slane %v18695_v63, %v16026_v4 }
 0x75e   :  { %v14992_v60 = vpop.f32.mrf.mxu0  ;;  %v9025_v59 = vcombine.low %v8270_v2, %v8278_v17  ;;  %v9048_v46 = vcombine.low %v8263_v53, %v8277_v28  ;;  %v8986_v58 = vrot.slane %v18708_v51, %v16026_v4  ;;  %v9039_v40 = vrot.slane %v8280_v20, %v16026_v4 }
 0x75f   :  { %v9017_v37 = vcombine.low %v9009_v49, %v9016_v54  ;;  %v8281_v19 = vcombine.high %v8277_v28, %v8277_v28  ;;  %v9062_v56 = vrot.slane %v8279_v3, %v16026_v4  ;;  %v8297_v62 = vcombine.high %v8289_v33, %v8289_v33 }
 0x760   :  { %v18718_v50 = vpop.f32.mrf.mxu0  ;;  %v9032_v32 = vrot.slane %v9025_v59, %v16026_v4  ;;  %v9055_v27 = vrot.slane %v9048_v46, %v16026_v4  ;;  %v8298_v34 = vcombine.high %v8296_v9, %v8296_v9  ;;  %v8305_v16 = vrot.slane %v8289_v33, %v16026_v4 }
 0x761   :  { %v9024_v38 = vrot.slane %v9017_v37, %v16026_v4  ;;  %v8312_v61 = vrot.slane %v8296_v9, %v16026_v4  ;;  %v8319_v63 = vrot.slane %v8297_v62, %v16026_v4  ;;  %v8013_v11 = vmax.f32 %v7998_v48, 0.0 }
 0x762   :  { %v14995_v21 = vpop.f32.mrf.mxu0  ;;  %v9040_v8 = vcombine.low %v9032_v32, %v9039_v40  ;;  %v9063_v0 = vcombine.low %v9055_v27, %v9062_v56  ;;  %v8326_v15 = vrot.slane %v8298_v34, %v16026_v4  ;;  %v9071_v53 = vcombine.low %v8281_v19, %v8305_v16 }
 0x763   :  { %v9802_v55 = vsel %vm20761_vm4, %v9024_v38, -inf  ;;  %v8328_v13 = vcombine.high %v8312_v61, %v8312_v61  ;;  %v9085_v9 = vrot.slane %v8319_v63, %v16026_v4  ;;  %v14449_v48 = vcombine.high %v8305_v16, %v8319_v63  ;;  %vm20766_vm4 = vmmov %vm20756_vm0 }
 0x764   :  { %v18730_v30 = vpop.f32.mrf.mxu0  ;;  %v9047_v2 = vrot.slane %v9040_v8, %v16026_v4  ;;  %v9070_v51 = vrot.slane %v9063_v0, %v16026_v4  ;;  %v9803_v33 = vrot.slane %v9802_v55, 4  ;;  %v8330_v17 = vcombine.high %v8326_v15, %v8326_v15 }
 0x765   :  { %v9078_v60 = vrot.slane %v9071_v53, %v16026_v4  ;;  %v9108_v3 = vrot.slane %v8312_v61, %v16026_v4  ;;  %v9117_v59 = vcombine.low %v8326_v15, %v8328_v13  ;;  %v9101_v32 = vrot.slane %v14449_v48, %v16026_v4 }
 0x766   :  { %v14998_v28 = vpop.f32.mrf.mxu0  ;;  %v9804_v20 = vmax.f32 %v9802_v55, %v9803_v33  ;;  %v9809_v49 = vsel %vm20756_vm0, %v9047_v2, -inf  ;;  %v9816_v54 = vsel %vm20762_vm1, %v9070_v51, -inf  ;;  %v8971_v27 = vcombine.low %v18714_v36, %v18706_v12  ;;  %vm20767_vm1 = vmmov %vm20756_vm0 }
 0x767   :  { %v9810_v37 = vrot.slane %v9809_v49, 4  ;;  %v9817_v40 = vrot.slane %v9816_v54, 4  ;;  %v9086_v19 = vcombine.low %v9078_v60, %v9085_v9  ;;  %v9124_v62 = vrot.slane %v9117_v59, %v16026_v4 }
 0x768   :  { %v18741_v46 = vpop.f32.mrf.mxu0  ;;  %v9805_v56 = vrot.slane %v9804_v20, 2  ;;  %v8331_v21 = vcombine.high %v8013_v11, %v8013_v11  ;;  %v9109_v61 = vcombine.low %v9101_v32, %v9108_v3  ;;  %v9131_v8 = vrot.slane %v8330_v17, %v16026_v4 }
 0x769   :  { %v18747_v34 = vmax.f32 %v9809_v49, %v9810_v37  ;;  %v9093_v16 = vrot.slane %v9086_v19, %v16026_v4  ;;  %v18751_v0 = vcombine.low %v8986_v58, %v8993_v18  ;;  %v18753_v63 = vmax.f32 %v9816_v54, %v9817_v40 }
 0x76a   :  { %v15001_v38 = vpop.f32.mrf.mxu0  ;;  %v8338_v55 = vrot.slane %v8013_v11, %v16026_v4  ;;  %v8345_v15 = vrot.slane %v8331_v21, %v16026_v4  ;;  %v18757_v13 = vmax.f32 %v9804_v20, %v9805_v56  ;;  %v9116_v53 = vrot.slane %v9109_v61, %v16026_v4 }
 0x76b   :  { %v9823_v2 = vsel %vm20763_vm7, %v9093_v16, -inf  ;;  %v7999_v51 = vadd.f32 %v18588_v52, %v18688_v45  ;;  %v18765_v17 = vcombine.low %v9124_v62, %v9131_v8  ;;  %v7977_v60 = vmul.f32 %v18583_v57, %v18651_v22  ;;  %vm20768_vm7 = vmmov %vm20756_vm0 }
 0x76c   :  { %v9824_v33 = vrot.slane %v9823_v2, 4  ;;  %v8346_v9 = vcombine.high %v8338_v55, %v8338_v55  ;;  %v8347_v28 = vcombine.high %v8345_v15, %v8345_v15  ;;  %v8354_v18 = vrot.slane %v8338_v55, %v16026_v4 }
 0x76d   :  { %v8014_v11 = vmax.f32 %v7999_v51, 0.0  ;;  %v18770_v48 = vsel %vm20764_vm6, %v9116_v53, -inf  ;;  %v8361_v3 = vrot.slane %v8345_v15, %v16026_v4  ;;  %v8000_v37 = vadd.f32 %v18588_v52, %v7977_v60  ;;  %vm20769_vm6 = vmmov %vm20756_vm0 }
 0x76e   :  { %v8368_v45 = vrot.slane %v8346_v9, %v16026_v4  ;;  %v8375_v20 = vrot.slane %v8347_v28, %v16026_v4  ;;  %v18775_v49 = vmax.f32 %v9823_v2, %v9824_v33  ;;  %v8376_v40 = vcombine.high %v8354_v18, %v8354_v18 }
 0x76f   :  { %v8380_v54 = vcombine.high %v8014_v11, %v8014_v11  ;;  %v8387_v59 = vrot.slane %v8014_v11, %v16026_v4  ;;  %v8015_v55 = vmax.f32 %v8000_v37, 0.0  ;;  %v9763_v36 = vrot.slane %v18661_v29, 2 }
 0x770   :  { %v8378_v19 = vcombine.high %v8368_v45, %v8368_v45  ;;  %v9140_v32 = vcombine.low %v8354_v18, %v8368_v45  ;;  %v14450_v22 = vcombine.high %v8361_v3, %v8375_v20  ;;  %v9177_v56 = vrot.slane %v8375_v20, %v16026_v4 }
 0x771   :  { %v8394_v62 = vrot.slane %v8380_v54, %v16026_v4  ;;  %v8395_v21 = vcombine.high %v8387_v59, %v8387_v59  ;;  %v8403_v38 = vrot.slane %v8387_v59, %v16026_v4  ;;  %v18789_v33 = vrot.slane %v8376_v40, %v16026_v4 }
 0x772   :  { %v18783_v16 = vrot.slane %v9140_v32, %v16026_v4  ;;  %v9163_v61 = vcombine.low %v8378_v19, %v8361_v3  ;;  %v9193_v8 = vrot.slane %v14450_v22, %v16026_v4  ;;  %v8429_v18 = vcombine.high %v8015_v55, %v8015_v55 }
 0x773   :  { %v8396_v15 = vcombine.high %v8394_v62, %v8394_v62  ;;  %v8410_v53 = vrot.slane %v8394_v62, %v16026_v4  ;;  %v8417_v2 = vrot.slane %v8395_v21, %v16026_v4  ;;  %v8425_v51 = vcombine.high %v8403_v38, %v8403_v38 }
 0x774   :  { %v9170_v9 = vrot.slane %v9163_v61, %v16026_v4  ;;  %v9200_v28 = vrot.slane %v8403_v38, %v16026_v4  ;;  %v8436_v59 = vrot.slane %v8015_v55, %v16026_v4  ;;  %v8443_v37 = vrot.slane %v8429_v18, %v16026_v4 }
 0x775   :  { %v8424_v11 = vrot.slane %v8396_v15, %v16026_v4  ;;  %v8426_v60 = vcombine.high %v8410_v53, %v8410_v53  ;;  %v8427_v3 = vcombine.high %v8417_v2, %v8417_v2  ;;  %v9209_v45 = vcombine.low %v8417_v2, %v8425_v51 }
 0x776   :  { %v18795_v54 = vcombine.low %v9193_v8, %v9200_v28  ;;  %v18801_v19 = vcombine.low %v9170_v9, %v9177_v56  ;;  %v8444_v38 = vcombine.high %v8436_v59, %v8436_v59  ;;  %v8445_v61 = vcombine.high %v8443_v37, %v8443_v37 }
 0x777   :  { %v9216_v32 = vrot.slane %v9209_v45, %v16026_v4  ;;  %v9232_v22 = vcombine.low %v8410_v53, %v8424_v11  ;;  %v9223_v62 = vrot.slane %v8427_v3, %v16026_v4  ;;  %v8428_v21 = vcombine.high %v8424_v11, %v8424_v11 }
 0x778   :  { %v9246_v15 = vrot.slane %v8426_v60, %v16026_v4  ;;  %v8452_v55 = vrot.slane %v8436_v59, %v16026_v4  ;;  %v8459_v2 = vrot.slane %v8443_v37, %v16026_v4  ;;  %v8466_v51 = vrot.slane %v8444_v38, %v16026_v4 }
 0x779   :  { %v9239_v8 = vrot.slane %v9232_v22, %v16026_v4  ;;  %v8473_v56 = vrot.slane %v8445_v61, %v16026_v4  ;;  %v7978_v53 = vmul.f32 %v18583_v57, %v18667_v43  ;;  %v7979_v9 = vmul.f32 %v18583_v57, %v18683_v5 }
 0x77a   :  { %v8475_v11 = vcombine.high %v8459_v2, %v8459_v2  ;;  %v9255_v60 = vcombine.low %v8428_v21, %v8452_v55  ;;  %v9269_v45 = vrot.slane %v8466_v51, %v16026_v4  ;;  %v14451_v59 = vcombine.high %v8452_v55, %v8466_v51 }
 0x77b   :  { %v9247_v18 = vcombine.low %v9239_v8, %v9246_v15  ;;  %v8477_v3 = vcombine.high %v8473_v56, %v8473_v56  ;;  %v8001_v37 = vadd.f32 %v18588_v52, %v7978_v53  ;;  %v8002_v61 = vadd.f32 %v18588_v52, %v7979_v9  ;;  %v14461_v53 = vld [vmem:[%s20596_s6 + $0x88] sm:$0xff] }
 0x77c   :  { %v9262_v38 = vrot.slane %v9255_v60, %v16026_v4  ;;  %v9301_v43 = vcombine.low %v8473_v56, %v8475_v11  ;;  %v9285_v5 = vrot.slane %v14451_v59, %v16026_v4  ;;  %v9292_v26 = vrot.slane %v8459_v2, %v16026_v4  ;;  %v14460_v56 = vld [vmem:[%s20596_s6 + $0x80] sm:$0xff]  ;;  %15003 = vmatpush3.msra.mxu1 %v14461_v53 }
 0x77d   :  { %v9254_v22 = vrot.slane %v9247_v18, %v16026_v4  ;;  %v9315_v8 = vrot.slane %v8477_v3, %v16026_v4  ;;  %v8016_v21 = vmax.f32 %v8001_v37, 0.0  ;;  %v8017_v51 = vmax.f32 %v8002_v61, 0.0  ;;  %15004 = vmatprep.subr.mxu1 %v20640_v10 }
 0x77e   :  { %v9270_v28 = vcombine.low %v9262_v38, %v9269_v45  ;;  %v9308_v55 = vrot.slane %v9301_v43, %v16026_v4  ;;  %v9293_v18 = vcombine.low %v9285_v5, %v9292_v26  ;;  %v18834_v60 = vcombine.low %v9216_v32, %v9223_v62  ;;  %15005 = vmatpush3.msra.mxu1 %v14460_v56 }
 0x77f   :  { %v9872_v15 = vsel %vm20765_vm2, %v9254_v22, -inf  ;;  %v8478_v2 = vcombine.high %v8016_v21, %v8016_v21  ;;  %v8485_v11 = vrot.slane %v8016_v21, %v16026_v4  ;;  %v8527_v59 = vcombine.high %v8017_v51, %v8017_v51  ;;  %15006 = vmatprep.subr.mxu1 %v20640_v10  ;;  %vm20770_vm2 = vmmov %vm20756_vm0 }
 0x780   :  { %v9873_v9 = vrot.slane %v9872_v15, 4  ;;  %v9277_v3 = vrot.slane %v9270_v28, %v16026_v4  ;;  %v9316_v45 = vcombine.low %v9308_v55, %v9315_v8  ;;  %v9300_v37 = vrot.slane %v9293_v18, %v16026_v4 }
 0x781   :  { %v8492_v22 = vrot.slane %v8478_v2, %v16026_v4  ;;  %v8493_v38 = vcombine.high %v8485_v11, %v8485_v11  ;;  %v7980_v26 = vmul.f32 %v18583_v57, %v18699_v47  ;;  %v8501_v62 = vrot.slane %v8485_v11, %v16026_v4 }
 0x782   :  { %v9323_v43 = vrot.slane %v9316_v45, %v16026_v4  ;;  %v9879_v32 = vsel %vm20766_vm4, %v9277_v3, -inf  ;;  %v8534_v28 = vrot.slane %v8017_v51, %v16026_v4  ;;  %v18847_v61 = vmax.f32 %v9872_v15, %v9873_v9  ;;  %vm20771_vm4 = vmmov %vm20756_vm0 }
 0x783   :  { %v9880_v5 = vrot.slane %v9879_v32, 4  ;;  %v9886_v8 = vsel %vm20756_vm0, %v9300_v37, -inf  ;;  %v8494_v21 = vcombine.high %v8492_v22, %v8492_v22  ;;  %v8515_v53 = vrot.slane %v8493_v38, %v16026_v4 }
 0x784   :  { %v9887_v55 = vrot.slane %v9886_v8, 4  ;;  %v9893_v47 = vsel %vm20767_vm1, %v9323_v43, -inf  ;;  %v8541_v56 = vrot.slane %v8527_v59, %v16026_v4  ;;  %v8508_v11 = vrot.slane %v8492_v22, %v16026_v4  ;;  %vm20772_vm1 = vmmov %vm20756_vm0 }
 0x785   :  { %v9881_v18 = vmax.f32 %v9879_v32, %v9880_v5  ;;  %v9894_v2 = vrot.slane %v9893_v47, 4  ;;  %v8522_v51 = vrot.slane %v8494_v21, %v16026_v4  ;;  %v8523_v15 = vcombine.high %v8501_v62, %v8501_v62 }
 0x786   :  { %v9888_v3 = vmax.f32 %v9886_v8, %v9887_v55  ;;  %v8525_v9 = vcombine.high %v8515_v53, %v8515_v53  ;;  %v9324_v45 = vcombine.low %v8501_v62, %v8515_v53  ;;  %v8542_v22 = vcombine.high %v8534_v28, %v8534_v28 }
 0x787   :  { %v9882_v20 = vrot.slane %v9881_v18, 2  ;;  %v18855_v37 = vmax.f32 %v9893_v47, %v9894_v2  ;;  %v9361_v58 = vrot.slane %v8522_v51, %v16026_v4  ;;  %v14452_v43 = vcombine.high %v8508_v11, %v8522_v51 }
 0x788   :  { %v9889_v40 = vrot.slane %v9888_v3, 2  ;;  %v9331_v38 = vrot.slane %v9324_v45, %v16026_v4  ;;  %v9338_v59 = vrot.slane %v8523_v15, %v16026_v4  ;;  %v9347_v32 = vcombine.low %v8525_v9, %v8508_v11 }
 0x789   :  { %v18860_v5 = vmax.f32 %v9881_v18, %v9882_v20  ;;  %v8543_v21 = vcombine.high %v8541_v56, %v8541_v56  ;;  %v8550_v8 = vrot.slane %v8534_v28, %v16026_v4  ;;  %v8557_v53 = vrot.slane %v8541_v56, %v16026_v4 }
 0x78a   :  { %v18863_v55 = vmax.f32 %v9888_v3, %v9889_v40  ;;  %v9339_v62 = vcombine.low %v9331_v38, %v9338_v59  ;;  %v9354_v47 = vrot.slane %v9347_v32, %v16026_v4  ;;  %v8564_v51 = vrot.slane %v8542_v22, %v16026_v4 }
 0x78b   :  { %v8571_v15 = vrot.slane %v8543_v21, %v16026_v4  ;;  %v8572_v11 = vcombine.high %v8550_v8, %v8550_v8  ;;  %v8573_v28 = vcombine.high %v8557_v53, %v8557_v53  ;;  %v9377_v3 = vrot.slane %v14452_v43, %v16026_v4 }
 0x78c   :  { %v9346_v18 = vrot.slane %v9339_v62, %v16026_v4  ;;  %v9362_v9 = vcombine.low %v9354_v47, %v9361_v58  ;;  %v8574_v40 = vcombine.high %v8564_v51, %v8564_v51  ;;  %v9384_v45 = vrot.slane %v8550_v8, %v16026_v4 }
 0x78d   :  { %v9393_v38 = vcombine.low %v8564_v51, %v8572_v11  ;;  %v9416_v32 = vcombine.low %v8557_v53, %v8571_v15  ;;  %v18877_v22 = vrot.slane %v8573_v28, %v16026_v4  ;;  %v8003_v8 = vadd.f32 %v18588_v52, %v7980_v26 }
 0x78e   :  { %v9369_v56 = vrot.slane %v9362_v9, %v16026_v4  ;;  %v9900_v59 = vsel %vm20768_vm7, %v9346_v18, -inf  ;;  %v9385_v20 = vcombine.low %v9377_v3, %v9384_v45  ;;  %v9407_v58 = vrot.slane %v8574_v40, %v16026_v4  ;;  %vm20773_vm7 = vmmov %vm20756_vm0 }
 0x78f   :  { %v9901_v21 = vrot.slane %v9900_v59, 4  ;;  %v9400_v62 = vrot.slane %v9393_v38, %v16026_v4  ;;  %v18885_v43 = vrot.slane %v9416_v32, %v16026_v4  ;;  %v8575_v51 = vcombine.high %v8571_v15, %v8571_v15 }
 0x790   :  { %v18882_v47 = vsel %vm20769_vm6, %v9369_v56, -inf  ;;  %v9392_v18 = vrot.slane %v9385_v20, %v16026_v4  ;;  %v8018_v40 = vmax.f32 %v8003_v8, 0.0  ;;  %v8955_v3 = vrot.slane %v18673_v1, %v16026_v4  ;;  %vm20774_vm6 = vmmov %vm20756_vm0 }
 0x791   :  { %v18888_v11 = vmax.f32 %v9900_v59, %v9901_v21  ;;  %v18892_v9 = vcombine.low %v9400_v62, %v9407_v58  ;;  %v8978_v26 = vrot.slane %v8971_v27, %v16026_v4  ;;  %v9744_v38 = vrot.slane %v18646_v6, 1 }
 0x792   :  { %v9914_v20 = vsel %vm20770_vm2, %v9392_v18, -inf  ;;  %v8576_v59 = vcombine.high %v8018_v40, %v8018_v40  ;;  %v8583_v32 = vrot.slane %v8018_v40, %v16026_v4  ;;  %v9757_v1 = vmax.f32 %v18644_v25, %v9756_v42  ;;  %vm20777_vm2 = vmmov %vm20756_vm0 }
 0x793   :  { %v9915_v56 = vrot.slane %v9914_v20, 4  ;;  %v18912_v12 = vmax.f32 %v18646_v6, %v9744_v38  ;;  %v9770_v27 = vrot.slane %v18685_v7, 2  ;;  %v9776_v21 = vmax.f32 %v18679_v31, %v9775_v41 }
 0x794   :  { %v8590_v58 = vrot.slane %v8576_v59, %v16026_v4  ;;  %v8591_v8 = vcombine.high %v8583_v32, %v8583_v32  ;;  %v8599_v18 = vrot.slane %v8583_v32, %v16026_v4  ;;  %v9758_v40 = vrot.slane %v9757_v1, 1 }
 0x795   :  { %v18919_v62 = vmax.f32 %v9914_v20, %v9915_v56  ;;  %v9764_v25 = vmax.f32 %v18661_v29, %v9763_v36  ;;  %v9771_v6 = vmax.f32 %v18685_v7, %v9770_v27  ;;  %v9777_v42 = vrot.slane %v9776_v21, 2 }
 0x796   :  { %v8592_v38 = vcombine.high %v8590_v58, %v8590_v58  ;;  %v8606_v45 = vrot.slane %v8590_v58, %v16026_v4  ;;  %v8613_v53 = vrot.slane %v8591_v8, %v16026_v4  ;;  %v9439_v15 = vcombine.low %v8575_v51, %v8599_v18 }
 0x797   :  { %v18927_v31 = vmax.f32 %v9757_v1, %v9758_v40  ;;  %v9765_v41 = vrot.slane %v9764_v25, 1  ;;  %v9772_v20 = vrot.slane %v9771_v6, 1  ;;  %v9778_v56 = vmax.f32 %v9776_v21, %v9777_v42 }
 0x798   :  { %v8620_v59 = vrot.slane %v8592_v38, %v16026_v4  ;;  %v8622_v32 = vcombine.high %v8606_v45, %v8606_v45  ;;  %v9446_v2 = vrot.slane %v9439_v15, %v16026_v4  ;;  %v9453_v29 = vrot.slane %v8613_v53, %v16026_v4 }
 0x799   :  { %v14453_v7 = vcombine.high %v8599_v18, %v8613_v53  ;;  %v9476_v36 = vrot.slane %v8606_v45, %v16026_v4  ;;  %v18933_v27 = vmax.f32 %v9764_v25, %v9765_v41  ;;  %v18935_v58 = vmax.f32 %v9771_v6, %v9772_v20 }
 0x79a   :  { %v8624_v51 = vcombine.high %v8620_v59, %v8620_v59  ;;  %v18937_v1 = vcombine.low %v9446_v2, %v9453_v29  ;;  %v9485_v8 = vcombine.low %v8620_v59, %v8622_v32  ;;  %v9779_v40 = vrot.slane %v9778_v56, 1 }
 0x79b   :  { %v9469_v21 = vrot.slane %v14453_v7, %v16026_v4  ;;  %v9781_v42 = vsel %vm20771_vm4, %v8955_v3, -inf  ;;  %v9788_v15 = vsel %vm20756_vm0, %v8978_v26, -inf  ;;  %v10086_v53 = vsel %vm2598_vm8, %v18669_v24, %v18912_v12  ;;  %vm20778_vm4 = vmmov %vm20756_vm0 }
 0x79c   :  { %v9492_v45 = vrot.slane %v9485_v8, %v16026_v4  ;;  %v9499_v18 = vrot.slane %v8624_v51, %v16026_v4  ;;  %v18947_v25 = vmax.f32 %v9778_v56, %v9779_v40  ;;  %v9782_v2 = vrot.slane %v9781_v42, 4 }
 0x79d   :  { %v9477_v6 = vcombine.low %v9469_v21, %v9476_v36  ;;  %v9789_v38 = vrot.slane %v9788_v15, 4  ;;  %v10087_v41 = vsel %vm2600_vm9, %v18927_v31, %v10086_v53  ;;  %v7981_v3 = vmul.f32 %v18583_v57, %v18718_v50 }
 0x79e   :  { %v9500_v26 = vcombine.low %v9492_v45, %v9499_v18  ;;  %v9783_v20 = vmax.f32 %v9781_v42, %v9782_v2  ;;  %v10088_v59 = vsel %vm2602_vm10, %v18933_v27, %v10087_v41  ;;  %v9001_v32 = vrot.slane %v18751_v0, %v16026_v4 }
 0x79f   :  { %v9484_v56 = vrot.slane %v9477_v6, %v16026_v4  ;;  %v9790_v29 = vmax.f32 %v9788_v15, %v9789_v38  ;;  %v10089_v7 = vsel %vm2604_vm11, %v18935_v58, %v10088_v59  ;;  %v8004_v36 = vadd.f32 %v18588_v52, %v7981_v3 }
 0x7a0   :  { %v9507_v51 = vrot.slane %v9500_v26, %v16026_v4  ;;  %v9784_v8 = vrot.slane %v9783_v20, 2  ;;  %v10090_v57 = vsel %vm2606_vm12, %v18947_v25, %v10089_v7  ;;  %v9795_v50 = vsel %vm20772_vm1, %v9001_v32, -inf  ;;  %vm20781_vm1 = vmmov %vm20756_vm0 }
 0x7a1   :  { %v9942_v40 = vsel %vm20773_vm7, %v9484_v56, -inf  ;;  %v9791_v21 = vrot.slane %v9790_v29, 2  ;;  %v8019_v0 = vmax.f32 %v8004_v36, 0.0  ;;  %v9796_v42 = vrot.slane %v9795_v50, 4  ;;  %vm20782_vm7 = vmmov %vm20756_vm0 }
 0x7a2   :  { %v9943_v53 = vrot.slane %v9942_v40, 4  ;;  %v9949_v15 = vsel %vm20774_vm6, %v9507_v51, -inf  ;;  %v9785_v45 = vmax.f32 %v9783_v20, %v9784_v8  ;;  %v10136_v52 = vsel %vm2598_vm8, %v18927_v31, %v18669_v24  ;;  %vm20783_vm6 = vmmov %vm20756_vm0 }
 0x7a3   :  { %v9950_v18 = vrot.slane %v9949_v15, 4  ;;  %v9792_v2 = vmax.f32 %v9790_v29, %v9791_v21  ;;  %v8625_v6 = vcombine.high %v8019_v0, %v8019_v0  ;;  %v8632_v38 = vrot.slane %v8019_v0, %v16026_v4 }
 0x7a4   :  { %v18971_v41 = vmax.f32 %v9942_v40, %v9943_v53  ;;  %v9786_v3 = vrot.slane %v9785_v45, 1  ;;  %v9797_v26 = vmax.f32 %v9795_v50, %v9796_v42  ;;  %v10137_v59 = vsel %vm2600_vm9, %v18933_v27, %v10136_v52 }
 0x7a5   :  { %v18975_v32 = vmax.f32 %v9949_v15, %v9950_v18  ;;  %v9793_v56 = vrot.slane %v9792_v2, 1  ;;  %v8639_v20 = vrot.slane %v8625_v6, %v16026_v4  ;;  %v8640_v7 = vcombine.high %v8632_v38, %v8632_v38 }
 0x7a6   :  { %v18979_v51 = vmax.f32 %v9785_v45, %v9786_v3  ;;  %v8648_v29 = vrot.slane %v8632_v38, %v16026_v4  ;;  %v9798_v8 = vrot.slane %v9797_v26, 2  ;;  %v10138_v52 = vsel %vm2602_vm10, %v18935_v58, %v10137_v59 }
 0x7a7   :  { %v9794_v40 = vmax.f32 %v9792_v2, %v9793_v56  ;;  %v8641_v21 = vcombine.high %v8639_v20, %v8639_v20  ;;  %v8655_v50 = vrot.slane %v8639_v20, %v16026_v4  ;;  %v8662_v0 = vrot.slane %v8640_v7, %v16026_v4 }
 0x7a8   :  { %v10091_v42 = vsel %vm2608_vm13, %v18979_v51, %v10090_v57  ;;  %v8670_v53 = vcombine.high %v8648_v29, %v8648_v29  ;;  %v9799_v15 = vmax.f32 %v9797_v26, %v9798_v8  ;;  %v10139_v56 = vsel %vm2604_vm11, %v18947_v25, %v10138_v52 }
 0x7a9   :  { %v10092_v45 = vsel %vm2610_vm14, %v9794_v40, %v10091_v42  ;;  %v8669_v18 = vrot.slane %v8641_v21, %v16026_v4  ;;  %v8672_v6 = vcombine.high %v8662_v0, %v8662_v0  ;;  %v9508_v38 = vcombine.low %v8648_v29, %v8662_v0  ;;  %v15577_v0 = vld [vmem:[%s20633_s2 + $0x2] ss:$0 sm:$0xff] }
 0x7aa   :  { %10116 = vrot.lane.b32.xlu0 %v10092_v45, %s15620_s27  ;;  %v9522_v2 = vrot.slane %v8670_v53, %v16026_v4  ;;  %v9800_v3 = vrot.slane %v9799_v15, 1  ;;  %v9807_v57 = vrot.slane %v18757_v13, 1  ;;  %v10140_v29 = vsel %vm2606_vm12, %v18979_v51, %v10139_v56 }
 0x7ab   :  { %v9515_v26 = vrot.slane %v9508_v38, %v16026_v4  ;;  %v9531_v20 = vcombine.low %v8672_v6, %v8655_v50  ;;  %v9545_v59 = vrot.slane %v8669_v18, %v16026_v4  ;;  %v14454_v7 = vcombine.high %v8655_v50, %v8669_v18 }
 0x7ac   :  { %v9801_v8 = vmax.f32 %v9799_v15, %v9800_v3  ;;  %v19000_v21 = vmax.f32 %v18757_v13, %v9807_v57  ;;  %v7982_v42 = vmul.f32 %v15577_v0, %v18730_v30  ;;  %v10141_v45 = vsel %vm2608_vm13, %v9794_v40, %v10140_v29  ;;  %v14459_v15 = vld [vmem:[%s20596_s6 + $0x78] sm:$0xff]  ;;  %v15578_v30 = vld [vmem:[%s20595_s5 + $0x2] ss:$0 sm:$0xff] }
 0x7ad   :  { %v9523_v53 = vcombine.low %v9515_v26, %v9522_v2  ;;  %v9538_v52 = vrot.slane %v9531_v20, %v16026_v4  ;;  %v9561_v50 = vrot.slane %v14454_v7, %v16026_v4  ;;  %15007 = vmatpush3.msra.mxu1 %v14459_v15  ;;  %v14458_v2 = vld [vmem:[%s20596_s6 + $0x70] sm:$0xff]  ;;  %v7983_v57 = vmul.f32 %v15577_v0, %v18741_v46 }
 0x7ae   :  { %v10142_v13 = vsel %vm2610_vm14, %v9801_v8, %v10141_v45  ;;  %v10055_v18 = vsel %vm2598_vm8, %v9801_v8, %v9794_v40  ;;  %v19016_v6 = vsel %vm2598_vm8, %v19000_v21, %v9801_v8  ;;  %v8005_v38 = vadd.f32 %v15578_v30, %v7982_v42  ;;  %15008 = vmatprep.subr.mxu1 %v20640_v10 }
 0x7af   :  { %v9530_v3 = vrot.slane %v9523_v53, %v16026_v4  ;;  %v9546_v56 = vcombine.low %v9538_v52, %v9545_v59  ;;  %10166 = vrot.lane.b32.xlu1 %v10142_v13, %s15621_s3  ;;  %v19028_v40 = vsel %vm2600_vm9, %v19000_v21, %v10055_v18  ;;  %v20775_v7 = vcombine.low %v18783_v16, %v18789_v33 }
 0x7b0   :  { %v8020_v26 = vmax.f32 %v8005_v38, 0.0  ;;  %v20776_v59 = vrot.slane %v18747_v34, 2  ;;  %v8006_v0 = vadd.f32 %v15578_v30, %v7983_v57  ;;  %v9819_v53 = vrot.slane %v18753_v63, 2  ;;  %15009 = vmatpush3.msra.mxu1 %v14458_v2 }
 0x7b1   :  { %v19037_v8 = vrot.slane %v20775_v7, %v16026_v4  ;;  %v9553_v42 = vrot.slane %v9546_v56, %v16026_v4  ;;  %v9956_v46 = vsel %vm20777_vm2, %v9530_v3, -inf  ;;  %15010 = vmatprep.subr.mxu1 %v20640_v10  ;;  %v9826_v18 = vrot.slane %v18775_v49, 2  ;;  %vm20785_vm2 = vmmov %vm20756_vm0 }
 0x7b2   :  { %v9813_v29 = vmax.f32 %v18747_v34, %v20776_v59  ;;  %v9957_v52 = vrot.slane %v9956_v46, 4  ;;  %v8674_v45 = vcombine.high %v8020_v26, %v8020_v26  ;;  %v8681_v16 = vrot.slane %v8020_v26, %v16026_v4 }
 0x7b3   :  { %v19049_v15 = vsel %vm20778_vm4, %v9553_v42, -inf  ;;  %v8021_v34 = vmax.f32 %v8006_v0, 0.0  ;;  %v9820_v13 = vmax.f32 %v18753_v63, %v9819_v53  ;;  %vm20787_vm4 = vmmov %vm20756_vm0 }
 0x7b4   :  { %v9814_v33 = vrot.slane %v9813_v29, 1  ;;  %v19053_v38 = vmax.f32 %v9956_v46, %v9957_v52  ;;  %v8688_v2 = vrot.slane %v8674_v45, %v16026_v4  ;;  %v8689_v3 = vcombine.high %v8681_v16, %v8681_v16 }
 0x7b5   :  { %v8697_v56 = vrot.slane %v8681_v16, %v16026_v4  ;;  %v8723_v57 = vcombine.high %v8021_v34, %v8021_v34  ;;  %v8730_v26 = vrot.slane %v8021_v34, %v16026_v4 }
 0x7b6   :  { %v19059_v7 = vmax.f32 %v9813_v29, %v9814_v33  ;;  %v8690_v42 = vcombine.high %v8688_v2, %v8688_v2  ;;  %v8704_v63 = vrot.slane %v8688_v2, %v16026_v4  ;;  %v8711_v46 = vrot.slane %v8689_v3, %v16026_v4 }
 0x7b7   :  { %v8719_v0 = vcombine.high %v8697_v56, %v8697_v56  ;;  %v9568_v53 = vrot.slane %v8697_v56, %v16026_v4  ;;  %v8737_v52 = vrot.slane %v8723_v57, %v16026_v4  ;;  %v8738_v45 = vcombine.high %v8730_v26, %v8730_v26 }
 0x7b8   :  { %v8718_v16 = vrot.slane %v8690_v42, %v16026_v4  ;;  %v8720_v30 = vcombine.high %v8704_v63, %v8704_v63  ;;  %v8721_v36 = vcombine.high %v8711_v46, %v8711_v46  ;;  %v8746_v29 = vrot.slane %v8730_v26, %v16026_v4 }
 0x7b9   :  { %v9569_v33 = vcombine.low %v9561_v50, %v9568_v53  ;;  %v9577_v34 = vcombine.low %v8711_v46, %v8719_v0  ;;  %v8739_v59 = vcombine.high %v8737_v52, %v8737_v52  ;;  %v8753_v28 = vrot.slane %v8737_v52, %v16026_v4 }
 0x7ba   :  { %v9591_v2 = vrot.slane %v8721_v36, %v16026_v4  ;;  %v9600_v3 = vcombine.low %v8704_v63, %v8718_v16  ;;  %v19071_v20 = vrot.slane %v8720_v30, %v16026_v4  ;;  %v8722_v56 = vcombine.high %v8718_v16, %v8718_v16 }
 0x7bb   :  { %v9576_v57 = vrot.slane %v9569_v33, %v16026_v4  ;;  %v9584_v42 = vrot.slane %v9577_v34, %v16026_v4  ;;  %v8760_v14 = vrot.slane %v8738_v45, %v16026_v4  ;;  %v8767_v26 = vrot.slane %v8739_v59, %v16026_v4 }
 0x7bc   :  { %v19078_v50 = vrot.slane %v9600_v3, %v16026_v4  ;;  %v8769_v46 = vcombine.high %v8753_v28, %v8753_v28  ;;  %v9623_v0 = vcombine.low %v8722_v56, %v8746_v29  ;;  %v9660_v36 = vrot.slane %v8753_v28, %v16026_v4 }
 0x7bd   :  { %v19081_v63 = vcombine.low %v9584_v42, %v9591_v2  ;;  %v9970_v30 = vsel %vm20756_vm0, %v9576_v57, -inf  ;;  %v8771_v53 = vcombine.high %v8767_v26, %v8767_v26  ;;  %v9637_v52 = vrot.slane %v8760_v14, %v16026_v4 }
 0x7be   :  { %v9971_v45 = vrot.slane %v9970_v30, 4  ;;  %v9630_v59 = vrot.slane %v9623_v0, %v16026_v4  ;;  %v14455_v33 = vcombine.high %v8746_v29, %v8760_v14  ;;  %v19090_v3 = vcombine.low %v8767_v26, %v8769_v46 }
 0x7bf   :  { %v19093_v28 = vrot.slane %v8771_v53, %v16026_v4  ;;  %v9821_v2 = vrot.slane %v9820_v13, 1  ;;  %v9827_v16 = vmax.f32 %v18775_v49, %v9826_v18  ;;  %v20779_v26 = vrot.slane %v18770_v48, 4 }
 0x7c0   :  { %v19095_v56 = vmax.f32 %v9970_v30, %v9971_v45  ;;  %v19097_v57 = vcombine.low %v9630_v59, %v9637_v52  ;;  %v9653_v42 = vrot.slane %v14455_v33, %v16026_v4  ;;  %v20780_v0 = vrot.slane %v18765_v17, %v16026_v4  ;;  %v14457_v17 = vld [vmem:[%s20596_s6 + $0x68] sm:$0xff] }
 0x7c1   :  { %v19103_v29 = vmax.f32 %v9820_v13, %v9821_v2  ;;  %v9832_v46 = vmax.f32 %v18770_v48, %v20779_v26  ;;  %v9828_v52 = vrot.slane %v9827_v16, 1  ;;  %v9844_v49 = vsel %vm20782_vm7, %v19037_v8, -inf  ;;  %15011 = vmatpush3.msra.mxu1 %v14457_v17  ;;  %vm20794_vm7 = vmmov %vm20756_vm0 }
 0x7c2   :  { %v9837_v30 = vsel %vm20781_vm1, %v20780_v0, -inf  ;;  %v19112_v53 = vcombine.low %v9653_v42, %v9660_v36  ;;  %v9845_v59 = vrot.slane %v9844_v49, 4  ;;  %v10094_v13 = vsel %vm2600_vm9, %v19059_v7, %v19016_v6  ;;  %15012 = vmatprep.subr.mxu1 %v20640_v10  ;;  %vm20793_vm1 = vmmov %vm20756_vm0 }
 0x7c3   :  { %v9838_v45 = vrot.slane %v9837_v30, 4  ;;  %v9833_v18 = vrot.slane %v9832_v46, 2  ;;  %v9185_v48 = vrot.slane %v18801_v19, %v16026_v4  ;;  %v19124_v36 = vmax.f32 %v9827_v16, %v9828_v52 }
 0x7c4   :  { %v10095_v2 = vsel %vm2602_vm10, %v19103_v29, %v10094_v13  ;;  %v10143_v8 = vsel %vm2598_vm8, %v19059_v7, %v19000_v21  ;;  %v9846_v6 = vmax.f32 %v9844_v49, %v9845_v59  ;;  %v20786_v17 = vcombine.low %v18885_v43, %v18877_v22 }
 0x7c5   :  { %v9839_v33 = vmax.f32 %v9837_v30, %v9838_v45  ;;  %v9834_v42 = vmax.f32 %v9832_v46, %v9833_v18  ;;  %v9851_v26 = vsel %vm20783_vm6, %v9185_v48, -inf  ;;  %v10144_v19 = vsel %vm2600_vm9, %v19103_v29, %v10143_v8  ;;  %vm20800_vm6 = vmmov %vm20756_vm0 }
 0x7c6   :  { %v10096_v0 = vsel %vm2604_vm11, %v19124_v36, %v10095_v2  ;;  %v9852_v30 = vrot.slane %v9851_v26, 4  ;;  %v10145_v52 = vsel %vm2602_vm10, %v19124_v36, %v10144_v19  ;;  %v9847_v21 = vrot.slane %v9846_v6, 2 }
 0x7c7   :  { %v9840_v16 = vrot.slane %v9839_v33, 2  ;;  %v9835_v45 = vrot.slane %v9834_v42, 1  ;;  %v20784_v46 = vrot.slane %v18795_v54, %v16026_v4  ;;  %v9231_v18 = vrot.slane %v18834_v60, %v16026_v4 }
 0x7c8   :  { %v9853_v13 = vmax.f32 %v9851_v26, %v9852_v30  ;;  %v9438_v2 = vrot.slane %v20786_v17, %v16026_v4  ;;  %v9848_v19 = vmax.f32 %v9846_v6, %v9847_v21  ;;  %v20788_v54 = vrot.slane %v18860_v5, 1 }
 0x7c9   :  { %v9858_v49 = vsel %vm20785_vm2, %v20784_v46, -inf  ;;  %v9841_v59 = vmax.f32 %v9839_v33, %v9840_v16  ;;  %v19149_v8 = vmax.f32 %v9834_v42, %v9835_v45  ;;  %v9865_v14 = vsel %vm20787_vm4, %v9231_v18, -inf  ;;  %vm20801_vm2 = vmmov %vm20756_vm0 }
 0x7ca   :  { %v9859_v48 = vrot.slane %v9858_v49, 4  ;;  %v19155_v46 = vmax.f32 %v18860_v5, %v20788_v54  ;;  %v9854_v60 = vrot.slane %v9853_v13, 2  ;;  %v9866_v26 = vrot.slane %v9865_v14, 4  ;;  %vm20802_vm4 = vmmov %vm20756_vm0 }
 0x7cb   :  { %v9842_v34 = vrot.slane %v9841_v59, 1  ;;  %v9849_v16 = vrot.slane %v9848_v19, 1  ;;  %v10097_v30 = vsel %vm2606_vm12, %v19149_v8, %v10096_v0  ;;  %v10146_v22 = vsel %vm2604_vm11, %v19149_v8, %v10145_v52 }
 0x7cc   :  { %v9860_v33 = vmax.f32 %v9858_v49, %v9859_v48  ;;  %v20789_v43 = vrot.slane %v18863_v55, 1  ;;  %v9855_v5 = vmax.f32 %v9853_v13, %v9854_v60  ;;  %v9867_v21 = vmax.f32 %v9865_v14, %v9866_v26 }
 0x7cd   :  { %v19166_v6 = vmax.f32 %v9841_v59, %v9842_v34  ;;  %v19168_v18 = vmax.f32 %v9848_v19, %v9849_v16  ;;  %v9896_v49 = vrot.slane %v18855_v37, 2  ;;  %v20790_v48 = vrot.slane %v18888_v11, 2 }
 0x7ce   :  { %v19164_v42 = vmax.f32 %v18863_v55, %v20789_v43  ;;  %v9861_v45 = vrot.slane %v9860_v33, 2  ;;  %v20791_v52 = vrot.slane %v18882_v47, 4  ;;  %v9856_v34 = vrot.slane %v9855_v5, 1 }
 0x7cf   :  { %v9904_v0 = vmax.f32 %v18888_v11, %v20790_v48  ;;  %v10098_v55 = vsel %vm2608_vm13, %v19166_v6, %v10097_v30  ;;  %v10147_v59 = vsel %vm2606_vm12, %v19166_v6, %v10146_v22  ;;  %v9868_v54 = vrot.slane %v9867_v21, 2 }
 0x7d0   :  { %v9909_v17 = vmax.f32 %v18882_v47, %v20791_v52  ;;  %v9862_v14 = vmax.f32 %v9860_v33, %v9861_v45  ;;  %v10099_v13 = vsel %vm2610_vm14, %v19168_v18, %v10098_v55  ;;  %v10148_v19 = vsel %vm2608_vm13, %v19168_v18, %v10147_v59  ;;  %v14456_v47 = vld [vmem:[%s20596_s6 + $0x60] sm:$0xff]  ;;  %s15624_s6 = smov 96  }
 0x7d1   :  { %v9897_v11 = vmax.f32 %v18855_v37, %v9896_v49  ;;  %10118 = vrot.lane.b32.xlu0 %v10099_v13, %s15620_s27  ;;  %v19190_v60 = vmax.f32 %v9855_v5, %v9856_v34  ;;  %v9905_v16 = vrot.slane %v9904_v0, 1  ;;  %15013 = vmatpush3.msra.mxu1 %v14456_v47  ;;  %v9869_v30 = vmax.f32 %v9867_v21, %v9868_v54 }
 0x7d2   :  { %v9863_v26 = vrot.slane %v9862_v14, 1  ;;  %v9910_v33 = vrot.slane %v9909_v17, 2  ;;  %v9917_v43 = vrot.slane %v18919_v62, 2  ;;  %v20792_v45 = vrot.slane %v18892_v9, %v16026_v4 }
 0x7d3   :  { %v9898_v22 = vrot.slane %v9897_v11, 1  ;;  %v10149_v49 = vsel %vm2610_vm14, %v19190_v60, %v10148_v19  ;;  %v19199_v52 = vmax.f32 %v9904_v0, %v9905_v16  ;;  %v9870_v55 = vrot.slane %v9869_v30, 1 }
 0x7d4   :  { %v9921_v37 = vsel %vm20756_vm0, %v20792_v45, -inf  ;;  %v9864_v48 = vmax.f32 %v9862_v14, %v9863_v26  ;;  %v9911_v5 = vmax.f32 %v9909_v17, %v9910_v33  ;;  %10168 = vrot.lane.b32.xlu1 %v10149_v49, %s15621_s3  ;;  %v9918_v21 = vmax.f32 %v18919_v62, %v9917_v43 }
 0x7d5   :  { %v19202_v34 = vmax.f32 %v9897_v11, %v9898_v22  ;;  %v9922_v59 = vrot.slane %v9921_v37, 4  ;;  %v9928_v54 = vsel %vm20793_vm1, %v9438_v2, -inf  ;;  %v10101_v0 = vsel %vm2598_vm8, %v19164_v42, %v19155_v46  ;;  %vm20805_vm1 = vmmov %vm20756_vm0 }
 0x7d6   :  { %v10100_v9 = vsel %vm2598_vm8, %v9864_v48, %v19190_v60  ;;  %v9912_v13 = vrot.slane %v9911_v5, 1  ;;  %v9871_v17 = vmax.f32 %v9869_v30, %v9870_v55  ;;  %v9919_v14 = vrot.slane %v9918_v21, 1 }
 0x7d7   :  { %10120 = vrot.lane.b32.xlu0 %v10100_v9, %s15620_s27  ;;  %v9923_v19 = vmax.f32 %v9921_v37, %v9922_v59  ;;  %v9929_v11 = vrot.slane %v9928_v54, 4  ;;  %v10102_v62 = vsel %vm2600_vm9, %v19202_v34, %v10101_v0  ;;  %v9461_v26 = vrot.slane %v18937_v1, %v16026_v4 }
 0x7d8   :  { %v19212_v47 = vmax.f32 %v9911_v5, %v9912_v13  ;;  %v10151_v2 = vsel %vm2598_vm8, %v19202_v34, %v19164_v42  ;;  %v10150_v16 = vsel %vm2598_vm8, %v9871_v17, %v9864_v48  ;;  %v19222_v33 = vmax.f32 %v9918_v21, %v9919_v14 }
 0x7d9   :  { %v9924_v30 = vrot.slane %v9923_v19, 2  ;;  %v9930_v22 = vmax.f32 %v9928_v54, %v9929_v11  ;;  %10170 = vrot.lane.b32.xlu1 %v10150_v16, %s15621_s3  ;;  %v10103_v43 = vsel %vm2602_vm10, %v19199_v52, %v10102_v62  ;;  %v9935_v45 = vsel %vm20794_vm7, %v9461_v26, -inf  ;;  %vm20806_vm7 = vmmov %vm20756_vm0 }
 0x7da   :  { %v10152_v1 = vsel %vm2600_vm9, %v19199_v52, %v10151_v2  ;;  %v20795_v37 = vrot.slane %v18971_v41, 2  ;;  %v10104_v55 = vsel %vm2604_vm11, %v19212_v47, %v10103_v43  ;;  %v9936_v21 = vrot.slane %v9935_v45, 4 }
 0x7db   :  { %v9925_v5 = vmax.f32 %v9923_v19, %v9924_v30  ;;  %v9931_v48 = vrot.slane %v9930_v22, 2  ;;  %v10105_v59 = vsel %vm2606_vm12, %v19222_v33, %v10104_v55  ;;  %v10153_v9 = vsel %vm2602_vm10, %v19212_v47, %v10152_v1 }
 0x7dc   :  { %v9946_v49 = vmax.f32 %v18971_v41, %v20795_v37  ;;  %v20796_v54 = vcombine.low %v19078_v50, %v19071_v20  ;;  %v9937_v14 = vmax.f32 %v9935_v45, %v9936_v21  ;;  %v10154_v19 = vsel %vm2604_vm11, %v19222_v33, %v10153_v9 }
 0x7dd   :  { %v9926_v17 = vrot.slane %v9925_v5, 1  ;;  %v9932_v41 = vmax.f32 %v9930_v22, %v9931_v48  ;;  %v9952_v62 = vrot.slane %v18975_v32, 2  ;;  %v20797_v26 = vrot.slane %v19053_v38, 2 }
 0x7de   :  { %v9947_v13 = vrot.slane %v9946_v49, 1  ;;  %v9622_v0 = vrot.slane %v20796_v54, %v16026_v4  ;;  %v20798_v16 = vrot.slane %v19049_v15, 4  ;;  %v9938_v50 = vrot.slane %v9937_v14, 2 }
 0x7df   :  { %v9960_v2 = vmax.f32 %v19053_v38, %v20797_v26  ;;  %v19252_v43 = vmax.f32 %v9925_v5, %v9926_v17  ;;  %v9933_v20 = vrot.slane %v9932_v41, 1  ;;  %v9973_v22 = vrot.slane %v19095_v56, 2 }
 0x7e0   :  { %v9948_v11 = vmax.f32 %v9946_v49, %v9947_v13  ;;  %v9965_v30 = vmax.f32 %v19049_v15, %v20798_v16  ;;  %v9953_v45 = vmax.f32 %v18975_v32, %v9952_v62  ;;  %v20799_v49 = vrot.slane %v19081_v63, %v16026_v4 }
 0x7e1   :  { %v9961_v1 = vrot.slane %v9960_v2, 1  ;;  %v9934_v38 = vmax.f32 %v9932_v41, %v9933_v20  ;;  %v10106_v55 = vsel %vm2608_vm13, %v19252_v43, %v10105_v59  ;;  %v9939_v15 = vmax.f32 %v9937_v14, %v9938_v50 }
 0x7e2   :  { %v9966_v37 = vrot.slane %v9965_v30, 2  ;;  %v9977_v48 = vsel %vm20800_vm6, %v20799_v49, -inf  ;;  %v10155_v5 = vsel %vm2606_vm12, %v19252_v43, %v10154_v19  ;;  %v9954_v21 = vrot.slane %v9953_v45, 1 }
 0x7e3   :  { %v19264_v9 = vmax.f32 %v9960_v2, %v9961_v1  ;;  %v9974_v32 = vmax.f32 %v19095_v56, %v9973_v22  ;;  %v10107_v54 = vsel %vm2610_vm14, %v9934_v38, %v10106_v55  ;;  %v9940_v17 = vrot.slane %v9939_v15, 1 }
 0x7e4   :  { %v9967_v13 = vmax.f32 %v9965_v30, %v9966_v37  ;;  %v10156_v63 = vsel %vm2608_vm13, %v9934_v38, %v10155_v5  ;;  %v9978_v62 = vrot.slane %v9977_v48, 4  ;;  %10122 = vrot.lane.b32.xlu0 %v10107_v54, %s15620_s27  ;;  %v19270_v41 = vmax.f32 %v9953_v45, %v9954_v21 }
 0x7e5   :  { %v9975_v14 = vrot.slane %v9974_v32, 1  ;;  %v9984_v19 = vsel %vm20801_vm2, %v9622_v0, -inf  ;;  %v9941_v26 = vmax.f32 %v9939_v15, %v9940_v17  ;;  %v9645_v56 = vrot.slane %v19097_v57, %v16026_v4 }
 0x7e6   :  { %v9968_v59 = vrot.slane %v9967_v13, 1  ;;  %v9979_v2 = vmax.f32 %v9977_v48, %v9978_v62  ;;  %v9985_v16 = vrot.slane %v9984_v19, 4  ;;  %v10158_v50 = vsel %vm2598_vm8, %v19270_v41, %v9948_v11 }
 0x7e7   :  { %v19277_v20 = vmax.f32 %v9974_v32, %v9975_v14  ;;  %v9668_v22 = vrot.slane %v19112_v53, %v16026_v4  ;;  %v10157_v45 = vsel %vm2610_vm14, %v9941_v26, %v10156_v63  ;;  %v10070_v0 = vsel %vm2598_vm8, %v9941_v26, %v9934_v38 }
 0x7e8   :  { %v19275_v30 = vmax.f32 %v9967_v13, %v9968_v59  ;;  %v10108_v1 = vsel %vm2598_vm8, %v9948_v11, %v9941_v26  ;;  %v9980_v37 = vrot.slane %v9979_v2, 2  ;;  %10172 = vrot.lane.b32.xlu1 %v10157_v45, %s15621_s3  ;;  %v10071_v57 = vsel %vm2600_vm9, %v9948_v11, %v10070_v0 }
 0x7e9   :  { %v9986_v49 = vmax.f32 %v9984_v19, %v9985_v16  ;;  %v10109_v48 = vsel %vm2600_vm9, %v19270_v41, %v10108_v1  ;;  %v9991_v55 = vsel %vm20802_vm4, %v9645_v56, -inf  ;;  %v10159_v38 = vsel %vm2600_vm9, %v19264_v9, %v10158_v50 }
 0x7ea   :  { %v9981_v15 = vmax.f32 %v9979_v2, %v9980_v37  ;;  %v10110_v53 = vsel %vm2602_vm10, %v19264_v9, %v10109_v48  ;;  %v9992_v5 = vrot.slane %v9991_v55, 4  ;;  %v10160_v11 = vsel %vm2602_vm10, %v19275_v30, %v10159_v38 }
 0x7eb   :  { %v9987_v21 = vrot.slane %v9986_v49, 2  ;;  %v10111_v13 = vsel %vm2604_vm11, %v19275_v30, %v10110_v53  ;;  %v9998_v32 = vsel %vm20756_vm0, %v9668_v22, -inf  ;;  %v10161_v62 = vsel %vm2604_vm11, %v19277_v20, %v10160_v11 }
 0x7ec   :  { %v9982_v54 = vrot.slane %v9981_v15, 1  ;;  %v10112_v17 = vsel %vm2606_vm12, %v19277_v20, %v10111_v13  ;;  %v9993_v63 = vmax.f32 %v9991_v55, %v9992_v5  ;;  %v9875_v59 = vrot.slane %v18847_v61, 2 }
 0x7ed   :  { %v9988_v14 = vmax.f32 %v9986_v49, %v9987_v21  ;;  %v9999_v19 = vrot.slane %v9998_v32, 4  ;;  %v20803_v26 = vrot.slane %v19090_v3, %v16026_v4  ;;  %v10057_v50 = vsel %vm2602_vm10, %v19059_v7, %v19028_v40 }
 0x7ee   :  { %v9983_v16 = vmax.f32 %v9981_v15, %v9982_v54  ;;  %v9994_v56 = vrot.slane %v9993_v63, 2  ;;  %v19315_v22 = vsel %vm2598_vm8, %v19190_v60, %v19168_v18  ;;  %v20804_v3 = vcombine.low %v18611_v44, %v18606_v39 }
 0x7ef   :  { %v9684_v2 = vcombine.low %v20803_v26, %v19093_v28  ;;  %v9989_v45 = vrot.slane %v9988_v14, 1  ;;  %v10000_v0 = vmax.f32 %v9998_v32, %v9999_v19  ;;  %v9876_v40 = vmax.f32 %v18847_v61, %v9875_v59 }
 0x7f0   :  { %v8794_v28 = vrot.slane %v20804_v3, %v16026_v4  ;;  %v10113_v37 = vsel %vm2608_vm13, %v9983_v16, %v10112_v17  ;;  %v9995_v49 = vmax.f32 %v9993_v63, %v9994_v56  ;;  %v10162_v48 = vsel %vm2606_vm12, %v9983_v16, %v10161_v62 }
 0x7f1   :  { %v9691_v1 = vrot.slane %v9684_v2, %v16026_v4  ;;  %v9990_v7 = vmax.f32 %v9988_v14, %v9989_v45  ;;  %v10001_v55 = vrot.slane %v10000_v0, 2  ;;  %v10058_v53 = vsel %vm2604_vm11, %v19103_v29, %v10057_v50 }
 0x7f2   :  { %v9996_v60 = vrot.slane %v9995_v49, 1  ;;  %v10059_v61 = vsel %vm2606_vm12, %v19124_v36, %v10058_v53  ;;  %v9732_v13 = vsel %vm20806_vm7, %v8794_v28, -inf  ;;  %v9877_v54 = vrot.slane %v9876_v40, 1 }
 0x7f3   :  { %v10005_v18 = vsel %vm20805_vm1, %v9691_v1, -inf  ;;  %v10114_v5 = vsel %vm2610_vm14, %v9990_v7, %v10113_v37  ;;  %v10163_v39 = vsel %vm2608_vm13, %v9990_v7, %v10162_v48  ;;  %v10002_v44 = vmax.f32 %v10000_v0, %v10001_v55 }
 0x7f4   :  { %v10006_v15 = vrot.slane %v10005_v18, 4  ;;  %10124 = vrot.lane.b32.xlu0 %v10114_v5, %s15620_s27  ;;  %v9997_v38 = vmax.f32 %v9995_v49, %v9996_v60  ;;  %v10060_v32 = vsel %vm2608_vm13, %v19149_v8, %v10059_v61  ;;  %v10072_v62 = vsel %vm2602_vm10, %v19270_v41, %v10071_v57 }
 0x7f5   :  { %v10003_v11 = vrot.slane %v10002_v44, 1  ;;  %v10061_v63 = vsel %vm2610_vm14, %v19166_v6, %v10060_v32  ;;  %v9878_v36 = vmax.f32 %v9876_v40, %v9877_v54  ;;  %v10073_v14 = vsel %vm2604_vm11, %v19264_v9, %v10072_v62 }
 0x7f6   :  { %v10007_v21 = vmax.f32 %v10005_v18, %v10006_v15  ;;  %v10164_v29 = vsel %vm2610_vm14, %v9997_v38, %v10163_v39  ;;  %v19345_v19 = vsel %vm2598_vm8, %v9997_v38, %v9990_v7  ;;  %v10074_v26 = vsel %vm2606_vm12, %v19275_v30, %v10073_v14 }
 0x7f7   :  { %10174 = vrot.lane.b32.xlu1 %v10164_v29, %s15621_s3  ;;  %v10004_v59 = vmax.f32 %v10002_v44, %v10003_v11  ;;  %v9733_v2 = vrot.slane %v9732_v13, 4  ;;  %v10063_v41 = vsel %vm2598_vm8, %v19155_v46, %v9878_v36  ;;  %v10075_v57 = vsel %vm2608_vm13, %v19277_v20, %v10074_v26 }
 0x7f8   :  { %v10008_v17 = vrot.slane %v10007_v21, 2  ;;  %v10064_v9 = vsel %vm2600_vm9, %v19164_v42, %v10063_v41  ;;  %v19358_v50 = vsel %vm2610_vm14, %v9983_v16, %v10075_v57  ;;  %vm20807_vm6 = vcmask 261120  }
 0x7f9   :  { %v10115_v6 = vsel %vm2598_vm8, %v10004_v59, %v9997_v38  ;;  %v10065_v30 = vsel %vm2602_vm10, %v19202_v34, %v10064_v9  ;;  %v9734_v46 = vmax.f32 %v9732_v13, %v9733_v2  ;;  %vm20808_vm2 = vcmask 392192   ;;  %vm20809_vm4 = vmmov %vm20807_vm6 }
 0x7fa   :  { %v10009_v8 = vmax.f32 %v10007_v21, %v10008_v17  ;;  %10126 = vrot.lane.b32.xlu0 %v10115_v6, %s15620_s27  ;;  %v10066_v0 = vsel %vm2604_vm11, %v19199_v52, %v10065_v30  ;;  %vm20810_vm0 = vmmov %vm20808_vm2 }
 0x7fb   :  { %v10067_v20 = vsel %vm2606_vm12, %v19212_v47, %v10066_v0  ;;  %v9735_v16 = vrot.slane %v9734_v46, 2  ;;  %vm20811_vm1 = vmmov %vm20809_vm4 }
 0x7fc   :  { %v10010_v56 = vrot.slane %v10009_v8, 1  ;;  %v10068_v3 = vsel %vm2608_vm13, %v19222_v33, %v10067_v20  ;;  %vm20812_vm7 = vmmov %vm20811_vm1 }
 0x7fd   :  { %v10069_v42 = vsel %vm2610_vm14, %v19252_v43, %v10068_v3  ;;  %v9736_v34 = vmax.f32 %v9734_v46, %v9735_v16 }
 0x7fe   :  { %v10011_v45 = vmax.f32 %v10009_v8, %v10010_v56 }
 0x7ff   :  { %v9737_v28 = vrot.slane %v9736_v34, 1 }
 0x800   :  { %v10165_v1 = vsel %vm2598_vm8, %v10011_v45, %v10004_v59 }
 0x801   :  { %10176 = vrot.lane.b32.xlu1 %v10165_v1, %s15621_s3  ;;  %v9738_v37 = vmax.f32 %v9736_v34, %v9737_v28 }
 0x803   :  { %v10048_v52 = vsel %vm2598_vm8, %v18912_v12, %v9738_v37 }
 0x804   :  { %v10049_v47 = vsel %vm2600_vm9, %v18669_v24, %v10048_v52 }
 0x805   :  { %v10050_v49 = vsel %vm2602_vm10, %v18927_v31, %v10049_v47 }
 0x806   :  { %v10051_v33 = vsel %vm2604_vm11, %v18933_v27, %v10050_v49 }
 0x807   :  { %v10052_v48 = vsel %vm2606_vm12, %v18935_v58, %v10051_v33 }
 0x808   :  { %v10053_v43 = vsel %vm2608_vm13, %v18947_v25, %v10052_v48 }
 0x809   :  { %v10054_v7 = vsel %vm2610_vm14, %v18979_v51, %v10053_v43 }
 0x81c   :  { %v10117_v40 = vpop.permute.xlu0 %10116 }
 0x81d   :  { %v10184_v12 = vsel %vm2741_vm15, %v10054_v7, %v10117_v40 }
 0x821   :  { %v10167_v55 = vpop.permute.xlu1 %10166 }
 0x822   :  { %v10190_v24 = vsel %vm20807_vm6, %v10184_v12, %v10167_v55  ;;  %vm20813_vm6 = vmmov %vm20810_vm0 }
 0x823   :  { %v10202_v18 = vcombine.high %v10190_v24, %v10190_v24  ;;  %v10209_v31 = vrot.slane %v10190_v24, %v16936_v35 }
 0x825   :  { %v10216_v27 = vrot.slane %v10202_v18, %v16936_v35  ;;  %v10217_v60 = vcombine.high %v10209_v31, %v10209_v31 }
 0x827   :  { %v10218_v15 = vcombine.high %v10216_v27, %v10216_v27  ;;  %v10291_v58 = vcombine.low %v10209_v31, %v10217_v60 }
 0x829   :  { %v10292_v53 = vcombine.low %v10216_v27, %v10218_v15  ;;  %v10299_v25 = vrot.slane %v10291_v58, %v16936_v35  ;;  %v14476_v58 = vld [vmem:[%s20599_s9 + $0x50] sm:$0xff] }
 0x82b   :  { %v10306_v5 = vrot.slane %v10292_v53, %v16936_v35  ;;  %v14475_v53 = vld [vmem:[%s20599_s9 + $0x48] sm:$0xff] }
 0x82d   :  { %v10307_v39 = vcombine.low %v10299_v25, %v10306_v5  ;;  %v14474_v25 = vld [vmem:[%s20599_s9 + $0x40] sm:$0xff]  ;;  %v19449_v5 = vld [vmem:[%s20600_s10 + $0x18] sm:$0xff] }
 0x82e   :  { %15074 = vmatpush3.msra.mxu0 %v19449_v5 }
 0x82f   :  { %15015 = vmatmul.mubr.msk.f32.vlgmr.msra.gmra.mxu1 %vm20808_vm2, %v10307_v39  ;;  %vm20814_vm2 = vmmov %vm20811_vm1  ;;  %v19455_v39 = vld [vmem:[%s20600_s10 + $0x10] sm:$0xff]  ;;  %15075 = vmatprep.subr.mxu0 %v20640_v10 }
 0x830   :  { %15017 = vmatprep.mubr.msk.f32.mxu1 %vm15618_vm3, %v20640_v10  ;;  %15076 = vmatpush3.msra.mxu0 %v19455_v39 }
 0x831   :  { %15077 = vmatprep.subr.mxu0 %v20640_v10 }
 0x843   :  { %v10119_v51 = vpop.permute.xlu0 %10118 }
 0x844   :  { %v10185_v44 = vsel %vm2741_vm15, %v10061_v63, %v10119_v51  ;;  %v19462_v51 = vld [vmem:[%s20600_s10 + $0x8] sm:$0xff] }
 0x845   :  { %15078 = vmatpush3.msra.mxu0 %v19462_v51 }
 0x846   :  { %v10169_v38 = vpop.permute.xlu1 %10168  ;;  %15079 = vmatprep.subr.mxu0 %v20640_v10 }
 0x847   :  { %v10191_v21 = vsel %vm20809_vm4, %v10185_v44, %v10169_v38  ;;  %vm20815_vm4 = vmmov %vm20811_vm1  ;;  %v19469_v44 = vld [vmem:[%s20600_s10] sm:$0xff] }
 0x848   :  { %v10219_v61 = vcombine.high %v10191_v21, %v10191_v21  ;;  %v10226_v13 = vrot.slane %v10191_v21, %v16936_v35  ;;  %15080 = vmatpush3.msra.mxu0 %v19469_v44  ;;  %v19477_v38 = vld [vmem:[%s20597_s7 + $0x2] ss:$0 sm:$0xff] }
 0x849   :  { %v10121_v36 = vpop.permute.xlu0 %10120  ;;  %15095 = vmatprep.subr.mxu0 %v20640_v10 }
 0x84a   :  { %v10233_v11 = vrot.slane %v10219_v61, %v16936_v35  ;;  %v10234_v32 = vcombine.high %v10226_v13, %v10226_v13  ;;  %v10186_v63 = vsel %vm2741_vm15, %v19315_v22, %v10121_v36  ;;  %v19482_v61 = vld [vmem:[%s20598_s8 + $0x2] ss:$0 sm:$0xff] }
 0x84b   :  { %v10171_v8 = vpop.permute.xlu1 %10170 }
 0x84c   :  { %v10235_v54 = vcombine.high %v10233_v11, %v10233_v11  ;;  %v10308_v29 = vcombine.low %v10226_v13, %v10234_v32  ;;  %v10192_v6 = vsel %vm20811_vm1, %v10186_v63, %v10171_v8  ;;  %vm20816_vm1 = vmmov %vm20810_vm0 }
 0x84d   :  { %v10242_v56 = vrot.slane %v10192_v6, %v16936_v35 }
 0x84e   :  { %v10309_v17 = vcombine.low %v10233_v11, %v10235_v54  ;;  %v10316_v62 = vrot.slane %v10308_v29, %v16936_v35 }
 0x850   :  { %v10323_v59 = vrot.slane %v10309_v17, %v16936_v35 }
 0x852   :  { %v10324_v14 = vcombine.low %v10316_v62, %v10323_v59 }
 0x854   :  { %15018 = vmatmul.mubr.msk.f32.gmra.mxu1 %vm20810_vm0, %v10324_v14 }
 0x855   :  { %15020 = vmatprep.mubr.msk.f32.mxu1 %vm15618_vm3, %v20640_v10 }
 0x856   :  { %v10123_v26 = vpop.permute.xlu0 %10122 }
 0x857   :  { %v10187_v2 = vsel %vm2741_vm15, %v10069_v42, %v10123_v26 }
 0x85a   :  { %v10173_v41 = vpop.permute.xlu1 %10172 }
 0x85b   :  { %v10193_v57 = vsel %vm20812_vm7, %v10187_v2, %v10173_v41  ;;  %vm20817_vm7 = vcmask 256000  }
 0x85c   :  { %v10243_v9 = vcombine.high %v10193_v57, %v10193_v57  ;;  %v10250_v30 = vrot.slane %v10193_v57, %v16936_v35 }
 0x85e   :  { %v10257_v45 = vrot.slane %v10243_v9, %v16936_v35  ;;  %v10258_v22 = vcombine.high %v10250_v30, %v10250_v30  ;;  %v10325_v0 = vcombine.low %v10242_v56, %v10250_v30 }
 0x860   :  { %v10326_v46 = vcombine.low %v10258_v22, %v10257_v45  ;;  %v10333_v20 = vrot.slane %v10325_v0, %v16936_v35  ;;  %v10259_v37 = vcombine.high %v10257_v45, %v10257_v45 }
 0x862   :  { %v10340_v1 = vrot.slane %v10326_v46, %v16936_v35 }
 0x864   :  { %v10341_v3 = vcombine.low %v10333_v20, %v10340_v1 }
 0x866   :  { %v10125_v42 = vpop.permute.xlu0 %10124  ;;  %15021 = vmatmul.mubr.msk.f32.gmra.mxu1 %vm20813_vm6, %v10341_v3  ;;  %vm20818_vm6 = vmmov %vm20817_vm7 }
 0x867   :  { %v10188_v16 = vsel %vm2741_vm15, %v19358_v50, %v10125_v42  ;;  %15023 = vmatprep.mubr.msk.f32.mxu1 %vm15618_vm3, %v20640_v10 }
 0x869   :  { %v10175_v34 = vpop.permute.xlu1 %10174 }
 0x86a   :  { %v10194_v28 = vsel %vm20814_vm2, %v10188_v16, %v10175_v34  ;;  %vm20819_vm2 = vmmov %vm20818_vm6 }
 0x86b   :  { %v10260_v52 = vcombine.high %v10194_v28, %v10194_v28  ;;  %v10267_v47 = vrot.slane %v10194_v28, %v16936_v35 }
 0x86c   :  { %v10127_v49 = vpop.permute.xlu0 %10126 }
 0x86d   :  { %v10274_v33 = vrot.slane %v10260_v52, %v16936_v35  ;;  %v10275_v48 = vcombine.high %v10267_v47, %v10267_v47  ;;  %v10342_v43 = vcombine.low %v10259_v37, %v10267_v47  ;;  %v10189_v50 = vsel %vm2741_vm15, %v19345_v19, %v10127_v49  ;;  %v14477_v19 = vld [vmem:[%s20599_s9 + $0x58] sm:$0xff] }
 0x86e   :  { %15029 = vmatprep.subr.mxu1 %v14477_v19 }
 0x86f   :  { %v10343_v40 = vcombine.low %v10275_v48, %v10274_v33  ;;  %v10350_v7 = vrot.slane %v10342_v43, %v16936_v35  ;;  %v10276_v24 = vcombine.high %v10274_v33, %v10274_v33  ;;  %15030 = vmatpush3.msra.mxu1 %v14477_v19 }
 0x870   :  { %15031 = vmatprep.subr.mxu1 %v14476_v58 }
 0x871   :  { %v10357_v12 = vrot.slane %v10343_v40, %v16936_v35  ;;  %15032 = vmatpush3.msra.mxu1 %v14476_v58 }
 0x872   :  { %15033 = vmatprep.subr.mxu1 %v14475_v53 }
 0x873   :  { %v10177_v55 = vpop.permute.xlu1 %10176  ;;  %v10358_v27 = vcombine.low %v10350_v7, %v10357_v12  ;;  %15034 = vmatpush3.msra.mxu1 %v14475_v53 }
 0x874   :  { %v10195_v18 = vsel %vm20815_vm4, %v10189_v50, %v10177_v55  ;;  %15035 = vmatprep.subr.mxu1 %v14474_v25  ;;  %vm20820_vm4 = vmmov %vm20819_vm2 }
 0x875   :  { %v10283_v31 = vrot.slane %v10195_v18, %v16936_v35  ;;  %15024 = vmatmul.mubr.msk.f32.gmra.mxu1 %vm20810_vm0, %v10358_v27  ;;  %vm20821_vm0 = vmmov %vm20819_vm2 }
 0x876   :  { %15026 = vmatprep.mubr.msk.f32.mxu1 %vm15618_vm3, %v20640_v10  ;;  %15036 = vmatpush3.msra.mxu1 %v14474_v25 }
 0x877   :  { %v10359_v60 = vcombine.low %v10276_v24, %v10283_v31  ;;  %15040 = vmatprep.subr.mxu1 %v20640_v10 }
 0x879   :  { %v10366_v15 = vrot.slane %v10359_v60, %v16936_v35 }
 0x87b   :  { %15027 = vmatmul.mubr.msk.f32.gmra.mxu1 %vm20816_vm1, %v10366_v15  ;;  %vm20822_vm1 = vmmov %vm20821_vm0 }
 0x8ef   :  { %v10443_v21 = vpop.f32.mrf.mxu1 }
 0x8f0   :  { %v10475_v13 = vmul.f32 %v19477_v38, %v10443_v21 }
 0x8f1   :  { %v15016_v11 = vpop.f32.mrf.mxu1 }
 0x8f2   :  { %v10488_v32 = vadd.f32 %v19482_v61, %v10475_v13 }
 0x8f4   :  { %v10493_v54 = vmax.f32 %v10488_v32, 0.0 }
 0x8f6   :  { %v10510_v29 = vrot.slane %v10493_v54, %v16026_v4  ;;  %v10503_v62 = vcombine.high %v10493_v54, %v10493_v54 }
 0x8f8   :  { %v10518_v17 = vcombine.high %v10510_v29, %v10510_v29  ;;  %v10517_v36 = vrot.slane %v10503_v62, %v16026_v4  ;;  %v10526_v8 = vrot.slane %v10510_v29, %v16026_v4 }
 0x8fa   :  { %v10540_v59 = vrot.slane %v10518_v17, %v16026_v4  ;;  %v10519_v63 = vcombine.high %v10517_v36, %v10517_v36  ;;  %v10533_v26 = vrot.slane %v10517_v36, %v16026_v4  ;;  %v10548_v57 = vcombine.high %v10526_v8, %v10526_v8 }
 0x8fc   :  { %v10550_v14 = vcombine.high %v10540_v59, %v10540_v59  ;;  %v10723_v2 = vcombine.low %v10526_v8, %v10540_v59  ;;  %v10547_v41 = vrot.slane %v10519_v63, %v16026_v4  ;;  %v10737_v30 = vrot.slane %v10548_v57, %v16026_v4 }
 0x8fe   :  { %v10746_v6 = vcombine.low %v10550_v14, %v10533_v26  ;;  %v10730_v56 = vrot.slane %v10723_v2, %v16026_v4  ;;  %v10760_v45 = vrot.slane %v10547_v41, %v16026_v4  ;;  %v14471_v49 = vcombine.high %v10533_v26, %v10547_v41 }
 0x900   :  { %v10753_v9 = vrot.slane %v10746_v6, %v16026_v4  ;;  %v10738_v22 = vcombine.low %v10730_v56, %v10737_v30  ;;  %v10776_v18 = vrot.slane %v14471_v49, %v16026_v4 }
 0x902   :  { %v10761_v0 = vcombine.low %v10753_v9, %v10760_v45  ;;  %v10745_v3 = vrot.slane %v10738_v22, %v16026_v4 }
 0x904   :  { %v10768_v42 = vrot.slane %v10761_v0, %v16026_v4  ;;  %v11011_v28 = vsel %vm20817_vm7, %v10745_v3, -inf  ;;  %vm20823_vm7 = vmmov %vm20821_vm0 }
 0x905   :  { %v11012_v40 = vrot.slane %v11011_v28, 4 }
 0x906   :  { %v11018_v37 = vsel %vm20818_vm6, %v10768_v42, -inf  ;;  %vm20824_vm6 = vmmov %vm20821_vm0 }
 0x907   :  { %v11019_v50 = vrot.slane %v11018_v37, 4  ;;  %v11013_v58 = vmax.f32 %v11011_v28, %v11012_v40 }
 0x909   :  { %v11020_v25 = vmax.f32 %v11018_v37, %v11019_v50  ;;  %v11014_v59 = vrot.slane %v11013_v58, 2 }
 0x90b   :  { %v11021_v63 = vrot.slane %v11020_v25, 2  ;;  %v11015_v22 = vmax.f32 %v11013_v58, %v11014_v59 }
 0x90d   :  { %v11022_v0 = vmax.f32 %v11020_v25, %v11021_v63  ;;  %v11016_v49 = vrot.slane %v11015_v22, 1 }
 0x914   :  { %v10448_v46 = vpop.f32.mrf.mxu1 }
 0x915   :  { %v10476_v20 = vmul.f32 %v19477_v38, %v10448_v46 }
 0x916   :  { %v15019_v1 = vpop.f32.mrf.mxu1 }
 0x917   :  { %v10489_v16 = vadd.f32 %v19482_v61, %v10476_v20 }
 0x919   :  { %v10494_v34 = vmax.f32 %v10489_v16, 0.0 }
 0x91b   :  { %v10552_v52 = vcombine.high %v10494_v34, %v10494_v34  ;;  %v10559_v47 = vrot.slane %v10494_v34, %v16026_v4 }
 0x91d   :  { %v10566_v33 = vrot.slane %v10552_v52, %v16026_v4  ;;  %v10567_v48 = vcombine.high %v10559_v47, %v10559_v47  ;;  %v10575_v43 = vrot.slane %v10559_v47, %v16026_v4 }
 0x91f   :  { %v10568_v7 = vcombine.high %v10566_v33, %v10566_v33  ;;  %v10582_v12 = vrot.slane %v10566_v33, %v16026_v4  ;;  %v10589_v55 = vrot.slane %v10567_v48, %v16026_v4  ;;  %v10597_v24 = vcombine.high %v10575_v43, %v10575_v43 }
 0x920   :  { %v10783_v31 = vrot.slane %v10575_v43, %v16026_v4  ;;  %v11023_v48 = vrot.slane %v11022_v0, 1 }
 0x921   :  { %v10596_v27 = vrot.slane %v10568_v7, %v16026_v4  ;;  %v10598_v60 = vcombine.high %v10582_v12, %v10582_v12  ;;  %v10599_v15 = vcombine.high %v10589_v55, %v10589_v55  ;;  %v10792_v19 = vcombine.low %v10589_v55, %v10597_v24 }
 0x922   :  { %v10784_v53 = vcombine.low %v10776_v18, %v10783_v31  ;;  %v11024_v25 = vmax.f32 %v11022_v0, %v11023_v48 }
 0x923   :  { %v10799_v21 = vrot.slane %v10792_v19, %v16026_v4  ;;  %v10806_v13 = vrot.slane %v10599_v15, %v16026_v4  ;;  %v10815_v11 = vcombine.low %v10582_v12, %v10596_v27  ;;  %v10829_v17 = vrot.slane %v10598_v60, %v16026_v4 }
 0x924   :  { %v10791_v32 = vrot.slane %v10784_v53, %v16026_v4  ;;  %v10600_v34 = vcombine.high %v10596_v27, %v10596_v27  ;;  %v11017_v53 = vmax.f32 %v11015_v22, %v11016_v49 }
 0x925   :  { %v10807_v54 = vcombine.low %v10799_v21, %v10806_v13  ;;  %v10822_v29 = vrot.slane %v10815_v11, %v16026_v4 }
 0x926   :  { %v10453_v62 = vpop.f32.mrf.mxu1  ;;  %v11025_v36 = vsel %vm20819_vm2, %v10791_v32, -inf  ;;  %vm20825_vm2 = vmmov %vm20821_vm0 }
 0x927   :  { %v10477_v14 = vmul.f32 %v19477_v38, %v10453_v62  ;;  %v10814_v8 = vrot.slane %v10807_v54, %v16026_v4  ;;  %v10830_v26 = vcombine.low %v10822_v29, %v10829_v17  ;;  %v11026_v2 = vrot.slane %v11025_v36, 4 }
 0x928   :  { %v15022_v6 = vpop.f32.mrf.mxu1 }
 0x929   :  { %v10490_v41 = vadd.f32 %v19482_v61, %v10477_v14  ;;  %v10837_v57 = vrot.slane %v10830_v26, %v16026_v4  ;;  %v11027_v56 = vmax.f32 %v11025_v36, %v11026_v2  ;;  %v11032_v9 = vsel %vm20820_vm4, %v10814_v8, -inf  ;;  %vm20826_vm4 = vmmov %vm20821_vm0 }
 0x92a   :  { %v11033_v30 = vrot.slane %v11032_v9, 4 }
 0x92b   :  { %v10495_v45 = vmax.f32 %v10490_v41, 0.0  ;;  %v11028_v46 = vrot.slane %v11027_v56, 2  ;;  %v11039_v20 = vsel %vm20821_vm0, %v10837_v57, -inf  ;;  %v11120_v41 = vsel %vm2598_vm8, %v11024_v25, %v11017_v53 }
 0x92c   :  { %v11034_v1 = vmax.f32 %v11032_v9, %v11033_v30  ;;  %v11040_v3 = vrot.slane %v11039_v20, 4 }
 0x92d   :  { %v10601_v42 = vcombine.high %v10495_v45, %v10495_v45  ;;  %v10608_v16 = vrot.slane %v10495_v45, %v16026_v4  ;;  %v11029_v33 = vmax.f32 %v11027_v56, %v11028_v46 }
 0x92e   :  { %v11035_v47 = vrot.slane %v11034_v1, 2  ;;  %v11041_v43 = vmax.f32 %v11039_v20, %v11040_v3 }
 0x92f   :  { %v10615_v28 = vrot.slane %v10601_v42, %v16026_v4  ;;  %v10616_v37 = vcombine.high %v10608_v16, %v10608_v16  ;;  %v10624_v52 = vrot.slane %v10608_v16, %v16026_v4  ;;  %v11030_v15 = vrot.slane %v11029_v33, 1 }
 0x930   :  { %v11036_v55 = vmax.f32 %v11034_v1, %v11035_v47  ;;  %v11042_v24 = vrot.slane %v11041_v43, 2 }
 0x931   :  { %v10617_v40 = vcombine.high %v10615_v28, %v10615_v28  ;;  %v10631_v50 = vrot.slane %v10615_v28, %v16026_v4  ;;  %v10638_v7 = vrot.slane %v10616_v37, %v16026_v4  ;;  %v10838_v12 = vcombine.low %v10600_v34, %v10624_v52 }
 0x932   :  { %v11037_v62 = vrot.slane %v11036_v55, 1  ;;  %v11043_v59 = vmax.f32 %v11041_v43, %v11042_v24  ;;  %v11031_v6 = vmax.f32 %v11029_v33, %v11030_v15 }
 0x933   :  { %v10645_v18 = vrot.slane %v10617_v40, %v16026_v4  ;;  %v10647_v31 = vcombine.high %v10631_v50, %v10631_v50  ;;  %v10845_v27 = vrot.slane %v10838_v12, %v16026_v4  ;;  %v10852_v60 = vrot.slane %v10638_v7, %v16026_v4 }
 0x934   :  { %v14472_v19 = vcombine.high %v10624_v52, %v10638_v7  ;;  %v10875_v29 = vrot.slane %v10631_v50, %v16026_v4  ;;  %v11038_v46 = vmax.f32 %v11036_v55, %v11037_v62  ;;  %v11044_v20 = vrot.slane %v11043_v59, 1 }
 0x935   :  { %v10458_v58 = vpop.f32.mrf.mxu1  ;;  %v10649_v21 = vcombine.high %v10645_v18, %v10645_v18  ;;  %v10853_v13 = vcombine.low %v10845_v27, %v10852_v60  ;;  %v10884_v11 = vcombine.low %v10645_v18, %v10647_v31  ;;  %v11121_v37 = vsel %vm2600_vm9, %v11031_v6, %v11120_v41 }
 0x936   :  { %v10478_v32 = vmul.f32 %v19477_v38, %v10458_v58  ;;  %v10868_v54 = vrot.slane %v14472_v19, %v16026_v4  ;;  %v11045_v33 = vmax.f32 %v11043_v59, %v11044_v20  ;;  %v11122_v12 = vsel %vm2602_vm10, %v11038_v46, %v11121_v37 }
 0x937   :  { %v15025_v17 = vpop.f32.mrf.mxu1  ;;  %v10860_v36 = vrot.slane %v10853_v13, %v16026_v4  ;;  %v10891_v14 = vrot.slane %v10884_v11, %v16026_v4  ;;  %v10898_v63 = vrot.slane %v10649_v21, %v16026_v4 }
 0x938   :  { %v10491_v8 = vadd.f32 %v19482_v61, %v10478_v32  ;;  %v10876_v26 = vcombine.low %v10868_v54, %v10875_v29  ;;  %v11123_v46 = vsel %vm2604_vm11, %v11045_v33, %v11122_v12  ;;  %vm20827_vm11 = vmmov %vm20821_vm0 }
 0x939   :  { %v11046_v57 = vsel %vm20822_vm1, %v10860_v36, -inf  ;;  %v10899_v30 = vcombine.low %v10891_v14, %v10898_v63 }
 0x93a   :  { %v10496_v56 = vmax.f32 %v10491_v8, 0.0  ;;  %v10883_v45 = vrot.slane %v10876_v26, %v16026_v4  ;;  %v11047_v22 = vrot.slane %v11046_v57, 4 }
 0x93b   :  { %v10463_v2 = vpop.f32.mrf.mxu1  ;;  %v10906_v16 = vrot.slane %v10899_v30, %v16026_v4 }
 0x93c   :  { %v10479_v9 = vmul.f32 %v19477_v38, %v10463_v2  ;;  %v10650_v1 = vcombine.high %v10496_v56, %v10496_v56  ;;  %v10657_v3 = vrot.slane %v10496_v56, %v16026_v4  ;;  %v11048_v34 = vmax.f32 %v11046_v57, %v11047_v22 }
 0x93d   :  { %v15028_v0 = vpop.f32.mrf.mxu1  ;;  %v11053_v28 = vsel %vm20823_vm7, %v10883_v45, -inf  ;;  %v11060_v40 = vsel %vm20824_vm6, %v10906_v16, -inf }
 0x93e   :  { %v10492_v42 = vadd.f32 %v19482_v61, %v10479_v9  ;;  %v10664_v38 = vrot.slane %v10650_v1, %v16026_v4  ;;  %v10665_v52 = vcombine.high %v10657_v3, %v10657_v3  ;;  %v10673_v47 = vrot.slane %v10657_v3, %v16026_v4 }
 0x93f   :  { %v11049_v48 = vrot.slane %v11048_v34, 2  ;;  %v11054_v43 = vrot.slane %v11053_v28, 4  ;;  %v11061_v19 = vrot.slane %v11060_v40, 4 }
 0x940   :  { %v10497_v49 = vmax.f32 %v10492_v42, 0.0  ;;  %v10666_v50 = vcombine.high %v10664_v38, %v10664_v38  ;;  %v10687_v61 = vrot.slane %v10665_v52, %v16026_v4  ;;  %v10695_v7 = vcombine.high %v10673_v47, %v10673_v47 }
 0x941   :  { %v10680_v55 = vrot.slane %v10664_v38, %v16026_v4  ;;  %v11050_v18 = vmax.f32 %v11048_v34, %v11049_v48  ;;  %v11055_v31 = vmax.f32 %v11053_v28, %v11054_v43  ;;  %v11062_v41 = vmax.f32 %v11060_v40, %v11061_v19 }
 0x942   :  { %v10705_v24 = vrot.slane %v10497_v49, %v16026_v4  ;;  %v10694_v27 = vrot.slane %v10666_v50, %v16026_v4  ;;  %v10697_v60 = vcombine.high %v10687_v61, %v10687_v61  ;;  %v10907_v15 = vcombine.low %v10673_v47, %v10687_v61 }
 0x943   :  { %v11051_v25 = vrot.slane %v11050_v18, 1  ;;  %v11056_v21 = vrot.slane %v11055_v31, 2  ;;  %v10921_v11 = vrot.slane %v10695_v7, %v16026_v4  ;;  %v11063_v0 = vrot.slane %v11062_v41, 2 }
 0x944   :  { %v10706_v58 = vcombine.high %v10705_v24, %v10705_v24  ;;  %v10713_v53 = vrot.slane %v10705_v24, %v16026_v4  ;;  %v10914_v13 = vrot.slane %v10907_v15, %v16026_v4  ;;  %v10930_v32 = vcombine.low %v10697_v60, %v10680_v55 }
 0x945   :  { %v14473_v54 = vcombine.high %v10680_v55, %v10694_v27  ;;  %v10944_v29 = vrot.slane %v10694_v27, %v16026_v4  ;;  %v11057_v8 = vmax.f32 %v11055_v31, %v11056_v21  ;;  %v11052_v6 = vmax.f32 %v11050_v18, %v11051_v25 }
 0x946   :  { %v10720_v17 = vrot.slane %v10706_v58, %v16026_v4  ;;  %v10721_v62 = vcombine.high %v10713_v53, %v10713_v53  ;;  %v10967_v59 = vrot.slane %v10713_v53, %v16026_v4  ;;  %v10922_v36 = vcombine.low %v10914_v13, %v10921_v11 }
 0x947   :  { %v10937_v14 = vrot.slane %v10930_v32, %v16026_v4  ;;  %v10960_v63 = vrot.slane %v14473_v54, %v16026_v4  ;;  %v11058_v30 = vrot.slane %v11057_v8, 1  ;;  %v11064_v28 = vmax.f32 %v11062_v41, %v11063_v0  ;;  %v19629_v41 = vld [vmem:[%s20600_s10 + $0x58] sm:$0xff] }
 0x948   :  { %v10722_v26 = vcombine.high %v10720_v17, %v10720_v17  ;;  %v10976_v2 = vcombine.low %v10720_v17, %v10721_v62  ;;  %v10929_v57 = vrot.slane %v10922_v36, %v16026_v4  ;;  %v11124_v37 = vsel %vm2606_vm12, %v11052_v6, %v11123_v46  ;;  %v14490_v6 = vld [vmem:[%s20602_s12 + $0x2] sm:$0x3]  ;;  %v20833_v0 = vld [vmem:[#allocation7_spill] sm:$0xff] }
 0x949   :  { %v10945_v56 = vcombine.low %v10937_v14, %v10944_v29  ;;  %v10968_v9 = vcombine.low %v10960_v63, %v10967_v59  ;;  %v11059_v42 = vmax.f32 %v11057_v8, %v11058_v30  ;;  %v11065_v43 = vrot.slane %v11064_v28, 1  ;;  %v11256_v14 = vld [vmem:[%s20602_s12] sm:$0x3]  ;;  %v19595_v63 = vld [vmem:[%s20600_s10 + $0x38] sm:$0xff]  ;;  %v19603_v8 = vld [vmem:[%s20600_s10 + $0x30] sm:$0xff] }
 0x94a   :  { %v10983_v45 = vrot.slane %v10976_v2, %v16026_v4  ;;  %v10990_v22 = vrot.slane %v10722_v26, %v16026_v4  ;;  %v11067_v1 = vsel %vm20825_vm2, %v10929_v57, -inf  ;;  %vm20828_vm12 = vcmask 261120   ;;  %v19612_v26 = vld [vmem:[%s20600_s10 + $0x28] sm:$0xff]  ;;  %v19619_v2 = vld [vmem:[%s20600_s10 + $0x20] sm:$0xff]  ;;  %v19637_v57 = vld [vmem:[%s20600_s10 + $0x50] sm:$0xff] }
 0x94b   :  { %v10952_v20 = vrot.slane %v10945_v56, %v16026_v4  ;;  %v10975_v3 = vrot.slane %v10968_v9, %v16026_v4  ;;  %v11068_v16 = vrot.slane %v11067_v1, 4  ;;  %v11125_v40 = vsel %vm2608_vm13, %v11059_v42, %v11124_v37  ;;  %vm20829_vm13 = vmmov %vm20828_vm12  ;;  %v19646_v56 = vld [vmem:[%s20600_s10 + $0x48] sm:$0xff]  ;;  %v19653_v9 = vld [vmem:[%s20600_s10 + $0x40] sm:$0xff] }
 0x94c   :  { %v10991_v34 = vcombine.low %v10983_v45, %v10990_v22  ;;  %v11066_v55 = vmax.f32 %v11064_v28, %v11065_v43  ;;  %v14491_v30 = vld [vmem:[%s20602_s12 + $0x4] sm:$0x3]  ;;  %v14479_v45 = vld [vmem:[%s20601_s11 + $0x2] ss:$0 sm:$0xff]  ;;  %v15579_v22 = vld [vmem:[%s20601_s11] ss:$0 sm:$0xff] }
 0x94d   :  { %v11074_v38 = vsel %vm20826_vm4, %v10952_v20, -inf  ;;  %v11081_v52 = vsel %vm20821_vm0, %v10975_v3, -inf  ;;  %v11069_v47 = vmax.f32 %v11067_v1, %v11068_v16  ;;  %v3757_v46 = vadd.f32 %v15579_v22, %v20833_v0 }
 0x94e   :  { %v11075_v49 = vrot.slane %v11074_v38, 4  ;;  %v10998_v33 = vrot.slane %v10991_v34, %v16026_v4  ;;  %v11082_v48 = vrot.slane %v11081_v52, 4  ;;  %v11126_v60 = vsel %vm2610_vm14, %v11066_v55, %v11125_v40  ;;  %v15580_v34 = vld [vmem:[%s20601_s11 + $0x1] ss:$0 sm:$0xff]  ;;  %s15623_s11 = smov 64  }
 0x94f   :  { %v11070_v50 = vrot.slane %v11069_v47, 2  ;;  %15037 = vmatprep.mubr.msk.f32.mxu1 %vm20828_vm12, %v11126_v60  ;;  %v3767_v3 = vcombine.high %v3757_v46, %v3757_v46  ;;  %v7479_v28 = vadd.f32 %v15580_v34, %v18578_v23 }
 0x950   :  { %v11076_v61 = vmax.f32 %v11074_v38, %v11075_v49  ;;  %v11083_v7 = vmax.f32 %v11081_v52, %v11082_v48  ;;  %v11088_v12 = vsel %vm20827_vm11, %v10998_v33, -inf  ;;  %v19690_v38 = vrot.slane %v3757_v46, %v16936_v35 }
 0x951   :  { %v11089_v24 = vrot.slane %v11088_v12, 4  ;;  %v11071_v31 = vmax.f32 %v11069_v47, %v11070_v50  ;;  %v19683_v16 = vrot.slane %v3767_v3, %v16936_v35  ;;  %v7489_v49 = vcombine.high %v7479_v28, %v7479_v28 }
 0x952   :  { %v11084_v18 = vrot.slane %v11083_v7, 2  ;;  %v11077_v27 = vrot.slane %v11076_v61, 2 }
 0x953   :  { %v11090_v15 = vmax.f32 %v11088_v12, %v11089_v24  ;;  %v11072_v4 = vrot.slane %v11071_v31, 1  ;;  %v19695_v33 = vcombine.high %v19683_v16, %v19683_v16  ;;  %v19700_v23 = vrot.slane %v7489_v49, %v16936_v35 }
 0x954   :  { %v11078_v19 = vmax.f32 %v11076_v61, %v11077_v27  ;;  %v11085_v58 = vmax.f32 %v11083_v7, %v11084_v18  ;;  %v19703_v61 = vrot.slane %v7479_v28, %v16936_v35 }
 0x955   :  { %v11091_v53 = vrot.slane %v11090_v15, 2  ;;  %v11073_v11 = vmax.f32 %v11071_v31, %v11072_v4  ;;  %v19708_v24 = vcombine.high %v19700_v23, %v19700_v23 }
 0x956   :  { %v11079_v25 = vrot.slane %v11078_v19, 1  ;;  %v11086_v21 = vrot.slane %v11085_v58, 1 }
 0x957   :  { %v11092_v13 = vmax.f32 %v11090_v15, %v11091_v53 }
 0x958   :  { %v11080_v32 = vmax.f32 %v11078_v19, %v11079_v25  ;;  %v11087_v54 = vmax.f32 %v11085_v58, %v11086_v21 }
 0x959   :  { %v11093_v29 = vrot.slane %v11092_v13, 1 }
 0x95a   :  { %v11127_v17 = vsel %vm2598_vm8, %v11080_v32, %v11073_v11 }
 0x95b   :  { %v11094_v62 = vmax.f32 %v11092_v13, %v11093_v29  ;;  %v11128_v59 = vsel %vm2600_vm9, %v11087_v54, %v11127_v17 }
 0x95d   :  { %v11129_v36 = vsel %vm2602_vm10, %v11094_v62, %v11128_v59  ;;  %vm20830_vm10 = vmmov %vm20828_vm12  ;;  %v14499_v59 = vld.sshfl [vmem:[%s20603_s13] sm:$0x3 pattern:$0x76325410] }
 0x95e   :  { %15038 = vmatmul.mubr.msk.f32.vlgmr.msra.gmra.mxu1 %vm20829_vm13, %v11129_v36  ;;  %vm20831_vm14 = vmmov %vm20830_vm10 }
 0x95f   :  { %15041 = vmatpush3.msra.mxu1 %v19449_v5  ;;  %15048 = vmatprep.mubr.msk.f32.mxu1 %vm15618_vm3, %v20640_v10  ;;  %vm20832_vm1 = vmmov %vm20830_vm10 }
 0x960   :  { %15042 = vmatprep.subr.mxu1 %v20640_v10  ;;  %vm20835_vm7 = vmmov %vm20832_vm1 }
 0x961   :  { %15043 = vmatpush3.msra.mxu1 %v19455_v39  ;;  %vm20836_vm6 = vmmov %vm20832_vm1 }
 0x962   :  { %15044 = vmatprep.subr.mxu1 %v20640_v10  ;;  %vm20837_vm2 = vmmov %vm20832_vm1 }
 0x963   :  { %15045 = vmatpush3.msra.mxu1 %v19462_v51  ;;  %vm20838_vm4 = vmmov %vm20832_vm1 }
 0x964   :  { %15046 = vmatprep.subr.mxu1 %v20640_v10  ;;  %vm20839_vm0 = vmmov %vm20832_vm1 }
 0x965   :  { %15047 = vmatpush3.msra.mxu1 %v19469_v44  ;;  %vm20840_vm11 = vmmov %vm20839_vm0 }
 0x966   :  { %15049 = vmatmul.mubr.msk.f32.vlgmr.msra.gmra.mxu1 %vm20830_vm10, %v11256_v14  ;;  %15051 = vmatprep.subr.mxu1 %v20640_v10  ;;  %v14502_v14 = vld.sshfl [vmem:[%s20603_s13 + $0x2] sm:$0x3 pattern:$0x76325410]  ;;  %vm20843_vm12 = vmmov %vm20839_vm0 }
 0x967   :  { %15052 = vmatpush3.msra.mxu1 %v19595_v63  ;;  %15059 = vmatprep.mubr.msk.f32.mxu1 %vm15618_vm3, %v20640_v10  ;;  %vm20844_vm13 = vmmov %vm20839_vm0 }
 0x968   :  { %15053 = vmatprep.subr.mxu1 %v20640_v10  ;;  %vm20845_vm10 = vmmov %vm20839_vm0 }
 0x969   :  { %15054 = vmatpush3.msra.mxu1 %v19603_v8 }
 0x96a   :  { %15055 = vmatprep.subr.mxu1 %v20640_v10 }
 0x96b   :  { %15056 = vmatpush3.msra.mxu1 %v19612_v26 }
 0x96c   :  { %15057 = vmatprep.subr.mxu1 %v20640_v10 }
 0x96d   :  { %15058 = vmatpush3.msra.mxu1 %v19619_v2 }
 0x96e   :  { %15060 = vmatmul.mubr.msk.f32.vlgmr.msra.gmra.mxu1 %vm20831_vm14, %v14490_v6  ;;  %15062 = vmatprep.subr.mxu1 %v20640_v10  ;;  %v11520_v6 = vrot.slane %v14499_v59, 1  ;;  %vm20846_vm14 = vmmov %vm20839_vm0 }
 0x96f   :  { %15063 = vmatpush3.msra.mxu1 %v19629_v41  ;;  %15070 = vmatprep.mubr.msk.f32.mxu1 %vm15618_vm3, %v20640_v10 }
 0x970   :  { %15064 = vmatprep.subr.mxu1 %v20640_v10 }
 0x971   :  { %15065 = vmatpush3.msra.mxu1 %v19637_v57 }
 0x972   :  { %15066 = vmatprep.subr.mxu1 %v20640_v10 }
 0x973   :  { %15067 = vmatpush3.msra.mxu1 %v19646_v56 }
 0x974   :  { %15068 = vmatprep.subr.mxu1 %v20640_v10 }
 0x975   :  { %15069 = vmatpush3.msra.mxu1 %v19653_v9 }
 0x976   :  { %15071 = vmatmul.mubr.msk.f32.vlgmr.msra.gmra.mxu1 %vm20832_vm1, %v14491_v30  ;;  %15084 = vmatprep.subr.mxu1 %v20640_v10  ;;  %v14505_v30 = vld.sshfl [vmem:[%s20603_s13 + $0x4] sm:$0x3 pattern:$0x76325410]  ;;  %vm20847_vm1 = vmmov %vm20839_vm0 }
 0x977   :  { %15085 = vmatpush3.msra.mxu1 %v19595_v63  ;;  %15092 = vmatprep.mubr.msk.f32.mxu1 %vm15618_vm3, %v20640_v10  ;;  %v11672_v22 = vrot.slane %v14505_v30, 1 }
 0x978   :  { %15086 = vmatprep.subr.mxu1 %v20640_v10 }
 0x979   :  { %15087 = vmatpush3.msra.mxu1 %v19603_v8 }
 0x97a   :  { %15088 = vmatprep.subr.mxu1 %v20640_v10 }
 0x97b   :  { %15089 = vmatpush3.msra.mxu1 %v19612_v26 }
 0x97c   :  { %15090 = vmatprep.subr.mxu1 %v20640_v10 }
 0x97d   :  { %15091 = vmatpush3.msra.mxu1 %v19619_v2 }
 0x97e   :  { %15106 = vmatprep.subr.mxu1 %v20640_v10 }
 0xa1e   :  { %v15039_v20 = vpop.f32.mrf.mxu1 }
 0xa1f   :  { %v19680_v1 = vadd.f32 %v15039_v20, %v14479_v45 }
 0xa20   :  { %v11200_v42 = vpop.f32.mrf.mxu1 }
 0xa21   :  { %v11201_v7 = vadd.f32 %v14479_v45, %v11200_v42  ;;  %v11596_v45 = vrot.slane %v14502_v14, 1 }
 0xa23   :  { %v11211_v27 = vcombine.high %v11201_v7, %v11201_v7  ;;  %v19713_v4 = vrot.slane %v11201_v7, %v16936_v35 }
 0xa25   :  { %v19716_v19 = vrot.slane %v11211_v27, %v16936_v35 }
 0xa26   :  { %v11335_v37 = vpop.f32.mrf.mxu1 }
 0xa27   :  { %v11492_v52 = vrot.slane %v11335_v37, %v16936_v35  ;;  %v19723_v32 = vcombine.high %v19716_v19, %v19716_v19 }
 0xa28   :  { %v15050_v47 = vpop.f32.mrf.mxu1 }
 0xa29   :  { %v11493_v48 = vrot.slane %v11492_v52, 1  ;;  %v11496_v43 = vadd.f32 %v11492_v52, %v19690_v38 }
 0xa2b   :  { %v11497_v40 = vadd.f32 %v11493_v48, %v19695_v33  ;;  %15288 = vtanh.f32 %v11496_v43  ;;  %v14497_v0 = vmul.f32 -1.442695, %v11496_v43 }
 0xa2d   :  { %15290 = vtanh.f32 %v11497_v40  ;;  %v14498_v46 = vmul.f32 -1.442695, %v11497_v40 }
 0xa2e   :  { %v11408_v50 = vpop.f32.mrf.mxu1 }
 0xa2f   :  { %v11568_v12 = vrot.slane %v11408_v50, %v16936_v35 }
 0xa30   :  { %v15061_v55 = vpop.f32.mrf.mxu1 }
 0xa31   :  { %v11569_v18 = vrot.slane %v11568_v12, 1  ;;  %v11572_v31 = vadd.f32 %v11568_v12, %v19703_v61 }
 0xa33   :  { %v11573_v60 = vadd.f32 %v11569_v18, %v19708_v24  ;;  %15292 = vtanh.f32 %v11572_v31  ;;  %v14500_v20 = vmul.f32 -1.442695, %v11572_v31 }
 0xa35   :  { %15294 = vtanh.f32 %v11573_v60  ;;  %v14501_v3 = vmul.f32 -1.442695, %v11573_v60 }
 0xa36   :  { %v11481_v15 = vpop.f32.mrf.mxu1 }
 0xa37   :  { %v11644_v58 = vrot.slane %v11481_v15, %v16936_v35 }
 0xa38   :  { %v15289_v53 = vpop.eup %15288  ;;  %v15072_v25 = vpop.f32.mrf.mxu1 }
 0xa39   :  { %v11645_v21 = vrot.slane %v11644_v58, 1  ;;  %v11648_v13 = vadd.f32 %v11644_v58, %v19713_v4  ;;  %11531 = vrot.lane.b32.xlu0 %v15289_v53, %s15623_s11 }
 0xa3a   :  { %v15291_v11 = vpop.eup %15290 }
 0xa3b   :  { %15296 = vtanh.f32 %v11648_v13  ;;  %11533 = vrot.lane.b32.xlu1 %v15291_v11, %s15623_s11  ;;  %v11649_v54 = vadd.f32 %v11645_v21, %v19723_v32  ;;  %v14503_v42 = vmul.f32 -1.442695, %v11648_v13 }
 0xa3d   :  { %15298 = vtanh.f32 %v11649_v54  ;;  %v14504_v52 = vmul.f32 -1.442695, %v11649_v54 }
 0xa3e   :  { %15300 = vpow2.f32 %v14497_v0 }
 0xa3f   :  { %15302 = vpow2.f32 %v14498_v46 }
 0xa40   :  { %v15293_v29 = vpop.eup %15292  ;;  %15304 = vpow2.f32 %v14500_v20 }
 0xa41   :  { %11607 = vrot.lane.b32.xlu0 %v15293_v29, %s15623_s11  ;;  %15306 = vpow2.f32 %v14501_v3 }
 0xa42   :  { %v15295_v17 = vpop.eup %15294  ;;  %15308 = vpow2.f32 %v14503_v42 }
 0xa43   :  { %11609 = vrot.lane.b32.xlu1 %v15295_v17, %s15623_s11 }
 0xa48   :  { %v15297_v62 = vpop.eup %15296 }
 0xa49   :  { %11683 = vrot.lane.b32.xlu0 %v15297_v62, %s15623_s11 }
 0xa4a   :  { %v15299_v36 = vpop.eup %15298 }
 0xa4b   :  { %11685 = vrot.lane.b32.xlu1 %v15299_v36, %s15623_s11  ;;  %v15301_v34 = vpop.eup %15300 }
 0xa4c   :  { %v15303_v28 = vpop.eup %15302  ;;  %v11504_v37 = vadd.f32 1.0, %v15301_v34 }
 0xa4d   :  { %11521 = vrot.lane.b32.xlu0 %v14499_v59, %s15621_s3  ;;  %v11505_v47 = vadd.f32 1.0, %v15303_v28  ;;  %v15305_v49 = vpop.eup %15304 }
 0xa4e   :  { %15310 = vrcp.f32 %v11504_v37  ;;  %v15307_v48 = vpop.eup %15306  ;;  %v11580_v43 = vadd.f32 1.0, %v15305_v49 }
 0xa4f   :  { %11523 = vrot.lane.b32.xlu1 %v11520_v6, %s15621_s3  ;;  %15312 = vpow2.f32 %v14504_v52  ;;  %v11581_v40 = vadd.f32 1.0, %v15307_v48  ;;  %v15309_v50 = vpop.eup %15308 }
 0xa50   :  { %15314 = vrcp.f32 %v11505_v47  ;;  %v11656_v7 = vadd.f32 1.0, %v15309_v50 }
 0xa51   :  { %11597 = vrot.lane.b32.xlu0 %v14502_v14, %s15621_s3  ;;  %15316 = vrcp.f32 %v11580_v43 }
 0xa52   :  { %15318 = vrcp.f32 %v11581_v40 }
 0xa53   :  { %11599 = vrot.lane.b32.xlu1 %v11596_v45, %s15621_s3  ;;  %15320 = vrcp.f32 %v11656_v7 }
 0xa55   :  { %11673 = vrot.lane.b32.xlu0 %v14505_v30, %s15621_s3 }
 0xa57   :  { %11675 = vrot.lane.b32.xlu1 %v11672_v22, %s15621_s3 }
 0xa5b   :  { %v19746_v12 = vpop.eup %15310 }
 0xa5c   :  { %v15313_v31 = vpop.eup %15312 }
 0xa5d   :  { %v19749_v27 = vpop.eup %15314  ;;  %v11657_v58 = vadd.f32 1.0, %v15313_v31 }
 0xa5e   :  { %v19754_v53 = vpop.eup %15316 }
 0xa5f   :  { %15322 = vrcp.f32 %v11657_v58  ;;  %v19757_v13 = vpop.eup %15318 }
 0xa60   :  { %v19762_v29 = vpop.eup %15320 }
 0xa6c   :  { %v19766_v59 = vpop.eup %15322 }
 0xaab   :  { %v11532_v55 = vpop.permute.xlu0 %11531 }
 0xaac   :  { %v11537_v18 = vmul.f32 %v19746_v12, %v11532_v55 }
 0xaad   :  { %v11534_v60 = vpop.permute.xlu1 %11533 }
 0xaae   :  { %11541 = vrot.lane.b32.xlu0 %v11537_v18, %s15621_s3  ;;  %v11538_v15 = vmul.f32 %v19749_v27, %v11534_v60 }
 0xab0   :  { %11543 = vrot.lane.b32.xlu1 %v11538_v15, %s15621_s3 }
 0xab3   :  { %v11608_v25 = vpop.permute.xlu0 %11607 }
 0xab4   :  { %v11613_v21 = vmul.f32 %v19754_v53, %v11608_v25 }
 0xab5   :  { %v11610_v11 = vpop.permute.xlu1 %11609 }
 0xab6   :  { %11617 = vrot.lane.b32.xlu0 %v11613_v21, %s15621_s3  ;;  %v11614_v54 = vmul.f32 %v19757_v13, %v11610_v11 }
 0xab8   :  { %11619 = vrot.lane.b32.xlu1 %v11614_v54, %s15621_s3 }
 0xabb   :  { %v11684_v17 = vpop.permute.xlu0 %11683 }
 0xabc   :  { %v11689_v62 = vmul.f32 %v19762_v29, %v11684_v17 }
 0xabd   :  { %v11686_v36 = vpop.permute.xlu1 %11685 }
 0xabe   :  { %11693 = vrot.lane.b32.xlu0 %v11689_v62, %s15621_s3  ;;  %v11690_v14 = vmul.f32 %v19766_v59, %v11686_v36  ;;  %v20834_v62 = vld [vmem:[#allocation5_spill] sm:$0xff] }
 0xabf   :  { %v11522_v6 = vpop.permute.xlu0 %11521  ;;  %v19801_v36 = vsub.s32 0, %v20834_v62 }
 0xac0   :  { %11695 = vrot.lane.b32.xlu1 %v11690_v14, %s15621_s3  ;;  %v11527_v46 = vmul.f32 %v19746_v12, %v11522_v6 }
 0xac1   :  { %v11524_v30 = vpop.permute.xlu1 %11523 }
 0xac2   :  { %v11528_v34 = vmul.f32 %v19749_v27, %v11524_v30 }
 0xac3   :  { %v11598_v45 = vpop.permute.xlu0 %11597 }
 0xac4   :  { %v11603_v52 = vmul.f32 %v19754_v53, %v11598_v45 }
 0xac5   :  { %v11600_v22 = vpop.permute.xlu1 %11599 }
 0xac6   :  { %v11604_v48 = vmul.f32 %v19757_v13, %v11600_v22 }
 0xac7   :  { %v11674_v0 = vpop.permute.xlu0 %11673 }
 0xac8   :  { %v11679_v50 = vmul.f32 %v19762_v29, %v11674_v0 }
 0xac9   :  { %v11676_v20 = vpop.permute.xlu1 %11675 }
 0xaca   :  { %v11680_v60 = vmul.f32 %v19766_v59, %v11676_v20 }
 0xb20   :  { %v11542_v3 = vpop.permute.xlu0 %11541 }
 0xb21   :  { %v19771_v42 = vadd.f32 %v11542_v3, %v11527_v46 }
 0xb22   :  { %v11544_v28 = vpop.permute.xlu1 %11543 }
 0xb23   :  { %15324 = vtanh.f32 %v19771_v42  ;;  %v19775_v37 = vadd.f32 %v11544_v28, %v11528_v34 }
 0xb25   :  { %15326 = vtanh.f32 %v19775_v37 }
 0xb28   :  { %v11618_v47 = vpop.permute.xlu0 %11617 }
 0xb29   :  { %v19779_v49 = vadd.f32 %v11618_v47, %v11603_v52 }
 0xb2a   :  { %v11620_v43 = vpop.permute.xlu1 %11619 }
 0xb2b   :  { %15328 = vtanh.f32 %v19779_v49  ;;  %v19783_v40 = vadd.f32 %v11620_v43, %v11604_v48 }
 0xb2d   :  { %15330 = vtanh.f32 %v19783_v40 }
 0xb30   :  { %v15325_v7 = vpop.eup %15324  ;;  %v11694_v55 = vpop.permute.xlu0 %11693 }
 0xb31   :  { %v19787_v18 = vadd.f32 %v11694_v55, %v11679_v50  ;;  %11553 = vrot.lane.b32.xlu0 %v15325_v7, %s15623_s11 }
 0xb32   :  { %v15327_v31 = vpop.eup %15326  ;;  %v11696_v15 = vpop.permute.xlu1 %11695 }
 0xb33   :  { %15332 = vtanh.f32 %v19787_v18  ;;  %11555 = vrot.lane.b32.xlu1 %v15327_v31, %s15623_s11  ;;  %v19793_v58 = vadd.f32 %v11696_v15, %v11680_v60 }
 0xb35   :  { %15334 = vtanh.f32 %v19793_v58 }
 0xb38   :  { %v15329_v25 = vpop.eup %15328 }
 0xb39   :  { %11629 = vrot.lane.b32.xlu0 %v15329_v25, %s15623_s11 }
 0xb3a   :  { %v15331_v21 = vpop.eup %15330 }
 0xb3b   :  { %11631 = vrot.lane.b32.xlu1 %v15331_v21, %s15623_s11 }
 0xb40   :  { %v15333_v11 = vpop.eup %15332 }
 0xb41   :  { %11705 = vrot.lane.b32.xlu0 %v15333_v11, %s15623_s11 }
 0xb42   :  { %v15335_v54 = vpop.eup %15334 }
 0xb43   :  { %11707 = vrot.lane.b32.xlu1 %v15335_v54, %s15623_s11 }
 0xba3   :  { %v11554_v17 = vpop.permute.xlu0 %11553 }
 0xba4   :  { %v11559_v14 = vmul.f32 %v19746_v12, %v11554_v17 }
 0xba5   :  { %v11556_v6 = vpop.permute.xlu1 %11555 }
 0xba6   :  { %v11560_v30 = vmul.f32 %v19749_v27, %v11556_v6  ;;  %v11718_v45 = vrot.slane %v11559_v14, %v19801_v36 }
 0xba8   :  { %v11722_v22 = vrot.slane %v11560_v30, %v19801_v36 }
 0xbaa   :  { %v11723_v46 = vsel %vm2598_vm8, %v11722_v22, %v11718_v45 }
 0xbab   :  { %v11630_v0 = vpop.permute.xlu0 %11629  ;;  %11724 = vrot.lane.b32.xlu0 %v11723_v46, %s15621_s3 }
 0xbac   :  { %v11635_v20 = vmul.f32 %v19754_v53, %v11630_v0 }
 0xbad   :  { %v11632_v3 = vpop.permute.xlu1 %11631 }
 0xbae   :  { %v11636_v34 = vmul.f32 %v19757_v13, %v11632_v3  ;;  %v11803_v28 = vrot.slane %v11635_v20, %v19801_v36 }
 0xbb0   :  { %v11807_v12 = vrot.slane %v11636_v34, %v19801_v36 }
 0xbb2   :  { %v11808_v27 = vsel %vm2598_vm8, %v11807_v12, %v11803_v28 }
 0xbb3   :  { %11809 = vrot.lane.b32.xlu1 %v11808_v27, %s15621_s3  ;;  %v11706_v52 = vpop.permute.xlu0 %11705 }
 0xbb4   :  { %v11711_v47 = vmul.f32 %v19762_v29, %v11706_v52 }
 0xbb5   :  { %v11708_v48 = vpop.permute.xlu1 %11707 }
 0xbb6   :  { %v11712_v43 = vmul.f32 %v19766_v59, %v11708_v48  ;;  %v11888_v50 = vrot.slane %v11711_v47, %v19801_v36 }
 0xbb8   :  { %v11892_v53 = vrot.slane %v11712_v43, %v19801_v36 }
 0xbba   :  { %v11893_v13 = vsel %vm2598_vm8, %v11892_v53, %v11888_v50 }
 0xbbb   :  { %11894 = vrot.lane.b32.xlu0 %v11893_v13, %s15621_s3 }
 0xc1d   :  { %v11725_v7 = vpop.permute.xlu0 %11724 }
 0xc1e   :  { %15082 = vmatmul.mubr.msk.f32.vlgmr.msra.gmra.mxu0 %vm20835_vm7, %v11725_v7  ;;  %vm20848_vm7 = vmmov %vm20839_vm0 }
 0xc1f   :  { %15096 = vmatpush3.msra.mxu0 %v19629_v41  ;;  %15103 = vmatprep.mubr.msk.f32.mxu0 %vm15618_vm3, %v20640_v10 }
 0xc20   :  { %15097 = vmatprep.subr.mxu0 %v20640_v10 }
 0xc21   :  { %15098 = vmatpush3.msra.mxu0 %v19637_v57 }
 0xc22   :  { %15099 = vmatprep.subr.mxu0 %v20640_v10 }
 0xc23   :  { %15100 = vmatpush3.msra.mxu0 %v19646_v56 }
 0xc24   :  { %15101 = vmatprep.subr.mxu0 %v20640_v10 }
 0xc25   :  { %v11810_v29 = vpop.permute.xlu1 %11809  ;;  %15102 = vmatpush3.msra.mxu0 %v19653_v9 }
 0xc26   :  { %15093 = vmatmul.mubr.msk.f32.vlgmr.msra.gmra.mxu1 %vm20836_vm6, %v11810_v29  ;;  %15117 = vmatprep.subr.mxu0 %v20640_v10  ;;  %vm20849_vm6 = vmmov %vm20839_vm0 }
 0xc27   :  { %15107 = vmatpush3.msra.mxu1 %v19449_v5  ;;  %15114 = vmatprep.mubr.msk.f32.mxu1 %vm15618_vm3, %v20640_v10 }
 0xc28   :  { %15108 = vmatprep.subr.mxu1 %v20640_v10 }
 0xc29   :  { %15109 = vmatpush3.msra.mxu1 %v19455_v39 }
 0xc2a   :  { %15110 = vmatprep.subr.mxu1 %v20640_v10 }
 0xc2b   :  { %15111 = vmatpush3.msra.mxu1 %v19462_v51 }
 0xc2c   :  { %15112 = vmatprep.subr.mxu1 %v20640_v10 }
 0xc2d   :  { %15113 = vmatpush3.msra.mxu1 %v19469_v44  ;;  %v11895_v59 = vpop.permute.xlu0 %11894 }
 0xc2e   :  { %15128 = vmatprep.subr.mxu1 %v20640_v10  ;;  %15104 = vmatmul.mubr.msk.f32.vlgmr.msra.gmra.mxu0 %vm20837_vm2, %v11895_v59  ;;  %vm20851_vm2 = vmmov %vm20839_vm0 }
 0xc2f   :  { %15118 = vmatpush3.msra.mxu0 %v19595_v63  ;;  %15125 = vmatprep.mubr.msk.f32.mxu0 %vm15618_vm3, %v20640_v10 }
 0xc30   :  { %15119 = vmatprep.subr.mxu0 %v20640_v10 }
 0xc31   :  { %15120 = vmatpush3.msra.mxu0 %v19603_v8 }
 0xc32   :  { %15121 = vmatprep.subr.mxu0 %v20640_v10 }
 0xc33   :  { %15122 = vmatpush3.msra.mxu0 %v19612_v26 }
 0xc34   :  { %15123 = vmatprep.subr.mxu0 %v20640_v10 }
 0xc35   :  { %15124 = vmatpush3.msra.mxu0 %v19619_v2 }
 0xc36   :  { %15139 = vmatprep.subr.mxu0 %v20640_v10 }
 0xcde   :  { %v11794_v5 = vpop.f32.mrf.mxu0 }
 0xcdf   :  { %v11975_v39 = vrot.slane %v11794_v5, %v16936_v35 }
 0xce0   :  { %v15083_v51 = vpop.f32.mrf.mxu0 }
 0xce1   :  { %v11976_v44 = vrot.slane %v11975_v39, 7  ;;  %v11980_v55 = vadd.f32 %v11975_v39, %v19695_v33 }
 0xce3   :  { %v11979_v31 = vadd.f32 %v11976_v44, %v19690_v38  ;;  %15336 = vtanh.f32 %v11980_v55  ;;  %v14510_v34 = vmul.f32 -1.442695, %v11980_v55 }
 0xce5   :  { %15338 = vtanh.f32 %v11979_v31 }
 0xce6   :  { %v11879_v60 = vpop.f32.mrf.mxu1 }
 0xce7   :  { %v12042_v15 = vrot.slane %v11879_v60, %v16936_v35 }
 0xce8   :  { %v15094_v25 = vpop.f32.mrf.mxu1 }
 0xce9   :  { %v12043_v21 = vrot.slane %v12042_v15, 7  ;;  %v12047_v11 = vadd.f32 %v12042_v15, %v19708_v24 }
 0xceb   :  { %v12046_v54 = vadd.f32 %v12043_v21, %v19703_v61  ;;  %15340 = vtanh.f32 %v12047_v11  ;;  %v14512_v28 = vmul.f32 -1.442695, %v12047_v11 }
 0xced   :  { %15342 = vtanh.f32 %v12046_v54  ;;  %v14511_v12 = vmul.f32 -1.442695, %v12046_v54 }
 0xcee   :  { %v11964_v14 = vpop.f32.mrf.mxu0 }
 0xcef   :  { %v12109_v33 = vrot.slane %v11964_v14, %v16936_v35 }
 0xcf0   :  { %v15337_v17 = vpop.eup %15336  ;;  %v15105_v30 = vpop.f32.mrf.mxu0 }
 0xcf1   :  { %12007 = vrot.lane.b32.xlu0 %v15337_v17, %s15623_s11  ;;  %v12110_v45 = vrot.slane %v12109_v33, 7  ;;  %v12114_v22 = vadd.f32 %v12109_v33, %v19723_v32  ;;  %v14509_v32 = vmul.f32 -1.442695, %v11979_v31 }
 0xcf2   :  { %v15339_v6 = vpop.eup %15338 }
 0xcf3   :  { %12005 = vrot.lane.b32.xlu1 %v15339_v6, %s15623_s11  ;;  %v12113_v0 = vadd.f32 %v12110_v45, %v19713_v4  ;;  %15344 = vtanh.f32 %v12114_v22  ;;  %v14514_v52 = vmul.f32 -1.442695, %v12114_v22 }
 0xcf5   :  { %15346 = vtanh.f32 %v12113_v0  ;;  %v14513_v43 = vmul.f32 -1.442695, %v12113_v0 }
 0xcf6   :  { %15348 = vpow2.f32 %v14510_v34 }
 0xcf7   :  { %15350 = vpow2.f32 %v14509_v32 }
 0xcf8   :  { %v15341_v24 = vpop.eup %15340  ;;  %15352 = vpow2.f32 %v14512_v28 }
 0xcf9   :  { %12074 = vrot.lane.b32.xlu0 %v15341_v24, %s15623_s11  ;;  %15354 = vpow2.f32 %v14511_v12 }
 0xcfa   :  { %v15343_v46 = vpop.eup %15342  ;;  %15356 = vpow2.f32 %v14514_v52  ;;  %v12065_v52 = vrot.slane %v19783_v40, 7  ;;  %v12132_v40 = vrot.slane %v19793_v58, 7 }
 0xcfb   :  { %12072 = vrot.lane.b32.xlu1 %v15343_v46, %s15623_s11  ;;  %v11998_v46 = vrot.slane %v19775_v37, 7 }
 0xd00   :  { %v15345_v20 = vpop.eup %15344 }
 0xd01   :  { %12141 = vrot.lane.b32.xlu0 %v15345_v20, %s15623_s11 }
 0xd02   :  { %v15347_v3 = vpop.eup %15346 }
 0xd03   :  { %12139 = vrot.lane.b32.xlu1 %v15347_v3, %s15623_s11  ;;  %v15349_v27 = vpop.eup %15348  ;;  %v11997_v3 = vrot.slane %v19771_v42, 7 }
 0xd04   :  { %v15351_v47 = vpop.eup %15350  ;;  %v11988_v48 = vadd.f32 1.0, %v15349_v27 }
 0xd05   :  { %v11987_v50 = vadd.f32 1.0, %v15351_v47  ;;  %v15353_v53 = vpop.eup %15352  ;;  %v12064_v47 = vrot.slane %v19779_v49, 7 }
 0xd06   :  { %15358 = vrcp.f32 %v11988_v48  ;;  %v15355_v13 = vpop.eup %15354  ;;  %v12055_v7 = vadd.f32 1.0, %v15353_v53 }
 0xd07   :  { %15360 = vpow2.f32 %v14513_v43  ;;  %v12054_v29 = vadd.f32 1.0, %v15355_v13  ;;  %v15357_v59 = vpop.eup %15356 }
 0xd08   :  { %15362 = vrcp.f32 %v11987_v50  ;;  %v12122_v55 = vadd.f32 1.0, %v15357_v59 }
 0xd09   :  { %15364 = vrcp.f32 %v12055_v7 }
 0xd0a   :  { %15366 = vrcp.f32 %v12054_v29  ;;  %v12131_v29 = vrot.slane %v19787_v18, 7 }
 0xd0b   :  { %15368 = vrcp.f32 %v12122_v55 }
 0xd13   :  { %v19869_v5 = vpop.eup %15358 }
 0xd14   :  { %v15361_v44 = vpop.eup %15360  ;;  %v12002_v20 = vmul.f32 %v19869_v5, %v11998_v46 }
 0xd15   :  { %v19872_v31 = vpop.eup %15362  ;;  %v12121_v25 = vadd.f32 1.0, %v15361_v44 }
 0xd16   :  { %v19877_v21 = vpop.eup %15364  ;;  %v12001_v28 = vmul.f32 %v19872_v31, %v11997_v3 }
 0xd17   :  { %15370 = vrcp.f32 %v12121_v25  ;;  %v19880_v17 = vpop.eup %15366  ;;  %v12069_v37 = vmul.f32 %v19877_v21, %v12065_v52 }
 0xd18   :  { %v19885_v6 = vpop.eup %15368  ;;  %v12068_v43 = vmul.f32 %v19880_v17, %v12064_v47 }
 0xd19   :  { %v12136_v7 = vmul.f32 %v19885_v6, %v12132_v40 }
 0xd24   :  { %v19888_v22 = vpop.eup %15370 }
 0xd63   :  { %v12008_v39 = vpop.permute.xlu0 %12007 }
 0xd64   :  { %v12012_v51 = vmul.f32 %v19869_v5, %v12008_v39 }
 0xd65   :  { %v12006_v60 = vpop.permute.xlu1 %12005 }
 0xd66   :  { %12017 = vrot.lane.b32.xlu0 %v12012_v51, %s15621_s3  ;;  %v12011_v15 = vmul.f32 %v19872_v31, %v12006_v60  ;;  %v12135_v51 = vmul.f32 %v19888_v22, %v12131_v29 }
 0xd68   :  { %12015 = vrot.lane.b32.xlu1 %v12011_v15, %s15621_s3 }
 0xd6b   :  { %v12075_v11 = vpop.permute.xlu0 %12074 }
 0xd6c   :  { %v12079_v54 = vmul.f32 %v19877_v21, %v12075_v11  ;;  %v19930_v11 = vsub.s32 1, %v20834_v62 }
 0xd6d   :  { %v12073_v14 = vpop.permute.xlu1 %12072 }
 0xd6e   :  { %12084 = vrot.lane.b32.xlu0 %v12079_v54, %s15621_s3  ;;  %v12078_v33 = vmul.f32 %v19880_v17, %v12073_v14 }
 0xd70   :  { %12082 = vrot.lane.b32.xlu1 %v12078_v33, %s15621_s3 }
 0xd73   :  { %v12142_v30 = vpop.permute.xlu0 %12141 }
 0xd74   :  { %v12146_v45 = vmul.f32 %v19885_v6, %v12142_v30 }
 0xd75   :  { %v12140_v0 = vpop.permute.xlu1 %12139 }
 0xd76   :  { %12151 = vrot.lane.b32.xlu0 %v12146_v45, %s15621_s3  ;;  %v12145_v24 = vmul.f32 %v19888_v22, %v12140_v0 }
 0xd78   :  { %12149 = vrot.lane.b32.xlu1 %v12145_v24, %s15621_s3 }
 0xdd8   :  { %v12018_v34 = vpop.permute.xlu0 %12017 }
 0xdd9   :  { %v19896_v32 = vadd.f32 %v12018_v34, %v12002_v20 }
 0xdda   :  { %v12016_v12 = vpop.permute.xlu1 %12015 }
 0xddb   :  { %15372 = vtanh.f32 %v19896_v32  ;;  %v19900_v27 = vadd.f32 %v12016_v12, %v12001_v28 }
 0xddd   :  { %15374 = vtanh.f32 %v19900_v27 }
 0xde0   :  { %v12085_v48 = vpop.permute.xlu0 %12084 }
 0xde1   :  { %v19906_v42 = vadd.f32 %v12085_v48, %v12069_v37 }
 0xde2   :  { %v12083_v50 = vpop.permute.xlu1 %12082 }
 0xde3   :  { %15376 = vtanh.f32 %v19906_v42  ;;  %v19910_v53 = vadd.f32 %v12083_v50, %v12068_v43 }
 0xde5   :  { %15378 = vtanh.f32 %v19910_v53 }
 0xde8   :  { %v15373_v13 = vpop.eup %15372  ;;  %v12152_v59 = vpop.permute.xlu0 %12151 }
 0xde9   :  { %12029 = vrot.lane.b32.xlu0 %v15373_v13, %s15623_s11  ;;  %v19917_v39 = vadd.f32 %v12152_v59, %v12136_v7  ;;  %v20842_v59 = vld [vmem:[#allocation8_spill] sm:$0xff] }
 0xdea   :  { %v15375_v49 = vpop.eup %15374  ;;  %v12150_v44 = vpop.permute.xlu1 %12149 }
 0xdeb   :  { %12027 = vrot.lane.b32.xlu1 %v15375_v49, %s15623_s11  ;;  %15380 = vtanh.f32 %v19917_v39  ;;  %v19922_v55 = vadd.f32 %v12150_v44, %v12135_v51  ;;  %v20016_v49 = vcombine.high %v19703_v61, %v19703_v61  ;;  %v20021_v51 = vrot.slane %v20842_v59, %v16936_v35 }
 0xdec   :  { %v20028_v61 = vcombine.high %v19713_v4, %v19713_v4 }
 0xded   :  { %15382 = vtanh.f32 %v19922_v55 }
 0xdf0   :  { %v15377_v58 = vpop.eup %15376 }
 0xdf1   :  { %12096 = vrot.lane.b32.xlu0 %v15377_v58, %s15623_s11 }
 0xdf2   :  { %v15379_v60 = vpop.eup %15378 }
 0xdf3   :  { %12094 = vrot.lane.b32.xlu1 %v15379_v60, %s15623_s11 }
 0xdf8   :  { %v15381_v18 = vpop.eup %15380 }
 0xdf9   :  { %12163 = vrot.lane.b32.xlu0 %v15381_v18, %s15623_s11 }
 0xdfa   :  { %v15383_v15 = vpop.eup %15382 }
 0xdfb   :  { %12161 = vrot.lane.b32.xlu1 %v15383_v15, %s15623_s11 }
 0xe5b   :  { %v12030_v25 = vpop.permute.xlu0 %12029 }
 0xe5c   :  { %v12034_v54 = vmul.f32 %v19869_v5, %v12030_v25 }
 0xe5d   :  { %v12028_v14 = vpop.permute.xlu1 %12027 }
 0xe5e   :  { %v12033_v33 = vmul.f32 %v19872_v31, %v12028_v14  ;;  %v12178_v30 = vrot.slane %v12034_v54, %v19930_v11 }
 0xe60   :  { %v12174_v45 = vrot.slane %v12033_v33, %v19930_v11  ;;  %v20033_v33 = vrot.slane %v19680_v1, %v16936_v35 }
 0xe62   :  { %v12179_v24 = vsel %vm2598_vm8, %v12178_v30, %v12174_v45 }
 0xe63   :  { %v12097_v0 = vpop.permute.xlu0 %12096  ;;  %12180 = vrot.lane.b32.xlu1 %v12179_v24, %s15621_s3 }
 0xe64   :  { %v12101_v46 = vmul.f32 %v19877_v21, %v12097_v0 }
 0xe65   :  { %v12095_v20 = vpop.permute.xlu1 %12094 }
 0xe66   :  { %v12100_v62 = vmul.f32 %v19880_v17, %v12095_v20  ;;  %v12263_v3 = vrot.slane %v12101_v46, %v19930_v11 }
 0xe68   :  { %v12259_v5 = vrot.slane %v12100_v62, %v19930_v11 }
 0xe6a   :  { %v12264_v31 = vsel %vm2598_vm8, %v12263_v3, %v12259_v5 }
 0xe6b   :  { %12265 = vrot.lane.b32.xlu0 %v12264_v31, %s15621_s3  ;;  %v12164_v34 = vpop.permute.xlu0 %12163 }
 0xe6c   :  { %v12168_v28 = vmul.f32 %v19885_v6, %v12164_v34 }
 0xe6d   :  { %v12162_v12 = vpop.permute.xlu1 %12161 }
 0xe6e   :  { %v12167_v52 = vmul.f32 %v19888_v22, %v12162_v12  ;;  %v12348_v37 = vrot.slane %v12168_v28, %v19930_v11 }
 0xe70   :  { %v12344_v21 = vrot.slane %v12167_v52, %v19930_v11 }
 0xe72   :  { %v12349_v17 = vsel %vm2598_vm8, %v12348_v37, %v12344_v21 }
 0xe73   :  { %12350 = vrot.lane.b32.xlu1 %v12349_v17, %s15621_s3 }
 0xed5   :  { %v12181_v47 = vpop.permute.xlu1 %12180 }
 0xed6   :  { %15115 = vmatmul.mubr.msk.f32.vlgmr.msra.gmra.mxu1 %vm20838_vm4, %v12181_v47  ;;  %vm14048_vm4 = vcmask 523264  }
 0xed7   :  { %15129 = vmatpush3.msra.mxu1 %v19629_v41  ;;  %15136 = vmatprep.mubr.msk.f32.mxu1 %vm15618_vm3, %v20640_v10  ;;  %v19965_v41 = vld [vmem:[%s20600_s10 + $0x18] sm:$0xff] }
 0xed8   :  { %15130 = vmatprep.subr.mxu1 %v20640_v10 }
 0xed9   :  { %15131 = vmatpush3.msra.mxu1 %v19637_v57  ;;  %v19974_v57 = vld [vmem:[%s20600_s10 + $0x10] sm:$0xff] }
 0xeda   :  { %15132 = vmatprep.subr.mxu1 %v20640_v10 }
 0xedb   :  { %15133 = vmatpush3.msra.mxu1 %v19646_v56  ;;  %v19981_v56 = vld [vmem:[%s20600_s10 + $0x8] sm:$0xff] }
 0xedc   :  { %15134 = vmatprep.subr.mxu1 %v20640_v10 }
 0xedd   :  { %v12266_v6 = vpop.permute.xlu0 %12265  ;;  %15135 = vmatpush3.msra.mxu1 %v19653_v9  ;;  %v19988_v9 = vld [vmem:[%s20600_s10] sm:$0xff] }
 0xede   :  { %15126 = vmatmul.mubr.msk.f32.vlgmr.msra.gmra.mxu0 %vm20839_vm0, %v12266_v6  ;;  %15150 = vmatprep.subr.mxu1 %v20640_v10 }
 0xedf   :  { %15140 = vmatpush3.msra.mxu0 %v19965_v41  ;;  %15147 = vmatprep.mubr.msk.f32.mxu0 %vm15618_vm3, %v20640_v10 }
 0xee0   :  { %15141 = vmatprep.subr.mxu0 %v20640_v10 }
 0xee1   :  { %15142 = vmatpush3.msra.mxu0 %v19974_v57 }
 0xee2   :  { %15143 = vmatprep.subr.mxu0 %v20640_v10 }
 0xee3   :  { %15144 = vmatpush3.msra.mxu0 %v19981_v56 }
 0xee4   :  { %15145 = vmatprep.subr.mxu0 %v20640_v10 }
 0xee5   :  { %15146 = vmatpush3.msra.mxu0 %v19988_v9  ;;  %v12351_v22 = vpop.permute.xlu1 %12350 }
 0xee6   :  { %15161 = vmatprep.subr.mxu0 %v20640_v10  ;;  %15137 = vmatmul.mubr.msk.f32.vlgmr.msra.gmra.mxu1 %vm20840_vm11, %v12351_v22  ;;  %vm14071_vm11 = vcmask 785408  }
 0xee7   :  { %15151 = vmatpush3.msra.mxu1 %v19595_v63  ;;  %15158 = vmatprep.mubr.msk.f32.mxu1 %vm15618_vm3, %v20640_v10  ;;  %v20005_v63 = vcombine.high %v19690_v38, %v19690_v38 }
 0xee8   :  { %15152 = vmatprep.subr.mxu1 %v20640_v10 }
 0xee9   :  { %15153 = vmatpush3.msra.mxu1 %v19603_v8  ;;  %v20841_v8 = vld [vmem:[#allocation6_spill] sm:$0xff] }
 0xeea   :  { %15154 = vmatprep.subr.mxu1 %v20640_v10  ;;  %v20010_v13 = vrot.slane %v20841_v8, %v16936_v35 }
 0xeeb   :  { %15155 = vmatpush3.msra.mxu1 %v19612_v26 }
 0xeec   :  { %15156 = vmatprep.subr.mxu1 %v20640_v10 }
 0xeed   :  { %15157 = vmatpush3.msra.mxu1 %v19619_v2 }
 0xeee   :  { %15172 = vmatprep.subr.mxu1 %v20640_v10 }
 0xf96   :  { %v12250_v48 = vpop.f32.mrf.mxu1 }
 0xf97   :  { %v12431_v43 = vrot.slane %v12250_v48, %v16936_v35 }
 0xf98   :  { %v15116_v50 = vpop.f32.mrf.mxu1 }
 0xf99   :  { %v12432_v40 = vrot.slane %v12431_v43, 1  ;;  %v12435_v26 = vadd.f32 %v12431_v43, %v20005_v63 }
 0xf9b   :  { %v12436_v7 = vadd.f32 %v12432_v40, %v20010_v13  ;;  %15384 = vtanh.f32 %v12435_v26  ;;  %v14518_v20 = vmul.f32 -1.442695, %v12435_v26 }
 0xf9d   :  { %15386 = vtanh.f32 %v12436_v7  ;;  %v14519_v62 = vmul.f32 -1.442695, %v12436_v7 }
 0xf9e   :  { %v12335_v2 = vpop.f32.mrf.mxu0 }
 0xf9f   :  { %v12500_v38 = vrot.slane %v12335_v2, %v16936_v35 }
 0xfa0   :  { %v15127_v29 = vpop.f32.mrf.mxu0 }
 0xfa1   :  { %v12501_v44 = vrot.slane %v12500_v38, 1  ;;  %v12504_v58 = vadd.f32 %v12500_v38, %v20016_v49 }
 0xfa3   :  { %v12505_v60 = vadd.f32 %v12501_v44, %v20021_v51  ;;  %15388 = vtanh.f32 %v12504_v58  ;;  %v14522_v3 = vmul.f32 -1.442695, %v12504_v58 }
 0xfa5   :  { %15390 = vtanh.f32 %v12505_v60  ;;  %v14523_v5 = vmul.f32 -1.442695, %v12505_v60 }
 0xfa6   :  { %v12420_v15 = vpop.f32.mrf.mxu1 }
 0xfa7   :  { %v12569_v25 = vrot.slane %v12420_v15, %v16936_v35 }
 0xfa8   :  { %v15385_v18 = vpop.eup %15384  ;;  %v15138_v14 = vpop.f32.mrf.mxu1 }
 0xfa9   :  { %12463 = vrot.lane.b32.xlu0 %v15385_v18, %s15623_s11  ;;  %v12570_v30 = vrot.slane %v12569_v25, 1  ;;  %v12573_v45 = vadd.f32 %v12569_v25, %v20028_v61 }
 0xfaa   :  { %v15387_v54 = vpop.eup %15386 }
 0xfab   :  { %12465 = vrot.lane.b32.xlu1 %v15387_v54, %s15623_s11  ;;  %v12574_v0 = vadd.f32 %v12570_v30, %v20033_v33  ;;  %15392 = vtanh.f32 %v12573_v45  ;;  %v14526_v34 = vmul.f32 -1.442695, %v12573_v45 }
 0xfad   :  { %15394 = vtanh.f32 %v12574_v0  ;;  %v14527_v52 = vmul.f32 -1.442695, %v12574_v0  ;;  %v14520_v0 = vrot.slane %v19900_v27, 9 }
 0xfae   :  { %15396 = vpow2.f32 %v14518_v20 }
 0xfaf   :  { %15398 = vpow2.f32 %v14519_v62 }
 0xfb0   :  { %v15389_v24 = vpop.eup %15388  ;;  %15400 = vpow2.f32 %v14522_v3 }
 0xfb1   :  { %12532 = vrot.lane.b32.xlu0 %v15389_v24, %s15623_s11  ;;  %15402 = vpow2.f32 %v14523_v5  ;;  %v14524_v5 = vrot.slane %v19910_v53, 9  ;;  %v14528_v53 = vrot.slane %v19922_v55, 9 }
 0xfb2   :  { %v15391_v4 = vpop.eup %15390  ;;  %15404 = vpow2.f32 %v14526_v34 }
 0xfb3   :  { %12534 = vrot.lane.b32.xlu1 %v15391_v4, %s15623_s11  ;;  %v14521_v4 = vrot.slane %v19896_v32, 9 }
 0xfb8   :  { %v15393_v46 = vpop.eup %15392 }
 0xfb9   :  { %12601 = vrot.lane.b32.xlu0 %v15393_v46, %s15623_s11 }
 0xfba   :  { %v15395_v1 = vpop.eup %15394 }
 0xfbb   :  { %12603 = vrot.lane.b32.xlu1 %v15395_v1, %s15623_s11  ;;  %v15397_v31 = vpop.eup %15396 }
 0xfbc   :  { %v15399_v28 = vpop.eup %15398  ;;  %v12443_v12 = vadd.f32 1.0, %v15397_v31  ;;  %v14525_v31 = vrot.slane %v19906_v42, 9 }
 0xfbd   :  { %v12444_v37 = vadd.f32 1.0, %v15399_v28  ;;  %v15401_v21 = vpop.eup %15400 }
 0xfbe   :  { %15406 = vrcp.f32 %v12443_v12  ;;  %v15403_v17 = vpop.eup %15402  ;;  %v12512_v47 = vadd.f32 1.0, %v15401_v21 }
 0xfbf   :  { %15408 = vpow2.f32 %v14527_v52  ;;  %v12513_v6 = vadd.f32 1.0, %v15403_v17  ;;  %v15405_v22 = vpop.eup %15404  ;;  %v14529_v17 = vrot.slane %v19917_v39, 9 }
 0xfc0   :  { %15410 = vrcp.f32 %v12444_v37  ;;  %v12581_v40 = vadd.f32 1.0, %v15405_v22 }
 0xfc1   :  { %15412 = vrcp.f32 %v12512_v47 }
 0xfc2   :  { %15414 = vrcp.f32 %v12513_v6 }
 0xfc3   :  { %15416 = vrcp.f32 %v12581_v40 }
 0xfcb   :  { %v20042_v48 = vpop.eup %15406 }
 0xfcc   :  { %v15409_v8 = vpop.eup %15408  ;;  %v12459_v24 = vmul.f32 %v20042_v48, %v14520_v0 }
 0xfcd   :  { %v20045_v26 = vpop.eup %15410  ;;  %v12582_v38 = vadd.f32 1.0, %v15409_v8 }
 0xfce   :  { %v20050_v29 = vpop.eup %15412  ;;  %v12460_v20 = vmul.f32 %v20045_v26, %v14521_v4 }
 0xfcf   :  { %15418 = vrcp.f32 %v12582_v38  ;;  %v20053_v58 = vpop.eup %15414  ;;  %v12528_v27 = vmul.f32 %v20050_v29, %v14524_v5 }
 0xfd0   :  { %v20058_v15 = vpop.eup %15416  ;;  %v12529_v28 = vmul.f32 %v20053_v58, %v14525_v31 }
 0xfd1   :  { %v12597_v21 = vmul.f32 %v20058_v15, %v14528_v53  ;;  %v20182_v53 = vld [vmem:[%s20600_s10 + $0x28] sm:$0xff] }
 0xfdc   :  { %v20061_v14 = vpop.eup %15418 }
 0xfdd   :  { %v12598_v22 = vmul.f32 %v20061_v14, %v14529_v17 }
0x101b   :  { %v12464_v43 = vpop.permute.xlu0 %12463 }
0x101c   :  { %v12469_v50 = vmul.f32 %v20042_v48, %v12464_v43 }
0x101d   :  { %v12466_v7 = vpop.permute.xlu1 %12465 }
0x101e   :  { %12473 = vrot.lane.b32.xlu0 %v12469_v50, %s15621_s3  ;;  %v12470_v2 = vmul.f32 %v20045_v26, %v12466_v7 }
0x1020   :  { %12475 = vrot.lane.b32.xlu1 %v12470_v2, %s15621_s3 }
0x1023   :  { %v12533_v59 = vpop.permute.xlu0 %12532 }
0x1024   :  { %v12538_v44 = vmul.f32 %v20050_v29, %v12533_v59 }
0x1025   :  { %v12535_v60 = vpop.permute.xlu1 %12534 }
0x1026   :  { %12542 = vrot.lane.b32.xlu0 %v12538_v44, %s15621_s3  ;;  %v12539_v18 = vmul.f32 %v20053_v58, %v12535_v60 }
0x1028   :  { %12544 = vrot.lane.b32.xlu1 %v12539_v18, %s15621_s3 }
0x102b   :  { %v12602_v25 = vpop.permute.xlu0 %12601 }
0x102c   :  { %v12607_v54 = vmul.f32 %v20058_v15, %v12602_v25 }
0x102d   :  { %v12604_v30 = vpop.permute.xlu1 %12603 }
0x102e   :  { %12611 = vrot.lane.b32.xlu0 %v12607_v54, %s15621_s3  ;;  %v12608_v45 = vmul.f32 %v20061_v14, %v12604_v30 }
0x1030   :  { %12613 = vrot.lane.b32.xlu1 %v12608_v45, %s15621_s3 }
0x1090   :  { %v12474_v46 = vpop.permute.xlu0 %12473 }
0x1091   :  { %v20069_v1 = vadd.f32 %v12474_v46, %v12459_v24 }
0x1092   :  { %v12476_v62 = vpop.permute.xlu1 %12475 }
0x1093   :  { %15420 = vtanh.f32 %v20069_v1  ;;  %v20073_v3 = vadd.f32 %v12476_v62, %v12460_v20 }
0x1095   :  { %15422 = vtanh.f32 %v20073_v3 }
0x1098   :  { %v12543_v34 = vpop.permute.xlu0 %12542 }
0x1099   :  { %v20079_v32 = vadd.f32 %v12543_v34, %v12528_v27  ;;  %v20124_v27 = vld [vmem:[%s20600_s10 + $0x58] sm:$0xff]  ;;  %v20147_v34 = vld [vmem:[%s20600_s10 + $0x40] sm:$0xff] }
0x109a   :  { %v12545_v12 = vpop.permute.xlu1 %12544 }
0x109b   :  { %15424 = vtanh.f32 %v20079_v32  ;;  %v20083_v52 = vadd.f32 %v12545_v12, %v12529_v28  ;;  %v20166_v12 = vld [vmem:[%s20600_s10 + $0x38] sm:$0xff] }
0x109d   :  { %15426 = vtanh.f32 %v20083_v52 }
0x10a0   :  { %v15421_v37 = vpop.eup %15420  ;;  %v12612_v47 = vpop.permute.xlu0 %12611 }
0x10a1   :  { %12485 = vrot.lane.b32.xlu0 %v15421_v37, %s15623_s11  ;;  %v20090_v6 = vadd.f32 %v12612_v47, %v12597_v21  ;;  %v20175_v37 = vld [vmem:[%s20600_s10 + $0x30] sm:$0xff]  ;;  %v20189_v21 = vld [vmem:[%s20600_s10 + $0x20] sm:$0xff] }
0x10a2   :  { %v15423_v42 = vpop.eup %15422  ;;  %v12614_v43 = vpop.permute.xlu1 %12613 }
0x10a3   :  { %12487 = vrot.lane.b32.xlu1 %v15423_v42, %s15623_s11  ;;  %15428 = vtanh.f32 %v20090_v6  ;;  %v20095_v50 = vadd.f32 %v12614_v43, %v12598_v22 }
0x10a5   :  { %15430 = vtanh.f32 %v20095_v50 }
0x10a8   :  { %v15425_v55 = vpop.eup %15424 }
0x10a9   :  { %12554 = vrot.lane.b32.xlu0 %v15425_v55, %s15623_s11 }
0x10aa   :  { %v15427_v8 = vpop.eup %15426 }
0x10ab   :  { %12556 = vrot.lane.b32.xlu1 %v15427_v8, %s15623_s11 }
0x10b0   :  { %v15429_v39 = vpop.eup %15428 }
0x10b1   :  { %12623 = vrot.lane.b32.xlu0 %v15429_v39, %s15623_s11 }
0x10b2   :  { %v15431_v40 = vpop.eup %15430 }
0x10b3   :  { %12625 = vrot.lane.b32.xlu1 %v15431_v40, %s15623_s11 }
0x1113   :  { %v12486_v7 = vpop.permute.xlu0 %12485 }
0x1114   :  { %v12491_v2 = vmul.f32 %v20042_v48, %v12486_v7 }
0x1115   :  { %v12488_v38 = vpop.permute.xlu1 %12487 }
0x1116   :  { %v12492_v59 = vmul.f32 %v20045_v26, %v12488_v38  ;;  %v12636_v44 = vrot.slane %v12491_v2, %v19801_v36 }
0x1118   :  { %v12640_v60 = vrot.slane %v12492_v59, %v19801_v36 }
0x111a   :  { %v12641_v25 = vsel %vm2598_vm8, %v12640_v60, %v12636_v44 }
0x111b   :  { %v12555_v18 = vpop.permute.xlu0 %12554  ;;  %12642 = vrot.lane.b32.xlu0 %v12641_v25, %s15621_s3 }
0x111c   :  { %v12560_v54 = vmul.f32 %v20050_v29, %v12555_v18 }
0x111d   :  { %v12557_v30 = vpop.permute.xlu1 %12556 }
0x111e   :  { %v12561_v45 = vmul.f32 %v20053_v58, %v12557_v30  ;;  %v12721_v0 = vrot.slane %v12560_v54, %v19801_v36 }
0x1120   :  { %v12725_v48 = vrot.slane %v12561_v45, %v19801_v36 }
0x1122   :  { %v12726_v26 = vsel %vm2598_vm8, %v12725_v48, %v12721_v0 }
0x1123   :  { %12727 = vrot.lane.b32.xlu1 %v12726_v26, %s15621_s3  ;;  %v12624_v24 = vpop.permute.xlu0 %12623 }
0x1124   :  { %v12629_v4 = vmul.f32 %v20058_v15, %v12624_v24  ;;  %v20133_v15 = vld [vmem:[%s20600_s10 + $0x50] sm:$0xff] }
0x1125   :  { %v12626_v46 = vpop.permute.xlu1 %12625 }
0x1126   :  { %v12630_v20 = vmul.f32 %v20061_v14, %v12626_v46  ;;  %v12806_v62 = vrot.slane %v12629_v4, %v19801_v36  ;;  %v20140_v14 = vld [vmem:[%s20600_s10 + $0x48] sm:$0xff] }
0x1128   :  { %v12810_v29 = vrot.slane %v12630_v20, %v19801_v36 }
0x112a   :  { %v12811_v58 = vsel %vm2598_vm8, %v12810_v29, %v12806_v62 }
0x112b   :  { %12812 = vrot.lane.b32.xlu0 %v12811_v58, %s15621_s3 }
0x118d   :  { %v12643_v5 = vpop.permute.xlu0 %12642 }
0x118e   :  { %15148 = vmatmul.mubr.msk.f32.vlgmr.msra.gmra.mxu0 %vm20843_vm12, %v12643_v5 }
0x118f   :  { %15162 = vmatpush3.msra.mxu0 %v20124_v27  ;;  %15169 = vmatprep.mubr.msk.f32.mxu0 %vm15618_vm3, %v20640_v10 }
0x1190   :  { %15163 = vmatprep.subr.mxu0 %v20640_v10 }
0x1191   :  { %15164 = vmatpush3.msra.mxu0 %v20133_v15 }
0x1192   :  { %15165 = vmatprep.subr.mxu0 %v20640_v10 }
0x1193   :  { %15166 = vmatpush3.msra.mxu0 %v20140_v14 }
0x1194   :  { %15167 = vmatprep.subr.mxu0 %v20640_v10 }
0x1195   :  { %v12728_v31 = vpop.permute.xlu1 %12727  ;;  %15168 = vmatpush3.msra.mxu0 %v20147_v34 }
0x1196   :  { %15159 = vmatmul.mubr.msk.f32.vlgmr.msra.gmra.mxu1 %vm20844_vm13, %v12728_v31  ;;  %15183 = vmatprep.subr.mxu0 %v20640_v10 }
0x1197   :  { %15173 = vmatpush3.msra.mxu1 %v19965_v41  ;;  %15180 = vmatprep.mubr.msk.f32.mxu1 %vm15618_vm3, %v20640_v10 }
0x1198   :  { %15174 = vmatprep.subr.mxu1 %v20640_v10 }
0x1199   :  { %15175 = vmatpush3.msra.mxu1 %v19974_v57 }
0x119a   :  { %15176 = vmatprep.subr.mxu1 %v20640_v10 }
0x119b   :  { %15177 = vmatpush3.msra.mxu1 %v19981_v56 }
0x119c   :  { %15178 = vmatprep.subr.mxu1 %v20640_v10 }
0x119d   :  { %15179 = vmatpush3.msra.mxu1 %v19988_v9  ;;  %v12813_v28 = vpop.permute.xlu0 %12812 }
0x119e   :  { %15194 = vmatprep.subr.mxu1 %v20640_v10  ;;  %15170 = vmatmul.mubr.msk.f32.vlgmr.msra.gmra.mxu0 %vm20845_vm10, %v12813_v28 }
0x119f   :  { %15184 = vmatpush3.msra.mxu0 %v20166_v12  ;;  %15191 = vmatprep.mubr.msk.f32.mxu0 %vm15618_vm3, %v20640_v10 }
0x11a0   :  { %15185 = vmatprep.subr.mxu0 %v20640_v10 }
0x11a1   :  { %15186 = vmatpush3.msra.mxu0 %v20175_v37 }
0x11a2   :  { %15187 = vmatprep.subr.mxu0 %v20640_v10 }
0x11a3   :  { %15188 = vmatpush3.msra.mxu0 %v20182_v53 }
0x11a4   :  { %15189 = vmatprep.subr.mxu0 %v20640_v10 }
0x11a5   :  { %15190 = vmatpush3.msra.mxu0 %v20189_v21 }
0x11a6   :  { %15205 = vmatprep.subr.mxu0 %v20640_v10 }
0x124e   :  { %v12712_v42 = vpop.f32.mrf.mxu0 }
0x124f   :  { %v12893_v17 = vrot.slane %v12712_v42, %v16936_v35 }
0x1250   :  { %v15149_v47 = vpop.f32.mrf.mxu0 }
0x1251   :  { %v12894_v22 = vrot.slane %v12893_v17, 7  ;;  %v12898_v43 = vadd.f32 %v12893_v17, %v20010_v13 }
0x1253   :  { %v12897_v55 = vadd.f32 %v12894_v22, %v20005_v63  ;;  %15432 = vtanh.f32 %v12898_v43  ;;  %v14534_v26 = vmul.f32 -1.442695, %v12898_v43 }
0x1255   :  { %15434 = vtanh.f32 %v12897_v55  ;;  %v14533_v24 = vmul.f32 -1.442695, %v12897_v55 }
0x1256   :  { %v12797_v8 = vpop.f32.mrf.mxu1 }
0x1257   :  { %v12960_v39 = vrot.slane %v12797_v8, %v16936_v35 }
0x1258   :  { %v15160_v40 = vpop.f32.mrf.mxu1 }
0x1259   :  { %v12961_v7 = vrot.slane %v12960_v39, 7  ;;  %v12965_v2 = vadd.f32 %v12960_v39, %v20021_v51 }
0x125b   :  { %v12964_v38 = vadd.f32 %v12961_v7, %v20016_v49  ;;  %15436 = vtanh.f32 %v12965_v2  ;;  %v14536_v4 = vmul.f32 -1.442695, %v12965_v2 }
0x125d   :  { %15438 = vtanh.f32 %v12964_v38 }
0x125e   :  { %v12882_v44 = vpop.f32.mrf.mxu0 }
0x125f   :  { %v13027_v60 = vrot.slane %v12882_v44, %v16936_v35 }
0x1260   :  { %v15433_v59 = vpop.eup %15432  ;;  %v15171_v18 = vpop.f32.mrf.mxu0 }
0x1261   :  { %12925 = vrot.lane.b32.xlu0 %v15433_v59, %s15623_s11  ;;  %v13028_v25 = vrot.slane %v13027_v60, 7  ;;  %v13032_v54 = vadd.f32 %v13027_v60, %v20033_v33 }
0x1262   :  { %v15435_v63 = vpop.eup %15434 }
0x1263   :  { %12923 = vrot.lane.b32.xlu1 %v15435_v63, %s15623_s11  ;;  %v13031_v30 = vadd.f32 %v13028_v25, %v20028_v61  ;;  %15440 = vtanh.f32 %v13032_v54  ;;  %v14535_v61 = vmul.f32 -1.442695, %v12964_v38  ;;  %v14538_v20 = vmul.f32 -1.442695, %v13032_v54 }
0x1265   :  { %15442 = vtanh.f32 %v13031_v30  ;;  %v14537_v58 = vmul.f32 -1.442695, %v13031_v30 }
0x1266   :  { %15444 = vpow2.f32 %v14534_v26  ;;  %v12916_v26 = vrot.slane %v20073_v3, 7 }
0x1267   :  { %15446 = vpow2.f32 %v14533_v24 }
0x1268   :  { %v15437_v45 = vpop.eup %15436  ;;  %15448 = vpow2.f32 %v14536_v4  ;;  %v12915_v4 = vrot.slane %v20069_v1, 7 }
0x1269   :  { %12992 = vrot.lane.b32.xlu0 %v15437_v45, %s15623_s11  ;;  %15450 = vpow2.f32 %v14535_v61 }
0x126a   :  { %v15439_v49 = vpop.eup %15438  ;;  %15452 = vpow2.f32 %v14538_v20 }
0x126b   :  { %12990 = vrot.lane.b32.xlu1 %v15439_v49, %s15623_s11 }
0x1270   :  { %v15441_v0 = vpop.eup %15440 }
0x1271   :  { %13059 = vrot.lane.b32.xlu0 %v15441_v0, %s15623_s11 }
0x1272   :  { %v15443_v48 = vpop.eup %15442 }
0x1273   :  { %13057 = vrot.lane.b32.xlu1 %v15443_v48, %s15623_s11  ;;  %v15445_v46 = vpop.eup %15444 }
0x1274   :  { %v15447_v62 = vpop.eup %15446  ;;  %v12906_v29 = vadd.f32 1.0, %v15445_v46 }
0x1275   :  { %v12905_v5 = vadd.f32 1.0, %v15447_v62  ;;  %v15449_v31 = vpop.eup %15448 }
0x1276   :  { %15454 = vrcp.f32 %v12906_v29  ;;  %v15451_v28 = vpop.eup %15450  ;;  %v12973_v42 = vadd.f32 1.0, %v15449_v31 }
0x1277   :  { %15456 = vpow2.f32 %v14537_v58  ;;  %v12972_v17 = vadd.f32 1.0, %v15451_v28  ;;  %v15453_v47 = vpop.eup %15452  ;;  %v12983_v58 = vrot.slane %v20083_v52, 7  ;;  %v13050_v52 = vrot.slane %v20095_v50, 7 }
0x1278   :  { %15458 = vrcp.f32 %v12905_v5  ;;  %v13040_v39 = vadd.f32 1.0, %v15453_v47  ;;  %v12982_v5 = vrot.slane %v20079_v32, 7 }
0x1279   :  { %15460 = vrcp.f32 %v12973_v42 }
0x127a   :  { %15462 = vrcp.f32 %v12972_v17 }
0x127b   :  { %15464 = vrcp.f32 %v13040_v39 }
0x1283   :  { %v20208_v22 = vpop.eup %15454 }
0x1284   :  { %v15457_v8 = vpop.eup %15456  ;;  %v12920_v24 = vmul.f32 %v20208_v22, %v12916_v26 }
0x1285   :  { %v20211_v40 = vpop.eup %15458  ;;  %v13039_v38 = vadd.f32 1.0, %v15457_v8 }
0x1286   :  { %v20216_v59 = vpop.eup %15460  ;;  %v12919_v20 = vmul.f32 %v20211_v40, %v12915_v4 }
0x1287   :  { %15466 = vrcp.f32 %v13039_v38  ;;  %v20219_v63 = vpop.eup %15462  ;;  %v12987_v3 = vmul.f32 %v20216_v59, %v12983_v58 }
0x1288   :  { %v20224_v54 = vpop.eup %15464  ;;  %v12986_v28 = vmul.f32 %v20219_v63, %v12982_v5 }
0x1294   :  { %v20227_v49 = vpop.eup %15466 }
0x12d3   :  { %v12926_v43 = vpop.permute.xlu0 %12925 }
0x12d4   :  { %v12930_v55 = vmul.f32 %v20208_v22, %v12926_v43  ;;  %v13054_v43 = vmul.f32 %v20224_v54, %v13050_v52 }
0x12d5   :  { %v12924_v7 = vpop.permute.xlu1 %12923 }
0x12d6   :  { %12935 = vrot.lane.b32.xlu0 %v12930_v55, %s15621_s3  ;;  %v12929_v2 = vmul.f32 %v20211_v40, %v12924_v7  ;;  %v13049_v55 = vrot.slane %v20090_v6, 7 }
0x12d8   :  { %12933 = vrot.lane.b32.xlu1 %v12929_v2, %s15621_s3  ;;  %v13053_v7 = vmul.f32 %v20227_v49, %v13049_v55 }
0x12db   :  { %v12993_v44 = vpop.permute.xlu0 %12992 }
0x12dc   :  { %v12997_v60 = vmul.f32 %v20216_v59, %v12993_v44 }
0x12dd   :  { %v12991_v18 = vpop.permute.xlu1 %12990 }
0x12de   :  { %13002 = vrot.lane.b32.xlu0 %v12997_v60, %s15621_s3  ;;  %v12996_v25 = vmul.f32 %v20219_v63, %v12991_v18 }
0x12e0   :  { %13000 = vrot.lane.b32.xlu1 %v12996_v25, %s15621_s3 }
0x12e3   :  { %v13060_v30 = vpop.permute.xlu0 %13059 }
0x12e4   :  { %v13064_v45 = vmul.f32 %v20224_v54, %v13060_v30 }
0x12e5   :  { %v13058_v0 = vpop.permute.xlu1 %13057 }
0x12e6   :  { %13069 = vrot.lane.b32.xlu0 %v13064_v45, %s15621_s3  ;;  %v13063_v48 = vmul.f32 %v20227_v49, %v13058_v0 }
0x12e8   :  { %13067 = vrot.lane.b32.xlu1 %v13063_v48, %s15621_s3 }
0x1348   :  { %v12936_v61 = vpop.permute.xlu0 %12935 }
0x1349   :  { %v20235_v46 = vadd.f32 %v12936_v61, %v12920_v24 }
0x134a   :  { %v12934_v62 = vpop.permute.xlu1 %12933 }
0x134b   :  { %15468 = vtanh.f32 %v20235_v46  ;;  %v20239_v29 = vadd.f32 %v12934_v62, %v12919_v20 }
0x134d   :  { %15470 = vtanh.f32 %v20239_v29 }
0x1350   :  { %v13003_v31 = vpop.permute.xlu0 %13002 }
0x1351   :  { %v20245_v1 = vadd.f32 %v13003_v31, %v12987_v3 }
0x1352   :  { %v13001_v42 = vpop.permute.xlu1 %13000 }
0x1353   :  { %15472 = vtanh.f32 %v20245_v1  ;;  %v20249_v17 = vadd.f32 %v13001_v42, %v12986_v28 }
0x1355   :  { %15474 = vtanh.f32 %v20249_v17 }
0x1358   :  { %v15469_v47 = vpop.eup %15468  ;;  %v13070_v8 = vpop.permute.xlu0 %13069 }
0x1359   :  { %12947 = vrot.lane.b32.xlu0 %v15469_v47, %s15623_s11  ;;  %v20256_v39 = vadd.f32 %v13070_v8, %v13054_v43  ;;  %v20329_v43 = vcombine.high %v20021_v51, %v20021_v51 }
0x135a   :  { %v15471_v32 = vpop.eup %15470  ;;  %v13068_v2 = vpop.permute.xlu1 %13067 }
0x135b   :  { %12945 = vrot.lane.b32.xlu1 %v15471_v32, %s15623_s11  ;;  %15476 = vtanh.f32 %v20256_v39  ;;  %v20261_v38 = vadd.f32 %v13068_v2, %v13053_v7 }
0x135d   :  { %15478 = vtanh.f32 %v20261_v38 }
0x1360   :  { %v15473_v50 = vpop.eup %15472 }
0x1361   :  { %13014 = vrot.lane.b32.xlu0 %v15473_v50, %s15623_s11 }
0x1362   :  { %v15475_v44 = vpop.eup %15474 }
0x1363   :  { %13012 = vrot.lane.b32.xlu1 %v15475_v44, %s15623_s11 }
0x1368   :  { %v15477_v6 = vpop.eup %15476 }
0x1369   :  { %13081 = vrot.lane.b32.xlu0 %v15477_v6, %s15623_s11  ;;  %v20337_v6 = vcombine.high %v20033_v33, %v20033_v33 }
0x136a   :  { %v15479_v60 = vpop.eup %15478 }
0x136b   :  { %13079 = vrot.lane.b32.xlu1 %v15479_v60, %s15623_s11 }
0x13cb   :  { %v12948_v18 = vpop.permute.xlu0 %12947 }
0x13cc   :  { %v12952_v25 = vmul.f32 %v20208_v22, %v12948_v18 }
0x13cd   :  { %v12946_v30 = vpop.permute.xlu1 %12945 }
0x13ce   :  { %v12951_v45 = vmul.f32 %v20211_v40, %v12946_v30  ;;  %v13096_v0 = vrot.slane %v12952_v25, %v19930_v11 }
0x13d0   :  { %v13092_v48 = vrot.slane %v12951_v45, %v19930_v11 }
0x13d2   :  { %v13097_v24 = vsel %vm2598_vm8, %v13096_v0, %v13092_v48 }
0x13d3   :  { %v13015_v26 = vpop.permute.xlu0 %13014  ;;  %13098 = vrot.lane.b32.xlu1 %v13097_v24, %s15621_s3 }
0x13d4   :  { %v13019_v4 = vmul.f32 %v20216_v59, %v13015_v26 }
0x13d5   :  { %v13013_v61 = vpop.permute.xlu1 %13012 }
0x13d6   :  { %v13018_v20 = vmul.f32 %v20219_v63, %v13013_v61  ;;  %v13181_v62 = vrot.slane %v13019_v4, %v19930_v11 }
0x13d8   :  { %v13177_v22 = vrot.slane %v13018_v20, %v19930_v11 }
0x13da   :  { %v13182_v40 = vsel %vm2598_vm8, %v13181_v62, %v13177_v22 }
0x13db   :  { %13183 = vrot.lane.b32.xlu0 %v13182_v40, %s15621_s3  ;;  %v13082_v58 = vpop.permute.xlu0 %13081 }
0x13dc   :  { %v13086_v3 = vmul.f32 %v20224_v54, %v13082_v58 }
0x13dd   :  { %v13080_v5 = vpop.permute.xlu1 %13079 }
0x13de   :  { %v13085_v31 = vmul.f32 %v20227_v49, %v13080_v5  ;;  %v13266_v28 = vrot.slane %v13086_v3, %v19930_v11 }
0x13e0   :  { %v13262_v59 = vrot.slane %v13085_v31, %v19930_v11 }
0x13e2   :  { %v13267_v63 = vsel %vm2598_vm8, %v13266_v28, %v13262_v59 }
0x13e3   :  { %13268 = vrot.lane.b32.xlu1 %v13267_v63, %s15621_s3 }
0x1445   :  { %v13099_v42 = vpop.permute.xlu1 %13098 }
0x1446   :  { %15181 = vmatmul.mubr.msk.f32.vlgmr.msra.gmra.mxu1 %vm20846_vm14, %v13099_v42 }
0x1447   :  { %15195 = vmatpush3.msra.mxu1 %v20124_v27  ;;  %15202 = vmatprep.mubr.msk.f32.mxu1 %vm15618_vm3, %v20640_v10 }
0x1448   :  { %15196 = vmatprep.subr.mxu1 %v20640_v10 }
0x1449   :  { %15197 = vmatpush3.msra.mxu1 %v20133_v15 }
0x144a   :  { %15198 = vmatprep.subr.mxu1 %v20640_v10 }
0x144b   :  { %15199 = vmatpush3.msra.mxu1 %v20140_v14 }
0x144c   :  { %15200 = vmatprep.subr.mxu1 %v20640_v10 }
0x144d   :  { %v13184_v54 = vpop.permute.xlu0 %13183  ;;  %15201 = vmatpush3.msra.mxu1 %v20147_v34 }
0x144e   :  { %15192 = vmatmul.mubr.msk.f32.vlgmr.msra.gmra.mxu0 %vm20847_vm1, %v13184_v54  ;;  %15216 = vmatprep.subr.mxu1 %v20640_v10 }
0x144f   :  { %15206 = vmatpush3.msra.mxu0 %v19965_v41  ;;  %15213 = vmatprep.mubr.msk.f32.mxu0 %vm15618_vm3, %v20640_v10 }
0x1450   :  { %15207 = vmatprep.subr.mxu0 %v20640_v10 }
0x1451   :  { %15208 = vmatpush3.msra.mxu0 %v19974_v57 }
0x1452   :  { %15209 = vmatprep.subr.mxu0 %v20640_v10 }
0x1453   :  { %15210 = vmatpush3.msra.mxu0 %v19981_v56 }
0x1454   :  { %15211 = vmatprep.subr.mxu0 %v20640_v10 }
0x1455   :  { %15212 = vmatpush3.msra.mxu0 %v19988_v9  ;;  %v13269_v49 = vpop.permute.xlu1 %13268  ;;  %v20322_v9 = vcombine.high %v20010_v13, %v20010_v13 }
0x1456   :  { %15227 = vmatprep.subr.mxu0 %v20640_v10  ;;  %15203 = vmatmul.mubr.msk.f32.vlgmr.msra.gmra.mxu1 %vm20848_vm7, %v13269_v49 }
0x1457   :  { %15217 = vmatpush3.msra.mxu1 %v20166_v12  ;;  %15224 = vmatprep.mubr.msk.f32.mxu1 %vm15618_vm3, %v20640_v10 }
0x1458   :  { %15218 = vmatprep.subr.mxu1 %v20640_v10 }
0x1459   :  { %15219 = vmatpush3.msra.mxu1 %v20175_v37 }
0x145a   :  { %15220 = vmatprep.subr.mxu1 %v20640_v10 }
0x145b   :  { %15221 = vmatpush3.msra.mxu1 %v20182_v53 }
0x145c   :  { %15222 = vmatprep.subr.mxu1 %v20640_v10 }
0x145d   :  { %15223 = vmatpush3.msra.mxu1 %v20189_v21 }
0x145e   :  { %15238 = vmatprep.subr.mxu1 %v20640_v10 }
0x1506   :  { %v13168_v41 = vpop.f32.mrf.mxu1 }
0x1507   :  { %v13349_v57 = vrot.slane %v13168_v41, %v16936_v35 }
0x1508   :  { %v15182_v56 = vpop.f32.mrf.mxu1 }
0x1509   :  { %v13350_v12 = vrot.slane %v13349_v57, 1  ;;  %v13353_v37 = vadd.f32 %v13349_v57, %v19683_v16 }
0x150b   :  { %v13354_v47 = vadd.f32 %v13350_v12, %v20322_v9  ;;  %15480 = vtanh.f32 %v13353_v37  ;;  %v14542_v0 = vmul.f32 -1.442695, %v13353_v37 }
0x150d   :  { %15482 = vtanh.f32 %v13354_v47  ;;  %v14543_v48 = vmul.f32 -1.442695, %v13354_v47 }
0x150e   :  { %v13253_v53 = vpop.f32.mrf.mxu0 }
0x150f   :  { %v13418_v21 = vrot.slane %v13253_v53, %v16936_v35 }
0x1510   :  { %v15193_v52 = vpop.f32.mrf.mxu0 }
0x1511   :  { %v13419_v32 = vrot.slane %v13418_v21, 1  ;;  %v13422_v55 = vadd.f32 %v13418_v21, %v19700_v23 }
0x1513   :  { %v13423_v13 = vadd.f32 %v13419_v32, %v20329_v43  ;;  %15484 = vtanh.f32 %v13422_v55  ;;  %v14546_v26 = vmul.f32 -1.442695, %v13422_v55 }
0x1515   :  { %15486 = vtanh.f32 %v13423_v13  ;;  %v14547_v24 = vmul.f32 -1.442695, %v13423_v13 }
0x1516   :  { %v13338_v7 = vpop.f32.mrf.mxu1 }
0x1517   :  { %v13487_v2 = vrot.slane %v13338_v7, %v16936_v35 }
0x1518   :  { %v15481_v8 = vpop.eup %15480  ;;  %v15204_v44 = vpop.f32.mrf.mxu1 }
0x1519   :  { %13381 = vrot.lane.b32.xlu0 %v15481_v8, %s15623_s11  ;;  %v13488_v51 = vrot.slane %v13487_v2, 1  ;;  %v13491_v60 = vadd.f32 %v13487_v2, %v19716_v19  ;;  %v14544_v44 = vrot.slane %v20239_v29, 9 }
0x151a   :  { %v15483_v50 = vpop.eup %15482 }
0x151b   :  { %13383 = vrot.lane.b32.xlu1 %v15483_v50, %s15623_s11  ;;  %v13492_v18 = vadd.f32 %v13488_v51, %v20337_v6  ;;  %15488 = vtanh.f32 %v13491_v60  ;;  %v14550_v61 = vmul.f32 -1.442695, %v13491_v60  ;;  %v14545_v60 = vrot.slane %v20235_v46, 9 }
0x151d   :  { %15490 = vtanh.f32 %v13492_v18  ;;  %v14551_v22 = vmul.f32 -1.442695, %v13492_v18 }
0x151e   :  { %15492 = vpow2.f32 %v14542_v0  ;;  %v14548_v0 = vrot.slane %v20249_v17, 9  ;;  %v14552_v17 = vrot.slane %v20261_v38, 9 }
0x151f   :  { %15494 = vpow2.f32 %v14543_v48  ;;  %v14549_v48 = vrot.slane %v20245_v1, 9 }
0x1520   :  { %v15485_v25 = vpop.eup %15484  ;;  %15496 = vpow2.f32 %v14546_v26 }
0x1521   :  { %13450 = vrot.lane.b32.xlu0 %v15485_v25, %s15623_s11  ;;  %15498 = vpow2.f32 %v14547_v24 }
0x1522   :  { %v15487_v30 = vpop.eup %15486  ;;  %15500 = vpow2.f32 %v14550_v61 }
0x1523   :  { %13452 = vrot.lane.b32.xlu1 %v15487_v30, %s15623_s11 }
0x1528   :  { %v15489_v45 = vpop.eup %15488 }
0x1529   :  { %13519 = vrot.lane.b32.xlu0 %v15489_v45, %s15623_s11 }
0x152a   :  { %v15491_v33 = vpop.eup %15490 }
0x152b   :  { %13521 = vrot.lane.b32.xlu1 %v15491_v33, %s15623_s11  ;;  %v15493_v4 = vpop.eup %15492 }
0x152c   :  { %v15495_v20 = vpop.eup %15494  ;;  %v13361_v62 = vadd.f32 1.0, %v15493_v4 }
0x152d   :  { %v13362_v40 = vadd.f32 1.0, %v15495_v20  ;;  %v15497_v58 = vpop.eup %15496 }
0x152e   :  { %15502 = vrcp.f32 %v13361_v62  ;;  %v15499_v3 = vpop.eup %15498  ;;  %v13430_v5 = vadd.f32 1.0, %v15497_v58 }
0x152f   :  { %15504 = vpow2.f32 %v14551_v22  ;;  %v13431_v31 = vadd.f32 1.0, %v15499_v3  ;;  %v15501_v28 = vpop.eup %15500  ;;  %v14553_v22 = vrot.slane %v20256_v39, 9 }
0x1530   :  { %15506 = vrcp.f32 %v13362_v40  ;;  %v13499_v49 = vadd.f32 1.0, %v15501_v28 }
0x1531   :  { %15508 = vrcp.f32 %v13430_v5 }
0x1532   :  { %15510 = vrcp.f32 %v13431_v31 }
0x1533   :  { %15512 = vrcp.f32 %v13499_v49 }
0x153b   :  { %v20346_v59 = vpop.eup %15502 }
0x153c   :  { %v15505_v54 = vpop.eup %15504  ;;  %v13377_v51 = vmul.f32 %v20346_v59, %v14544_v44 }
0x153d   :  { %v20349_v41 = vpop.eup %15506  ;;  %v13500_v12 = vadd.f32 1.0, %v15505_v54 }
0x153e   :  { %v20354_v37 = vpop.eup %15508  ;;  %v13378_v30 = vmul.f32 %v20349_v41, %v14545_v60 }
0x153f   :  { %15514 = vrcp.f32 %v13500_v12  ;;  %v20357_v21 = vpop.eup %15510  ;;  %v13446_v29 = vmul.f32 %v20354_v37, %v14548_v0 }
0x1540   :  { %v20362_v55 = vpop.eup %15512  ;;  %v13447_v24 = vmul.f32 %v20357_v21, %v14549_v48 }
0x1541   :  { %v13515_v62 = vmul.f32 %v20362_v55, %v14552_v17 }
0x154c   :  { %v20365_v7 = vpop.eup %15514 }
0x154d   :  { %v13516_v3 = vmul.f32 %v20365_v7, %v14553_v22 }
0x158b   :  { %v13382_v63 = vpop.permute.xlu0 %13381 }
0x158c   :  { %v13387_v42 = vmul.f32 %v20346_v59, %v13382_v63 }
0x158d   :  { %v13384_v57 = vpop.permute.xlu1 %13383 }
0x158e   :  { %13391 = vrot.lane.b32.xlu0 %v13387_v42, %s15621_s3  ;;  %v13388_v56 = vmul.f32 %v20349_v41, %v13384_v57 }
0x1590   :  { %13393 = vrot.lane.b32.xlu1 %v13388_v56, %s15621_s3 }
0x1593   :  { %v13451_v47 = vpop.permute.xlu0 %13450 }
0x1594   :  { %v13456_v53 = vmul.f32 %v20354_v37, %v13451_v47 }
0x1595   :  { %v13453_v52 = vpop.permute.xlu1 %13452 }
0x1596   :  { %13460 = vrot.lane.b32.xlu0 %v13456_v53, %s15621_s3  ;;  %v13457_v32 = vmul.f32 %v20357_v21, %v13453_v52 }
0x1598   :  { %13462 = vrot.lane.b32.xlu1 %v13457_v32, %s15621_s3 }
0x159b   :  { %v13520_v13 = vpop.permute.xlu0 %13519 }
0x159c   :  { %v13525_v8 = vmul.f32 %v20362_v55, %v13520_v13 }
0x159d   :  { %v13522_v2 = vpop.permute.xlu1 %13521 }
0x159e   :  { %13529 = vrot.lane.b32.xlu0 %v13525_v8, %s15621_s3  ;;  %v13526_v50 = vmul.f32 %v20365_v7, %v13522_v2 }
0x15a0   :  { %13531 = vrot.lane.b32.xlu1 %v13526_v50, %s15621_s3 }
0x1600   :  { %v13392_v18 = vpop.permute.xlu0 %13391 }
0x1601   :  { %v20373_v25 = vadd.f32 %v13392_v18, %v13377_v51 }
0x1602   :  { %v13394_v45 = vpop.permute.xlu1 %13393 }
0x1603   :  { %15516 = vtanh.f32 %v20373_v25  ;;  %v20377_v33 = vadd.f32 %v13394_v45, %v13378_v30 }
0x1605   :  { %15518 = vtanh.f32 %v20377_v33 }
0x1608   :  { %v13461_v26 = vpop.permute.xlu0 %13460 }
0x1609   :  { %v20383_v46 = vadd.f32 %v13461_v26, %v13446_v29 }
0x160a   :  { %v13463_v4 = vpop.permute.xlu1 %13462 }
0x160b   :  { %15520 = vtanh.f32 %v20383_v46  ;;  %v20387_v61 = vadd.f32 %v13463_v4, %v13447_v24 }
0x160d   :  { %15522 = vtanh.f32 %v20387_v61 }
0x1610   :  { %v15517_v20 = vpop.eup %15516  ;;  %v13530_v40 = vpop.permute.xlu0 %13529 }
0x1611   :  { %13403 = vrot.lane.b32.xlu0 %v15517_v20, %s15623_s11  ;;  %v20394_v58 = vadd.f32 %v13530_v40, %v13515_v62 }
0x1612   :  { %v15519_v1 = vpop.eup %15518  ;;  %v13532_v5 = vpop.permute.xlu1 %13531 }
0x1613   :  { %13405 = vrot.lane.b32.xlu1 %v15519_v1, %s15623_s11  ;;  %15524 = vtanh.f32 %v20394_v58  ;;  %v20399_v31 = vadd.f32 %v13532_v5, %v13516_v3 }
0x1615   :  { %15526 = vtanh.f32 %v20399_v31 }
0x1618   :  { %v15521_v38 = vpop.eup %15520 }
0x1619   :  { %13472 = vrot.lane.b32.xlu0 %v15521_v38, %s15623_s11 }
0x161a   :  { %v15523_v28 = vpop.eup %15522 }
0x161b   :  { %13474 = vrot.lane.b32.xlu1 %v15523_v28, %s15623_s11 }
0x1620   :  { %v15525_v39 = vpop.eup %15524 }
0x1621   :  { %13541 = vrot.lane.b32.xlu0 %v15525_v39, %s15623_s11 }
0x1622   :  { %v15527_v63 = vpop.eup %15526 }
0x1623   :  { %13543 = vrot.lane.b32.xlu1 %v15527_v63, %s15623_s11 }
0x1683   :  { %v13404_v42 = vpop.permute.xlu0 %13403 }
0x1684   :  { %v13409_v54 = vmul.f32 %v20346_v59, %v13404_v42 }
0x1685   :  { %v13406_v49 = vpop.permute.xlu1 %13405 }
0x1686   :  { %v13410_v57 = vmul.f32 %v20349_v41, %v13406_v49  ;;  %v13554_v56 = vrot.slane %v13409_v54, %v19801_v36 }
0x1688   :  { %v13558_v12 = vrot.slane %v13410_v57, %v19801_v36 }
0x168a   :  { %v13559_v53 = vsel %vm2598_vm8, %v13558_v12, %v13554_v56 }
0x168b   :  { %v13473_v47 = vpop.permute.xlu0 %13472  ;;  %13560 = vrot.lane.b32.xlu0 %v13559_v53, %s15621_s3 }
0x168c   :  { %v13478_v52 = vmul.f32 %v20354_v37, %v13473_v47 }
0x168d   :  { %v13475_v32 = vpop.permute.xlu1 %13474 }
0x168e   :  { %v13479_v13 = vmul.f32 %v20357_v21, %v13475_v32  ;;  %v13639_v8 = vrot.slane %v13478_v52, %v19801_v36 }
0x1690   :  { %v13643_v59 = vrot.slane %v13479_v13, %v19801_v36 }
0x1692   :  { %v13644_v41 = vsel %vm2598_vm8, %v13643_v59, %v13639_v8 }
0x1693   :  { %13645 = vrot.lane.b32.xlu1 %v13644_v41, %s15621_s3  ;;  %v13542_v2 = vpop.permute.xlu0 %13541 }
0x1694   :  { %v13547_v50 = vmul.f32 %v20362_v55, %v13542_v2 }
0x1695   :  { %v13544_v44 = vpop.permute.xlu1 %13543 }
0x1696   :  { %v13548_v51 = vmul.f32 %v20365_v7, %v13544_v44  ;;  %v13724_v60 = vrot.slane %v13547_v50, %v19801_v36 }
0x1698   :  { %v13728_v37 = vrot.slane %v13548_v51, %v19801_v36 }
0x169a   :  { %v13729_v21 = vsel %vm2598_vm8, %v13728_v37, %v13724_v60  ;;  %vm20850_vm8 = vmmov %vm20839_vm0 }
0x169b   :  { %13730 = vrot.lane.b32.xlu0 %v13729_v21, %s15621_s3 }
0x16fd   :  { %v13561_v18 = vpop.permute.xlu0 %13560 }
0x16fe   :  { %15214 = vmatmul.mubr.msk.f32.vlgmr.msra.gmra.mxu0 %vm20849_vm6, %v13561_v18 }
0x16ff   :  { %15228 = vmatpush3.msra.mxu0 %v20124_v27  ;;  %15235 = vmatprep.mubr.msk.f32.mxu0 %vm15618_vm3, %v20640_v10 }
0x1700   :  { %15229 = vmatprep.subr.mxu0 %v20640_v10 }
0x1701   :  { %15230 = vmatpush3.msra.mxu0 %v20133_v15 }
0x1702   :  { %15231 = vmatprep.subr.mxu0 %v20640_v10 }
0x1703   :  { %15232 = vmatpush3.msra.mxu0 %v20140_v14 }
0x1704   :  { %15233 = vmatprep.subr.mxu0 %v20640_v10 }
0x1705   :  { %v13646_v36 = vpop.permute.xlu1 %13645  ;;  %15234 = vmatpush3.msra.mxu0 %v20147_v34 }
0x1706   :  { %15225 = vmatmul.mubr.msk.f32.vlgmr.msra.gmra.mxu1 %vm20850_vm8, %v13646_v36  ;;  %15265 = vmatprep.subr.mxu0 %v20640_v10 }
0x1707   :  { %15262 = vmatprep.mubr.msk.f32.mxu1 %vm15618_vm3, %v20640_v10 }
0x170d   :  { %v13731_v27 = vpop.permute.xlu0 %13730 }
0x170e   :  { %15236 = vmatmul.mubr.msk.f32.vlgmr.msra.gmra.mxu0 %vm20851_vm2, %v13731_v27 }
0x170f   :  { %15269 = vmatprep.mubr.msk.f32.mxu0 %vm15618_vm3, %v20640_v10 }
0x17be   :  { %v13630_v15 = vpop.f32.mrf.mxu0 }
0x17bf   :  { %v13811_v14 = vrot.slane %v13630_v15, %v16936_v35 }
0x17c0   :  { %v15215_v55 = vpop.f32.mrf.mxu0 }
0x17c1   :  { %v13812_v7 = vrot.slane %v13811_v14, 7  ;;  %v13816_v34 = vadd.f32 %v13811_v14, %v20322_v9 }
0x17c3   :  { %v13815_v30 = vadd.f32 %v13812_v7, %v19683_v16  ;;  %15528 = vtanh.f32 %v13816_v34  ;;  %v14558_v3 = vmul.f32 -1.442695, %v13816_v34  ;;  %v13834_v34 = vrot.slane %v20377_v33, 7 }
0x17c5   :  { %15530 = vtanh.f32 %v13815_v30 }
0x17c6   :  { %v13715_v45 = vpop.f32.mrf.mxu1 }
0x17c7   :  { %v13878_v0 = vrot.slane %v13715_v45, %v16936_v35  ;;  %v13833_v45 = vrot.slane %v20373_v25, 7 }
0x17c8   :  { %v15226_v29 = vpop.f32.mrf.mxu1 }
0x17c9   :  { %v13879_v48 = vrot.slane %v13878_v0, 7  ;;  %v13883_v26 = vadd.f32 %v13878_v0, %v20329_v43 }
0x17cb   :  { %v13882_v24 = vadd.f32 %v13879_v48, %v19700_v23  ;;  %15532 = vtanh.f32 %v13883_v26  ;;  %v14560_v5 = vmul.f32 -1.442695, %v13883_v26 }
0x17cd   :  { %15534 = vtanh.f32 %v13882_v24 }
0x17ce   :  { %v13800_v20 = vpop.f32.mrf.mxu0 }
0x17cf   :  { %v13945_v9 = vrot.slane %v13800_v20, %v16936_v35 }
0x17d0   :  { %v15529_v4 = vpop.eup %15528  ;;  %v15237_v17 = vpop.f32.mrf.mxu0 }
0x17d1   :  { %13843 = vrot.lane.b32.xlu0 %v15529_v4, %s15623_s11  ;;  %v13946_v62 = vrot.slane %v13945_v9, 7  ;;  %v13950_v1 = vadd.f32 %v13945_v9, %v20337_v6  ;;  %v14557_v6 = vmul.f32 -1.442695, %v13815_v30  ;;  %v13901_v4 = vrot.slane %v20387_v61, 7 }
0x17d2   :  { %v15531_v16 = vpop.eup %15530  ;;  %v13900_v9 = vrot.slane %v20383_v46, 7 }
0x17d3   :  { %13841 = vrot.lane.b32.xlu1 %v15531_v16, %s15623_s11  ;;  %v13949_v22 = vadd.f32 %v13946_v62, %v19716_v19  ;;  %15536 = vtanh.f32 %v13950_v1  ;;  %v14559_v19 = vmul.f32 -1.442695, %v13882_v24  ;;  %v14562_v28 = vmul.f32 -1.442695, %v13950_v1 }
0x17d5   :  { %15538 = vtanh.f32 %v13949_v22  ;;  %v14561_v42 = vmul.f32 -1.442695, %v13949_v22  ;;  %v13968_v22 = vrot.slane %v20399_v31, 7 }
0x17d6   :  { %15540 = vpow2.f32 %v14558_v3 }
0x17d7   :  { %15542 = vpow2.f32 %v14557_v6 }
0x17d8   :  { %v15533_v43 = vpop.eup %15532  ;;  %15544 = vpow2.f32 %v14560_v5 }
0x17d9   :  { %13910 = vrot.lane.b32.xlu0 %v15533_v43, %s15623_s11  ;;  %15546 = vpow2.f32 %v14559_v19  ;;  %v14060_v19 = vld [vmem:[%s20604_s14 + $0x50] sm:$0xff] }
0x17da   :  { %v15535_v23 = vpop.eup %15534  ;;  %15548 = vpow2.f32 %v14562_v28 }
0x17db   :  { %13908 = vrot.lane.b32.xlu1 %v15535_v23, %s15623_s11  ;;  %v13967_v23 = vrot.slane %v20394_v58, 7  ;;  %v14061_v58 = vld [vmem:[%s20604_s14 + $0x58] sm:$0xff] }
0x17dc   :  { %15239 = vmatpush3.msra.mxu1 %v14061_v58 }
0x17dd   :  { %15240 = vmatprep.subr.mxu1 %v20640_v10 }
0x17de   :  { %15241 = vmatpush3.msra.mxu1 %v14060_v19 }
0x17df   :  { %15242 = vmatprep.subr.mxu1 %v20640_v10 }
0x17e0   :  { %v15537_v40 = vpop.eup %15536 }
0x17e1   :  { %13977 = vrot.lane.b32.xlu0 %v15537_v40, %s15623_s11 }
0x17e2   :  { %v15539_v35 = vpop.eup %15538 }
0x17e3   :  { %13975 = vrot.lane.b32.xlu1 %v15539_v35, %s15623_s11  ;;  %v15541_v38 = vpop.eup %15540 }
0x17e4   :  { %v15543_v39 = vpop.eup %15542  ;;  %v13824_v63 = vadd.f32 1.0, %v15541_v38 }
0x17e5   :  { %v13823_v54 = vadd.f32 1.0, %v15543_v39  ;;  %v15545_v49 = vpop.eup %15544  ;;  %v14059_v39 = vld [vmem:[%s20604_s14 + $0x48] sm:$0xff] }
0x17e6   :  { %15550 = vrcp.f32 %v13824_v63  ;;  %v15547_v57 = vpop.eup %15546  ;;  %v13891_v56 = vadd.f32 1.0, %v15545_v49  ;;  %v14058_v63 = vld [vmem:[%s20604_s14 + $0x40] sm:$0xff]  ;;  %15243 = vmatpush3.msra.mxu1 %v14059_v39 }
0x17e7   :  { %15552 = vpow2.f32 %v14561_v42  ;;  %v13890_v12 = vadd.f32 1.0, %v15547_v57  ;;  %v15549_v47 = vpop.eup %15548  ;;  %15244 = vmatprep.subr.mxu1 %v20640_v10  ;;  %v14057_v42 = vld [vmem:[%s20604_s14 + $0x38] sm:$0xff] }
0x17e8   :  { %15554 = vrcp.f32 %v13823_v54  ;;  %v13958_v8 = vadd.f32 1.0, %v15549_v47  ;;  %15245 = vmatpush3.msra.mxu1 %v14058_v63  ;;  %v14056_v54 = vld [vmem:[%s20604_s14 + $0x30] sm:$0xff]  ;;  %v14055_v47 = vld [vmem:[%s20604_s14 + $0x28] sm:$0xff] }
0x17e9   :  { %15556 = vrcp.f32 %v13891_v56  ;;  %15246 = vmatprep.subr.mxu1 %v20640_v10 }
0x17ea   :  { %15558 = vrcp.f32 %v13890_v12  ;;  %15247 = vmatpush3.msra.mxu1 %v14057_v42 }
0x17eb   :  { %15560 = vrcp.f32 %v13958_v8  ;;  %15248 = vmatprep.subr.mxu1 %v20640_v10 }
0x17ec   :  { %15249 = vmatpush3.msra.mxu1 %v14056_v54 }
0x17ed   :  { %15250 = vmatprep.subr.mxu1 %v20640_v10 }
0x17ee   :  { %15251 = vmatpush3.msra.mxu1 %v14055_v47 }
0x17ef   :  { %15252 = vmatprep.subr.mxu1 %v20640_v10 }
0x17f3   :  { %v20456_v53 = vpop.eup %15550 }
0x17f4   :  { %v15553_v13 = vpop.eup %15552  ;;  %v13838_v30 = vmul.f32 %v20456_v53, %v13834_v34 }
0x17f5   :  { %v20459_v59 = vpop.eup %15554  ;;  %v13957_v50 = vadd.f32 1.0, %v15553_v13 }
0x17f6   :  { %v20464_v44 = vpop.eup %15556  ;;  %v13837_v48 = vmul.f32 %v20459_v59, %v13833_v45 }
0x17f7   :  { %15562 = vrcp.f32 %v13957_v50  ;;  %v20467_v37 = vpop.eup %15558  ;;  %v13905_v20 = vmul.f32 %v20464_v44, %v13901_v4  ;;  %v14563_v4 = vld [vmem:[%s20605_s15] ss:$0 sm:$0xff] }
0x17f8   :  { %v20472_v36 = vpop.eup %15560  ;;  %v13904_v17 = vmul.f32 %v20467_v37, %v13900_v9 }
0x17f9   :  { %v13972_v61 = vmul.f32 %v20472_v36, %v13968_v22 }
0x1804   :  { %v20475_v14 = vpop.eup %15562 }
0x1805   :  { %v13971_v35 = vmul.f32 %v20475_v14, %v13967_v23 }
0x1843   :  { %v13844_v52 = vpop.permute.xlu0 %13843 }
0x1844   :  { %v13848_v32 = vmul.f32 %v20456_v53, %v13844_v52  ;;  %v14054_v52 = vld [vmem:[%s20604_s14 + $0x20] sm:$0xff] }
0x1845   :  { %v13842_v41 = vpop.permute.xlu1 %13841  ;;  %15253 = vmatpush3.msra.mxu1 %v14054_v52 }
0x1846   :  { %13853 = vrot.lane.b32.xlu0 %v13848_v32, %s15621_s3  ;;  %v13847_v2 = vmul.f32 %v20459_v59, %v13842_v41  ;;  %15254 = vmatprep.subr.mxu1 %v20640_v10  ;;  %v14052_v41 = vld [vmem:[%s20604_s14 + $0x10] sm:$0xff] }
0x1848   :  { %13851 = vrot.lane.b32.xlu1 %v13847_v2, %s15621_s3 }
0x184b   :  { %v13911_v51 = vpop.permute.xlu0 %13910 }
0x184c   :  { %v13915_v60 = vmul.f32 %v20464_v44, %v13911_v51 }
0x184d   :  { %v13909_v21 = vpop.permute.xlu1 %13908 }
0x184e   :  { %13920 = vrot.lane.b32.xlu0 %v13915_v60, %s15621_s3  ;;  %v13914_v18 = vmul.f32 %v20467_v37, %v13909_v21 }
0x1850   :  { %13918 = vrot.lane.b32.xlu1 %v13914_v18, %s15621_s3 }
0x1853   :  { %v13978_v27 = vpop.permute.xlu0 %13977 }
0x1854   :  { %v13982_v15 = vmul.f32 %v20472_v36, %v13978_v27  ;;  %v14051_v27 = vld [vmem:[%s20604_s14 + $0x8] sm:$0xff] }
0x1855   :  { %v13976_v55 = vpop.permute.xlu1 %13975 }
0x1856   :  { %13987 = vrot.lane.b32.xlu0 %v13982_v15, %s15621_s3  ;;  %v13981_v7 = vmul.f32 %v20475_v14, %v13976_v55 }
0x1858   :  { %13985 = vrot.lane.b32.xlu1 %v13981_v7, %s15621_s3 }
0x18b8   :  { %v13854_v0 = vpop.permute.xlu0 %13853 }
0x18b9   :  { %v13858_v29 = vadd.f32 %v13854_v0, %v13838_v30 }
0x18ba   :  { %v13852_v26 = vpop.permute.xlu1 %13851 }
0x18bb   :  { %15564 = vtanh.f32 %v13858_v29  ;;  %v13857_v24 = vadd.f32 %v13852_v26, %v13837_v48 }
0x18bd   :  { %15566 = vtanh.f32 %v13857_v24 }
0x18c0   :  { %v13921_v16 = vpop.permute.xlu0 %13920 }
0x18c1   :  { %v13925_v33 = vadd.f32 %v13921_v16, %v13905_v20 }
0x18c2   :  { %v13919_v25 = vpop.permute.xlu1 %13918 }
0x18c3   :  { %15568 = vtanh.f32 %v13925_v33  ;;  %v13924_v62 = vadd.f32 %v13919_v25, %v13904_v17  ;;  %v14228_v17 = vld [vmem:[%s20608_s18] sm:$0xff]  ;;  %s15593_s18 = scalar_lea.vmem %s14318_s26, 32 }
0x18c4   :  { %v14565_v25 = vld [vmem:[%s20607_s17] ss:$0 sm:$0xff]  ;;  %p15594_p0 = scmp.ne.s32.totalorder %s14318_s26, %s15593_s18  ;;  %p15599_p2 = scmp.lt.s32.totalorder %s15593_s18, %s15593_s18 }
0x18c5   :  { %15570 = vtanh.f32 %v13924_v62 }
0x18c6   :  { %p15600_p3 = por %p15599_p2, %p15598_p1 }
0x18c8   :  { %v15565_v1 = vpop.eup %15564  ;;  %v13988_v40 = vpop.permute.xlu0 %13987  ;;  %p15601_p4 = pnand %p15600_p3, %p15594_p0 }
0x18c9   :  { %13865 = vrot.lane.b32.xlu0 %v15565_v1, %s15623_s11  ;;  %v13992_v46 = vadd.f32 %v13988_v40, %v13972_v61 }
0x18ca   :  { %v15567_v43 = vpop.eup %15566  ;;  %v13986_v3 = vpop.permute.xlu1 %13985 }
0x18cb   :  { %13863 = vrot.lane.b32.xlu1 %v15567_v43, %s15623_s11  ;;  %15572 = vtanh.f32 %v13992_v46  ;;  %v13991_v6 = vadd.f32 %v13986_v3, %v13971_v35  ;;  %v14567_v43 = vld [vmem:[%s20609_s19] ss:$0 sm:$0xff] }
0x18cd   :  { %15574 = vtanh.f32 %v13991_v6 }
0x18d0   :  { %v15569_v5 = vpop.eup %15568 }
0x18d1   :  { %13932 = vrot.lane.b32.xlu0 %v15569_v5, %s15623_s11 }
0x18d2   :  { %v15571_v31 = vpop.eup %15570 }
0x18d3   :  { %13930 = vrot.lane.b32.xlu1 %v15571_v31, %s15623_s11 }
0x18d8   :  { %v15573_v38 = vpop.eup %15572 }
0x18d9   :  { %13999 = vrot.lane.b32.xlu0 %v15573_v38, %s15623_s11 }
0x18da   :  { %v15575_v28 = vpop.eup %15574 }
0x18db   :  { %13997 = vrot.lane.b32.xlu1 %v15575_v28, %s15623_s11 }
0x193b   :  { %v13866_v49 = vpop.permute.xlu0 %13865 }
0x193c   :  { %v13870_v57 = vmul.f32 %v20456_v53, %v13866_v49  ;;  %v14053_v53 = vld [vmem:[%s20604_s14 + $0x18] sm:$0xff] }
0x193d   :  { %v13864_v56 = vpop.permute.xlu1 %13863  ;;  %15255 = vmatpush3.msra.mxu1 %v14053_v53 }
0x193e   :  { %v13869_v12 = vmul.f32 %v20459_v59, %v13864_v56  ;;  %v14014_v32 = vrot.slane %v13870_v57, %v19930_v11  ;;  %15256 = vmatprep.subr.mxu1 %v20640_v10 }
0x193f   :  { %15257 = vmatpush3.msra.mxu1 %v14052_v41 }
0x1940   :  { %v14010_v13 = vrot.slane %v13869_v12, %v19930_v11  ;;  %15258 = vmatprep.subr.mxu1 %v20640_v10 }
0x1941   :  { %15259 = vmatpush3.msra.mxu1 %v14051_v27 }
0x1942   :  { %v14015_v59 = vsel %vm2600_vm9, %v14014_v32, %v14010_v13  ;;  %15260 = vmatprep.subr.mxu1 %v20640_v10 }
0x1943   :  { %v13933_v8 = vpop.permute.xlu0 %13932  ;;  %14016 = vrot.lane.b32.xlu1 %v14015_v59, %s15621_s3 }
0x1944   :  { %v13937_v2 = vmul.f32 %v20464_v44, %v13933_v8  ;;  %v14050_v44 = vld [vmem:[%s20604_s14] sm:$0xff] }
0x1945   :  { %v13931_v50 = vpop.permute.xlu1 %13930  ;;  %15261 = vmatpush3.msra.mxu1 %v14050_v44 }
0x1946   :  { %v13936_v51 = vmul.f32 %v20467_v37, %v13931_v50  ;;  %v14028_v60 = vrot.slane %v13937_v2, %v19930_v11 }
0x1948   :  { %v14024_v21 = vrot.slane %v13936_v51, %v19930_v11 }
0x194a   :  { %v14029_v18 = vsel %vm2600_vm9, %v14028_v60, %v14024_v21 }
0x194b   :  { %14030 = vrot.lane.b32.xlu0 %v14029_v18, %s15623_s11  ;;  %v14000_v37 = vpop.permute.xlu0 %13999 }
0x194c   :  { %v14004_v15 = vmul.f32 %v20472_v36, %v14000_v37 }
0x194d   :  { %v13998_v55 = vpop.permute.xlu1 %13997 }
0x194e   :  { %v14003_v7 = vmul.f32 %v20475_v14, %v13998_v55  ;;  %v14042_v34 = vrot.slane %v14004_v15, %v19930_v11  ;;  %v14146_v14 = vld [vmem:[%s20606_s16 + $0x8] sm:$0xff] }
0x194f   :  { %15266 = vmatpush3.msra.mxu0 %v14146_v14 }
0x1950   :  { %v14038_v30 = vrot.slane %v14003_v7, %v19930_v11  ;;  %v14145_v11 = vld [vmem:[%s20606_s16] sm:$0xff]  ;;  %15267 = vmatprep.subr.mxu0 %v20640_v10 }
0x1951   :  { %15268 = vmatpush3.msra.mxu0 %v14145_v11 }
0x1952   :  { %v14043_v45 = vsel %vm2600_vm9, %v14042_v34, %v14038_v30  ;;  %15272 = vmatprep.subr.mxu0 %v20640_v10 }
0x1953   :  { %14044 = vrot.lane.b32.xlu1 %v14043_v45, %s15624_s6 }
0x19b5   :  { %v14017_v0 = vpop.permute.xlu1 %14016 }
0x19bd   :  { %v14031_v29 = vpop.permute.xlu0 %14030 }
0x19be   :  { %v14047_v48 = vsel %vm20839_vm0, %v14017_v0, %v14031_v29 }
0x19c5   :  { %v14045_v26 = vpop.permute.xlu1 %14044 }
0x19c6   :  { %v14049_v24 = vsel %vm14048_vm4, %v14047_v48, %v14045_v26 }
0x19c7   :  { %v14070_v36 = vrot.slane %v14049_v24, 1 }
0x19c9   :  { %15263 = vmatmul.mubr.msk.f32.vlgmr.msra.gmra.mxu1 %vm14071_vm11, %v14070_v36 }
0x1a89   :  { %v14140_v20 = vpop.f32.mrf.mxu1 }
0x1a8a   :  { %v14141_v9 = vadd.f32 %v14563_v4, %v14140_v20 }
0x1a8b   :  { %v15264_v16 = vpop.f32.mrf.mxu1 }
0x1a8c   :  { %v14144_v33 = vmax.f32 %v14141_v9, 0.0 }
0x1a8e   :  { %15270 = vmatmul.mubr.msk.f32.vlgmr.msra.gmra.mxu0 %vm2741_vm15, %v14144_v33 }
0x1a8f   :  { %15274 = vmatprep.mubr.msk.f32.mxu0 %vm15618_vm3, %v20640_v10  ;;  %15273 = vmatpush3.msra.mxu0 %v14228_v17  ;;  %vm14309_vm3 = vcmask 17408  }
0x1b4e   :  { %v14223_v62 = vpop.f32.mrf.mxu0 }
0x1b4f   :  { %v14224_v1 = vadd.f32 %v14565_v25, %v14223_v62 }
0x1b50   :  { %v15271_v22 = vpop.f32.mrf.mxu0 }
0x1b51   :  { %v14227_v61 = vmax.f32 %v14224_v1, 0.0 }
0x1b53   :  { %15275 = vmatmul.mubr.msk.f32.vlgmr.msra.gmra.mxu0 %vm273_vm5, %v14227_v61 }
0x1c13   :  { %v14305_v10 = vpop.f32.mrf.mxu0 }
0x1c14   :  { %v14306_v23 = vadd.f32 %v14567_v43, %v14305_v10 }
0x1c15   :  { %v15276_v40 = vpop.f32.mrf.mxu0 }
0x1c16   :  { %14310 = vst.msk [vmem:[#allocation2] sm:$0x3] %vm14309_vm3, %v14306_v23 }
0x1c17   :  { %15604 = shalt.err (!%p15601_p4)
}
0x1c18   :  { %14320 = dma.vmem_to_hbm [thread:$0]  %s14318_s26, 32, %s20610_s20, [#allocation3]  }
0x1c19   :  { %15613 = dma.done.wait [#allocation3], 32  }
0x1c1a   :  { %15614 = vsyncadd [#allocation3], 4294967264 }
0x1c1b   :  { %14324 = vsyncpa [#allocation3], 1 }

</bundles_post_ra>
